<compile_context>
chip_gen: v7x
topology: tpu7x:2x2x1
jax: 0.10.0
libtpu: 0.0.40
codegen_flags: <defaults>
</compile_context>

<pallas_src>
import jax
import jax.numpy as jnp
from jax.experimental import pallas as pl
from jax.experimental.pallas import tpu as pltpu


def _const_index_map(ndim):
    def idx(b):
        return (0,) * ndim
    return idx


def _round_up(x, m):
    return ((x + m - 1) // m) * m


def _make_kernel(Bt, L, D, Dp, H, hdp, fs, eps=1e-5, slope=0.1):
    Mt = Bt * L
    Hd = H * hdp
    pad = (fs - 1) // 2
    f32 = jnp.float32

    def kernel(x_ref, wqkv_ref, bqkv_ref, wo_ref, bo_ref,
               g1_ref, be1_ref, w1_ref, b1_ref, w2_ref, b2_ref,
               g2_ref, be2_ref, wc_ref, bc_ref, out_ref):
        # (Bt, L, Dp) -> (Bt*L, Dp): L == 8 is the f32 sublane tile, so this
        # merge is layout-free and gives the MXU an M = Bt*L row tile.
        x2 = x_ref[...].reshape(Mt, Dp)

        lane = jax.lax.broadcasted_iota(jnp.int32, (1, Dp), 1)
        real = lane < D                       # mask of the D real channels

        def layernorm(a, g, b):
            # padded lanes of `a` are exactly zero, so the plain lane sum is
            # already the sum over the D real channels; the variance is
            # masked explicitly because (a - mu) is nonzero on padded lanes.
            mu = jnp.sum(a, axis=-1, keepdims=True) * (1.0 / D)
            ac = a - mu
            var = jnp.sum(jnp.where(real, ac * ac, 0.0), axis=-1,
                          keepdims=True) * (1.0 / D)
            return ac * jax.lax.rsqrt(var + eps) * g + b

        def leaky(a):
            return jnp.where(a > 0, a, slope * a)

        # ---------------- multi-head self-attention ------------------------
        # Single (Mt, Dp) @ (Dp, 3*Hd) matmul for Q|K|V.  The 1/sqrt(hd)
        # scale is folded into the Q columns/bias in the wrapper.
        qkv = (jnp.dot(x2, wqkv_ref[...], preferred_element_type=f32)
               + bqkv_ref[...])
        wo = wo_ref[...]                      # (Hd, Dp), head rows at k*hdp
        attn = jnp.zeros((Mt, Dp), f32)
        for h in range(H):                    # static unroll over heads
            lo = h * hdp
            qh = qkv[:, lo:lo + hdp].reshape(Bt, L, hdp)
            kh = qkv[:, Hd + lo:Hd + lo + hdp].reshape(Bt, L, hdp)
            vh = qkv[:, 2 * Hd + lo:2 * Hd + lo + hdp].reshape(Bt, L, hdp)
            s = jnp.einsum("bqd,bkd->bqk", qh, kh,
                           preferred_element_type=f32)      # (Bt, L, L)
            s = s - jnp.max(s, axis=-1, keepdims=True)
            e = jnp.exp(s)
            p = e / jnp.sum(e, axis=-1, keepdims=True)
            oh = jnp.einsum("bqk,bkd->bqd", p, vh,
                            preferred_element_type=f32)     # (Bt, L, hdp)
            # fold the out-projection per head (sublane-aligned weight rows)
            attn = attn + jnp.dot(oh.reshape(Mt, hdp), wo[lo:lo + hdp, :],
                                  preferred_element_type=f32)
        attn = attn + bo_ref[...]

        # ---------------- residual + LayerNorm 1 ----------------------------
        y = layernorm(x2 + attn, g1_ref[...], be1_ref[...])

        # ---------------- feed-forward (ReLU), bf16 MXU inputs --------------
        hmid = jnp.dot(y.astype(w1_ref.dtype), w1_ref[...],
                       preferred_element_type=f32) + b1_ref[...]
        hmid = jnp.maximum(hmid, 0.0)
        ffn = jnp.dot(hmid.astype(w2_ref.dtype), w2_ref[...],
                      preferred_element_type=f32) + b2_ref[...]

        # ---------------- residual + LayerNorm 2 ----------------------------
        z = layernorm(y + ffn, g2_ref[...], be2_ref[...])
        weighted_map = leaky(z)                              # LeakyReLU(0.1)

        # ---------------- conv branch ---------------------------------------
        # One (Mt, Dp) @ (Dp, fs*Dp) matmul; the fs taps are combined with
        # cheap per-example row shifts (no padded x copy, no im2col).
        taps = jnp.dot(x2, wc_ref[...], preferred_element_type=f32)
        conv3 = jnp.zeros((Bt, L, Dp), f32)
        for r in range(fs):
            yr = taps[:, r * Dp:(r + 1) * Dp].reshape(Bt, L, Dp)
            d = r - pad
            if d == 0:
                contrib = yr
            elif d > 0:
                contrib = jnp.concatenate(
                    [yr[:, d:, :], jnp.zeros((Bt, d, Dp), f32)], axis=1)
            else:
                contrib = jnp.concatenate(
                    [jnp.zeros((Bt, -d, Dp), f32), yr[:, :L + d, :]], axis=1)
            conv3 = conv3 + contrib
        conv = conv3.reshape(Mt, Dp) + bc_ref[...]
        conved = leaky(conv)                                 # LeakyReLU(0.1)

        out_ref[...] = (weighted_map * conved).reshape(Bt, L, Dp).astype(
            out_ref.dtype)

    return kernel


def _prepare_weights(params, D, Dp, H, hdp, fs, ffn_dtype):
    """Pad / reorder the weights once in the wrapper (lane- and head-padding)."""
    hd = D // H
    Hd = H * hdp
    scale = 1.0 / float(hd) ** 0.5
    f32 = jnp.float32

    def head_cols(w, s):          # (D, H*hd) -> (Dp, H*hdp)
        w3 = (w * s).astype(f32).reshape(D, H, hd)
        w3 = jnp.pad(w3, ((0, Dp - D), (0, 0), (0, hdp - hd)))
        return w3.reshape(Dp, Hd)

    def head_bias(b, s):          # (1, H*hd) -> (1, H*hdp)
        b3 = (b * s).astype(f32).reshape(1, H, hd)
        b3 = jnp.pad(b3, ((0, 0), (0, 0), (0, hdp - hd)))
        return b3.reshape(1, Hd)

    def lane_pad(v):              # (1, D) -> (1, Dp)
        return jnp.pad(v.astype(f32), ((0, 0), (0, Dp - D)))

    wqkv, bqkv = params["wqkv"], params["bqkv"]
    wq, wk, wv = wqkv[:, :D], wqkv[:, D:2 * D], wqkv[:, 2 * D:]
    bq, bk, bv = bqkv[:, :D], bqkv[:, D:2 * D], bqkv[:, 2 * D:]
    # 1/sqrt(hd) folded into the Q projection.
    wqkv_p = jnp.concatenate(
        [head_cols(wq, scale), head_cols(wk, 1.0), head_cols(wv, 1.0)], axis=1)
    bqkv_p = jnp.concatenate(
        [head_bias(bq, scale), head_bias(bk, 1.0), head_bias(bv, 1.0)], axis=1)

    wo3 = params["wo"].astype(f32).reshape(H, hd, D)
    wo_p = jnp.pad(wo3, ((0, 0), (0, hdp - hd), (0, Dp - D))).reshape(Hd, Dp)

    w1_p = jnp.pad(params["w1"].astype(f32), ((0, Dp - D), (0, 0))).astype(ffn_dtype)
    w2_p = jnp.pad(params["w2"].astype(f32), ((0, 0), (0, Dp - D))).astype(ffn_dtype)

    wc_p = jnp.pad(params["wc3"].astype(f32), ((0, 0), (0, Dp - D), (0, Dp - D)))
    wc_cat = jnp.transpose(wc_p, (1, 0, 2)).reshape(Dp, fs * Dp)

    return [
        wqkv_p, bqkv_p, wo_p, lane_pad(params["bo"]),
        lane_pad(params["g1"]), lane_pad(params["be1"]),
        w1_p, params["b1"].astype(f32), w2_p, lane_pad(params["b2"]),
        lane_pad(params["g2"]), lane_pad(params["be2"]),
        wc_cat, lane_pad(params["bc"]),
    ]


def tcnn_p_token_block_forward(embed_text, params, fs=3, nhead=10,
                               block_batch=None, ffn_dtype=jnp.bfloat16):
    """embed_text: (B, L, D) float32 token embeddings."""
    B, L, D = embed_text.shape
    assert D % nhead == 0, "embed_dim must be divisible by nhead=10"
    assert fs % 2 == 1, "even fs changes the output length in the torch module"
    hd = D // nhead
    hdp = _round_up(hd, 8)          # head dim padded to a sublane multiple
    Dp = _round_up(D, 128)          # model dim padded to a full lane tile
    Hd = nhead * hdp
    d_ff = params["w1"].shape[1]

    if block_batch is None:
        cap = max(1, 256 // L)      # target M = Bt*L ~ 256 (v6e/v7x MXU tile)
        block_batch = 1
        for c in range(1, min(B, cap) + 1):
            if B % c == 0:
                block_batch = c
        # keep >= 2 grid steps so v7x's two TensorCores both get work
        if B // block_batch == 1 and block_batch % 2 == 0:
            block_batch //= 2
    assert B % block_batch == 0
    grid = (B // block_batch,)

    # Lane-pad the activations once in the wrapper (padded lanes are zero).
    x_p = jnp.pad(embed_text.astype(jnp.float32),
                  ((0, 0), (0, 0), (0, Dp - D)))
    weights = _prepare_weights(params, D, Dp, nhead, hdp, fs, ffn_dtype)

    kernel = _make_kernel(block_batch, L, D, Dp, nhead, hdp, fs)

    in_specs = [pl.BlockSpec((block_batch, L, Dp), lambda b: (b, 0, 0))]
    # Full-extent blocks with constant index maps: weights are DMA'd once and
    # stay resident in VMEM across grid steps.
    # TODO(synk): on v7x at production sizes add pipeline_mode=pl.Buffered(1)
    # here so the resident weights are not double-buffered.
    in_specs += [pl.BlockSpec(w.shape, _const_index_map(w.ndim)) for w in weights]

    flops = int(
        2 * B * L * Dp * (3 * Hd)            # fused QKV projection
        + 4 * B * nhead * L * L * hdp        # scores + P @ V
        + 2 * B * L * Hd * Dp                # out-projection
        + 4 * B * L * Dp * d_ff              # FFN (two matmuls)
        + 2 * B * L * Dp * (fs * Dp))        # conv taps
    transcendentals = int(B * nhead * L * L + 2 * B * L)
    bytes_accessed = int(x_p.size * 4 + B * L * Dp * 4
                         + sum(int(w.size) * w.dtype.itemsize for w in weights))

    out = pl.pallas_call(
        kernel,
        grid=grid,
        in_specs=in_specs,
        out_specs=pl.BlockSpec((block_batch, L, Dp), lambda b: (b, 0, 0)),
        out_shape=jax.ShapeDtypeStruct((B, L, Dp), jnp.float32),
        compiler_params=pltpu.CompilerParams(
            dimension_semantics=("parallel",),
            vmem_limit_bytes=32 * 1024 * 1024,
        ),
        cost_estimate=pl.CostEstimate(
            flops=flops, transcendentals=transcendentals,
            bytes_accessed=bytes_accessed),
    )(x_p, *weights)
    return out[..., :D]             # drop the zero padded lanes


def init_params(key, D, d_ff, fs, nhead=10):
    ks = jax.random.split(key, 10)
    s = 0.1
    in_proj_w = jax.random.normal(ks[0], (3 * D, D), jnp.float32) * s
    in_proj_b = jax.random.normal(ks[1], (3 * D,), jnp.float32) * s
    out_proj_w = jax.random.normal(ks[2], (D, D), jnp.float32) * s
    out_proj_b = jax.random.normal(ks[3], (D,), jnp.float32) * s
    lin1_w = jax.random.normal(ks[4], (d_ff, D), jnp.float32) * 0.05
    lin1_b = jax.random.normal(ks[5], (d_ff,), jnp.float32) * 0.05
    lin2_w = jax.random.normal(ks[6], (D, d_ff), jnp.float32) * 0.05
    lin2_b = jax.random.normal(ks[7], (D,), jnp.float32) * 0.05
    conv_w = jax.random.normal(ks[8], (D, 1, fs, D), jnp.float32) * s   # n_filters = D
    conv_b = jax.random.normal(ks[9], (D,), jnp.float32) * s
    return {
        "wqkv": in_proj_w.T,                              # (D, 3D), cols = Q|K|V
        "bqkv": in_proj_b.reshape(1, 3 * D),
        "wo": out_proj_w.T,                               # (D, D)
        "bo": out_proj_b.reshape(1, D),
        "g1": jnp.ones((1, D), jnp.float32),
        "be1": jnp.zeros((1, D), jnp.float32),
        "w1": lin1_w.T,                                   # (D, d_ff)
        "b1": lin1_b.reshape(1, d_ff),
        "w2": lin2_w.T,                                   # (d_ff, D)
        "b2": lin2_b.reshape(1, D),
        "g2": jnp.ones((1, D), jnp.float32),
        "be2": jnp.zeros((1, D), jnp.float32),
        # conv weight (F,1,fs,D) -> (fs, D, F): conv = sum_r x_shift_r @ wc3[r]
        "wc3": jnp.transpose(conv_w.reshape(D, fs, D), (1, 2, 0)),
        "bc": conv_b.reshape(1, D),
    }


def reference_forward(embed_text, params, fs=3, nhead=10):
    """Pure-JAX f32 reference of the PyTorch forward (eval mode)."""
    P = jax.lax.Precision.HIGHEST
    x = embed_text.astype(jnp.float32)
    B, L, D = x.shape
    hd = D // nhead
    scale = 1.0 / float(hd) ** 0.5
    eps = 1e-5

    def leaky(a):
        return jnp.where(a > 0, a, 0.1 * a)

    def layernorm(a, g, b):
        mu = jnp.mean(a, axis=-1, keepdims=True)
        ac = a - mu
        var = jnp.mean(ac * ac, axis=-1, keepdims=True)
        return ac * jax.lax.rsqrt(var + eps) * g + b

    # TODO(synk): PyTorch's TransformerEncoderLayer defaults to
    # batch_first=False; we implement the intended semantics: dim 0 = batch,
    # attention over dim 1 (the token axis).
    qkv = jnp.einsum("bld,de->ble", x, params["wqkv"], precision=P) + params["bqkv"]
    q, k, v = qkv[..., :D], qkv[..., D:2 * D], qkv[..., 2 * D:]
    qh = q.reshape(B, L, nhead, hd).transpose(0, 2, 1, 3)
    kh = k.reshape(B, L, nhead, hd).transpose(0, 2, 1, 3)
    vh = v.reshape(B, L, nhead, hd).transpose(0, 2, 1, 3)
    s = jnp.einsum("bhqd,bhkd->bhqk", qh, kh, precision=P) * scale
    pa = jax.nn.softmax(s, axis=-1)
    o = jnp.einsum("bhqk,bhkd->bhqd", pa, vh, precision=P)
    o = o.transpose(0, 2, 1, 3).reshape(B, L, D)
    attn = jnp.einsum("bld,de->ble", o, params["wo"], precision=P) + params["bo"]

    y = layernorm(x + attn, params["g1"], params["be1"])
    ff = jnp.maximum(jnp.einsum("bld,df->blf", y, params["w1"], precision=P)
                     + params["b1"], 0.0)
    ff = jnp.einsum("blf,fd->bld", ff, params["w2"], precision=P) + params["b2"]
    z = layernorm(y + ff, params["g2"], params["be2"])
    weighted_map = leaky(z)

    pad = (fs - 1) // 2
    xp = jnp.pad(x, ((0, 0), (pad, pad), (0, 0)))
    conv = sum(jnp.einsum("bld,df->blf", xp[:, r:r + L, :], params["wc3"][r],
                          precision=P) for r in range(fs)) + params["bc"]
    conved = leaky(conv)
    return weighted_map * conved


if __name__ == "__main__":
    # Small deterministic config consistent with the module: nhead=10 is
    # hard-coded -> embed_dim divisible by 10; d_ff is the
    # nn.TransformerEncoderLayer default (2048); fs odd so conv length == L.
    B, L = 8, 8
    D = 40
    d_ff = 2048
    fs = 3
    nhead = 10

    key = jax.random.PRNGKey(0)
    k_par, k_x = jax.random.split(key, 2)
    params = init_params(k_par, D, d_ff, fs, nhead=nhead)
    embed_text = jax.random.normal(k_x, (B, L, D), jnp.float32) * 0.5

    ref = reference_forward(embed_text, params, fs=fs, nhead=nhead)

    # 1) all-f32 matmuls: tight check of the kernel semantics.
    out_f32 = tcnn_p_token_block_forward(embed_text, params, fs=fs, nhead=nhead,
                                         ffn_dtype=jnp.float32)
    out_f32 = jax.block_until_ready(out_f32)
    assert out_f32.shape == (B, L, D)
    assert jnp.allclose(out_f32, ref, atol=2e-3, rtol=2e-3), (
        float(jnp.max(jnp.abs(out_f32 - ref))))

    # 2) default path: bf16 inputs for the FFN matmuls (f32 accumulation);
    #    tolerance reflects the reduced input precision.
    out = tcnn_p_token_block_forward(embed_text, params, fs=fs, nhead=nhead)
    out = jax.block_until_ready(out)
    assert out.shape == (B, L, D)
    assert jnp.allclose(out, ref, atol=2e-2, rtol=2e-2), (
        float(jnp.max(jnp.abs(out - ref))))

    print("KERNEL_OK")
</pallas_src>

<mosaic_0001>
module attributes {stable_mosaic.version = 11 : i64} {
  func.func @kernel(%arg0: i32, %arg1: memref<4x8x128xf32, #tpu.memory_space<vmem>>, %arg2: memref<128x240xf32, #tpu.memory_space<vmem>>, %arg3: memref<1x240xf32, #tpu.memory_space<vmem>>, %arg4: memref<80x128xf32, #tpu.memory_space<vmem>>, %arg5: memref<1x128xf32, #tpu.memory_space<vmem>>, %arg6: memref<1x128xf32, #tpu.memory_space<vmem>>, %arg7: memref<1x128xf32, #tpu.memory_space<vmem>>, %arg8: memref<128x2048xf32, #tpu.memory_space<vmem>>, %arg9: memref<1x2048xf32, #tpu.memory_space<vmem>>, %arg10: memref<2048x128xf32, #tpu.memory_space<vmem>>, %arg11: memref<1x128xf32, #tpu.memory_space<vmem>>, %arg12: memref<1x128xf32, #tpu.memory_space<vmem>>, %arg13: memref<1x128xf32, #tpu.memory_space<vmem>>, %arg14: memref<128x384xf32, #tpu.memory_space<vmem>>, %arg15: memref<1x128xf32, #tpu.memory_space<vmem>>, %arg16: memref<4x8x128xf32, #tpu.memory_space<vmem>>) attributes {dimension_semantics = [#tpu.dimension_semantics<parallel>], iteration_bounds = array<i64: 2>, scalar_prefetch = 0 : i64, scratch_operands = 0 : i64, tpu.core_type = #tpu.core_type<tc>, window_params = [{transform_indices = @transform_0, window_bounds = array<i64: 4, 8, 128>}, {pipeline_mode = #tpu.pipeline_mode<synchronous>, transform_indices = @transform_1, window_bounds = array<i64: 128, 240>}, {pipeline_mode = #tpu.pipeline_mode<synchronous>, transform_indices = @transform_2, window_bounds = array<i64: 1, 240>}, {pipeline_mode = #tpu.pipeline_mode<synchronous>, transform_indices = @transform_3, window_bounds = array<i64: 80, 128>}, {pipeline_mode = #tpu.pipeline_mode<synchronous>, transform_indices = @transform_4, window_bounds = array<i64: 1, 128>}, {pipeline_mode = #tpu.pipeline_mode<synchronous>, transform_indices = @transform_5, window_bounds = array<i64: 1, 128>}, {pipeline_mode = #tpu.pipeline_mode<synchronous>, transform_indices = @transform_6, window_bounds = array<i64: 1, 128>}, {pipeline_mode = #tpu.pipeline_mode<synchronous>, transform_indices = @transform_7, window_bounds = array<i64: 128, 2048>}, {pipeline_mode = #tpu.pipeline_mode<synchronous>, transform_indices = @transform_8, window_bounds = array<i64: 1, 2048>}, {pipeline_mode = #tpu.pipeline_mode<synchronous>, transform_indices = @transform_9, window_bounds = array<i64: 2048, 128>}, {pipeline_mode = #tpu.pipeline_mode<synchronous>, transform_indices = @transform_10, window_bounds = array<i64: 1, 128>}, {pipeline_mode = #tpu.pipeline_mode<synchronous>, transform_indices = @transform_11, window_bounds = array<i64: 1, 128>}, {pipeline_mode = #tpu.pipeline_mode<synchronous>, transform_indices = @transform_12, window_bounds = array<i64: 1, 128>}, {pipeline_mode = #tpu.pipeline_mode<synchronous>, transform_indices = @transform_13, window_bounds = array<i64: 128, 384>}, {pipeline_mode = #tpu.pipeline_mode<synchronous>, transform_indices = @transform_14, window_bounds = array<i64: 1, 128>}, {transform_indices = @transform_15, window_bounds = array<i64: 4, 8, 128>}]} {
    %c0 = arith.constant 0 : index
    %c0_0 = arith.constant 0 : index
    %c0_1 = arith.constant 0 : index
    %0 = vector.load %arg1[%c0, %c0_0, %c0_1] : memref<4x8x128xf32, #tpu.memory_space<vmem>>, vector<4x8x128xf32>
    %1 = vector.shape_cast %0 : vector<4x8x128xf32> to vector<32x128xf32>
    %2 = tpu.iota {dimensions = array<i32: 1>} : vector<1x128xi32>
    %c40_i32 = arith.constant 40 : i32
    %3 = vector.broadcast %c40_i32 : i32 to vector<1x128xi32>
    %4 = arith.cmpi slt, %2, %3 : vector<1x128xi32>
    %c0_2 = arith.constant 0 : index
    %c0_3 = arith.constant 0 : index
    %5 = vector.load %arg2[%c0_2, %c0_3] : memref<128x240xf32, #tpu.memory_space<vmem>>, vector<128x240xf32>
    %cst = arith.constant dense<0.000000e+00> : vector<32x240xf32>
    %6 = tpu.matmul %1, %5, %cst {dimension_numbers = #tpu.dot_dimension_numbers<[1], [0], [0], [1], [0, 0, 1, 1], [], []>} : vector<32x128xf32>, vector<128x240xf32>, vector<32x240xf32> -> vector<32x240xf32>
    %c0_4 = arith.constant 0 : index
    %c0_5 = arith.constant 0 : index
    %7 = vector.load %arg3[%c0_4, %c0_5] : memref<1x240xf32, #tpu.memory_space<vmem>>, vector<1x240xf32>
    %8 = vector.broadcast %7 : vector<1x240xf32> to vector<32x240xf32>
    %9 = arith.addf %6, %8 : vector<32x240xf32>
    %c0_6 = arith.constant 0 : index
    %c0_7 = arith.constant 0 : index
    %10 = vector.load %arg4[%c0_6, %c0_7] : memref<80x128xf32, #tpu.memory_space<vmem>>, vector<80x128xf32>
    %cst_8 = arith.constant 0.000000e+00 : f32
    %11 = vector.broadcast %cst_8 : f32 to vector<32x128xf32>
    %12 = vector.extract_strided_slice %9 {offsets = [0, 0], sizes = [32, 8], strides = [1, 1]} : vector<32x240xf32> to vector<32x8xf32>
    %13 = vector.shape_cast %12 : vector<32x8xf32> to vector<4x8x8xf32>
    %14 = vector.extract_strided_slice %9 {offsets = [0, 80], sizes = [32, 8], strides = [1, 1]} : vector<32x240xf32> to vector<32x8xf32>
    %15 = vector.shape_cast %14 : vector<32x8xf32> to vector<4x8x8xf32>
    %16 = vector.extract_strided_slice %9 {offsets = [0, 160], sizes = [32, 8], strides = [1, 1]} : vector<32x240xf32> to vector<32x8xf32>
    %17 = vector.shape_cast %16 : vector<32x8xf32> to vector<4x8x8xf32>
    "tpu.trace_start"() <{level = 10 : i32, message = "bqd,bkd->bqk"}> : () -> ()
    %cst_9 = arith.constant dense<0.000000e+00> : vector<4x8x8xf32>
    %18 = tpu.matmul %13, %15, %cst_9 {dimension_numbers = #tpu.dot_dimension_numbers<[2], [2], [1], [1], [0, 0, 0, 1, 1, 1], [0], [0]>} : vector<4x8x8xf32>, vector<4x8x8xf32>, vector<4x8x8xf32> -> vector<4x8x8xf32>
    "tpu.trace_stop"() : () -> ()
    %cst_10 = arith.constant dense<0xFF800000> : vector<4x8xf32>
    %19 = vector.multi_reduction <maximumf>, %18, %cst_10 [2] : vector<4x8x8xf32> to vector<4x8xf32>
    %20 = vector.shape_cast %19 : vector<4x8xf32> to vector<4x8x1xf32>
    %21 = vector.broadcast %20 : vector<4x8x1xf32> to vector<4x8x8xf32>
    %22 = arith.subf %18, %21 : vector<4x8x8xf32>
    %23 = math.exp %22 : vector<4x8x8xf32>
    %cst_11 = arith.constant dense<0.000000e+00> : vector<4x8xf32>
    %24 = vector.multi_reduction <add>, %23, %cst_11 [2] : vector<4x8x8xf32> to vector<4x8xf32>
    %25 = vector.shape_cast %24 : vector<4x8xf32> to vector<4x8x1xf32>
    %26 = vector.broadcast %25 : vector<4x8x1xf32> to vector<4x8x8xf32>
    %27 = arith.divf %23, %26 : vector<4x8x8xf32>
    "tpu.trace_start"() <{level = 10 : i32, message = "bqk,bkd->bqd"}> : () -> ()
    %cst_12 = arith.constant dense<0.000000e+00> : vector<4x8x8xf32>
    %28 = tpu.matmul %27, %17, %cst_12 {dimension_numbers = #tpu.dot_dimension_numbers<[2], [1], [1], [2], [0, 0, 0, 1, 1, 2], [0], [0]>} : vector<4x8x8xf32>, vector<4x8x8xf32>, vector<4x8x8xf32> -> vector<4x8x8xf32>
    "tpu.trace_stop"() : () -> ()
    %29 = vector.shape_cast %28 : vector<4x8x8xf32> to vector<32x8xf32>
    %30 = vector.extract_strided_slice %10 {offsets = [0, 0], sizes = [8, 128], strides = [1, 1]} : vector<80x128xf32> to vector<8x128xf32>
    %cst_13 = arith.constant dense<0.000000e+00> : vector<32x128xf32>
    %31 = tpu.matmul %29, %30, %cst_13 {dimension_numbers = #tpu.dot_dimension_numbers<[1], [0], [0], [1], [0, 0, 1, 1], [], []>} : vector<32x8xf32>, vector<8x128xf32>, vector<32x128xf32> -> vector<32x128xf32>
    %32 = arith.addf %11, %31 : vector<32x128xf32>
    %33 = vector.extract_strided_slice %9 {offsets = [0, 8], sizes = [32, 8], strides = [1, 1]} : vector<32x240xf32> to vector<32x8xf32>
    %34 = vector.shape_cast %33 : vector<32x8xf32> to vector<4x8x8xf32>
    %35 = vector.extract_strided_slice %9 {offsets = [0, 88], sizes = [32, 8], strides = [1, 1]} : vector<32x240xf32> to vector<32x8xf32>
    %36 = vector.shape_cast %35 : vector<32x8xf32> to vector<4x8x8xf32>
    %37 = vector.extract_strided_slice %9 {offsets = [0, 168], sizes = [32, 8], strides = [1, 1]} : vector<32x240xf32> to vector<32x8xf32>
    %38 = vector.shape_cast %37 : vector<32x8xf32> to vector<4x8x8xf32>
    "tpu.trace_start"() <{level = 10 : i32, message = "bqd,bkd->bqk"}> : () -> ()
    %cst_14 = arith.constant dense<0.000000e+00> : vector<4x8x8xf32>
    %39 = tpu.matmul %34, %36, %cst_14 {dimension_numbers = #tpu.dot_dimension_numbers<[2], [2], [1], [1], [0, 0, 0, 1, 1, 1], [0], [0]>} : vector<4x8x8xf32>, vector<4x8x8xf32>, vector<4x8x8xf32> -> vector<4x8x8xf32>
    "tpu.trace_stop"() : () -> ()
    %cst_15 = arith.constant dense<0xFF800000> : vector<4x8xf32>
    %40 = vector.multi_reduction <maximumf>, %39, %cst_15 [2] : vector<4x8x8xf32> to vector<4x8xf32>
    %41 = vector.shape_cast %40 : vector<4x8xf32> to vector<4x8x1xf32>
    %42 = vector.broadcast %41 : vector<4x8x1xf32> to vector<4x8x8xf32>
    %43 = arith.subf %39, %42 : vector<4x8x8xf32>
    %44 = math.exp %43 : vector<4x8x8xf32>
    %cst_16 = arith.constant dense<0.000000e+00> : vector<4x8xf32>
    %45 = vector.multi_reduction <add>, %44, %cst_16 [2] : vector<4x8x8xf32> to vector<4x8xf32>
    %46 = vector.shape_cast %45 : vector<4x8xf32> to vector<4x8x1xf32>
    %47 = vector.broadcast %46 : vector<4x8x1xf32> to vector<4x8x8xf32>
    %48 = arith.divf %44, %47 : vector<4x8x8xf32>
    "tpu.trace_start"() <{level = 10 : i32, message = "bqk,bkd->bqd"}> : () -> ()
    %cst_17 = arith.constant dense<0.000000e+00> : vector<4x8x8xf32>
    %49 = tpu.matmul %48, %38, %cst_17 {dimension_numbers = #tpu.dot_dimension_numbers<[2], [1], [1], [2], [0, 0, 0, 1, 1, 2], [0], [0]>} : vector<4x8x8xf32>, vector<4x8x8xf32>, vector<4x8x8xf32> -> vector<4x8x8xf32>
    "tpu.trace_stop"() : () -> ()
    %50 = vector.shape_cast %49 : vector<4x8x8xf32> to vector<32x8xf32>
    %51 = vector.extract_strided_slice %10 {offsets = [8, 0], sizes = [8, 128], strides = [1, 1]} : vector<80x128xf32> to vector<8x128xf32>
    %cst_18 = arith.constant dense<0.000000e+00> : vector<32x128xf32>
    %52 = tpu.matmul %50, %51, %cst_18 {dimension_numbers = #tpu.dot_dimension_numbers<[1], [0], [0], [1], [0, 0, 1, 1], [], []>} : vector<32x8xf32>, vector<8x128xf32>, vector<32x128xf32> -> vector<32x128xf32>
    %53 = arith.addf %32, %52 : vector<32x128xf32>
    %54 = vector.extract_strided_slice %9 {offsets = [0, 16], sizes = [32, 8], strides = [1, 1]} : vector<32x240xf32> to vector<32x8xf32>
    %55 = vector.shape_cast %54 : vector<32x8xf32> to vector<4x8x8xf32>
    %56 = vector.extract_strided_slice %9 {offsets = [0, 96], sizes = [32, 8], strides = [1, 1]} : vector<32x240xf32> to vector<32x8xf32>
    %57 = vector.shape_cast %56 : vector<32x8xf32> to vector<4x8x8xf32>
    %58 = vector.extract_strided_slice %9 {offsets = [0, 176], sizes = [32, 8], strides = [1, 1]} : vector<32x240xf32> to vector<32x8xf32>
    %59 = vector.shape_cast %58 : vector<32x8xf32> to vector<4x8x8xf32>
    "tpu.trace_start"() <{level = 10 : i32, message = "bqd,bkd->bqk"}> : () -> ()
    %cst_19 = arith.constant dense<0.000000e+00> : vector<4x8x8xf32>
    %60 = tpu.matmul %55, %57, %cst_19 {dimension_numbers = #tpu.dot_dimension_numbers<[2], [2], [1], [1], [0, 0, 0, 1, 1, 1], [0], [0]>} : vector<4x8x8xf32>, vector<4x8x8xf32>, vector<4x8x8xf32> -> vector<4x8x8xf32>
    "tpu.trace_stop"() : () -> ()
    %cst_20 = arith.constant dense<0xFF800000> : vector<4x8xf32>
    %61 = vector.multi_reduction <maximumf>, %60, %cst_20 [2] : vector<4x8x8xf32> to vector<4x8xf32>
    %62 = vector.shape_cast %61 : vector<4x8xf32> to vector<4x8x1xf32>
    %63 = vector.broadcast %62 : vector<4x8x1xf32> to vector<4x8x8xf32>
    %64 = arith.subf %60, %63 : vector<4x8x8xf32>
    %65 = math.exp %64 : vector<4x8x8xf32>
    %cst_21 = arith.constant dense<0.000000e+00> : vector<4x8xf32>
    %66 = vector.multi_reduction <add>, %65, %cst_21 [2] : vector<4x8x8xf32> to vector<4x8xf32>
    %67 = vector.shape_cast %66 : vector<4x8xf32> to vector<4x8x1xf32>
    %68 = vector.broadcast %67 : vector<4x8x1xf32> to vector<4x8x8xf32>
    %69 = arith.divf %65, %68 : vector<4x8x8xf32>
    "tpu.trace_start"() <{level = 10 : i32, message = "bqk,bkd->bqd"}> : () -> ()
    %cst_22 = arith.constant dense<0.000000e+00> : vector<4x8x8xf32>
    %70 = tpu.matmul %69, %59, %cst_22 {dimension_numbers = #tpu.dot_dimension_numbers<[2], [1], [1], [2], [0, 0, 0, 1, 1, 2], [0], [0]>} : vector<4x8x8xf32>, vector<4x8x8xf32>, vector<4x8x8xf32> -> vector<4x8x8xf32>
    "tpu.trace_stop"() : () -> ()
    %71 = vector.shape_cast %70 : vector<4x8x8xf32> to vector<32x8xf32>
    %72 = vector.extract_strided_slice %10 {offsets = [16, 0], sizes = [8, 128], strides = [1, 1]} : vector<80x128xf32> to vector<8x128xf32>
    %cst_23 = arith.constant dense<0.000000e+00> : vector<32x128xf32>
    %73 = tpu.matmul %71, %72, %cst_23 {dimension_numbers = #tpu.dot_dimension_numbers<[1], [0], [0], [1], [0, 0, 1, 1], [], []>} : vector<32x8xf32>, vector<8x128xf32>, vector<32x128xf32> -> vector<32x128xf32>
    %74 = arith.addf %53, %73 : vector<32x128xf32>
    %75 = vector.extract_strided_slice %9 {offsets = [0, 24], sizes = [32, 8], strides = [1, 1]} : vector<32x240xf32> to vector<32x8xf32>
    %76 = vector.shape_cast %75 : vector<32x8xf32> to vector<4x8x8xf32>
    %77 = vector.extract_strided_slice %9 {offsets = [0, 104], sizes = [32, 8], strides = [1, 1]} : vector<32x240xf32> to vector<32x8xf32>
    %78 = vector.shape_cast %77 : vector<32x8xf32> to vector<4x8x8xf32>
    %79 = vector.extract_strided_slice %9 {offsets = [0, 184], sizes = [32, 8], strides = [1, 1]} : vector<32x240xf32> to vector<32x8xf32>
    %80 = vector.shape_cast %79 : vector<32x8xf32> to vector<4x8x8xf32>
    "tpu.trace_start"() <{level = 10 : i32, message = "bqd,bkd->bqk"}> : () -> ()
    %cst_24 = arith.constant dense<0.000000e+00> : vector<4x8x8xf32>
    %81 = tpu.matmul %76, %78, %cst_24 {dimension_numbers = #tpu.dot_dimension_numbers<[2], [2], [1], [1], [0, 0, 0, 1, 1, 1], [0], [0]>} : vector<4x8x8xf32>, vector<4x8x8xf32>, vector<4x8x8xf32> -> vector<4x8x8xf32>
    "tpu.trace_stop"() : () -> ()
    %cst_25 = arith.constant dense<0xFF800000> : vector<4x8xf32>
    %82 = vector.multi_reduction <maximumf>, %81, %cst_25 [2] : vector<4x8x8xf32> to vector<4x8xf32>
    %83 = vector.shape_cast %82 : vector<4x8xf32> to vector<4x8x1xf32>
    %84 = vector.broadcast %83 : vector<4x8x1xf32> to vector<4x8x8xf32>
    %85 = arith.subf %81, %84 : vector<4x8x8xf32>
    %86 = math.exp %85 : vector<4x8x8xf32>
    %cst_26 = arith.constant dense<0.000000e+00> : vector<4x8xf32>
    %87 = vector.multi_reduction <add>, %86, %cst_26 [2] : vector<4x8x8xf32> to vector<4x8xf32>
    %88 = vector.shape_cast %87 : vector<4x8xf32> to vector<4x8x1xf32>
    %89 = vector.broadcast %88 : vector<4x8x1xf32> to vector<4x8x8xf32>
    %90 = arith.divf %86, %89 : vector<4x8x8xf32>
    "tpu.trace_start"() <{level = 10 : i32, message = "bqk,bkd->bqd"}> : () -> ()
    %cst_27 = arith.constant dense<0.000000e+00> : vector<4x8x8xf32>
    %91 = tpu.matmul %90, %80, %cst_27 {dimension_numbers = #tpu.dot_dimension_numbers<[2], [1], [1], [2], [0, 0, 0, 1, 1, 2], [0], [0]>} : vector<4x8x8xf32>, vector<4x8x8xf32>, vector<4x8x8xf32> -> vector<4x8x8xf32>
    "tpu.trace_stop"() : () -> ()
    %92 = vector.shape_cast %91 : vector<4x8x8xf32> to vector<32x8xf32>
    %93 = vector.extract_strided_slice %10 {offsets = [24, 0], sizes = [8, 128], strides = [1, 1]} : vector<80x128xf32> to vector<8x128xf32>
    %cst_28 = arith.constant dense<0.000000e+00> : vector<32x128xf32>
    %94 = tpu.matmul %92, %93, %cst_28 {dimension_numbers = #tpu.dot_dimension_numbers<[1], [0], [0], [1], [0, 0, 1, 1], [], []>} : vector<32x8xf32>, vector<8x128xf32>, vector<32x128xf32> -> vector<32x128xf32>
    %95 = arith.addf %74, %94 : vector<32x128xf32>
    %96 = vector.extract_strided_slice %9 {offsets = [0, 32], sizes = [32, 8], strides = [1, 1]} : vector<32x240xf32> to vector<32x8xf32>
    %97 = vector.shape_cast %96 : vector<32x8xf32> to vector<4x8x8xf32>
    %98 = vector.extract_strided_slice %9 {offsets = [0, 112], sizes = [32, 8], strides = [1, 1]} : vector<32x240xf32> to vector<32x8xf32>
    %99 = vector.shape_cast %98 : vector<32x8xf32> to vector<4x8x8xf32>
    %100 = vector.extract_strided_slice %9 {offsets = [0, 192], sizes = [32, 8], strides = [1, 1]} : vector<32x240xf32> to vector<32x8xf32>
    %101 = vector.shape_cast %100 : vector<32x8xf32> to vector<4x8x8xf32>
    "tpu.trace_start"() <{level = 10 : i32, message = "bqd,bkd->bqk"}> : () -> ()
    %cst_29 = arith.constant dense<0.000000e+00> : vector<4x8x8xf32>
    %102 = tpu.matmul %97, %99, %cst_29 {dimension_numbers = #tpu.dot_dimension_numbers<[2], [2], [1], [1], [0, 0, 0, 1, 1, 1], [0], [0]>} : vector<4x8x8xf32>, vector<4x8x8xf32>, vector<4x8x8xf32> -> vector<4x8x8xf32>
    "tpu.trace_stop"() : () -> ()
    %cst_30 = arith.constant dense<0xFF800000> : vector<4x8xf32>
    %103 = vector.multi_reduction <maximumf>, %102, %cst_30 [2] : vector<4x8x8xf32> to vector<4x8xf32>
    %104 = vector.shape_cast %103 : vector<4x8xf32> to vector<4x8x1xf32>
    %105 = vector.broadcast %104 : vector<4x8x1xf32> to vector<4x8x8xf32>
    %106 = arith.subf %102, %105 : vector<4x8x8xf32>
    %107 = math.exp %106 : vector<4x8x8xf32>
    %cst_31 = arith.constant dense<0.000000e+00> : vector<4x8xf32>
    %108 = vector.multi_reduction <add>, %107, %cst_31 [2] : vector<4x8x8xf32> to vector<4x8xf32>
    %109 = vector.shape_cast %108 : vector<4x8xf32> to vector<4x8x1xf32>
    %110 = vector.broadcast %109 : vector<4x8x1xf32> to vector<4x8x8xf32>
    %111 = arith.divf %107, %110 : vector<4x8x8xf32>
    "tpu.trace_start"() <{level = 10 : i32, message = "bqk,bkd->bqd"}> : () -> ()
    %cst_32 = arith.constant dense<0.000000e+00> : vector<4x8x8xf32>
    %112 = tpu.matmul %111, %101, %cst_32 {dimension_numbers = #tpu.dot_dimension_numbers<[2], [1], [1], [2], [0, 0, 0, 1, 1, 2], [0], [0]>} : vector<4x8x8xf32>, vector<4x8x8xf32>, vector<4x8x8xf32> -> vector<4x8x8xf32>
    "tpu.trace_stop"() : () -> ()
    %113 = vector.shape_cast %112 : vector<4x8x8xf32> to vector<32x8xf32>
    %114 = vector.extract_strided_slice %10 {offsets = [32, 0], sizes = [8, 128], strides = [1, 1]} : vector<80x128xf32> to vector<8x128xf32>
    %cst_33 = arith.constant dense<0.000000e+00> : vector<32x128xf32>
    %115 = tpu.matmul %113, %114, %cst_33 {dimension_numbers = #tpu.dot_dimension_numbers<[1], [0], [0], [1], [0, 0, 1, 1], [], []>} : vector<32x8xf32>, vector<8x128xf32>, vector<32x128xf32> -> vector<32x128xf32>
    %116 = arith.addf %95, %115 : vector<32x128xf32>
    %117 = vector.extract_strided_slice %9 {offsets = [0, 40], sizes = [32, 8], strides = [1, 1]} : vector<32x240xf32> to vector<32x8xf32>
    %118 = vector.shape_cast %117 : vector<32x8xf32> to vector<4x8x8xf32>
    %119 = vector.extract_strided_slice %9 {offsets = [0, 120], sizes = [32, 8], strides = [1, 1]} : vector<32x240xf32> to vector<32x8xf32>
    %120 = vector.shape_cast %119 : vector<32x8xf32> to vector<4x8x8xf32>
    %121 = vector.extract_strided_slice %9 {offsets = [0, 200], sizes = [32, 8], strides = [1, 1]} : vector<32x240xf32> to vector<32x8xf32>
    %122 = vector.shape_cast %121 : vector<32x8xf32> to vector<4x8x8xf32>
    "tpu.trace_start"() <{level = 10 : i32, message = "bqd,bkd->bqk"}> : () -> ()
    %cst_34 = arith.constant dense<0.000000e+00> : vector<4x8x8xf32>
    %123 = tpu.matmul %118, %120, %cst_34 {dimension_numbers = #tpu.dot_dimension_numbers<[2], [2], [1], [1], [0, 0, 0, 1, 1, 1], [0], [0]>} : vector<4x8x8xf32>, vector<4x8x8xf32>, vector<4x8x8xf32> -> vector<4x8x8xf32>
    "tpu.trace_stop"() : () -> ()
    %cst_35 = arith.constant dense<0xFF800000> : vector<4x8xf32>
    %124 = vector.multi_reduction <maximumf>, %123, %cst_35 [2] : vector<4x8x8xf32> to vector<4x8xf32>
    %125 = vector.shape_cast %124 : vector<4x8xf32> to vector<4x8x1xf32>
    %126 = vector.broadcast %125 : vector<4x8x1xf32> to vector<4x8x8xf32>
    %127 = arith.subf %123, %126 : vector<4x8x8xf32>
    %128 = math.exp %127 : vector<4x8x8xf32>
    %cst_36 = arith.constant dense<0.000000e+00> : vector<4x8xf32>
    %129 = vector.multi_reduction <add>, %128, %cst_36 [2] : vector<4x8x8xf32> to vector<4x8xf32>
    %130 = vector.shape_cast %129 : vector<4x8xf32> to vector<4x8x1xf32>
    %131 = vector.broadcast %130 : vector<4x8x1xf32> to vector<4x8x8xf32>
    %132 = arith.divf %128, %131 : vector<4x8x8xf32>
    "tpu.trace_start"() <{level = 10 : i32, message = "bqk,bkd->bqd"}> : () -> ()
    %cst_37 = arith.constant dense<0.000000e+00> : vector<4x8x8xf32>
    %133 = tpu.matmul %132, %122, %cst_37 {dimension_numbers = #tpu.dot_dimension_numbers<[2], [1], [1], [2], [0, 0, 0, 1, 1, 2], [0], [0]>} : vector<4x8x8xf32>, vector<4x8x8xf32>, vector<4x8x8xf32> -> vector<4x8x8xf32>
    "tpu.trace_stop"() : () -> ()
    %134 = vector.shape_cast %133 : vector<4x8x8xf32> to vector<32x8xf32>
    %135 = vector.extract_strided_slice %10 {offsets = [40, 0], sizes = [8, 128], strides = [1, 1]} : vector<80x128xf32> to vector<8x128xf32>
    %cst_38 = arith.constant dense<0.000000e+00> : vector<32x128xf32>
    %136 = tpu.matmul %134, %135, %cst_38 {dimension_numbers = #tpu.dot_dimension_numbers<[1], [0], [0], [1], [0, 0, 1, 1], [], []>} : vector<32x8xf32>, vector<8x128xf32>, vector<32x128xf32> -> vector<32x128xf32>
    %137 = arith.addf %116, %136 : vector<32x128xf32>
    %138 = vector.extract_strided_slice %9 {offsets = [0, 48], sizes = [32, 8], strides = [1, 1]} : vector<32x240xf32> to vector<32x8xf32>
    %139 = vector.shape_cast %138 : vector<32x8xf32> to vector<4x8x8xf32>
    %140 = vector.extract_strided_slice %9 {offsets = [0, 128], sizes = [32, 8], strides = [1, 1]} : vector<32x240xf32> to vector<32x8xf32>
    %141 = vector.shape_cast %140 : vector<32x8xf32> to vector<4x8x8xf32>
    %142 = vector.extract_strided_slice %9 {offsets = [0, 208], sizes = [32, 8], strides = [1, 1]} : vector<32x240xf32> to vector<32x8xf32>
    %143 = vector.shape_cast %142 : vector<32x8xf32> to vector<4x8x8xf32>
    "tpu.trace_start"() <{level = 10 : i32, message = "bqd,bkd->bqk"}> : () -> ()
    %cst_39 = arith.constant dense<0.000000e+00> : vector<4x8x8xf32>
    %144 = tpu.matmul %139, %141, %cst_39 {dimension_numbers = #tpu.dot_dimension_numbers<[2], [2], [1], [1], [0, 0, 0, 1, 1, 1], [0], [0]>} : vector<4x8x8xf32>, vector<4x8x8xf32>, vector<4x8x8xf32> -> vector<4x8x8xf32>
    "tpu.trace_stop"() : () -> ()
    %cst_40 = arith.constant dense<0xFF800000> : vector<4x8xf32>
    %145 = vector.multi_reduction <maximumf>, %144, %cst_40 [2] : vector<4x8x8xf32> to vector<4x8xf32>
    %146 = vector.shape_cast %145 : vector<4x8xf32> to vector<4x8x1xf32>
    %147 = vector.broadcast %146 : vector<4x8x1xf32> to vector<4x8x8xf32>
    %148 = arith.subf %144, %147 : vector<4x8x8xf32>
    %149 = math.exp %148 : vector<4x8x8xf32>
    %cst_41 = arith.constant dense<0.000000e+00> : vector<4x8xf32>
    %150 = vector.multi_reduction <add>, %149, %cst_41 [2] : vector<4x8x8xf32> to vector<4x8xf32>
    %151 = vector.shape_cast %150 : vector<4x8xf32> to vector<4x8x1xf32>
    %152 = vector.broadcast %151 : vector<4x8x1xf32> to vector<4x8x8xf32>
    %153 = arith.divf %149, %152 : vector<4x8x8xf32>
    "tpu.trace_start"() <{level = 10 : i32, message = "bqk,bkd->bqd"}> : () -> ()
    %cst_42 = arith.constant dense<0.000000e+00> : vector<4x8x8xf32>
    %154 = tpu.matmul %153, %143, %cst_42 {dimension_numbers = #tpu.dot_dimension_numbers<[2], [1], [1], [2], [0, 0, 0, 1, 1, 2], [0], [0]>} : vector<4x8x8xf32>, vector<4x8x8xf32>, vector<4x8x8xf32> -> vector<4x8x8xf32>
    "tpu.trace_stop"() : () -> ()
    %155 = vector.shape_cast %154 : vector<4x8x8xf32> to vector<32x8xf32>
    %156 = vector.extract_strided_slice %10 {offsets = [48, 0], sizes = [8, 128], strides = [1, 1]} : vector<80x128xf32> to vector<8x128xf32>
    %cst_43 = arith.constant dense<0.000000e+00> : vector<32x128xf32>
    %157 = tpu.matmul %155, %156, %cst_43 {dimension_numbers = #tpu.dot_dimension_numbers<[1], [0], [0], [1], [0, 0, 1, 1], [], []>} : vector<32x8xf32>, vector<8x128xf32>, vector<32x128xf32> -> vector<32x128xf32>
    %158 = arith.addf %137, %157 : vector<32x128xf32>
    %159 = vector.extract_strided_slice %9 {offsets = [0, 56], sizes = [32, 8], strides = [1, 1]} : vector<32x240xf32> to vector<32x8xf32>
    %160 = vector.shape_cast %159 : vector<32x8xf32> to vector<4x8x8xf32>
    %161 = vector.extract_strided_slice %9 {offsets = [0, 136], sizes = [32, 8], strides = [1, 1]} : vector<32x240xf32> to vector<32x8xf32>
    %162 = vector.shape_cast %161 : vector<32x8xf32> to vector<4x8x8xf32>
    %163 = vector.extract_strided_slice %9 {offsets = [0, 216], sizes = [32, 8], strides = [1, 1]} : vector<32x240xf32> to vector<32x8xf32>
    %164 = vector.shape_cast %163 : vector<32x8xf32> to vector<4x8x8xf32>
    "tpu.trace_start"() <{level = 10 : i32, message = "bqd,bkd->bqk"}> : () -> ()
    %cst_44 = arith.constant dense<0.000000e+00> : vector<4x8x8xf32>
    %165 = tpu.matmul %160, %162, %cst_44 {dimension_numbers = #tpu.dot_dimension_numbers<[2], [2], [1], [1], [0, 0, 0, 1, 1, 1], [0], [0]>} : vector<4x8x8xf32>, vector<4x8x8xf32>, vector<4x8x8xf32> -> vector<4x8x8xf32>
    "tpu.trace_stop"() : () -> ()
    %cst_45 = arith.constant dense<0xFF800000> : vector<4x8xf32>
    %166 = vector.multi_reduction <maximumf>, %165, %cst_45 [2] : vector<4x8x8xf32> to vector<4x8xf32>
    %167 = vector.shape_cast %166 : vector<4x8xf32> to vector<4x8x1xf32>
    %168 = vector.broadcast %167 : vector<4x8x1xf32> to vector<4x8x8xf32>
    %169 = arith.subf %165, %168 : vector<4x8x8xf32>
    %170 = math.exp %169 : vector<4x8x8xf32>
    %cst_46 = arith.constant dense<0.000000e+00> : vector<4x8xf32>
    %171 = vector.multi_reduction <add>, %170, %cst_46 [2] : vector<4x8x8xf32> to vector<4x8xf32>
    %172 = vector.shape_cast %171 : vector<4x8xf32> to vector<4x8x1xf32>
    %173 = vector.broadcast %172 : vector<4x8x1xf32> to vector<4x8x8xf32>
    %174 = arith.divf %170, %173 : vector<4x8x8xf32>
    "tpu.trace_start"() <{level = 10 : i32, message = "bqk,bkd->bqd"}> : () -> ()
    %cst_47 = arith.constant dense<0.000000e+00> : vector<4x8x8xf32>
    %175 = tpu.matmul %174, %164, %cst_47 {dimension_numbers = #tpu.dot_dimension_numbers<[2], [1], [1], [2], [0, 0, 0, 1, 1, 2], [0], [0]>} : vector<4x8x8xf32>, vector<4x8x8xf32>, vector<4x8x8xf32> -> vector<4x8x8xf32>
    "tpu.trace_stop"() : () -> ()
    %176 = vector.shape_cast %175 : vector<4x8x8xf32> to vector<32x8xf32>
    %177 = vector.extract_strided_slice %10 {offsets = [56, 0], sizes = [8, 128], strides = [1, 1]} : vector<80x128xf32> to vector<8x128xf32>
    %cst_48 = arith.constant dense<0.000000e+00> : vector<32x128xf32>
    %178 = tpu.matmul %176, %177, %cst_48 {dimension_numbers = #tpu.dot_dimension_numbers<[1], [0], [0], [1], [0, 0, 1, 1], [], []>} : vector<32x8xf32>, vector<8x128xf32>, vector<32x128xf32> -> vector<32x128xf32>
    %179 = arith.addf %158, %178 : vector<32x128xf32>
    %180 = vector.extract_strided_slice %9 {offsets = [0, 64], sizes = [32, 8], strides = [1, 1]} : vector<32x240xf32> to vector<32x8xf32>
    %181 = vector.shape_cast %180 : vector<32x8xf32> to vector<4x8x8xf32>
    %182 = vector.extract_strided_slice %9 {offsets = [0, 144], sizes = [32, 8], strides = [1, 1]} : vector<32x240xf32> to vector<32x8xf32>
    %183 = vector.shape_cast %182 : vector<32x8xf32> to vector<4x8x8xf32>
    %184 = vector.extract_strided_slice %9 {offsets = [0, 224], sizes = [32, 8], strides = [1, 1]} : vector<32x240xf32> to vector<32x8xf32>
    %185 = vector.shape_cast %184 : vector<32x8xf32> to vector<4x8x8xf32>
    "tpu.trace_start"() <{level = 10 : i32, message = "bqd,bkd->bqk"}> : () -> ()
    %cst_49 = arith.constant dense<0.000000e+00> : vector<4x8x8xf32>
    %186 = tpu.matmul %181, %183, %cst_49 {dimension_numbers = #tpu.dot_dimension_numbers<[2], [2], [1], [1], [0, 0, 0, 1, 1, 1], [0], [0]>} : vector<4x8x8xf32>, vector<4x8x8xf32>, vector<4x8x8xf32> -> vector<4x8x8xf32>
    "tpu.trace_stop"() : () -> ()
    %cst_50 = arith.constant dense<0xFF800000> : vector<4x8xf32>
    %187 = vector.multi_reduction <maximumf>, %186, %cst_50 [2] : vector<4x8x8xf32> to vector<4x8xf32>
    %188 = vector.shape_cast %187 : vector<4x8xf32> to vector<4x8x1xf32>
    %189 = vector.broadcast %188 : vector<4x8x1xf32> to vector<4x8x8xf32>
    %190 = arith.subf %186, %189 : vector<4x8x8xf32>
    %191 = math.exp %190 : vector<4x8x8xf32>
    %cst_51 = arith.constant dense<0.000000e+00> : vector<4x8xf32>
    %192 = vector.multi_reduction <add>, %191, %cst_51 [2] : vector<4x8x8xf32> to vector<4x8xf32>
    %193 = vector.shape_cast %192 : vector<4x8xf32> to vector<4x8x1xf32>
    %194 = vector.broadcast %193 : vector<4x8x1xf32> to vector<4x8x8xf32>
    %195 = arith.divf %191, %194 : vector<4x8x8xf32>
    "tpu.trace_start"() <{level = 10 : i32, message = "bqk,bkd->bqd"}> : () -> ()
    %cst_52 = arith.constant dense<0.000000e+00> : vector<4x8x8xf32>
    %196 = tpu.matmul %195, %185, %cst_52 {dimension_numbers = #tpu.dot_dimension_numbers<[2], [1], [1], [2], [0, 0, 0, 1, 1, 2], [0], [0]>} : vector<4x8x8xf32>, vector<4x8x8xf32>, vector<4x8x8xf32> -> vector<4x8x8xf32>
    "tpu.trace_stop"() : () -> ()
    %197 = vector.shape_cast %196 : vector<4x8x8xf32> to vector<32x8xf32>
    %198 = vector.extract_strided_slice %10 {offsets = [64, 0], sizes = [8, 128], strides = [1, 1]} : vector<80x128xf32> to vector<8x128xf32>
    %cst_53 = arith.constant dense<0.000000e+00> : vector<32x128xf32>
    %199 = tpu.matmul %197, %198, %cst_53 {dimension_numbers = #tpu.dot_dimension_numbers<[1], [0], [0], [1], [0, 0, 1, 1], [], []>} : vector<32x8xf32>, vector<8x128xf32>, vector<32x128xf32> -> vector<32x128xf32>
    %200 = arith.addf %179, %199 : vector<32x128xf32>
    %201 = vector.extract_strided_slice %9 {offsets = [0, 72], sizes = [32, 8], strides = [1, 1]} : vector<32x240xf32> to vector<32x8xf32>
    %202 = vector.shape_cast %201 : vector<32x8xf32> to vector<4x8x8xf32>
    %203 = vector.extract_strided_slice %9 {offsets = [0, 152], sizes = [32, 8], strides = [1, 1]} : vector<32x240xf32> to vector<32x8xf32>
    %204 = vector.shape_cast %203 : vector<32x8xf32> to vector<4x8x8xf32>
    %205 = vector.extract_strided_slice %9 {offsets = [0, 232], sizes = [32, 8], strides = [1, 1]} : vector<32x240xf32> to vector<32x8xf32>
    %206 = vector.shape_cast %205 : vector<32x8xf32> to vector<4x8x8xf32>
    "tpu.trace_start"() <{level = 10 : i32, message = "bqd,bkd->bqk"}> : () -> ()
    %cst_54 = arith.constant dense<0.000000e+00> : vector<4x8x8xf32>
    %207 = tpu.matmul %202, %204, %cst_54 {dimension_numbers = #tpu.dot_dimension_numbers<[2], [2], [1], [1], [0, 0, 0, 1, 1, 1], [0], [0]>} : vector<4x8x8xf32>, vector<4x8x8xf32>, vector<4x8x8xf32> -> vector<4x8x8xf32>
    "tpu.trace_stop"() : () -> ()
    %cst_55 = arith.constant dense<0xFF800000> : vector<4x8xf32>
    %208 = vector.multi_reduction <maximumf>, %207, %cst_55 [2] : vector<4x8x8xf32> to vector<4x8xf32>
    %209 = vector.shape_cast %208 : vector<4x8xf32> to vector<4x8x1xf32>
    %210 = vector.broadcast %209 : vector<4x8x1xf32> to vector<4x8x8xf32>
    %211 = arith.subf %207, %210 : vector<4x8x8xf32>
    %212 = math.exp %211 : vector<4x8x8xf32>
    %cst_56 = arith.constant dense<0.000000e+00> : vector<4x8xf32>
    %213 = vector.multi_reduction <add>, %212, %cst_56 [2] : vector<4x8x8xf32> to vector<4x8xf32>
    %214 = vector.shape_cast %213 : vector<4x8xf32> to vector<4x8x1xf32>
    %215 = vector.broadcast %214 : vector<4x8x1xf32> to vector<4x8x8xf32>
    %216 = arith.divf %212, %215 : vector<4x8x8xf32>
    "tpu.trace_start"() <{level = 10 : i32, message = "bqk,bkd->bqd"}> : () -> ()
    %cst_57 = arith.constant dense<0.000000e+00> : vector<4x8x8xf32>
    %217 = tpu.matmul %216, %206, %cst_57 {dimension_numbers = #tpu.dot_dimension_numbers<[2], [1], [1], [2], [0, 0, 0, 1, 1, 2], [0], [0]>} : vector<4x8x8xf32>, vector<4x8x8xf32>, vector<4x8x8xf32> -> vector<4x8x8xf32>
    "tpu.trace_stop"() : () -> ()
    %218 = vector.shape_cast %217 : vector<4x8x8xf32> to vector<32x8xf32>
    %219 = vector.extract_strided_slice %10 {offsets = [72, 0], sizes = [8, 128], strides = [1, 1]} : vector<80x128xf32> to vector<8x128xf32>
    %cst_58 = arith.constant dense<0.000000e+00> : vector<32x128xf32>
    %220 = tpu.matmul %218, %219, %cst_58 {dimension_numbers = #tpu.dot_dimension_numbers<[1], [0], [0], [1], [0, 0, 1, 1], [], []>} : vector<32x8xf32>, vector<8x128xf32>, vector<32x128xf32> -> vector<32x128xf32>
    %221 = arith.addf %200, %220 : vector<32x128xf32>
    %c0_59 = arith.constant 0 : index
    %c0_60 = arith.constant 0 : index
    %222 = vector.load %arg5[%c0_59, %c0_60] : memref<1x128xf32, #tpu.memory_space<vmem>>, vector<1x128xf32>
    %223 = vector.broadcast %222 : vector<1x128xf32> to vector<32x128xf32>
    %224 = arith.addf %221, %223 : vector<32x128xf32>
    %225 = arith.addf %1, %224 : vector<32x128xf32>
    %c0_61 = arith.constant 0 : index
    %c0_62 = arith.constant 0 : index
    %226 = vector.load %arg6[%c0_61, %c0_62] : memref<1x128xf32, #tpu.memory_space<vmem>>, vector<1x128xf32>
    %c0_63 = arith.constant 0 : index
    %c0_64 = arith.constant 0 : index
    %227 = vector.load %arg7[%c0_63, %c0_64] : memref<1x128xf32, #tpu.memory_space<vmem>>, vector<1x128xf32>
    %cst_65 = arith.constant dense<0.000000e+00> : vector<32xf32>
    %228 = vector.multi_reduction <add>, %225, %cst_65 [1] : vector<32x128xf32> to vector<32xf32>
    %229 = vector.shape_cast %228 : vector<32xf32> to vector<32x1xf32>
    %cst_66 = arith.constant 2.500000e-02 : f32
    %230 = vector.broadcast %cst_66 : f32 to vector<32x1xf32>
    %231 = arith.mulf %229, %230 : vector<32x1xf32>
    %232 = vector.broadcast %231 : vector<32x1xf32> to vector<32x128xf32>
    %233 = arith.subf %225, %232 : vector<32x128xf32>
    %234 = arith.mulf %233, %233 : vector<32x128xf32>
    %cst_67 = arith.constant 0.000000e+00 : f32
    %235 = vector.shape_cast %4 : vector<1x128xi1> to vector<1x128xi1>
    %236 = vector.broadcast %235 : vector<1x128xi1> to vector<32x128xi1>
    %237 = vector.broadcast %cst_67 : f32 to vector<32x128xf32>
    %238 = arith.select %236, %234, %237 : vector<32x128xi1>, vector<32x128xf32>
    %cst_68 = arith.constant dense<0.000000e+00> : vector<32xf32>
    %239 = vector.multi_reduction <add>, %238, %cst_68 [1] : vector<32x128xf32> to vector<32xf32>
    %240 = vector.shape_cast %239 : vector<32xf32> to vector<32x1xf32>
    %cst_69 = arith.constant 2.500000e-02 : f32
    %241 = vector.broadcast %cst_69 : f32 to vector<32x1xf32>
    %242 = arith.mulf %240, %241 : vector<32x1xf32>
    %cst_70 = arith.constant 9.99999974E-6 : f32
    %243 = vector.broadcast %cst_70 : f32 to vector<32x1xf32>
    %244 = arith.addf %242, %243 : vector<32x1xf32>
    %245 = math.rsqrt %244 : vector<32x1xf32>
    %246 = vector.broadcast %245 : vector<32x1xf32> to vector<32x128xf32>
    %247 = arith.mulf %233, %246 : vector<32x128xf32>
    %248 = vector.broadcast %226 : vector<1x128xf32> to vector<32x128xf32>
    %249 = arith.mulf %247, %248 : vector<32x128xf32>
    %250 = vector.broadcast %227 : vector<1x128xf32> to vector<32x128xf32>
    %251 = arith.addf %249, %250 : vector<32x128xf32>
    %c0_71 = arith.constant 0 : index
    %c0_72 = arith.constant 0 : index
    %252 = vector.load %arg8[%c0_71, %c0_72] : memref<128x2048xf32, #tpu.memory_space<vmem>>, vector<128x2048xf32>
    %cst_73 = arith.constant dense<0.000000e+00> : vector<32x2048xf32>
    %253 = tpu.matmul %251, %252, %cst_73 {dimension_numbers = #tpu.dot_dimension_numbers<[1], [0], [0], [1], [0, 0, 1, 1], [], []>} : vector<32x128xf32>, vector<128x2048xf32>, vector<32x2048xf32> -> vector<32x2048xf32>
    %c0_74 = arith.constant 0 : index
    %c0_75 = arith.constant 0 : index
    %254 = vector.load %arg9[%c0_74, %c0_75] : memref<1x2048xf32, #tpu.memory_space<vmem>>, vector<1x2048xf32>
    %255 = vector.broadcast %254 : vector<1x2048xf32> to vector<32x2048xf32>
    %256 = arith.addf %253, %255 : vector<32x2048xf32>
    %cst_76 = arith.constant 0.000000e+00 : f32
    %257 = vector.broadcast %cst_76 : f32 to vector<32x2048xf32>
    %258 = arith.maximumf %256, %257 : vector<32x2048xf32>
    %c0_77 = arith.constant 0 : index
    %c0_78 = arith.constant 0 : index
    %259 = vector.load %arg10[%c0_77, %c0_78] : memref<2048x128xf32, #tpu.memory_space<vmem>>, vector<2048x128xf32>
    %cst_79 = arith.constant dense<0.000000e+00> : vector<32x128xf32>
    %260 = tpu.matmul %258, %259, %cst_79 {dimension_numbers = #tpu.dot_dimension_numbers<[1], [0], [0], [1], [0, 0, 1, 1], [], []>} : vector<32x2048xf32>, vector<2048x128xf32>, vector<32x128xf32> -> vector<32x128xf32>
    %c0_80 = arith.constant 0 : index
    %c0_81 = arith.constant 0 : index
    %261 = vector.load %arg11[%c0_80, %c0_81] : memref<1x128xf32, #tpu.memory_space<vmem>>, vector<1x128xf32>
    %262 = vector.broadcast %261 : vector<1x128xf32> to vector<32x128xf32>
    %263 = arith.addf %260, %262 : vector<32x128xf32>
    %264 = arith.addf %251, %263 : vector<32x128xf32>
    %c0_82 = arith.constant 0 : index
    %c0_83 = arith.constant 0 : index
    %265 = vector.load %arg12[%c0_82, %c0_83] : memref<1x128xf32, #tpu.memory_space<vmem>>, vector<1x128xf32>
    %c0_84 = arith.constant 0 : index
    %c0_85 = arith.constant 0 : index
    %266 = vector.load %arg13[%c0_84, %c0_85] : memref<1x128xf32, #tpu.memory_space<vmem>>, vector<1x128xf32>
    %cst_86 = arith.constant dense<0.000000e+00> : vector<32xf32>
    %267 = vector.multi_reduction <add>, %264, %cst_86 [1] : vector<32x128xf32> to vector<32xf32>
    %268 = vector.shape_cast %267 : vector<32xf32> to vector<32x1xf32>
    %cst_87 = arith.constant 2.500000e-02 : f32
    %269 = vector.broadcast %cst_87 : f32 to vector<32x1xf32>
    %270 = arith.mulf %268, %269 : vector<32x1xf32>
    %271 = vector.broadcast %270 : vector<32x1xf32> to vector<32x128xf32>
    %272 = arith.subf %264, %271 : vector<32x128xf32>
    %273 = arith.mulf %272, %272 : vector<32x128xf32>
    %cst_88 = arith.constant 0.000000e+00 : f32
    %274 = vector.shape_cast %4 : vector<1x128xi1> to vector<1x128xi1>
    %275 = vector.broadcast %274 : vector<1x128xi1> to vector<32x128xi1>
    %276 = vector.broadcast %cst_88 : f32 to vector<32x128xf32>
    %277 = arith.select %275, %273, %276 : vector<32x128xi1>, vector<32x128xf32>
    %cst_89 = arith.constant dense<0.000000e+00> : vector<32xf32>
    %278 = vector.multi_reduction <add>, %277, %cst_89 [1] : vector<32x128xf32> to vector<32xf32>
    %279 = vector.shape_cast %278 : vector<32xf32> to vector<32x1xf32>
    %cst_90 = arith.constant 2.500000e-02 : f32
    %280 = vector.broadcast %cst_90 : f32 to vector<32x1xf32>
    %281 = arith.mulf %279, %280 : vector<32x1xf32>
    %cst_91 = arith.constant 9.99999974E-6 : f32
    %282 = vector.broadcast %cst_91 : f32 to vector<32x1xf32>
    %283 = arith.addf %281, %282 : vector<32x1xf32>
    %284 = math.rsqrt %283 : vector<32x1xf32>
    %285 = vector.broadcast %284 : vector<32x1xf32> to vector<32x128xf32>
    %286 = arith.mulf %272, %285 : vector<32x128xf32>
    %287 = vector.broadcast %265 : vector<1x128xf32> to vector<32x128xf32>
    %288 = arith.mulf %286, %287 : vector<32x128xf32>
    %289 = vector.broadcast %266 : vector<1x128xf32> to vector<32x128xf32>
    %290 = arith.addf %288, %289 : vector<32x128xf32>
    %cst_92 = arith.constant 0.000000e+00 : f32
    %291 = vector.broadcast %cst_92 : f32 to vector<32x128xf32>
    %292 = arith.cmpf ogt, %290, %291 : vector<32x128xf32>
    %cst_93 = arith.constant 1.000000e-01 : f32
    %293 = vector.broadcast %cst_93 : f32 to vector<32x128xf32>
    %294 = arith.mulf %293, %290 : vector<32x128xf32>
    %295 = arith.select %292, %290, %294 : vector<32x128xi1>, vector<32x128xf32>
    %c0_94 = arith.constant 0 : index
    %c0_95 = arith.constant 0 : index
    %296 = vector.load %arg14[%c0_94, %c0_95] : memref<128x384xf32, #tpu.memory_space<vmem>>, vector<128x384xf32>
    %cst_96 = arith.constant dense<0.000000e+00> : vector<32x384xf32>
    %297 = tpu.matmul %1, %296, %cst_96 {dimension_numbers = #tpu.dot_dimension_numbers<[1], [0], [0], [1], [0, 0, 1, 1], [], []>} : vector<32x128xf32>, vector<128x384xf32>, vector<32x384xf32> -> vector<32x384xf32>
    %cst_97 = arith.constant 0.000000e+00 : f32
    %298 = vector.broadcast %cst_97 : f32 to vector<4x8x128xf32>
    %299 = vector.extract_strided_slice %297 {offsets = [0, 0], sizes = [32, 128], strides = [1, 1]} : vector<32x384xf32> to vector<32x128xf32>
    %300 = vector.shape_cast %299 : vector<32x128xf32> to vector<4x8x128xf32>
    %cst_98 = arith.constant 0.000000e+00 : f32
    %301 = vector.broadcast %cst_98 : f32 to vector<4x1x128xf32>
    %302 = vector.extract_strided_slice %300 {offsets = [0, 0, 0], sizes = [4, 7, 128], strides = [1, 1, 1]} : vector<4x8x128xf32> to vector<4x7x128xf32>
    %303 = tpu.concatenate %301, %302 in 1 : vector<4x1x128xf32>, vector<4x7x128xf32> -> vector<4x8x128xf32>
    %304 = arith.addf %298, %303 : vector<4x8x128xf32>
    %305 = vector.extract_strided_slice %297 {offsets = [0, 128], sizes = [32, 128], strides = [1, 1]} : vector<32x384xf32> to vector<32x128xf32>
    %306 = vector.shape_cast %305 : vector<32x128xf32> to vector<4x8x128xf32>
    %307 = arith.addf %304, %306 : vector<4x8x128xf32>
    %308 = vector.extract_strided_slice %297 {offsets = [0, 256], sizes = [32, 128], strides = [1, 1]} : vector<32x384xf32> to vector<32x128xf32>
    %309 = vector.shape_cast %308 : vector<32x128xf32> to vector<4x8x128xf32>
    %310 = vector.extract_strided_slice %309 {offsets = [0, 1, 0], sizes = [4, 7, 128], strides = [1, 1, 1]} : vector<4x8x128xf32> to vector<4x7x128xf32>
    %cst_99 = arith.constant 0.000000e+00 : f32
    %311 = vector.broadcast %cst_99 : f32 to vector<4x1x128xf32>
    %312 = tpu.concatenate %310, %311 in 1 : vector<4x7x128xf32>, vector<4x1x128xf32> -> vector<4x8x128xf32>
    %313 = arith.addf %307, %312 : vector<4x8x128xf32>
    %314 = vector.shape_cast %313 : vector<4x8x128xf32> to vector<32x128xf32>
    %c0_100 = arith.constant 0 : index
    %c0_101 = arith.constant 0 : index
    %315 = vector.load %arg15[%c0_100, %c0_101] : memref<1x128xf32, #tpu.memory_space<vmem>>, vector<1x128xf32>
    %316 = vector.broadcast %315 : vector<1x128xf32> to vector<32x128xf32>
    %317 = arith.addf %314, %316 : vector<32x128xf32>
    %cst_102 = arith.constant 0.000000e+00 : f32
    %318 = vector.broadcast %cst_102 : f32 to vector<32x128xf32>
    %319 = arith.cmpf ogt, %317, %318 : vector<32x128xf32>
    %cst_103 = arith.constant 1.000000e-01 : f32
    %320 = vector.broadcast %cst_103 : f32 to vector<32x128xf32>
    %321 = arith.mulf %320, %317 : vector<32x128xf32>
    %322 = arith.select %319, %317, %321 : vector<32x128xi1>, vector<32x128xf32>
    %323 = arith.mulf %295, %322 : vector<32x128xf32>
    %324 = vector.shape_cast %323 : vector<32x128xf32> to vector<4x8x128xf32>
    %c0_104 = arith.constant 0 : index
    %c0_105 = arith.constant 0 : index
    %c0_106 = arith.constant 0 : index
    %325 = vector.load %arg16[%c0_104, %c0_105, %c0_106] : memref<4x8x128xf32, #tpu.memory_space<vmem>>, vector<4x8x128xf32>
    tpu.vector_store %arg16[%c0_104, %c0_105, %c0_106], %324 {strides = array<i32>} : memref<4x8x128xf32, #tpu.memory_space<vmem>>, vector<4x8x128xf32>,
    return
  }
  func.func @transform_0(%arg0: i32) -> (i32, i32, i32) {
    %c0_i32 = arith.constant 0 : i32
    %c0_i32_0 = arith.constant 0 : i32
    %c0_i32_1 = arith.constant 0 : i32
    return %arg0, %c0_i32, %c0_i32_0 : i32, i32, i32
  }
  func.func @transform_1(%arg0: i32) -> (i32, i32) {
    %c0_i32 = arith.constant 0 : i32
    %c0_i32_0 = arith.constant 0 : i32
    %c0_i32_1 = arith.constant 0 : i32
    return %c0_i32, %c0_i32_0 : i32, i32
  }
  func.func @transform_2(%arg0: i32) -> (i32, i32) {
    %c0_i32 = arith.constant 0 : i32
    %c0_i32_0 = arith.constant 0 : i32
    %c0_i32_1 = arith.constant 0 : i32
    return %c0_i32, %c0_i32_0 : i32, i32
  }
  func.func @transform_3(%arg0: i32) -> (i32, i32) {
    %c0_i32 = arith.constant 0 : i32
    %c0_i32_0 = arith.constant 0 : i32
    %c0_i32_1 = arith.constant 0 : i32
    return %c0_i32, %c0_i32_0 : i32, i32
  }
  func.func @transform_4(%arg0: i32) -> (i32, i32) {
    %c0_i32 = arith.constant 0 : i32
    %c0_i32_0 = arith.constant 0 : i32
    %c0_i32_1 = arith.constant 0 : i32
    return %c0_i32, %c0_i32_0 : i32, i32
  }
  func.func @transform_5(%arg0: i32) -> (i32, i32) {
    %c0_i32 = arith.constant 0 : i32
    %c0_i32_0 = arith.constant 0 : i32
    %c0_i32_1 = arith.constant 0 : i32
    return %c0_i32, %c0_i32_0 : i32, i32
  }
  func.func @transform_6(%arg0: i32) -> (i32, i32) {
    %c0_i32 = arith.constant 0 : i32
    %c0_i32_0 = arith.constant 0 : i32
    %c0_i32_1 = arith.constant 0 : i32
    return %c0_i32, %c0_i32_0 : i32, i32
  }
  func.func @transform_7(%arg0: i32) -> (i32, i32) {
    %c0_i32 = arith.constant 0 : i32
    %c0_i32_0 = arith.constant 0 : i32
    %c0_i32_1 = arith.constant 0 : i32
    return %c0_i32, %c0_i32_0 : i32, i32
  }
  func.func @transform_8(%arg0: i32) -> (i32, i32) {
    %c0_i32 = arith.constant 0 : i32
    %c0_i32_0 = arith.constant 0 : i32
    %c0_i32_1 = arith.constant 0 : i32
    return %c0_i32, %c0_i32_0 : i32, i32
  }
  func.func @transform_9(%arg0: i32) -> (i32, i32) {
    %c0_i32 = arith.constant 0 : i32
    %c0_i32_0 = arith.constant 0 : i32
    %c0_i32_1 = arith.constant 0 : i32
    return %c0_i32, %c0_i32_0 : i32, i32
  }
  func.func @transform_10(%arg0: i32) -> (i32, i32) {
    %c0_i32 = arith.constant 0 : i32
    %c0_i32_0 = arith.constant 0 : i32
    %c0_i32_1 = arith.constant 0 : i32
    return %c0_i32, %c0_i32_0 : i32, i32
  }
  func.func @transform_11(%arg0: i32) -> (i32, i32) {
    %c0_i32 = arith.constant 0 : i32
    %c0_i32_0 = arith.constant 0 : i32
    %c0_i32_1 = arith.constant 0 : i32
    return %c0_i32, %c0_i32_0 : i32, i32
  }
  func.func @transform_12(%arg0: i32) -> (i32, i32) {
    %c0_i32 = arith.constant 0 : i32
    %c0_i32_0 = arith.constant 0 : i32
    %c0_i32_1 = arith.constant 0 : i32
    return %c0_i32, %c0_i32_0 : i32, i32
  }
  func.func @transform_13(%arg0: i32) -> (i32, i32) {
    %c0_i32 = arith.constant 0 : i32
    %c0_i32_0 = arith.constant 0 : i32
    %c0_i32_1 = arith.constant 0 : i32
    return %c0_i32, %c0_i32_0 : i32, i32
  }
  func.func @transform_14(%arg0: i32) -> (i32, i32) {
    %c0_i32 = arith.constant 0 : i32
    %c0_i32_0 = arith.constant 0 : i32
    %c0_i32_1 = arith.constant 0 : i32
    return %c0_i32, %c0_i32_0 : i32, i32
  }
  func.func @transform_15(%arg0: i32) -> (i32, i32, i32) {
    %c0_i32 = arith.constant 0 : i32
    %c0_i32_0 = arith.constant 0 : i32
    %c0_i32_1 = arith.constant 0 : i32
    return %arg0, %c0_i32, %c0_i32_0 : i32, i32, i32
  }
}

</mosaic_0001>

<bundles_post_ra>
// kernel: tpu_custom_call.1
= control target key start
LH: loop header
LB: loop body
LE: loop exit
PB: predicated region body
PF: predicated region fallthrough
CT: control target
= control target key end

     0   :  { %s15516_s0 = inlined_call_operand.vmem [shape: f32[8,8,128], index: 0, kind: input, shape index: {}]   ;;  %s15517_s1 = inlined_call_operand.vmem [shape: f32[128,240], index: 1, kind: input, shape index: {}]   ;;  %s15518_s2 = inlined_call_operand.hbm [shape: f32[1,240], index: 2, kind: input, shape index: {}]   ;;  %s15519_s3 = inlined_call_operand.vmem [shape: f32[80,128], index: 3, kind: input, shape index: {}]   ;;  %s15520_s4 = inlined_call_operand.vmem [shape: f32[1,128], index: 4, kind: input, shape index: {}]   ;;  %s15521_s5 = inlined_call_operand.hbm [shape: f32[1,128], index: 5, kind: input, shape index: {}]   ;;  %s15522_s6 = inlined_call_operand.hbm [shape: f32[1,128], index: 6, kind: input, shape index: {}]   ;;  %s15523_s7 = inlined_call_operand.hbm [shape: f32[128,2048], index: 7, kind: input, shape index: {}]   ;;  %s15524_s8 = inlined_call_operand.vmem [shape: f32[1,2048], index: 8, kind: input, shape index: {}]   ;;  %s15525_s9 = inlined_call_operand.hbm [shape: f32[2048,128], index: 9, kind: input, shape index: {}]   ;;  %s15526_s10 = inlined_call_operand.hbm [shape: f32[1,128], index: 10, kind: input, shape index: {}]   ;;  %s15527_s11 = inlined_call_operand.hbm [shape: f32[1,128], index: 11, kind: input, shape index: {}]   ;;  %s15528_s12 = inlined_call_operand.hbm [shape: f32[1,128], index: 12, kind: input, shape index: {}]   ;;  %s15529_s13 = inlined_call_operand.vmem [shape: f32[128,384], index: 13, kind: input, shape index: {}]   ;;  %s15530_s14 = inlined_call_operand.vmem [shape: f32[1,128], index: 14, kind: input, shape index: {}]   ;;  %s15531_s15 = inlined_call_operand.hbm [shape: f32[8,8,128], index: 15, kind: output, shape index: {}]  }
   0x1   :  { %15545 = sst [smem:[#allocation30_spill]] %s15518_s2 }
   0x2   :  { %15546 = sst [smem:[#allocation31_spill]] %s15521_s5 }
   0x3   :  { %15547 = sst [smem:[#allocation32_spill]] %s15522_s6 }
   0x4   :  { %15548 = sst [smem:[#allocation33_spill]] %s15530_s14 }
   0x5   :  { %15549 = sst [smem:[#allocation34_spill]] %s15531_s15 }
   0x6   :  { %20 = vsyncpa [#allocation3], 0 }
   0x7   :  { %21 = vsyncpa [#allocation6], 0 }
   0x8   :  { %22 = vsyncpa [#allocation9], 0 }
   0x9   :  { %23 = vsyncpa [#allocation12], 0 }
   0xa   :  { %24 = vsyncpa [#allocation15], 0 }
   0xb   :  { %25 = vsyncpa [#allocation4], 0 }
   0xc   :  { %27 = vsyncpa [#allocation4 + $0x1], 0  ;;  %s13715_s18 = smov 0   ;;  %s13717_s19 = smov 0  }
   0xd   :  { %s13719_s20 = smov 0   ;;  %s13721_s21 = smov 0  }
   0xe LB: > { %15550 = sst [smem:[#allocation23_spill]] %s13591_s18  ;;  %s13736_s22 = sadd.s32 4294967295, %s13603_s21   ;;  %s13603_s21 = sphi %s13721_s21, %s15586_s21   ;;  %s13599_s20 = sphi %s13719_s20, %s15588_s20   ;;  %s13595_s19 = sphi %s13717_s19, %s15590_s19   ;;  %s13591_s18 = sphi %s13715_s18, %s15589_s18  }
   0xf   : > { %15551 = sst [smem:[#allocation24_spill]] %s13599_s20  ;;  %s11032_s23 = sadd.s32 4294967294, %s13603_s21  }
  0x10   : > { %15552 = sst [smem:[#allocation25_spill]] %s13603_s21  ;;  %s13740_s24 = sadd.s32 1, %s13603_s21  }
  0x11   : > { %15553 = sst [smem:[#allocation26_spill]] %s13740_s24  ;;  %s360_s25 = sadd.s32 1, %s13599_s20 }
  0x12   : > { %s357_s26 = ssub.s32 %s13603_s21, %s13740_s24  ;;  %p370_p0 = scmp.ne.s32.totalorder %s13599_s20, %s13595_s19 }
  0x13   : > { %p358_p1 = scmp.eq.s32.totalorder %s357_s26, 0  ;;  %p371_p2 = scmp.eq.s32.totalorder %s13736_s22, 1 }
  0x14   : > { %p376_p3 = scmp.ne.s32.totalorder %s13595_s19, %s13591_s18  ;;  %p377_p4 = scmp.eq.s32.totalorder %s11032_s23, 1 }
  0x15   : > { %s13751_s27 = scalar_select %p358_p1, %s13599_s20, %s360_s25  }
  0x16   : > { %p13753_p5 = por %p371_p2, %p370_p0  ;;  %p13757_p6 = por %p377_p4, %p376_p3 }
  0x17   : > { %15554 = sst [smem:[#allocation27_spill]] %s13751_s27  ;;  %p11033_p7 = scmp.ge.s32.totalorder %s13603_s21, 1 }
  0x18   : > { %s15555_s28 = scalar_select %p13753_p5, 1, 0 }
  0x19   : > { %s15557_s29 = scalar_select %p13757_p6, 1, 0 }
  0x1a   : > { %15556 = sst [smem:[#allocation28_spill]] %s15555_s28  ;;  %p384_p8 = scmp.lt.s32.totalorder %s13603_s21, 3 }
  0x1b   : > { %15558 = sst [smem:[#allocation29_spill]] %s15557_s29  ;;  %p15539_p9 = scmp.eq.s32.totalorder %s13736_s22, 0 }
  0x1c   : > { %p13764_p10 = pnand %p11033_p7, %p384_p8  ;;  %s13605_s16 = smov [#allocation5]  }
  0x1d   : > { %s417_s17 = sshll.u32 %s13605_s16, 4  ;;  %s13606_s23 = smov [#allocation8]   ;;  %s418_s17 = int_to_ptr.vmem [resolvable:$true] %s417_s17 }
  0x1e   : > { %s15559_s30 = scalar_select %p13764_p10, 1, 0 }
  0x1f   : > { %p13006_p11 = pneg %p13764_p10  ;;  %s438_s25 = sshll.u32 %s13606_s23, 4  ;;  %s13776_s25 = int_to_ptr.vmem [resolvable:$true] %s438_s25 }
  0x20   : > { %s13607_s27 = smov [#allocation11]   ;;  %s15561_s5 = sld [smem:[#allocation31_spill]] }
  0x21   : > { %p13772_p12 = pnand %p15539_p9, %p13006_p11  ;;  %s13778_s20 = sshll.u32 %s13607_s27, 4  ;;  %s469_s20 = int_to_ptr.vmem [resolvable:$true] %s13778_s20 }
  0x23   : > { %p13788_p0 = pneg %p13772_p12 }
  0x26   : > { %s13297_s16 = scalar_lea.hbm %s15561_s5, 16 }
  0x27   : > { %p13298_p13 = scmp.ne.s32.totalorder %s15561_s5, %s13297_s16  ;;  %p13304_p3 = scmp.lt.u32.totalorder %s13297_s16, %s15561_s5 }
  0x29   : > { %p13300_p1 = pnand %p13788_p0, %p13298_p13 }
  0x2b   : > { %p13301_p2 = pneg %p13300_p1 }
  0x2d   : > { %p13306_p4 = pnand %p13304_p3, %p13301_p2 }
  0x2f   : > { %13309 = shalt.err (!%p13306_p4)
}
  0x30   : > { %s13310_s24 = scalar_lea.vmem %s418_s17, 16  ;;  %s13317_s18 = scalar_lea.vmem %s418_s17, 32 }
  0x31   : > { %p13311_p7 = scmp.ne.s32.totalorder %s418_s17, %s13310_s24  ;;  %p13318_p9 = scmp.lt.s32.totalorder %s418_s17, %s418_s17 }
  0x32   : > { %p13319_p6 = scmp.lt.s32.totalorder %s13317_s18, %s13310_s24 }
  0x33   : > { %p13313_p8 = pnand %p13311_p7, %p13788_p0 }
  0x34   : > { %p13320_p5 = por %p13319_p6, %p13318_p9 }
  0x35   : > { %p13314_p11 = pneg %p13313_p8 }
  0x37   : > { %p13321_p10 = pnand %p13320_p5, %p13314_p11 }
  0x39   : > { %13324 = shalt.err (!%p13321_p10)
}
  0x3a   : > { %13012 = dma.hbm_to_vmem [thread:$0]  (!%p13772_p12), %s15561_s5, 16, %s418_s17, [#allocation6]  }
  0x3b   : > { %s13325_s27 = scalar_lea.hbm %s15523_s7, 32768 }
  0x3c   : > { %p13326_p13 = scmp.ne.s32.totalorder %s15523_s7, %s13325_s27  ;;  %p13332_p5 = scmp.lt.u32.totalorder %s13325_s27, %s15523_s7 }
  0x3e   : > { %p13328_p1 = pnand %p13326_p13, %p13788_p0 }
  0x40   : > { %p13329_p6 = pneg %p13328_p1 }
  0x42   : > { %p13334_p9 = pnand %p13332_p5, %p13329_p6 }
  0x44   : > { %13337 = shalt.err (!%p13334_p9)
}
  0x45   : > { %s13338_s17 = scalar_lea.vmem %s13776_s25, 32768  ;;  %p13346_p4 = scmp.lt.s32.totalorder %s13776_s25, %s13776_s25 }
  0x46   : > { %p13339_p10 = scmp.ne.s32.totalorder %s13776_s25, %s13338_s17  ;;  %p13347_p7 = scmp.lt.s32.totalorder %s13338_s17, %s13338_s17 }
  0x48   : > { %p13341_p2 = pnand %p13339_p10, %p13788_p0  ;;  %p13348_p8 = por %p13347_p7, %p13346_p4 }
  0x4a   : > { %p13342_p3 = pneg %p13341_p2 }
  0x4c   : > { %p13349_p11 = pnand %p13348_p8, %p13342_p3 }
  0x4e   : > { %13352 = shalt.err (!%p13349_p11)
}
  0x4f   : > { %s13608_s14 = smov 2048   ;;  %s15544_s28 = smov 128  }
  0x50   : > { %13018 = dma.hbm_to_vmem [thread:$0]  (!%p13772_p12), %s15523_s7, 32768, %s13776_s25, [#allocation9], %s13608_s14, %s13608_s14, %s15544_s28  }
  0x51   : > { %s13353_s27 = scalar_lea.hbm %s15526_s10, 16 }
  0x52   : > { %p13354_p13 = scmp.ne.s32.totalorder %s15526_s10, %s13353_s27  ;;  %p13360_p5 = scmp.lt.u32.totalorder %s13353_s27, %s15526_s10 }
  0x54   : > { %p13356_p1 = pnand %p13354_p13, %p13788_p0 }
  0x56   : > { %p13357_p6 = pneg %p13356_p1 }
  0x58   : > { %p13362_p9 = pnand %p13360_p5, %p13357_p6 }
  0x5a   : > { %13365 = shalt.err (!%p13362_p9)
}
  0x5b   : > { %s13366_s21 = scalar_lea.vmem %s469_s20, 16  ;;  %s13373_s25 = scalar_lea.vmem %s469_s20, 32 }
  0x5c   : > { %p13367_p10 = scmp.ne.s32.totalorder %s469_s20, %s13366_s21  ;;  %p13374_p4 = scmp.lt.s32.totalorder %s469_s20, %s469_s20 }
  0x5d   : > { %p13375_p7 = scmp.lt.s32.totalorder %s13373_s25, %s13366_s21 }
  0x5e   : > { %p13369_p2 = pnand %p13367_p10, %p13788_p0 }
  0x5f   : > { %p13376_p8 = por %p13375_p7, %p13374_p4 }
  0x60   : > { %p13370_p3 = pneg %p13369_p2 }
  0x62   : > { %p13377_p11 = pnand %p13376_p8, %p13370_p3 }
  0x64   : > { %13380 = shalt.err (!%p13377_p11)
}
  0x65   : > { %13024 = dma.hbm_to_vmem [thread:$0]  (!%p13772_p12), %s15526_s10, 16, %s469_s20, [#allocation12]  }
  0x66   : > { %s13610_s5 = smov [#allocation2]   ;;  %s13611_s16 = smov [#allocation7]  }
  0x67   : > { %s400_s15 = sshll.u32 %s13610_s5, 4  ;;  %s428_s27 = sshll.u32 %s13611_s16, 4  ;;  %s401_s15 = int_to_ptr.vmem [resolvable:$true] %s400_s15  ;;  %s429_s27 = int_to_ptr.vmem [resolvable:$true] %s428_s27 }
  0x68   : > { %s15563_s2 = sld [smem:[#allocation30_spill]] }
  0x6e   : > { %s13381_s17 = scalar_lea.hbm %s15563_s2, 32 }
  0x6f   : > { %p13382_p13 = scmp.ne.s32.totalorder %s15563_s2, %s13381_s17  ;;  %p13388_p5 = scmp.lt.u32.totalorder %s13381_s17, %s15563_s2 }
  0x71   : > { %p13384_p1 = pnand %p13382_p13, %p13788_p0 }
  0x73   : > { %p13385_p6 = pneg %p13384_p1 }
  0x75   : > { %p13390_p9 = pnand %p13388_p5, %p13385_p6 }
  0x77   : > { %13393 = shalt.err (!%p13390_p9)
}
  0x78   : > { %s13394_s20 = scalar_lea.vmem %s401_s15, 32  ;;  %p13402_p4 = scmp.lt.s32.totalorder %s401_s15, %s401_s15 }
  0x79   : > { %p13395_p10 = scmp.ne.s32.totalorder %s401_s15, %s13394_s20  ;;  %p13403_p7 = scmp.lt.s32.totalorder %s13394_s20, %s13394_s20 }
  0x7b   : > { %p13397_p2 = pnand %p13395_p10, %p13788_p0  ;;  %p13404_p8 = por %p13403_p7, %p13402_p4 }
  0x7d   : > { %p13398_p3 = pneg %p13397_p2 }
  0x7f   : > { %p13405_p11 = pnand %p13404_p8, %p13398_p3 }
  0x81   : > { %13408 = shalt.err (!%p13405_p11)
}
  0x82   : > { %13009 = dma.hbm_to_vmem [thread:$0]  (!%p13772_p12), %s15563_s2, 32, %s401_s15, [#allocation3]  }
  0x83   : > { %s15564_s6 = sld [smem:[#allocation32_spill]] }
  0x89   : > { %s13409_s24 = scalar_lea.hbm %s15564_s6, 16 }
  0x8a   : > { %p13410_p13 = scmp.ne.s32.totalorder %s15564_s6, %s13409_s24  ;;  %p13416_p5 = scmp.lt.u32.totalorder %s13409_s24, %s15564_s6 }
  0x8c   : > { %p13412_p1 = pnand %p13410_p13, %p13788_p0 }
  0x8e   : > { %p13413_p6 = pneg %p13412_p1 }
  0x90   : > { %p13418_p9 = pnand %p13416_p5, %p13413_p6 }
  0x92   : > { %13421 = shalt.err (!%p13418_p9)
}
  0x93   : > { %s13422_s14 = scalar_lea.vmem %s429_s27, 16  ;;  %s13429_s15 = scalar_lea.vmem %s429_s27, 32 }
  0x94   : > { %p13423_p10 = scmp.ne.s32.totalorder %s429_s27, %s13422_s14  ;;  %p13430_p4 = scmp.lt.s32.totalorder %s429_s27, %s429_s27 }
  0x95   : > { %p13431_p7 = scmp.lt.s32.totalorder %s13429_s15, %s13422_s14 }
  0x96   : > { %p13425_p2 = pnand %p13423_p10, %p13788_p0 }
  0x97   : > { %p13432_p8 = por %p13431_p7, %p13430_p4 }
  0x98   : > { %p13426_p3 = pneg %p13425_p2 }
  0x9a   : > { %p13433_p11 = pnand %p13432_p8, %p13426_p3 }
  0x9c   : > { %13436 = shalt.err (!%p13433_p11)
}
  0x9d   : > { %13015 = dma.hbm_to_vmem [thread:$0]  (!%p13772_p12), %s15564_s6, 16, %s429_s27, [#allocation6]  }
  0x9e   : > { %s13612_s5 = smov [#allocation10]   ;;  %s13437_s18 = scalar_lea.hbm %s15525_s9, 32768 }
  0x9f   : > { %s454_s28 = sshll.u32 %s13612_s5, 4  ;;  %p13438_p13 = scmp.ne.s32.totalorder %s15525_s9, %s13437_s18  ;;  %s455_s28 = int_to_ptr.vmem [resolvable:$true] %s454_s28 }
  0xa0   : > { %p13444_p5 = scmp.lt.u32.totalorder %s13437_s18, %s15525_s9 }
  0xa1   : > { %p13440_p1 = pnand %p13438_p13, %p13788_p0 }
  0xa3   : > { %p13441_p6 = pneg %p13440_p1 }
  0xa5   : > { %p13446_p9 = pnand %p13444_p5, %p13441_p6 }
  0xa7   : > { %13449 = shalt.err (!%p13446_p9)
}
  0xa8   : > { %s13450_s27 = scalar_lea.vmem %s455_s28, 32768  ;;  %p13458_p4 = scmp.lt.s32.totalorder %s455_s28, %s455_s28 }
  0xa9   : > { %p13451_p10 = scmp.ne.s32.totalorder %s455_s28, %s13450_s27  ;;  %p13459_p7 = scmp.lt.s32.totalorder %s13450_s27, %s13450_s27 }
  0xab   : > { %p13453_p2 = pnand %p13451_p10, %p13788_p0  ;;  %p13460_p8 = por %p13459_p7, %p13458_p4 }
  0xad   : > { %p13454_p3 = pneg %p13453_p2 }
  0xaf   : > { %p13461_p11 = pnand %p13460_p8, %p13454_p3 }
  0xb1   : > { %13464 = shalt.err (!%p13461_p11)
}
  0xb2   : > { %s13613_s15 = smov 8   ;;  %s15565_s20 = smov 128  }
  0xb3   : > { %13021 = dma.hbm_to_vmem [thread:$0]  (!%p13772_p12), %s15525_s9, 32768, %s455_s28, [#allocation9], %s15565_s20, %s15565_s20, %s13613_s15  }
  0xb4   : > { %s13614_s16 = smov [#allocation13]   ;;  %s13615_s18 = smov [#allocation14]  }
  0xb5   : > { %s479_s24 = sshll.u32 %s13614_s16, 4  ;;  %s490_s17 = sshll.u32 %s13615_s18, 4  ;;  %s480_s24 = int_to_ptr.vmem [resolvable:$true] %s479_s24  ;;  %s491_s17 = int_to_ptr.vmem [resolvable:$true] %s490_s17 }
  0xb6   : > { %s13465_s14 = scalar_lea.hbm %s15527_s11, 16 }
  0xb7   : > { %p13466_p13 = scmp.ne.s32.totalorder %s15527_s11, %s13465_s14  ;;  %p13472_p5 = scmp.lt.u32.totalorder %s13465_s14, %s15527_s11 }
  0xb9   : > { %p13468_p1 = pnand %p13466_p13, %p13788_p0 }
  0xbb   : > { %p13469_p6 = pneg %p13468_p1 }
  0xbd   : > { %p13474_p9 = pnand %p13472_p5, %p13469_p6 }
  0xbf   : > { %13477 = shalt.err (!%p13474_p9)
}
  0xc0   : > { %s13478_s28 = scalar_lea.vmem %s480_s24, 16  ;;  %s13485_s15 = scalar_lea.vmem %s480_s24, 32 }
  0xc1   : > { %p13479_p10 = scmp.ne.s32.totalorder %s480_s24, %s13478_s28  ;;  %p13486_p4 = scmp.lt.s32.totalorder %s480_s24, %s480_s24 }
  0xc2   : > { %p13487_p7 = scmp.lt.s32.totalorder %s13485_s15, %s13478_s28 }
  0xc3   : > { %p13481_p2 = pnand %p13479_p10, %p13788_p0 }
  0xc4   : > { %p13488_p8 = por %p13487_p7, %p13486_p4 }
  0xc5   : > { %p13482_p3 = pneg %p13481_p2 }
  0xc7   : > { %p13489_p11 = pnand %p13488_p8, %p13482_p3 }
  0xc9   : > { %13492 = shalt.err (!%p13489_p11)
}
  0xca   : > { %13027 = dma.hbm_to_vmem [thread:$0]  (!%p13772_p12), %s15527_s11, 16, %s480_s24, [#allocation12]  }
  0xcb   : > { %s13493_s16 = scalar_lea.hbm %s15528_s12, 16 }
  0xcc   : > { %p13494_p13 = scmp.ne.s32.totalorder %s15528_s12, %s13493_s16  ;;  %p13500_p5 = scmp.lt.u32.totalorder %s13493_s16, %s15528_s12 }
  0xce   : > { %p13496_p1 = pnand %p13494_p13, %p13788_p0 }
  0xd0   : > { %p13497_p6 = pneg %p13496_p1 }
  0xd2   : > { %p13502_p9 = pnand %p13500_p5, %p13497_p6 }
  0xd4   : > { %13505 = shalt.err (!%p13502_p9)
}
  0xd5   : > { %s13506_s27 = scalar_lea.vmem %s491_s17, 16  ;;  %s13513_s24 = scalar_lea.vmem %s491_s17, 32 }
  0xd6   : > { %p13507_p10 = scmp.ne.s32.totalorder %s491_s17, %s13506_s27  ;;  %p13514_p4 = scmp.lt.s32.totalorder %s491_s17, %s491_s17 }
  0xd7   : > { %p13515_p7 = scmp.lt.s32.totalorder %s13513_s24, %s13506_s27 }
  0xd8   : > { %p13509_p2 = pnand %p13507_p10, %p13788_p0 }
  0xd9   : > { %p13516_p8 = por %p13515_p7, %p13514_p4 }
  0xda   : > { %p13510_p3 = pneg %p13509_p2 }
  0xdc   : > { %p13517_p11 = pnand %p13516_p8, %p13510_p3 }
  0xde   : > { %13520 = shalt.err (!%p13517_p11)
}
  0xdf   : > { %13030 = dma.hbm_to_vmem [thread:$0]  (!%p13772_p12), %s15528_s12, 16, %s491_s17, [#allocation15]  }
  0xe0   : > { %p15566_p13 = scmp.ne.s32.totalorder %s15559_s30, 0 }
  0xe1   : > { %p15567_p1 = scmp.eq.s32.totalorder (!%p15566_p13), %s13736_s22, 0 }
  0xe2   : > { %518 = sbr.rel (%p15566_p13) target bundleno = 9118 (0x239e), region = 80 }
  0xe9   : > { %13566 = dma.done.wait (%p15567_p1), [#allocation3], 32   ;;  %p15568_p0 = pmov %p15567_p1 }
  0xeb   : > { %13568 = vsyncadd (%p15568_p0), [#allocation3], 4294967264  ;;  %p15569_p6 = pmov %p15568_p0 }
  0xec   : > { %p15570_p5 = pmov %p15568_p0 }
  0xed   : > { %13570 = dma.done.wait (%p15569_p6), [#allocation6], 32  }
  0xee   : > { %13572 = vsyncadd (%p15570_p5), [#allocation6], 4294967264  ;;  %p15571_p9 = pmov %p15568_p0 }
  0xef   : > { %p15572_p12 = pmov %p15568_p0 }
  0xf0   : > { %13574 = dma.done.wait (%p15571_p9), [#allocation9], 65536  }
  0xf1   : > { %13576 = vsyncadd (%p15572_p12), [#allocation9], 4294901760  ;;  %p15573_p10 = pmov %p15568_p0 }
  0xf2   : > { %p15574_p2 = pmov %p15568_p0 }
  0xf3   : > { %13578 = dma.done.wait (%p15573_p10), [#allocation12], 32  }
  0xf4   : > { %13580 = vsyncadd (%p15574_p2), [#allocation12], 4294967264  ;;  %p15575_p3 = pmov %p15568_p0 }
  0xf5   : > { %p15576_p4 = pmov %p15568_p0 }
  0xf6   : > { %13582 = dma.done.wait (%p15575_p3), [#allocation15], 16  }
  0xf7   : > { %13584 = vsyncadd (%p15576_p4), [#allocation15], 4294967280  ;;  %v13616_v0 = vmov 0.0   ;;  %v609_v1 = vld [vmem:[%s15517_s1 + $0x8] sm:$0xff]  ;;  %v611_v2 = vld [vmem:[%s15517_s1 + $0x18] sm:$0xff]  ;;  %s11053_s5 = sshll.u32 %s13736_s22, 2  ;;  %v605_v53 = vlaneseq }
  0xf8   : > { %716 = vmatprep.mubr.f32.mxu0 %v13616_v0  ;;  %11810 = vmatprep.subr.mxu1 %v13616_v0  ;;  %v608_v3 = vld [vmem:[%s15517_s1] sm:$0xff]  ;;  %v12328_v4 = vpack.c.bf16 %v611_v2, %v609_v1  ;;  %v610_v5 = vld [vmem:[%s15517_s1 + $0x10] sm:$0xff]  ;;  %v613_v6 = vld [vmem:[%s15517_s1 + $0x28] sm:$0xff]  ;;  %p595_p7 = scmp.lt.s32.totalorder %s11053_s5, 7  ;;  %vm13617_vm0 = vmmov 0   ;;  %vm754_vm1 = vcmask 64512  }
  0xf9   : > { %v615_v7 = vld [vmem:[%s15517_s1 + $0x38] sm:$0xff]  ;;  %v12330_v8 = vpack.c.bf16 %v610_v5, %v608_v3  ;;  %v612_v10 = vld [vmem:[%s15517_s1 + $0x20] sm:$0xff]  ;;  %v614_v11 = vld [vmem:[%s15517_s1 + $0x30] sm:$0xff]  ;;  %v14074_v54 = vshrl.u32 %v605_v53, 7  ;;  %11812 = vmatprep.mubr.msk.f32.mxu1 %vm13617_vm0, %v13616_v0  ;;  %s13619_s29 = smov 96   ;;  %s13620_s28 = smov 120  }
  0xfa   : > { %v12332_v9 = vpack.c.bf16 %v615_v7, %v613_v6  ;;  %v617_v12 = vld [vmem:[%s15517_s1 + $0x48] sm:$0xff]  ;;  %12329 = vmatprep.subr.bf16.mxu0 %v12328_v4  ;;  %v619_v13 = vld [vmem:[%s15517_s1 + $0x58] sm:$0xff]  ;;  %v12334_v14 = vpack.c.bf16 %v614_v11, %v612_v10  ;;  %v616_v16 = vld [vmem:[%s15517_s1 + $0x40] sm:$0xff]  ;;  %s15592_s5 = smov (!%p595_p7, %s11053_s5), 7  ;;  %s13621_s30 = smov 40   ;;  %vm10812_vm3 = vcmask 1040384  }
  0xfb   : > { %12331 = vmatpush1.bf16.msra.mxu0 %v12330_v8  ;;  %v12336_v15 = vpack.c.bf16 %v619_v13, %v617_v12  ;;  %v618_v17 = vld [vmem:[%s15517_s1 + $0x50] sm:$0xff]  ;;  %v621_v18 = vld [vmem:[%s15517_s1 + $0x68] sm:$0xff]  ;;  %v623_v19 = vld [vmem:[%s15517_s1 + $0x78] sm:$0xff]  ;;  %s11054_s25 = sshll.u32 %s15592_s5, 3  ;;  %v14081_v55 = vsub.s32 0, %v14074_v54  ;;  %v14085_v59 = vsub.s32 1, %v14074_v54 }
  0xfc   : > { %12333 = vmatprep.subr.bf16.mxu0 %v12332_v9  ;;  %v12338_v20 = vpack.c.bf16 %v618_v17, %v616_v16  ;;  %v12340_v21 = vpack.c.bf16 %v623_v19, %v621_v18  ;;  %v620_v22 = vld [vmem:[%s15517_s1 + $0x60] sm:$0xff]  ;;  %v622_v23 = vld [vmem:[%s15517_s1 + $0x70] sm:$0xff]  ;;  %v625_v24 = vld [vmem:[%s15517_s1 + $0x88] sm:$0xff]  ;;  %s14063_s24 = scalar_lea.vmem %s15516_s0, %s11054_s25  ;;  %s13618_s5 = smov 48   ;;  %vm10837_vm4 = vcmask 1046528  }
  0xfd   : > { %v627_v25 = vld [vmem:[%s15517_s1 + $0x98] sm:$0xff]  ;;  %v12342_v26 = vpack.c.bf16 %v622_v23, %v620_v22  ;;  %v624_v28 = vld [vmem:[%s15517_s1 + $0x80] sm:$0xff]  ;;  %v626_v29 = vld [vmem:[%s15517_s1 + $0x90] sm:$0xff]  ;;  %s13622_s26 = smov 88   ;;  %s13623_s23 = smov 32  }
  0xfe   : > { %v12344_v27 = vpack.c.bf16 %v627_v25, %v625_v24  ;;  %v629_v30 = vld [vmem:[%s15517_s1 + $0xa8] sm:$0xff]  ;;  %v631_v31 = vld [vmem:[%s15517_s1 + $0xb8] sm:$0xff]  ;;  %v12346_v32 = vpack.c.bf16 %v626_v29, %v624_v28  ;;  %v628_v34 = vld [vmem:[%s15517_s1 + $0xa0] sm:$0xff]  ;;  %s13624_s17 = smov 112   ;;  %s13625_s15 = smov 80  }
  0xff   : > { %12335 = vmatpush1.bf16.msra.mxu0 %v12334_v14  ;;  %v12348_v33 = vpack.c.bf16 %v631_v31, %v629_v30  ;;  %v630_v35 = vld [vmem:[%s15517_s1 + $0xb0] sm:$0xff]  ;;  %v633_v36 = vld [vmem:[%s15517_s1 + $0xc8] sm:$0xff]  ;;  %v635_v37 = vld [vmem:[%s15517_s1 + $0xd8] sm:$0xff]  ;;  %s13626_s18 = smov 104   ;;  %s13627_s21 = smov 24  }
 0x100   : > { %12337 = vmatprep.subr.bf16.mxu0 %v12336_v15  ;;  %v12350_v38 = vpack.c.bf16 %v630_v35, %v628_v34  ;;  %v12352_v39 = vpack.c.bf16 %v635_v37, %v633_v36  ;;  %v632_v40 = vld [vmem:[%s15517_s1 + $0xc0] sm:$0xff]  ;;  %v634_v41 = vld [vmem:[%s15517_s1 + $0xd0] sm:$0xff]  ;;  %v637_v42 = vld [vmem:[%s15517_s1 + $0xe8] sm:$0xff]  ;;  %s13628_s27 = smov 72   ;;  %s13629_s2 = smov 16  }
 0x101   : > { %v639_v43 = vld [vmem:[%s15517_s1 + $0xf8] sm:$0xff]  ;;  %v12354_v44 = vpack.c.bf16 %v634_v41, %v632_v40  ;;  %v636_v46 = vld [vmem:[%s15517_s1 + $0xe0] sm:$0xff]  ;;  %v638_v47 = vld [vmem:[%s15517_s1 + $0xf0] sm:$0xff]  ;;  %s13631_s16 = smov 8   ;;  %s15577_s20 = sld [smem:[#allocation33_spill]] }
 0x102   : > { %v12356_v45 = vpack.c.bf16 %v639_v43, %v637_v42  ;;  %v12358_v48 = vpack.c.bf16 %v638_v47, %v636_v46  ;;  %v601_v49 = vld [vmem:[%s14063_s24] sm:$0xff]  ;;  %v602_v50 = vld [vmem:[%s14063_s24 + $0x8] sm:$0xff]  ;;  %v603_v51 = vld [vmem:[%s14063_s24 + $0x10] sm:$0xff]  ;;  %s13633_s14 = smov [#allocation16]  }
 0x103   : > { %12339 = vmatpush1.bf16.msra.mxu0 %v12338_v20  ;;  %v604_v52 = vld [vmem:[%s14063_s24 + $0x18] sm:$0xff]  ;;  %v640_v56 = vld [vmem:[#allocation2] sm:$0x3] }
 0x104   : > { %12341 = vmatprep.subr.bf16.mxu0 %v12340_v21  ;;  %v645_v57 = vrot.slane %v640_v56, %v14081_v55  ;;  %v649_v62 = vrot.slane %v640_v56, %v14085_v59 }
 0x107   : > { %12343 = vmatpush1.bf16.msra.mxu0 %v12342_v26 }
 0x108   : > { %12345 = vmatprep.subr.bf16.mxu0 %v12344_v27 }
 0x10b   : > { %12347 = vmatpush1.bf16.msra.mxu0 %v12346_v32 }
 0x10c   : > { %12349 = vmatprep.subr.bf16.mxu0 %v12348_v33 }
 0x10f   : > { %12351 = vmatpush1.bf16.msra.mxu0 %v12350_v38 }
 0x110   : > { %12353 = vmatprep.subr.bf16.mxu0 %v12352_v39 }
 0x113   : > { %12355 = vmatpush1.bf16.msra.mxu0 %v12354_v44 }
 0x114   : > { %12357 = vmatprep.subr.bf16.mxu0 %v12356_v45 }
 0x117   : > { %12359 = vmatpush1.bf16.msra.mxu0 %v12358_v48 }
 0x118   : > { %11875 = vmatprep.subr.mxu0 %v13616_v0 }
 0x11a   : > { %717 = vmatmul.mubr.f32.vlgmr.msra.gmra.mrb[0].mxu0 %v601_v49 }
 0x11b   : > { %722 = vmatprep.mubr.f32.mxu0 %v13616_v0 }
 0x11e   : > { %723 = vmatmul.mubr.f32.gmra.mrb[2].mxu0 %v602_v50 }
 0x11f   : > { %728 = vmatprep.mubr.f32.mxu0 %v13616_v0 }
 0x122   : > { %729 = vmatmul.mubr.f32.gmra.mrb[4].mxu0 %v603_v51 }
 0x123   : > { %734 = vmatprep.mubr.f32.mxu0 %v13616_v0 }
 0x126   : > { %735 = vmatmul.mubr.f32.gmra.mrb[6].mxu0 %v604_v52 }
 0x127   : > { %11877 = vmatprep.mubr.msk.f32.mxu0 %vm13617_vm0, %v13616_v0 }
 0x1ed   : > { %v718_v58 = vpop.f32.mrb[0].mxu0 }
 0x1ee   : > { %v14087_v60 = vadd.f32 %v718_v58, %v645_v57  ;;  %v720_v61 = vpop.f32.mrb[1].mxu0 }
 0x1ef   : > { %v14138_v28 = vadd.f32 %v720_v61, %v649_v62 }
 0x1f0   : > { %752 = vrot.lane.b32.xlu0 %v14087_v60, %s13618_s5 }
 0x1f1   : > { %v724_v63 = vpop.f32.mrb[2].mxu0 }
 0x1f2   : > { %v14092_v1 = vadd.f32 %v724_v63, %v645_v57  ;;  %v726_v2 = vpop.f32.mrb[3].mxu0 }
 0x1f3   : > { %v14094_v3 = vadd.f32 %v726_v2, %v649_v62 }
 0x1f4   : > { %830 = vrot.lane.b32.xlu0 %v14092_v1, %s13618_s5 }
 0x1f5   : > { %v730_v4 = vpop.f32.mrb[4].mxu0 }
 0x1f6   : > { %v14098_v5 = vadd.f32 %v730_v4, %v645_v57  ;;  %v732_v6 = vpop.f32.mrb[5].mxu0 }
 0x1f7   : > { %v14100_v7 = vadd.f32 %v732_v6, %v649_v62 }
 0x1f8   : > { %907 = vrot.lane.b32.xlu1 %v14098_v5, %s13618_s5 }
 0x1f9   : > { %v736_v8 = vpop.f32.mrb[6].mxu0 }
 0x1fa   : > { %v14104_v9 = vadd.f32 %v736_v8, %v645_v57  ;;  %v738_v10 = vpop.f32.mrb[7].mxu0 }
 0x1fb   : > { %v14106_v11 = vadd.f32 %v738_v10, %v649_v62 }
 0x1fc   : > { %984 = vrot.lane.b32.xlu1 %v14104_v9, %s13618_s5 }
 0x262   : > { %v753_v12 = vpop.permute.xlu0 %752 }
 0x263   : > { %11811 = vmatpush3.xpose.msk.msra.mxu1 %vm754_vm1, %v753_v12 }
 0x264   : > { %11815 = vmatprep.subr.mxu1 %v13616_v0 }
 0x266   : > { %11813 = vmatmul.mubr.msk.f32.vlgmr.msra.gmra.mrb[0].mxu1 %vm754_vm1, %v14087_v60  ;;  %v831_v13 = vpop.permute.xlu0 %830 }
 0x267   : > { %11816 = vmatpush3.xpose.msk.msra.mxu1 %vm754_vm1, %v831_v13  ;;  %11817 = vmatprep.mubr.msk.f32.mxu1 %vm13617_vm0, %v13616_v0 }
 0x268   : > { %11820 = vmatprep.subr.mxu1 %v13616_v0 }
 0x26a   : > { %v908_v14 = vpop.permute.xlu1 %907  ;;  %11818 = vmatmul.mubr.msk.f32.vlgmr.msra.gmra.mrb[2].mxu1 %vm754_vm1, %v14092_v1 }
 0x26b   : > { %11821 = vmatpush3.xpose.msk.msra.mxu1 %vm754_vm1, %v908_v14  ;;  %11822 = vmatprep.mubr.msk.f32.mxu1 %vm13617_vm0, %v13616_v0 }
 0x26c   : > { %11825 = vmatprep.subr.mxu1 %v13616_v0 }
 0x26e   : > { %v985_v15 = vpop.permute.xlu1 %984  ;;  %11823 = vmatmul.mubr.msk.f32.vlgmr.msra.gmra.mrb[4].mxu1 %vm754_vm1, %v14098_v5 }
 0x26f   : > { %11826 = vmatpush3.xpose.msk.msra.mxu1 %vm754_vm1, %v985_v15  ;;  %11827 = vmatprep.mubr.msk.f32.mxu1 %vm13617_vm0, %v13616_v0 }
 0x270   : > { %11830 = vmatprep.subr.mxu1 %v13616_v0 }
 0x272   : > { %11828 = vmatmul.mubr.msk.f32.vlgmr.msra.gmra.mrb[6].mxu1 %vm754_vm1, %v14104_v9 }
 0x273   : > { %11832 = vmatprep.mubr.msk.f32.mxu1 %vm13617_vm0, %v13616_v0 }
 0x339   : > { %v825_v16 = vpop.f32.mrb[0].mxu1 }
 0x33a   : > { %v11814_v17 = vpop.f32.mrb[1].mxu1  ;;  %v1060_v18 = vsel %vm754_vm1, %v825_v16, -inf }
 0x33b   : > { %1061 = vmax.xlane.f32.xlu0 %v1060_v18 }
 0x33d   : > { %v902_v19 = vpop.f32.mrb[2].mxu1 }
 0x33e   : > { %v11819_v20 = vpop.f32.mrb[3].mxu1  ;;  %v1063_v21 = vsel %vm754_vm1, %v902_v19, -inf }
 0x33f   : > { %1064 = vmax.xlane.f32.xlu1 %v1063_v21 }
 0x341   : > { %v979_v22 = vpop.f32.mrb[4].mxu1 }
 0x342   : > { %v11824_v23 = vpop.f32.mrb[5].mxu1  ;;  %v1066_v24 = vsel %vm754_vm1, %v979_v22, -inf }
 0x343   : > { %1067 = vmax.xlane.f32.xlu0 %v1066_v24 }
 0x345   : > { %v1056_v25 = vpop.f32.mrb[6].mxu1 }
 0x346   : > { %v11829_v26 = vpop.f32.mrb[7].mxu1  ;;  %v1069_v27 = vsel %vm754_vm1, %v1056_v25, -inf }
 0x347   : > { %1070 = vmax.xlane.f32.xlu0 %v1069_v27 }
 0x350   : > { %1105 = vrot.lane.b32.xlu1 %v14138_v28, %s13619_s29 }
 0x3c8   : > { %v1062_v29 = vpop.xlane.xlu0 %1061 }
 0x3c9   : > { %v1072_v30 = vsub.f32 %v825_v16, %v1062_v29 }
 0x3cb   : > { %v1076_v31 = vmul.f32 1.442695, %v1072_v30 }
 0x3cc   : > { %v1065_v32 = vpop.xlane.xlu1 %1064 }
 0x3cd   : > { %13113 = vpow2.f32 %v1076_v31  ;;  %v1073_v33 = vsub.f32 %v902_v19, %v1065_v32 }
 0x3cf   : > { %v1078_v34 = vmul.f32 1.442695, %v1073_v33 }
 0x3d0   : > { %v1106_v35 = vpop.permute.xlu1 %1105  ;;  %v1068_v40 = vpop.xlane.xlu0 %1067 }
 0x3d1   : > { %13115 = vpow2.f32 %v1078_v34  ;;  %11831 = vmatpush3.msra.mxu1 %v1106_v35  ;;  %v1074_v41 = vsub.f32 %v979_v22, %v1068_v40 }
 0x3d2   : > { %11835 = vmatprep.subr.mxu1 %v13616_v0 }
 0x3d3   : > { %v1080_v43 = vmul.f32 1.442695, %v1074_v41 }
 0x3d4   : > { %v1071_v42 = vpop.xlane.xlu0 %1070 }
 0x3d5   : > { %v1075_v44 = vsub.f32 %v1056_v25, %v1071_v42  ;;  %13117 = vpow2.f32 %v1080_v43 }
 0x3d7   : > { %v13114_v36 = vpop.eup %13113  ;;  %v1082_v45 = vmul.f32 1.442695, %v1075_v44 }
 0x3d8   : > { %v1084_v37 = vsel %vm754_vm1, %v13114_v36, 0.0 }
 0x3d9   : > { %1085 = vadd.xlane.f32.xlu1 %v1084_v37  ;;  %13119 = vpow2.f32 %v1082_v45 }
 0x3db   : > { %v13116_v38 = vpop.eup %13115 }
 0x3dc   : > { %v1087_v39 = vsel %vm754_vm1, %v13116_v38, 0.0 }
 0x3dd   : > { %1088 = vadd.xlane.f32.xlu0 %v1087_v39 }
 0x3df   : > { %v13118_v46 = vpop.eup %13117 }
 0x3e0   : > { %v1090_v47 = vsel %vm754_vm1, %v13118_v46, 0.0 }
 0x3e3   : > { %v13120_v48 = vpop.eup %13119 }
 0x3e4   : > { %v1093_v49 = vsel %vm754_vm1, %v13120_v48, 0.0 }
 0x3ea   : > { %1259 = vrot.lane.b32.xlu1 %v14100_v7, %s13619_s29 }
 0x3f3   : > { %1182 = vrot.lane.b32.xlu0 %v14094_v3, %s13619_s29 }
 0x40e   : > { %1091 = vadd.xlane.f32.xlu1 %v1090_v47 }
 0x412   : > { %1094 = vadd.xlane.f32.xlu0 %v1093_v49 }
 0x41f   : > { %1336 = vrot.lane.b32.xlu1 %v14106_v11, %s13619_s29 }
 0x423   : > { %1412 = vrot.lane.b32.xlu1 %v14087_v60, %s13620_s28 }
 0x427   : > { %1490 = vrot.lane.b32.xlu1 %v14092_v1, %s13620_s28 }
 0x428   : > { %1414 = vrot.lane.b32.xlu0 %v14087_v60, %s13621_s30 }
 0x42b   : > { %1568 = vrot.lane.b32.xlu1 %v14098_v5, %s13620_s28 }
 0x42c   : > { %1492 = vrot.lane.b32.xlu0 %v14092_v1, %s13621_s30 }
 0x42f   : > { %1646 = vrot.lane.b32.xlu1 %v14104_v9, %s13620_s28 }
 0x430   : > { %1570 = vrot.lane.b32.xlu0 %v14098_v5, %s13621_s30 }
 0x434   : > { %1648 = vrot.lane.b32.xlu0 %v14104_v9, %s13621_s30 }
 0x466   : > { %v1086_v50 = vpop.xlane.xlu1 %1085 }
 0x467   : > { %13121 = vrcp.f32 %v1086_v50 }
 0x46a   : > { %v1089_v51 = vpop.xlane.xlu0 %1088  ;;  %v1260_v62 = vpop.permute.xlu1 %1259 }
 0x46b   : > { %13123 = vrcp.f32 %v1089_v51 }
 0x46e   : > { %v1183_v57 = vpop.permute.xlu0 %1182 }
 0x471   : > { %v13122_v52 = vpop.eup %13121 }
 0x472   : > { %v1097_v56 = vmul.f32 %v13122_v52, %v13114_v36 }
 0x474   : > { %11833 = vmatmul.mubr.msk.f32.vlgmr.msra.gmra.mrb[8].mxu1 %vm754_vm1, %v1097_v56 }
 0x475   : > { %v13124_v58 = vpop.eup %13123  ;;  %11836 = vmatpush3.msra.mxu1 %v1183_v57  ;;  %11837 = vmatprep.mubr.msk.f32.mxu1 %vm13617_vm0, %v13616_v0 }
 0x476   : > { %11840 = vmatprep.subr.mxu1 %v13616_v0  ;;  %v1099_v61 = vmul.f32 %v13124_v58, %v13116_v38 }
 0x478   : > { %11838 = vmatmul.mubr.msk.f32.vlgmr.msra.gmra.mrb[10].mxu1 %vm754_vm1, %v1099_v61 }
 0x479   : > { %11841 = vmatpush3.msra.mxu1 %v1260_v62  ;;  %11842 = vmatprep.mubr.msk.f32.mxu1 %vm13617_vm0, %v13616_v0 }
 0x47a   : > { %11845 = vmatprep.subr.mxu1 %v13616_v0 }
 0x49b   : > { %v1092_v63 = vpop.xlane.xlu1 %1091 }
 0x49c   : > { %13125 = vrcp.f32 %v1092_v63 }
 0x49f   : > { %v1095_v2 = vpop.xlane.xlu0 %1094  ;;  %v1337_v6 = vpop.permute.xlu1 %1336 }
 0x4a0   : > { %13127 = vrcp.f32 %v1095_v2 }
 0x4a3   : > { %v1415_v12 = vpop.permute.xlu0 %1414  ;;  %v1413_v14 = vpop.permute.xlu1 %1412 }
 0x4a6   : > { %v13126_v4 = vpop.eup %13125 }
 0x4a7   : > { %v1101_v8 = vmul.f32 %v13126_v4, %v13118_v46  ;;  %v1493_v15 = vpop.permute.xlu0 %1492  ;;  %v1491_v16 = vpop.permute.xlu1 %1490 }
 0x4a9   : > { %11843 = vmatmul.mubr.msk.f32.vlgmr.msra.gmra.mrb[12].mxu1 %vm754_vm1, %v1101_v8 }
 0x4aa   : > { %v13128_v10 = vpop.eup %13127  ;;  %11846 = vmatpush3.msra.mxu1 %v1337_v6  ;;  %11847 = vmatprep.mubr.msk.f32.mxu1 %vm13617_vm0, %v13616_v0 }
 0x4ab   : > { %v1103_v13 = vmul.f32 %v13128_v10, %v13120_v48  ;;  %11850 = vmatprep.subr.mxu1 %v13616_v0  ;;  %v1571_v17 = vpop.permute.xlu0 %1570  ;;  %v1569_v18 = vpop.permute.xlu1 %1568 }
 0x4ad   : > { %11848 = vmatmul.mubr.msk.f32.vlgmr.msra.gmra.mrb[14].mxu1 %vm754_vm1, %v1103_v13 }
 0x4ae   : > { %11852 = vmatprep.mubr.msk.f32.mxu1 %vm13617_vm0, %v13616_v0 }
 0x4af   : > { %v1649_v19 = vpop.permute.xlu0 %1648  ;;  %v1647_v20 = vpop.permute.xlu1 %1646 }
 0x4b1   : > { %11851 = vmatpush3.xpose.msk.msra.mxu1 %vm754_vm1, %v1415_v12 }
 0x4b2   : > { %11855 = vmatprep.subr.mxu1 %v13616_v0 }
 0x4b4   : > { %11853 = vmatmul.mubr.msk.f32.vlgmr.msra.gmra.mrb[16].mxu1 %vm754_vm1, %v1413_v14 }
 0x4b5   : > { %11856 = vmatpush3.xpose.msk.msra.mxu1 %vm754_vm1, %v1493_v15  ;;  %11857 = vmatprep.mubr.msk.f32.mxu1 %vm13617_vm0, %v13616_v0 }
 0x4b6   : > { %11860 = vmatprep.subr.mxu1 %v13616_v0 }
 0x4b8   : > { %11858 = vmatmul.mubr.msk.f32.vlgmr.msra.gmra.mrb[18].mxu1 %vm754_vm1, %v1491_v16 }
 0x4b9   : > { %11861 = vmatpush3.xpose.msk.msra.mxu1 %vm754_vm1, %v1571_v17  ;;  %11862 = vmatprep.mubr.msk.f32.mxu1 %vm13617_vm0, %v13616_v0 }
 0x4ba   : > { %11865 = vmatprep.subr.mxu1 %v13616_v0 }
 0x4bc   : > { %11863 = vmatmul.mubr.msk.f32.vlgmr.msra.gmra.mrb[20].mxu1 %vm754_vm1, %v1569_v18 }
 0x4bd   : > { %11866 = vmatpush3.xpose.msk.msra.mxu1 %vm754_vm1, %v1649_v19  ;;  %11867 = vmatprep.mubr.msk.f32.mxu1 %vm13617_vm0, %v13616_v0 }
 0x4be   : > { %11870 = vmatprep.subr.mxu1 %v13616_v0 }
 0x4c0   : > { %11868 = vmatmul.mubr.msk.f32.vlgmr.msra.gmra.mrb[22].mxu1 %vm754_vm1, %v1647_v20 }
 0x4c1   : > { %11872 = vmatprep.mubr.msk.f32.mxu1 %vm13617_vm0, %v13616_v0 }
 0x547   : > { %v14204_v21 = vpop.f32.mrb[8].mxu1 }
 0x548   : > { %v11834_v22 = vpop.f32.mrb[9].mxu1 }
 0x54b   : > { %v14206_v23 = vpop.f32.mrb[10].mxu1 }
 0x54c   : > { %v11839_v24 = vpop.f32.mrb[11].mxu1 }
 0x57c   : > { %v14208_v25 = vpop.f32.mrb[12].mxu1 }
 0x57d   : > { %v11844_v26 = vpop.f32.mrb[13].mxu1 }
 0x580   : > { %v14210_v27 = vpop.f32.mrb[14].mxu1 }
 0x581   : > { %v11849_v29 = vpop.f32.mrb[15].mxu1 }
 0x587   : > { %v14212_v30 = vpop.f32.mrb[16].mxu1 }
 0x588   : > { %v11854_v31 = vpop.f32.mrb[17].mxu1  ;;  %v1724_v2 = vsel %vm754_vm1, %v14212_v30, -inf }
 0x58b   : > { %v1564_v32 = vpop.f32.mrb[18].mxu1 }
 0x58c   : > { %v11859_v33 = vpop.f32.mrb[19].mxu1  ;;  %v1727_v34 = vsel %vm754_vm1, %v1564_v32, -inf }
 0x58d   : > { %1728 = vmax.xlane.f32.xlu0 %v1727_v34 }
 0x58f   : > { %v14215_v35 = vpop.f32.mrb[20].mxu1 }
 0x590   : > { %v11864_v36 = vpop.f32.mrb[21].mxu1  ;;  %v1730_v40 = vsel %vm754_vm1, %v14215_v35, -inf }
 0x593   : > { %v1720_v37 = vpop.f32.mrb[22].mxu1 }
 0x594   : > { %v11869_v38 = vpop.f32.mrb[23].mxu1  ;;  %v1733_v39 = vsel %vm754_vm1, %v1720_v37, -inf }
 0x595   : > { %1734 = vmax.xlane.f32.xlu1 %v1733_v39 }
 0x5a6   : > { %1844 = vrot.lane.b32.xlu1 %v14094_v3, %s13622_s26 }
 0x5aa   : > { %2268 = vrot.lane.b32.xlu1 %v14087_v60, %s13623_s23 }
 0x5ae   : > { %2266 = vrot.lane.b32.xlu1 %v14087_v60, %s13624_s17 }
 0x5b2   : > { %2344 = vrot.lane.b32.xlu1 %v14092_v1, %s13624_s17 }
 0x5b6   : > { %2422 = vrot.lane.b32.xlu1 %v14098_v5, %s13624_s17 }
 0x5ba   : > { %2500 = vrot.lane.b32.xlu1 %v14104_v9, %s13624_s17 }
 0x5de   : > { %1731 = vmax.xlane.f32.xlu1 %v1730_v40 }
 0x5ef   : > { %1768 = vrot.lane.b32.xlu1 %v14138_v28, %s13622_s26 }
 0x61a   : > { %v1729_v41 = vpop.xlane.xlu0 %1728 }
 0x61b   : > { %v1737_v42 = vsub.f32 %v1564_v32, %v1729_v41 }
 0x61d   : > { %v1742_v43 = vmul.f32 1.442695, %v1737_v42 }
 0x61f   : > { %13129 = vpow2.f32 %v1742_v43 }
 0x622   : > { %v1735_v44 = vpop.xlane.xlu1 %1734 }
 0x623   : > { %v1739_v45 = vsub.f32 %v1720_v37, %v1735_v44 }
 0x625   : > { %v1746_v46 = vmul.f32 1.442695, %v1739_v45 }
 0x626   : > { %v1845_v47 = vpop.permute.xlu1 %1844 }
 0x627   : > { %13131 = vpow2.f32 %v1746_v46  ;;  %11876 = vmatpush3.msra.mxu0 %v1845_v47 }
 0x628   : > { %11885 = vmatprep.subr.mxu0 %v13616_v0 }
 0x629   : > { %v13130_v48 = vpop.eup %13129 }
 0x62a   : > { %v1751_v49 = vsel %vm754_vm1, %v13130_v48, 0.0  ;;  %v2269_v52 = vpop.permute.xlu1 %2268 }
 0x62b   : > { %1752 = vadd.xlane.f32.xlu0 %v1751_v49 }
 0x62e   : > { %v2267_v56 = vpop.permute.xlu1 %2266 }
 0x631   : > { %v13132_v50 = vpop.eup %13131 }
 0x632   : > { %v1757_v51 = vsel %vm754_vm1, %v13132_v50, 0.0  ;;  %v2345_v57 = vpop.permute.xlu1 %2344 }
 0x633   : > { %1758 = vadd.xlane.f32.xlu0 %v1757_v51 }
 0x636   : > { %v2423_v58 = vpop.permute.xlu1 %2422 }
 0x63a   : > { %v2501_v61 = vpop.permute.xlu1 %2500 }
 0x649   : > { %1996 = vrot.lane.b32.xlu0 %v14106_v11, %s13622_s26 }
 0x64d   : > { %2346 = vrot.lane.b32.xlu0 %v14092_v1, %s13623_s23 }
 0x651   : > { %2424 = vrot.lane.b32.xlu0 %v14098_v5, %s13623_s23 }
 0x655   : > { %2502 = vrot.lane.b32.xlu0 %v14104_v9, %s13623_s23 }
 0x66b   : > { %v1732_v62 = vpop.xlane.xlu1 %1731 }
 0x66c   : > { %v1738_v18 = vsub.f32 %v14215_v35, %v1732_v62 }
 0x66e   : > { %v1744_v22 = vmul.f32 1.442695, %v1738_v18 }
 0x66f   : > { %v1769_v63 = vpop.permute.xlu1 %1768 }
 0x670   : > { %11871 = vmatpush3.msra.mxu1 %v1769_v63 }
 0x671   : > { %11880 = vmatprep.subr.mxu1 %v13616_v0 }
 0x674   : > { %1725 = vmax.xlane.f32.xlu0 %v1724_v2 }
 0x6b8   : > { %v1753_v4 = vpop.xlane.xlu0 %1752 }
 0x6b9   : > { %13133 = vrcp.f32 %v1753_v4 }
 0x6c0   : > { %v1759_v6 = vpop.xlane.xlu0 %1758 }
 0x6c1   : > { %13135 = vrcp.f32 %v1759_v6 }
 0x6c3   : > { %v13134_v8 = vpop.eup %13133 }
 0x6c4   : > { %v1763_v10 = vmul.f32 %v13134_v8, %v13130_v48  ;;  %v1997_v12 = vpop.permute.xlu0 %1996 }
 0x6c6   : > { %11878 = vmatmul.mubr.msk.f32.vlgmr.msra.gmra.mrb[8].mxu0 %vm754_vm1, %v1763_v10 }
 0x6c7   : > { %11886 = vmatpush3.msra.mxu0 %v1997_v12  ;;  %11887 = vmatprep.mubr.msk.f32.mxu0 %vm13617_vm0, %v13616_v0 }
 0x6c8   : > { %11906 = vmatprep.subr.mxu0 %v13616_v0  ;;  %v2347_v15 = vpop.permute.xlu0 %2346 }
 0x6cb   : > { %v13136_v13 = vpop.eup %13135 }
 0x6cc   : > { %v1767_v14 = vmul.f32 %v13136_v13, %v13132_v50  ;;  %v2425_v16 = vpop.permute.xlu0 %2424 }
 0x6ce   : > { %11888 = vmatmul.mubr.msk.f32.vlgmr.msra.gmra.mrb[10].mxu0 %vm754_vm1, %v1767_v14 }
 0x6cf   : > { %11907 = vmatpush3.xpose.msk.msra.mxu0 %vm754_vm1, %v2269_v52  ;;  %11908 = vmatprep.mubr.msk.f32.mxu0 %vm13617_vm0, %v13616_v0 }
 0x6d0   : > { %11911 = vmatprep.subr.mxu0 %v13616_v0  ;;  %v2503_v17 = vpop.permute.xlu0 %2502 }
 0x6d2   : > { %11909 = vmatmul.mubr.msk.f32.vlgmr.msra.gmra.mrb[12].mxu0 %vm754_vm1, %v2267_v56 }
 0x6d3   : > { %11912 = vmatpush3.xpose.msk.msra.mxu0 %vm754_vm1, %v2347_v15  ;;  %11913 = vmatprep.mubr.msk.f32.mxu0 %vm13617_vm0, %v13616_v0 }
 0x6d4   : > { %11916 = vmatprep.subr.mxu0 %v13616_v0 }
 0x6d6   : > { %11914 = vmatmul.mubr.msk.f32.vlgmr.msra.gmra.mrb[14].mxu0 %vm754_vm1, %v2345_v57 }
 0x6d7   : > { %11917 = vmatpush3.xpose.msk.msra.mxu0 %vm754_vm1, %v2425_v16  ;;  %11918 = vmatprep.mubr.msk.f32.mxu0 %vm13617_vm0, %v13616_v0 }
 0x6d8   : > { %11921 = vmatprep.subr.mxu0 %v13616_v0 }
 0x6da   : > { %11919 = vmatmul.mubr.msk.f32.vlgmr.msra.gmra.mrb[16].mxu0 %vm754_vm1, %v2423_v58  ;;  %v742_v58 = vld [vmem:[%s15519_s3 + $0x8] sm:$0xff] }
 0x6db   : > { %11922 = vmatpush3.xpose.msk.msra.mxu0 %vm754_vm1, %v2503_v17  ;;  %11923 = vmatprep.mubr.msk.f32.mxu0 %vm13617_vm0, %v13616_v0 }
 0x6dc   : > { %11931 = vmatprep.subr.mxu0 %v13616_v0 }
 0x6de   : > { %11924 = vmatmul.mubr.msk.f32.vlgmr.msra.gmra.mrb[18].mxu0 %vm754_vm1, %v2501_v61  ;;  %v741_v61 = vld [vmem:[%s15519_s3] sm:$0xff] }
 0x6df   : > { %11933 = vmatprep.mubr.msk.f32.mxu0 %vm13617_vm0, %v13616_v0 }
 0x701   : > { %v1726_v19 = vpop.xlane.xlu0 %1725 }
 0x702   : > { %v1736_v20 = vsub.f32 %v14212_v30, %v1726_v19 }
 0x704   : > { %v1740_v24 = vmul.f32 1.442695, %v1736_v20 }
 0x706   : > { %13137 = vpow2.f32 %v1740_v24 }
 0x707   : > { %13139 = vpow2.f32 %v1744_v22 }
 0x710   : > { %v13138_v26 = vpop.eup %13137 }
 0x711   : > { %v1748_v29 = vsel %vm754_vm1, %v13138_v26, 0.0  ;;  %v13140_v31 = vpop.eup %13139 }
 0x712   : > { %1749 = vadd.xlane.f32.xlu0 %v1748_v29  ;;  %v1754_v32 = vsel %vm754_vm1, %v13140_v31, 0.0 }
 0x716   : > { %1755 = vadd.xlane.f32.xlu0 %v1754_v32 }
 0x72c   : > { %1920 = vrot.lane.b32.xlu0 %v14100_v7, %s13622_s26 }
 0x799   : > { %v14281_v33 = vpop.f32.mrb[8].mxu0 }
 0x79a   : > { %v11879_v34 = vpop.f32.mrb[9].mxu0 }
 0x79f   : > { %v1750_v35 = vpop.xlane.xlu0 %1749 }
 0x7a0   : > { %13141 = vrcp.f32 %v1750_v35 }
 0x7a1   : > { %v14283_v30 = vpop.f32.mrb[10].mxu0 }
 0x7a2   : > { %v11889_v36 = vpop.f32.mrb[11].mxu0 }
 0x7a3   : > { %v1756_v37 = vpop.xlane.xlu0 %1755 }
 0x7a4   : > { %13143 = vrcp.f32 %v1756_v37 }
 0x7a5   : > { %v2340_v38 = vpop.f32.mrb[12].mxu0 }
 0x7a6   : > { %v11910_v39 = vpop.f32.mrb[13].mxu0  ;;  %v2578_v40 = vsel %vm754_vm1, %v2340_v38, -inf }
 0x7a7   : > { %2579 = vmax.xlane.f32.xlu1 %v2578_v40  ;;  %v1921_v46 = vpop.permute.xlu0 %1920 }
 0x7a9   : > { %v2418_v41 = vpop.f32.mrb[14].mxu0 }
 0x7aa   : > { %v13142_v42 = vpop.eup %13141  ;;  %v11915_v43 = vpop.f32.mrb[15].mxu0  ;;  %v2581_v44 = vsel %vm754_vm1, %v2418_v41, -inf }
 0x7ab   : > { %2582 = vmax.xlane.f32.xlu0 %v2581_v44  ;;  %v1761_v45 = vmul.f32 %v13142_v42, %v13138_v26 }
 0x7ad   : > { %11873 = vmatmul.mubr.msk.f32.vlgmr.msra.gmra.mrb[24].mxu1 %vm754_vm1, %v1761_v45  ;;  %v2496_v47 = vpop.f32.mrb[16].mxu0 }
 0x7ae   : > { %v13144_v48 = vpop.eup %13143  ;;  %11881 = vmatpush3.msra.mxu1 %v1921_v46  ;;  %v11920_v49 = vpop.f32.mrb[17].mxu0  ;;  %v2584_v50 = vsel %vm754_vm1, %v2496_v47, -inf  ;;  %11882 = vmatprep.mubr.msk.f32.mxu1 %vm13617_vm0, %v13616_v0 }
 0x7af   : > { %2585 = vmax.xlane.f32.xlu1 %v2584_v50  ;;  %v1765_v51 = vmul.f32 %v13144_v48, %v13140_v31  ;;  %11890 = vmatprep.subr.mxu1 %v742_v58 }
 0x7b1   : > { %11883 = vmatmul.mubr.msk.f32.vlgmr.msra.gmra.mrb[26].mxu1 %vm754_vm1, %v1765_v51  ;;  %v2574_v52 = vpop.f32.mrb[18].mxu0 }
 0x7b2   : > { %v11925_v56 = vpop.f32.mrb[19].mxu0  ;;  %v2587_v57 = vsel %vm754_vm1, %v2574_v52, -inf  ;;  %11891 = vmatpush3.msra.mxu1 %v742_v58 }
 0x7b3   : > { %2588 = vmax.xlane.f32.xlu0 %v2587_v57  ;;  %11898 = vmatprep.subr.mxu1 %v741_v61 }
 0x7c0   : > { %2622 = vrot.lane.b32.xlu1 %v14138_v28, %s13625_s15 }
 0x834   : > { %v2580_v62 = vpop.xlane.xlu1 %2579 }
 0x835   : > { %v2590_v63 = vsub.f32 %v2340_v38, %v2580_v62 }
 0x837   : > { %v2594_v2 = vmul.f32 1.442695, %v2590_v63 }
 0x838   : > { %v2583_v4 = vpop.xlane.xlu0 %2582 }
 0x839   : > { %13145 = vpow2.f32 %v2594_v2  ;;  %v2591_v6 = vsub.f32 %v2418_v41, %v2583_v4 }
 0x83b   : > { %v2596_v8 = vmul.f32 1.442695, %v2591_v6 }
 0x83c   : > { %v2586_v10 = vpop.xlane.xlu1 %2585 }
 0x83d   : > { %13147 = vpow2.f32 %v2596_v8  ;;  %v2592_v12 = vsub.f32 %v2496_v47, %v2586_v10 }
 0x83f   : > { %v2598_v13 = vmul.f32 1.442695, %v2592_v12 }
 0x840   : > { %v2589_v14 = vpop.xlane.xlu0 %2588  ;;  %v2623_v36 = vpop.permute.xlu1 %2622 }
 0x841   : > { %13149 = vpow2.f32 %v2598_v13  ;;  %v2593_v15 = vsub.f32 %v2574_v52, %v2589_v14 }
 0x843   : > { %v13146_v16 = vpop.eup %13145  ;;  %v2600_v17 = vmul.f32 1.442695, %v2593_v15 }
 0x844   : > { %v2602_v18 = vsel %vm754_vm1, %v13146_v16, 0.0 }
 0x845   : > { %13151 = vpow2.f32 %v2600_v17  ;;  %2603 = vadd.xlane.f32.xlu1 %v2602_v18 }
 0x847   : > { %v13148_v19 = vpop.eup %13147 }
 0x848   : > { %v2605_v20 = vsel %vm754_vm1, %v13148_v19, 0.0 }
 0x849   : > { %2606 = vadd.xlane.f32.xlu0 %v2605_v20 }
 0x84b   : > { %v14303_v22 = vpop.eup %13149 }
 0x84c   : > { %v2608_v24 = vsel %vm754_vm1, %v14303_v22, 0.0 }
 0x84d   : > { %2609 = vadd.xlane.f32.xlu1 %v2608_v24 }
 0x84f   : > { %v14307_v26 = vpop.eup %13151 }
 0x850   : > { %v2611_v29 = vsel %vm754_vm1, %v14307_v26, 0.0 }
 0x851   : > { %2612 = vadd.xlane.f32.xlu0 %v2611_v29 }
 0x85e   : > { %2774 = vrot.lane.b32.xlu1 %v14100_v7, %s13625_s15 }
 0x862   : > { %2850 = vrot.lane.b32.xlu1 %v14106_v11, %s13625_s15 }
 0x866   : > { %3027 = vrot.lane.b32.xlu1 %v14087_v60, %s13626_s18 }
 0x867   : > { %2698 = vrot.lane.b32.xlu0 %v14094_v3, %s13625_s15 }
 0x86a   : > { %3105 = vrot.lane.b32.xlu1 %v14092_v1, %s13626_s18 }
 0x86b   : > { %3029 = vrot.lane.b32.xlu0 %v14087_v60, %s13627_s21 }
 0x86e   : > { %3263 = vrot.lane.b32.xlu1 %v14104_v9, %s13627_s21 }
 0x86f   : > { %3107 = vrot.lane.b32.xlu0 %v14092_v1, %s13627_s21 }
 0x872   : > { %3261 = vrot.lane.b32.xlu1 %v14104_v9, %s13626_s18 }
 0x873   : > { %3185 = vrot.lane.b32.xlu0 %v14098_v5, %s13627_s21 }
 0x877   : > { %3183 = vrot.lane.b32.xlu0 %v14098_v5, %s13626_s18 }
 0x880   : > { %v1840_v31 = vpop.f32.mrb[24].mxu1 }
 0x881   : > { %v11874_v32 = vpop.f32.mrb[25].mxu1  ;;  %11892 = vmatprep.mubr.msk.f32.mxu1 %vm754_vm1, %v1840_v31 }
 0x882   : > { %11893 = vmatmul.mubr.msk.f32.vlgmr.msra.gmra.mrb[28].mxu1 %vm754_vm1, %v14281_v33 }
 0x883   : > { %11899 = vmatpush3.msra.mxu1 %v741_v61 }
 0x884   : > { %v1992_v34 = vpop.f32.mrb[26].mxu1  ;;  %11926 = vmatprep.subr.mxu1 %v13616_v0 }
 0x885   : > { %v11884_v35 = vpop.f32.mrb[27].mxu1  ;;  %11895 = vmatprep.mubr.msk.f32.mxu1 %vm754_vm1, %v1992_v34 }
 0x886   : > { %11896 = vmatmul.mubr.msk.f32.gmra.mrb[30].mxu1 %vm754_vm1, %v14283_v30 }
 0x887   : > { %11900 = vmatprep.mubr.msk.f32.mxu1 %vm754_vm1, %v14204_v21 }
 0x88a   : > { %11901 = vmatmul.mubr.msk.f32.vlgmr.msra.gmra.mrb[28].mxu1 %vm754_vm1, %v14206_v23 }
 0x88b   : > { %11927 = vmatpush3.msra.mxu1 %v2623_v36  ;;  %11903 = vmatprep.mubr.msk.f32.mxu1 %vm754_vm1, %v14208_v25  ;;  %v743_v25 = vld [vmem:[%s15519_s3 + $0x10] sm:$0xff] }
 0x88c   : > { %11936 = vmatprep.subr.mxu1 %v13616_v0 }
 0x88e   : > { %11904 = vmatmul.mubr.msk.f32.gmra.mrb[30].mxu1 %vm754_vm1, %v14210_v27 }
 0x88f   : > { %11928 = vmatprep.mubr.msk.f32.mxu1 %vm13617_vm0, %v13616_v0 }
 0x8d2   : > { %v2604_v33 = vpop.xlane.xlu1 %2603 }
 0x8d3   : > { %13153 = vrcp.f32 %v2604_v33 }
 0x8d6   : > { %v2607_v30 = vpop.xlane.xlu0 %2606 }
 0x8d7   : > { %13155 = vrcp.f32 %v2607_v30 }
 0x8da   : > { %v2610_v21 = vpop.xlane.xlu1 %2609 }
 0x8db   : > { %13157 = vrcp.f32 %v2610_v21 }
 0x8dd   : > { %v13154_v37 = vpop.eup %13153 }
 0x8de   : > { %v2615_v23 = vmul.f32 %v13154_v37, %v13146_v16  ;;  %v2775_v38 = vpop.permute.xlu1 %2774  ;;  %v2613_v39 = vpop.xlane.xlu0 %2612 }
 0x8df   : > { %13159 = vrcp.f32 %v2613_v39 }
 0x8e0   : > { %11929 = vmatmul.mubr.msk.f32.vlgmr.msra.gmra.mrb[32].mxu1 %vm754_vm1, %v2615_v23 }
 0x8e1   : > { %v13156_v27 = vpop.eup %13155  ;;  %11937 = vmatpush3.msra.mxu1 %v2775_v38  ;;  %11938 = vmatprep.mubr.msk.f32.mxu1 %vm13617_vm0, %v13616_v0 }
 0x8e2   : > { %v2851_v40 = vpop.permute.xlu1 %2850  ;;  %v2699_v41 = vpop.permute.xlu0 %2698  ;;  %v2617_v42 = vmul.f32 %v13156_v27, %v13148_v19  ;;  %11946 = vmatprep.subr.mxu1 %v743_v25 }
 0x8e3   : > { %11932 = vmatpush3.msra.mxu0 %v2699_v41 }
 0x8e4   : > { %11934 = vmatmul.mubr.msk.f32.vlgmr.msra.gmra.mrb[20].mxu0 %vm754_vm1, %v2617_v42  ;;  %11941 = vmatprep.subr.mxu0 %v13616_v0 }
 0x8e5   : > { %v13158_v43 = vpop.eup %13157  ;;  %11942 = vmatpush3.msra.mxu0 %v2851_v40  ;;  %11943 = vmatprep.mubr.msk.f32.mxu0 %vm13617_vm0, %v13616_v0 }
 0x8e6   : > { %v3028_v44 = vpop.permute.xlu1 %3027  ;;  %v2619_v45 = vmul.f32 %v13158_v43, %v14303_v22  ;;  %11954 = vmatprep.subr.mxu0 %v13616_v0  ;;  %v3030_v47 = vpop.permute.xlu0 %3029 }
 0x8e8   : > { %11939 = vmatmul.mubr.msk.f32.vlgmr.msra.gmra.mrb[34].mxu1 %vm754_vm1, %v2619_v45 }
 0x8e9   : > { %v13160_v46 = vpop.eup %13159  ;;  %11947 = vmatpush3.msra.mxu1 %v743_v25 }
 0x8ea   : > { %v2621_v48 = vmul.f32 %v13160_v46, %v14307_v26  ;;  %11964 = vmatprep.subr.mxu1 %v13616_v0  ;;  %v3106_v49 = vpop.permute.xlu1 %3105  ;;  %v3108_v50 = vpop.permute.xlu0 %3107 }
 0x8ec   : > { %11944 = vmatmul.mubr.msk.f32.vlgmr.msra.gmra.mrb[22].mxu0 %vm754_vm1, %v2621_v48 }
 0x8ed   : > { %11955 = vmatpush3.xpose.msk.msra.mxu0 %vm754_vm1, %v3030_v47  ;;  %11956 = vmatprep.mubr.msk.f32.mxu0 %vm13617_vm0, %v13616_v0 }
 0x8ee   : > { %11959 = vmatprep.subr.mxu0 %v13616_v0  ;;  %v3264_v51 = vpop.permute.xlu1 %3263  ;;  %v3186_v61 = vpop.permute.xlu0 %3185 }
 0x8f0   : > { %11957 = vmatmul.mubr.msk.f32.vlgmr.msra.gmra.mrb[24].mxu0 %vm754_vm1, %v3028_v44 }
 0x8f1   : > { %11960 = vmatpush3.xpose.msk.msra.mxu0 %vm754_vm1, %v3108_v50  ;;  %11961 = vmatprep.mubr.msk.f32.mxu0 %vm13617_vm0, %v13616_v0 }
 0x8f2   : > { %11969 = vmatprep.subr.mxu0 %v13616_v0  ;;  %v3262_v52 = vpop.permute.xlu1 %3261  ;;  %v3184_v8 = vpop.permute.xlu0 %3183 }
 0x8f4   : > { %11962 = vmatmul.mubr.msk.f32.vlgmr.msra.gmra.mrb[26].mxu0 %vm754_vm1, %v3106_v49  ;;  %v744_v49 = vld [vmem:[%s15519_s3 + $0x18] sm:$0xff] }
 0x8f5   : > { %11970 = vmatpush3.xpose.msk.msra.mxu0 %vm754_vm1, %v3264_v51  ;;  %11971 = vmatprep.mubr.msk.f32.mxu0 %vm13617_vm0, %v13616_v0 }
 0x8f6   : > { %11979 = vmatprep.subr.mxu0 %v13616_v0 }
 0x8f8   : > { %11972 = vmatmul.mubr.msk.f32.vlgmr.msra.gmra.mrb[28].mxu0 %vm754_vm1, %v3262_v52 }
 0x8f9   : > { %11981 = vmatprep.mubr.msk.f32.mxu0 %vm13617_vm0, %v13616_v0 }
 0x9b3   : > { %v2694_v56 = vpop.f32.mrb[32].mxu1 }
 0x9b4   : > { %v11930_v57 = vpop.f32.mrb[33].mxu1  ;;  %11948 = vmatprep.mubr.msk.f32.mxu1 %vm754_vm1, %v2694_v56 }
 0x9b7   : > { %v2770_v58 = vpop.f32.mrb[20].mxu0 }
 0x9b8   : > { %v11935_v62 = vpop.f32.mrb[21].mxu0  ;;  %11949 = vmatmul.mubr.msk.f32.vlgmr.msra.gmra.mrb[28].mxu1 %vm754_vm1, %v2770_v58 }
 0x9b9   : > { %11965 = vmatpush3.xpose.msk.msra.mxu1 %vm754_vm1, %v3186_v61 }
 0x9ba   : > { %11974 = vmatprep.subr.mxu1 %v13616_v0 }
 0x9bb   : > { %v2846_v63 = vpop.f32.mrb[34].mxu1 }
 0x9bc   : > { %v11940_v2 = vpop.f32.mrb[35].mxu1  ;;  %11951 = vmatprep.mubr.msk.f32.mxu1 %vm754_vm1, %v2846_v63 }
 0x9bf   : > { %v2922_v4 = vpop.f32.mrb[22].mxu0 }
 0x9c0   : > { %v11945_v6 = vpop.f32.mrb[23].mxu0  ;;  %11952 = vmatmul.mubr.msk.f32.gmra.mrb[30].mxu1 %vm754_vm1, %v2922_v4 }
 0x9c1   : > { %11966 = vmatprep.mubr.msk.f32.mxu1 %vm13617_vm0, %v13616_v0 }
 0x9c3   : > { %v3101_v10 = vpop.f32.mrb[24].mxu0 }
 0x9c4   : > { %v11958_v12 = vpop.f32.mrb[25].mxu0  ;;  %11967 = vmatmul.mubr.msk.f32.vlgmr.msra.gmra.mrb[36].mxu1 %vm754_vm1, %v3184_v8  ;;  %v3339_v13 = vsel %vm754_vm1, %v3101_v10, -inf }
 0x9c5   : > { %3340 = vmax.xlane.f32.xlu0 %v3339_v13  ;;  %11976 = vmatprep.mubr.msk.f32.mxu1 %vm13617_vm0, %v13616_v0 }
 0x9c7   : > { %v3179_v14 = vpop.f32.mrb[26].mxu0 }
 0x9c8   : > { %v11963_v15 = vpop.f32.mrb[27].mxu0  ;;  %v3342_v16 = vsel %vm754_vm1, %v3179_v14, -inf }
 0x9c9   : > { %3343 = vmax.xlane.f32.xlu1 %v3342_v16 }
 0x9cb   : > { %v3335_v17 = vpop.f32.mrb[28].mxu0 }
 0x9cc   : > { %v11973_v18 = vpop.f32.mrb[29].mxu0  ;;  %v3348_v33 = vsel %vm754_vm1, %v3335_v17, -inf }
 0xa52   : > { %v3341_v19 = vpop.xlane.xlu0 %3340 }
 0xa53   : > { %v3351_v20 = vsub.f32 %v3101_v10, %v3341_v19 }
 0xa55   : > { %v3355_v22 = vmul.f32 1.442695, %v3351_v20 }
 0xa56   : > { %v3344_v29 = vpop.xlane.xlu1 %3343 }
 0xa57   : > { %13161 = vpow2.f32 %v3355_v22  ;;  %v3352_v31 = vsub.f32 %v3179_v14, %v3344_v29 }
 0xa59   : > { %v3357_v32 = vmul.f32 1.442695, %v3352_v31 }
 0xa5b   : > { %13163 = vpow2.f32 %v3357_v32 }
 0xa61   : > { %v13162_v24 = vpop.eup %13161 }
 0xa62   : > { %v3363_v26 = vsel %vm754_vm1, %v13162_v24, 0.0 }
 0xa63   : > { %3364 = vadd.xlane.f32.xlu1 %v3363_v26 }
 0xa65   : > { %v13164_v30 = vpop.eup %13163 }
 0xa66   : > { %v3366_v21 = vsel %vm754_vm1, %v13164_v30, 0.0 }
 0xa74   : > { %3383 = vrot.lane.b32.xlu1 %v14138_v28, %s13628_s27 }
 0xa78   : > { %3535 = vrot.lane.b32.xlu1 %v14100_v7, %s13628_s27 }
 0xa97   : > { %v3257_v34 = vpop.f32.mrb[36].mxu1 }
 0xa98   : > { %v11968_v35 = vpop.f32.mrb[37].mxu1  ;;  %v3345_v36 = vsel %vm754_vm1, %v3257_v34, -inf }
 0xa99   : > { %3346 = vmax.xlane.f32.xlu0 %v3345_v36 }
 0xa9d   : > { %3349 = vmax.xlane.f32.xlu0 %v3348_v33 }
 0xaa1   : > { %3367 = vadd.xlane.f32.xlu0 %v3366_v21 }
 0xaf0   : > { %v3365_v37 = vpop.xlane.xlu1 %3364 }
 0xaf1   : > { %13165 = vrcp.f32 %v3365_v37 }
 0xaf4   : > { %v3384_v23 = vpop.permute.xlu1 %3383 }
 0xaf5   : > { %11975 = vmatpush3.msra.mxu1 %v3384_v23 }
 0xaf6   : > { %11984 = vmatprep.subr.mxu1 %v13616_v0 }
 0xaf8   : > { %v3536_v25 = vpop.permute.xlu1 %3535 }
 0xafb   : > { %v13166_v38 = vpop.eup %13165 }
 0xafc   : > { %v3376_v39 = vmul.f32 %v13166_v38, %v13162_v24 }
 0xafe   : > { %11977 = vmatmul.mubr.msk.f32.vlgmr.msra.gmra.mrb[38].mxu1 %vm754_vm1, %v3376_v39 }
 0xaff   : > { %11985 = vmatpush3.msra.mxu1 %v3536_v25  ;;  %11986 = vmatprep.mubr.msk.f32.mxu1 %vm13617_vm0, %v13616_v0 }
 0xb00   : > { %11994 = vmatprep.subr.mxu1 %v744_v49 }
 0xb26   : > { %v3347_v27 = vpop.xlane.xlu0 %3346 }
 0xb27   : > { %v3353_v40 = vsub.f32 %v3257_v34, %v3347_v27 }
 0xb29   : > { %v3359_v41 = vmul.f32 1.442695, %v3353_v40 }
 0xb2a   : > { %v3350_v42 = vpop.xlane.xlu0 %3349 }
 0xb2b   : > { %13167 = vpow2.f32 %v3359_v41  ;;  %v3354_v43 = vsub.f32 %v3335_v17, %v3350_v42 }
 0xb2d   : > { %v3361_v44 = vmul.f32 1.442695, %v3354_v43 }
 0xb2e   : > { %v3368_v50 = vpop.xlane.xlu0 %3367 }
 0xb2f   : > { %13169 = vpow2.f32 %v3361_v44 }
 0xb30   : > { %13171 = vrcp.f32 %v3368_v50 }
 0xb35   : > { %v13168_v45 = vpop.eup %13167 }
 0xb36   : > { %v3369_v46 = vsel %vm754_vm1, %v13168_v45, 0.0 }
 0xb37   : > { %3370 = vadd.xlane.f32.xlu1 %v3369_v46 }
 0xb39   : > { %v13170_v47 = vpop.eup %13169 }
 0xb3a   : > { %v3372_v48 = vsel %vm754_vm1, %v13170_v47, 0.0  ;;  %v13172_v56 = vpop.eup %13171 }
 0xb3b   : > { %3373 = vadd.xlane.f32.xlu0 %v3372_v48  ;;  %v3378_v61 = vmul.f32 %v13172_v56, %v13164_v30 }
 0xb48   : > { %3611 = vrot.lane.b32.xlu1 %v14106_v11, %s13628_s27 }
 0xb4c   : > { %3788 = vrot.lane.b32.xlu1 %v14087_v60, %s13619_s29 }
 0xb50   : > { %3866 = vrot.lane.b32.xlu1 %v14092_v1, %s13619_s29 }
 0xb51   : > { %3459 = vrot.lane.b32.xlu0 %v14094_v3, %s13628_s27 }
 0xb54   : > { %4024 = vrot.lane.b32.xlu1 %v14104_v9, %s13629_s2 }
 0xb55   : > { %3790 = vrot.lane.b32.xlu0 %v14087_v60, %s13629_s2 }
 0xb58   : > { %4022 = vrot.lane.b32.xlu1 %v14104_v9, %s13619_s29 }
 0xb59   : > { %3868 = vrot.lane.b32.xlu0 %v14092_v1, %s13629_s2 }
 0xb5d   : > { %3946 = vrot.lane.b32.xlu0 %v14098_v5, %s13629_s2 }
 0xb61   : > { %3944 = vrot.lane.b32.xlu0 %v14098_v5, %s13619_s29  ;;  %s13630_s29 = smov 64  }
 0xbc4   : > { %v3371_v51 = vpop.xlane.xlu1 %3370 }
 0xbc5   : > { %13173 = vrcp.f32 %v3371_v51 }
 0xbc8   : > { %v3374_v52 = vpop.xlane.xlu0 %3373  ;;  %v3612_v57 = vpop.permute.xlu1 %3611 }
 0xbc9   : > { %13175 = vrcp.f32 %v3374_v52 }
 0xbcc   : > { %v3460_v58 = vpop.permute.xlu0 %3459  ;;  %v3789_v63 = vpop.permute.xlu1 %3788 }
 0xbcd   : > { %11980 = vmatpush3.msra.mxu0 %v3460_v58 }
 0xbce   : > { %11982 = vmatmul.mubr.msk.f32.vlgmr.msra.gmra.mrb[30].mxu0 %vm754_vm1, %v3378_v61  ;;  %11989 = vmatprep.subr.mxu0 %v13616_v0 }
 0xbcf   : > { %v13174_v62 = vpop.eup %13173  ;;  %11990 = vmatpush3.msra.mxu0 %v3612_v57  ;;  %11991 = vmatprep.mubr.msk.f32.mxu0 %vm13617_vm0, %v13616_v0 }
 0xbd0   : > { %v3380_v2 = vmul.f32 %v13174_v62, %v13168_v45  ;;  %12002 = vmatprep.subr.mxu0 %v13616_v0  ;;  %v3791_v10 = vpop.permute.xlu0 %3790  ;;  %v3867_v13 = vpop.permute.xlu1 %3866 }
 0xbd1   : > { %v3455_v4 = vpop.f32.mrb[38].mxu1 }
 0xbd2   : > { %v11978_v6 = vpop.f32.mrb[39].mxu1  ;;  %11987 = vmatmul.mubr.msk.f32.vlgmr.msra.gmra.mrb[40].mxu1 %vm754_vm1, %v3380_v2 }
 0xbd3   : > { %v13176_v8 = vpop.eup %13175  ;;  %11996 = vmatprep.mubr.msk.f32.mxu1 %vm754_vm1, %v3455_v4  ;;  %11995 = vmatpush3.msra.mxu1 %v744_v49 }
 0xbd4   : > { %v3382_v12 = vmul.f32 %v13176_v8, %v13170_v47  ;;  %12012 = vmatprep.subr.mxu1 %v13616_v0  ;;  %v3869_v14 = vpop.permute.xlu0 %3868  ;;  %v4025_v15 = vpop.permute.xlu1 %4024 }
 0xbd6   : > { %11992 = vmatmul.mubr.msk.f32.vlgmr.msra.gmra.mrb[32].mxu0 %vm754_vm1, %v3382_v12 }
 0xbd7   : > { %12003 = vmatpush3.xpose.msk.msra.mxu0 %vm754_vm1, %v3791_v10  ;;  %12004 = vmatprep.mubr.msk.f32.mxu0 %vm13617_vm0, %v13616_v0  ;;  %v745_v10 = vld [vmem:[%s15519_s3 + $0x20] sm:$0xff] }
 0xbd8   : > { %12007 = vmatprep.subr.mxu0 %v13616_v0  ;;  %v4023_v16 = vpop.permute.xlu1 %4022  ;;  %v3947_v18 = vpop.permute.xlu0 %3946 }
 0xbda   : > { %12005 = vmatmul.mubr.msk.f32.vlgmr.msra.gmra.mrb[34].mxu0 %vm754_vm1, %v3789_v63 }
 0xbdb   : > { %12008 = vmatpush3.xpose.msk.msra.mxu0 %vm754_vm1, %v3869_v14  ;;  %12009 = vmatprep.mubr.msk.f32.mxu0 %vm13617_vm0, %v13616_v0 }
 0xbdc   : > { %12017 = vmatprep.subr.mxu0 %v13616_v0  ;;  %v3945_v29 = vpop.permute.xlu0 %3944 }
 0xbde   : > { %12010 = vmatmul.mubr.msk.f32.vlgmr.msra.gmra.mrb[36].mxu0 %vm754_vm1, %v3867_v13 }
 0xbdf   : > { %12018 = vmatpush3.xpose.msk.msra.mxu0 %vm754_vm1, %v4025_v15  ;;  %12019 = vmatprep.mubr.msk.f32.mxu0 %vm13617_vm0, %v13616_v0 }
 0xbe0   : > { %12027 = vmatprep.subr.mxu0 %v13616_v0 }
 0xbe2   : > { %12020 = vmatmul.mubr.msk.f32.vlgmr.msra.gmra.mrb[38].mxu0 %vm754_vm1, %v4023_v16 }
 0xbe3   : > { %12029 = vmatprep.mubr.msk.f32.mxu0 %vm13617_vm0, %v13616_v0 }
 0xca1   : > { %v3531_v17 = vpop.f32.mrb[30].mxu0 }
 0xca2   : > { %v11983_v19 = vpop.f32.mrb[31].mxu0  ;;  %11997 = vmatmul.mubr.msk.f32.vlgmr.msra.gmra.mrb[28].mxu1 %vm754_vm1, %v3531_v17 }
 0xca3   : > { %12013 = vmatpush3.xpose.msk.msra.mxu1 %vm754_vm1, %v3947_v18 }
 0xca4   : > { %12022 = vmatprep.subr.mxu1 %v13616_v0 }
 0xca5   : > { %v3607_v20 = vpop.f32.mrb[40].mxu1 }
 0xca6   : > { %v11988_v22 = vpop.f32.mrb[41].mxu1  ;;  %11999 = vmatprep.mubr.msk.f32.mxu1 %vm754_vm1, %v3607_v20 }
 0xca9   : > { %v3683_v24 = vpop.f32.mrb[32].mxu0 }
 0xcaa   : > { %v11993_v26 = vpop.f32.mrb[33].mxu0  ;;  %12000 = vmatmul.mubr.msk.f32.gmra.mrb[30].mxu1 %vm754_vm1, %v3683_v24 }
 0xcab   : > { %12014 = vmatprep.mubr.msk.f32.mxu1 %vm13617_vm0, %v13616_v0 }
 0xcad   : > { %v3862_v31 = vpop.f32.mrb[34].mxu0 }
 0xcae   : > { %v12006_v32 = vpop.f32.mrb[35].mxu0  ;;  %12015 = vmatmul.mubr.msk.f32.vlgmr.msra.gmra.mrb[42].mxu1 %vm754_vm1, %v3945_v29  ;;  %v4100_v34 = vsel %vm754_vm1, %v3862_v31, -inf }
 0xcaf   : > { %4101 = vmax.xlane.f32.xlu0 %v4100_v34  ;;  %12024 = vmatprep.mubr.msk.f32.mxu1 %vm13617_vm0, %v13616_v0 }
 0xcb1   : > { %v3940_v35 = vpop.f32.mrb[36].mxu0 }
 0xcb2   : > { %v12011_v36 = vpop.f32.mrb[37].mxu0  ;;  %v4103_v33 = vsel %vm754_vm1, %v3940_v35, -inf }
 0xcb3   : > { %4104 = vmax.xlane.f32.xlu1 %v4103_v33 }
 0xcb5   : > { %v4096_v30 = vpop.f32.mrb[38].mxu0 }
 0xcb6   : > { %v12021_v21 = vpop.f32.mrb[39].mxu0  ;;  %v4109_v45 = vsel %vm754_vm1, %v4096_v30, -inf }
 0xd3c   : > { %v4102_v37 = vpop.xlane.xlu0 %4101 }
 0xd3d   : > { %v4112_v23 = vsub.f32 %v3862_v31, %v4102_v37 }
 0xd3f   : > { %v4116_v38 = vmul.f32 1.442695, %v4112_v23 }
 0xd40   : > { %v4105_v27 = vpop.xlane.xlu1 %4104 }
 0xd41   : > { %13177 = vpow2.f32 %v4116_v38  ;;  %v4113_v40 = vsub.f32 %v3940_v35, %v4105_v27 }
 0xd43   : > { %v4118_v41 = vmul.f32 1.442695, %v4113_v40 }
 0xd45   : > { %13179 = vpow2.f32 %v4118_v41 }
 0xd4b   : > { %v13178_v39 = vpop.eup %13177 }
 0xd4c   : > { %v4124_v25 = vsel %vm754_vm1, %v13178_v39, 0.0 }
 0xd4d   : > { %4125 = vadd.xlane.f32.xlu1 %v4124_v25 }
 0xd4f   : > { %v13180_v46 = vpop.eup %13179 }
 0xd50   : > { %v4127_v47 = vsel %vm754_vm1, %v13180_v46, 0.0 }
 0xd5e   : > { %4144 = vrot.lane.b32.xlu1 %v14138_v28, %s13630_s29 }
 0xd62   : > { %4296 = vrot.lane.b32.xlu1 %v14100_v7, %s13630_s29 }
 0xd81   : > { %v4018_v42 = vpop.f32.mrb[42].mxu1 }
 0xd82   : > { %v12016_v43 = vpop.f32.mrb[43].mxu1  ;;  %v4106_v44 = vsel %vm754_vm1, %v4018_v42, -inf }
 0xd83   : > { %4107 = vmax.xlane.f32.xlu0 %v4106_v44 }
 0xd87   : > { %4110 = vmax.xlane.f32.xlu0 %v4109_v45 }
 0xd8b   : > { %4128 = vadd.xlane.f32.xlu0 %v4127_v47 }
 0xdda   : > { %v4126_v48 = vpop.xlane.xlu1 %4125 }
 0xddb   : > { %13181 = vrcp.f32 %v4126_v48 }
 0xdde   : > { %v4145_v49 = vpop.permute.xlu1 %4144 }
 0xddf   : > { %12023 = vmatpush3.msra.mxu1 %v4145_v49 }
 0xde0   : > { %12032 = vmatprep.subr.mxu1 %v13616_v0 }
 0xde2   : > { %v4297_v52 = vpop.permute.xlu1 %4296 }
 0xde5   : > { %v13182_v50 = vpop.eup %13181 }
 0xde6   : > { %v4137_v51 = vmul.f32 %v13182_v50, %v13178_v39 }
 0xde8   : > { %12025 = vmatmul.mubr.msk.f32.vlgmr.msra.gmra.mrb[44].mxu1 %vm754_vm1, %v4137_v51 }
 0xde9   : > { %12033 = vmatpush3.msra.mxu1 %v4297_v52  ;;  %12034 = vmatprep.mubr.msk.f32.mxu1 %vm13617_vm0, %v13616_v0 }
 0xdea   : > { %12042 = vmatprep.subr.mxu1 %v745_v10 }
 0xe10   : > { %v4108_v56 = vpop.xlane.xlu0 %4107 }
 0xe11   : > { %v4114_v57 = vsub.f32 %v4018_v42, %v4108_v56 }
 0xe13   : > { %v4120_v58 = vmul.f32 1.442695, %v4114_v57 }
 0xe14   : > { %v4111_v61 = vpop.xlane.xlu0 %4110 }
 0xe15   : > { %13183 = vpow2.f32 %v4120_v58  ;;  %v4115_v62 = vsub.f32 %v4096_v30, %v4111_v61 }
 0xe17   : > { %v4122_v63 = vmul.f32 1.442695, %v4115_v62 }
 0xe18   : > { %v4129_v12 = vpop.xlane.xlu0 %4128 }
 0xe19   : > { %13185 = vpow2.f32 %v4122_v63 }
 0xe1a   : > { %13187 = vrcp.f32 %v4129_v12 }
 0xe1f   : > { %v13184_v2 = vpop.eup %13183 }
 0xe20   : > { %v4130_v4 = vsel %vm754_vm1, %v13184_v2, 0.0 }
 0xe21   : > { %4131 = vadd.xlane.f32.xlu1 %v4130_v4 }
 0xe23   : > { %v13186_v6 = vpop.eup %13185 }
 0xe24   : > { %v4133_v8 = vsel %vm754_vm1, %v13186_v6, 0.0  ;;  %v13188_v15 = vpop.eup %13187 }
 0xe25   : > { %4134 = vadd.xlane.f32.xlu0 %v4133_v8  ;;  %v4139_v18 = vmul.f32 %v13188_v15, %v13180_v46 }
 0xe32   : > { %4372 = vrot.lane.b32.xlu1 %v14106_v11, %s13630_s29 }
 0xe36   : > { %4549 = vrot.lane.b32.xlu1 %v14087_v60, %s13622_s26 }
 0xe3a   : > { %4627 = vrot.lane.b32.xlu1 %v14092_v1, %s13622_s26 }
 0xe3b   : > { %4220 = vrot.lane.b32.xlu0 %v14094_v3, %s13630_s29 }
 0xe3e   : > { %4785 = vrot.lane.b32.xlu1 %v14104_v9, %s13631_s16 }
 0xe3f   : > { %4551 = vrot.lane.b32.xlu0 %v14087_v60, %s13631_s16 }
 0xe42   : > { %4783 = vrot.lane.b32.xlu1 %v14104_v9, %s13622_s26 }
 0xe43   : > { %4629 = vrot.lane.b32.xlu0 %v14092_v1, %s13631_s16 }
 0xe47   : > { %4707 = vrot.lane.b32.xlu0 %v14098_v5, %s13631_s16 }
 0xe4b   : > { %4705 = vrot.lane.b32.xlu0 %v14098_v5, %s13622_s26  ;;  %s13632_s26 = smov 56  }
 0xeae   : > { %v4132_v13 = vpop.xlane.xlu1 %4131 }
 0xeaf   : > { %13189 = vrcp.f32 %v4132_v13 }
 0xeb2   : > { %v4135_v14 = vpop.xlane.xlu0 %4134  ;;  %v4373_v16 = vpop.permute.xlu1 %4372 }
 0xeb3   : > { %13191 = vrcp.f32 %v4135_v14 }
 0xeb6   : > { %v4221_v17 = vpop.permute.xlu0 %4220  ;;  %v4550_v20 = vpop.permute.xlu1 %4549 }
 0xeb7   : > { %12028 = vmatpush3.msra.mxu0 %v4221_v17 }
 0xeb8   : > { %12030 = vmatmul.mubr.msk.f32.vlgmr.msra.gmra.mrb[40].mxu0 %vm754_vm1, %v4139_v18  ;;  %12037 = vmatprep.subr.mxu0 %v13616_v0 }
 0xeb9   : > { %v13190_v19 = vpop.eup %13189  ;;  %12038 = vmatpush3.msra.mxu0 %v4373_v16  ;;  %12039 = vmatprep.mubr.msk.f32.mxu0 %vm13617_vm0, %v13616_v0 }
 0xeba   : > { %v4141_v22 = vmul.f32 %v13190_v19, %v13184_v2  ;;  %12050 = vmatprep.subr.mxu0 %v13616_v0  ;;  %v4552_v31 = vpop.permute.xlu0 %4551  ;;  %v4628_v34 = vpop.permute.xlu1 %4627 }
 0xebb   : > { %v4216_v24 = vpop.f32.mrb[44].mxu1 }
 0xebc   : > { %v12026_v26 = vpop.f32.mrb[45].mxu1  ;;  %12035 = vmatmul.mubr.msk.f32.vlgmr.msra.gmra.mrb[46].mxu1 %vm754_vm1, %v4141_v22 }
 0xebd   : > { %v13192_v29 = vpop.eup %13191  ;;  %12044 = vmatprep.mubr.msk.f32.mxu1 %vm754_vm1, %v4216_v24  ;;  %12043 = vmatpush3.msra.mxu1 %v745_v10 }
 0xebe   : > { %v4143_v32 = vmul.f32 %v13192_v29, %v13186_v6  ;;  %12060 = vmatprep.subr.mxu1 %v13616_v0  ;;  %v4630_v35 = vpop.permute.xlu0 %4629  ;;  %v4786_v36 = vpop.permute.xlu1 %4785 }
 0xec0   : > { %12040 = vmatmul.mubr.msk.f32.vlgmr.msra.gmra.mrb[42].mxu0 %vm754_vm1, %v4143_v32 }
 0xec1   : > { %12051 = vmatpush3.xpose.msk.msra.mxu0 %vm754_vm1, %v4552_v31  ;;  %12052 = vmatprep.mubr.msk.f32.mxu0 %vm13617_vm0, %v13616_v0  ;;  %v746_v31 = vld [vmem:[%s15519_s3 + $0x28] sm:$0xff] }
 0xec2   : > { %12055 = vmatprep.subr.mxu0 %v13616_v0  ;;  %v4784_v33 = vpop.permute.xlu1 %4783  ;;  %v4708_v21 = vpop.permute.xlu0 %4707 }
 0xec4   : > { %12053 = vmatmul.mubr.msk.f32.vlgmr.msra.gmra.mrb[44].mxu0 %vm754_vm1, %v4550_v20 }
 0xec5   : > { %12056 = vmatpush3.xpose.msk.msra.mxu0 %vm754_vm1, %v4630_v35  ;;  %12057 = vmatprep.mubr.msk.f32.mxu0 %vm13617_vm0, %v13616_v0 }
 0xec6   : > { %12065 = vmatprep.subr.mxu0 %v13616_v0  ;;  %v4706_v27 = vpop.permute.xlu0 %4705 }
 0xec8   : > { %12058 = vmatmul.mubr.msk.f32.vlgmr.msra.gmra.mrb[46].mxu0 %vm754_vm1, %v4628_v34 }
 0xec9   : > { %12066 = vmatpush3.xpose.msk.msra.mxu0 %vm754_vm1, %v4786_v36  ;;  %12067 = vmatprep.mubr.msk.f32.mxu0 %vm13617_vm0, %v13616_v0 }
 0xeca   : > { %12075 = vmatprep.subr.mxu0 %v13616_v0 }
 0xecc   : > { %12068 = vmatmul.mubr.msk.f32.vlgmr.msra.gmra.mrb[48].mxu0 %vm754_vm1, %v4784_v33 }
 0xecd   : > { %12077 = vmatprep.mubr.msk.f32.mxu0 %vm13617_vm0, %v13616_v0 }
 0xf8b   : > { %v4292_v30 = vpop.f32.mrb[40].mxu0 }
 0xf8c   : > { %v12031_v37 = vpop.f32.mrb[41].mxu0  ;;  %12045 = vmatmul.mubr.msk.f32.vlgmr.msra.gmra.mrb[28].mxu1 %vm754_vm1, %v4292_v30 }
 0xf8d   : > { %12061 = vmatpush3.xpose.msk.msra.mxu1 %vm754_vm1, %v4708_v21 }
 0xf8e   : > { %12070 = vmatprep.subr.mxu1 %v13616_v0 }
 0xf8f   : > { %v4368_v23 = vpop.f32.mrb[46].mxu1 }
 0xf90   : > { %v12036_v38 = vpop.f32.mrb[47].mxu1  ;;  %12047 = vmatprep.mubr.msk.f32.mxu1 %vm754_vm1, %v4368_v23 }
 0xf93   : > { %v4444_v39 = vpop.f32.mrb[42].mxu0 }
 0xf94   : > { %v12041_v25 = vpop.f32.mrb[43].mxu0  ;;  %12048 = vmatmul.mubr.msk.f32.gmra.mrb[30].mxu1 %vm754_vm1, %v4444_v39 }
 0xf95   : > { %12062 = vmatprep.mubr.msk.f32.mxu1 %vm13617_vm0, %v13616_v0 }
 0xf97   : > { %v4623_v40 = vpop.f32.mrb[44].mxu0 }
 0xf98   : > { %v12054_v41 = vpop.f32.mrb[45].mxu0  ;;  %12063 = vmatmul.mubr.msk.f32.vlgmr.msra.gmra.mrb[48].mxu1 %vm754_vm1, %v4706_v27  ;;  %v4861_v42 = vsel %vm754_vm1, %v4623_v40, -inf }
 0xf99   : > { %4862 = vmax.xlane.f32.xlu0 %v4861_v42  ;;  %12072 = vmatprep.mubr.msk.f32.mxu1 %vm13617_vm0, %v13616_v0 }
 0xf9b   : > { %v4701_v43 = vpop.f32.mrb[46].mxu0 }
 0xf9c   : > { %v12059_v44 = vpop.f32.mrb[47].mxu0  ;;  %v4864_v45 = vsel %vm754_vm1, %v4701_v43, -inf }
 0xf9d   : > { %4865 = vmax.xlane.f32.xlu1 %v4864_v45 }
 0xf9f   : > { %v4857_v46 = vpop.f32.mrb[48].mxu0 }
 0xfa0   : > { %v12069_v47 = vpop.f32.mrb[49].mxu0  ;;  %v4870_v2 = vsel %vm754_vm1, %v4857_v46, -inf }
0x1026   : > { %v4863_v48 = vpop.xlane.xlu0 %4862 }
0x1027   : > { %v4873_v49 = vsub.f32 %v4623_v40, %v4863_v48 }
0x1029   : > { %v4877_v50 = vmul.f32 1.442695, %v4873_v49 }
0x102a   : > { %v4866_v56 = vpop.xlane.xlu1 %4865 }
0x102b   : > { %13193 = vpow2.f32 %v4877_v50  ;;  %v4874_v57 = vsub.f32 %v4701_v43, %v4866_v56 }
0x102d   : > { %v4879_v58 = vmul.f32 1.442695, %v4874_v57 }
0x102f   : > { %13195 = vpow2.f32 %v4879_v58 }
0x1035   : > { %v13194_v51 = vpop.eup %13193 }
0x1036   : > { %v4885_v52 = vsel %vm754_vm1, %v13194_v51, 0.0 }
0x1037   : > { %4886 = vadd.xlane.f32.xlu1 %v4885_v52 }
0x1039   : > { %v13196_v4 = vpop.eup %13195 }
0x103a   : > { %v4888_v6 = vsel %vm754_vm1, %v13196_v4, 0.0 }
0x1048   : > { %4905 = vrot.lane.b32.xlu1 %v14138_v28, %s13632_s26 }
0x104c   : > { %5057 = vrot.lane.b32.xlu1 %v14100_v7, %s13632_s26 }
0x106b   : > { %v4779_v61 = vpop.f32.mrb[48].mxu1 }
0x106c   : > { %v12064_v62 = vpop.f32.mrb[49].mxu1  ;;  %v4867_v63 = vsel %vm754_vm1, %v4779_v61, -inf }
0x106d   : > { %4868 = vmax.xlane.f32.xlu0 %v4867_v63 }
0x1071   : > { %4871 = vmax.xlane.f32.xlu0 %v4870_v2 }
0x1075   : > { %4889 = vadd.xlane.f32.xlu0 %v4888_v6 }
0x10c4   : > { %v4887_v8 = vpop.xlane.xlu1 %4886 }
0x10c5   : > { %13197 = vrcp.f32 %v4887_v8 }
0x10c8   : > { %v4906_v10 = vpop.permute.xlu1 %4905 }
0x10c9   : > { %12071 = vmatpush3.msra.mxu1 %v4906_v10 }
0x10ca   : > { %12080 = vmatprep.subr.mxu1 %v13616_v0 }
0x10cc   : > { %v5058_v14 = vpop.permute.xlu1 %5057 }
0x10cf   : > { %v13198_v12 = vpop.eup %13197 }
0x10d0   : > { %v4898_v13 = vmul.f32 %v13198_v12, %v13194_v51 }
0x10d2   : > { %12073 = vmatmul.mubr.msk.f32.vlgmr.msra.gmra.mrb[50].mxu1 %vm754_vm1, %v4898_v13 }
0x10d3   : > { %12081 = vmatpush3.msra.mxu1 %v5058_v14  ;;  %12082 = vmatprep.mubr.msk.f32.mxu1 %vm13617_vm0, %v13616_v0 }
0x10d4   : > { %12090 = vmatprep.subr.mxu1 %v746_v31 }
0x10fa   : > { %v4869_v15 = vpop.xlane.xlu0 %4868 }
0x10fb   : > { %v4875_v16 = vsub.f32 %v4779_v61, %v4869_v15 }
0x10fd   : > { %v4881_v17 = vmul.f32 1.442695, %v4875_v16 }
0x10fe   : > { %v4872_v18 = vpop.xlane.xlu0 %4871 }
0x10ff   : > { %13199 = vpow2.f32 %v4881_v17  ;;  %v4876_v19 = vsub.f32 %v4857_v46, %v4872_v18 }
0x1101   : > { %v4883_v20 = vmul.f32 1.442695, %v4876_v19 }
0x1102   : > { %v4890_v32 = vpop.xlane.xlu0 %4889 }
0x1103   : > { %13201 = vpow2.f32 %v4883_v20 }
0x1104   : > { %13203 = vrcp.f32 %v4890_v32 }
0x1109   : > { %v13200_v22 = vpop.eup %13199 }
0x110a   : > { %v4891_v24 = vsel %vm754_vm1, %v13200_v22, 0.0 }
0x110b   : > { %4892 = vadd.xlane.f32.xlu1 %v4891_v24 }
0x110d   : > { %v13202_v26 = vpop.eup %13201 }
0x110e   : > { %v4894_v29 = vsel %vm754_vm1, %v13202_v26, 0.0  ;;  %v13204_v36 = vpop.eup %13203 }
0x110f   : > { %4895 = vadd.xlane.f32.xlu0 %v4894_v29  ;;  %v4900_v30 = vmul.f32 %v13204_v36, %v13196_v4 }
0x111c   : > { %5133 = vrot.lane.b32.xlu1 %v14106_v11, %s13632_s26 }
0x1120   : > { %5386 = vrot.lane.b32.xlu1 %v14092_v1, %s13625_s15 }
0x1124   : > { %5538 = vrot.lane.b32.xlu1 %v14104_v9, %s13625_s15 }
0x1125   : > { %4981 = vrot.lane.b32.xlu0 %v14094_v3, %s13632_s26 }
0x1129   : > { %5310 = vrot.lane.b32.xlu0 %v14087_v60, %s13625_s15 }
0x112d   : > { %5462 = vrot.lane.b32.xlu0 %v14098_v5, %s13625_s15  ;;  %s591_s15 = sand.u32 1, %s13595_s19  }
0x1198   : > { %v4893_v34 = vpop.xlane.xlu1 %4892 }
0x1199   : > { %13205 = vrcp.f32 %v4893_v34 }
0x119c   : > { %v4896_v35 = vpop.xlane.xlu0 %4895  ;;  %v5134_v21 = vpop.permute.xlu1 %5133 }
0x119d   : > { %13207 = vrcp.f32 %v4896_v35 }
0x11a0   : > { %v4982_v33 = vpop.permute.xlu0 %4981  ;;  %v5387_v41 = vpop.permute.xlu1 %5386 }
0x11a1   : > { %12076 = vmatpush3.msra.mxu0 %v4982_v33 }
0x11a2   : > { %12078 = vmatmul.mubr.msk.f32.vlgmr.msra.gmra.mrb[50].mxu0 %vm754_vm1, %v4900_v30  ;;  %12085 = vmatprep.subr.mxu0 %v13616_v0 }
0x11a3   : > { %v13206_v37 = vpop.eup %13205  ;;  %12086 = vmatpush3.msra.mxu0 %v5134_v21  ;;  %12087 = vmatprep.mubr.msk.f32.mxu0 %vm13617_vm0, %v13616_v0 }
0x11a4   : > { %v4902_v23 = vmul.f32 %v13206_v37, %v13200_v22  ;;  %12098 = vmatprep.subr.mxu0 %v13616_v0  ;;  %v5311_v40 = vpop.permute.xlu0 %5310  ;;  %v5539_v42 = vpop.permute.xlu1 %5538 }
0x11a5   : > { %v4977_v38 = vpop.f32.mrb[50].mxu1 }
0x11a6   : > { %v12074_v39 = vpop.f32.mrb[51].mxu1  ;;  %12083 = vmatmul.mubr.msk.f32.vlgmr.msra.gmra.mrb[52].mxu1 %vm754_vm1, %v4902_v23 }
0x11a7   : > { %v13208_v25 = vpop.eup %13207  ;;  %12092 = vmatprep.mubr.msk.f32.mxu1 %vm754_vm1, %v4977_v38  ;;  %12091 = vmatpush3.msra.mxu1 %v746_v31  ;;  %v747_v38 = vld [vmem:[%s15519_s3 + $0x30] sm:$0xff] }
0x11a8   : > { %v4904_v27 = vmul.f32 %v13208_v25, %v13202_v26  ;;  %12108 = vmatprep.subr.mxu1 %v13616_v0  ;;  %v5463_v49 = vpop.permute.xlu0 %5462 }
0x11aa   : > { %12088 = vmatmul.mubr.msk.f32.vlgmr.msra.gmra.mrb[52].mxu0 %vm754_vm1, %v4904_v27 }
0x11ab   : > { %12099 = vmatpush3.xpose.msk.msra.mxu0 %vm754_vm1, %v14138_v28  ;;  %12100 = vmatprep.mubr.msk.f32.mxu0 %vm13617_vm0, %v13616_v0 }
0x11ac   : > { %12103 = vmatprep.subr.mxu0 %v13616_v0 }
0x11ae   : > { %12101 = vmatmul.mubr.msk.f32.vlgmr.msra.gmra.mrb[54].mxu0 %vm754_vm1, %v5311_v40 }
0x11af   : > { %12104 = vmatpush3.xpose.msk.msra.mxu0 %vm754_vm1, %v14094_v3  ;;  %12105 = vmatprep.mubr.msk.f32.mxu0 %vm13617_vm0, %v13616_v0 }
0x11b0   : > { %12113 = vmatprep.subr.mxu0 %v13616_v0 }
0x11b2   : > { %12106 = vmatmul.mubr.msk.f32.vlgmr.msra.gmra.mrb[56].mxu0 %vm754_vm1, %v5387_v41 }
0x11b3   : > { %12114 = vmatpush3.xpose.msk.msra.mxu0 %vm754_vm1, %v14106_v11  ;;  %12115 = vmatprep.mubr.msk.f32.mxu0 %vm13617_vm0, %v13616_v0 }
0x11b4   : > { %12123 = vmatprep.subr.mxu0 %v13616_v0 }
0x11b6   : > { %12116 = vmatmul.mubr.msk.f32.vlgmr.msra.gmra.mrb[58].mxu0 %vm754_vm1, %v5539_v42 }
0x11b7   : > { %12125 = vmatprep.mubr.msk.f32.mxu0 %vm13617_vm0, %v13616_v0 }
0x1275   : > { %v5053_v43 = vpop.f32.mrb[50].mxu0 }
0x1276   : > { %v12079_v44 = vpop.f32.mrb[51].mxu0  ;;  %12093 = vmatmul.mubr.msk.f32.vlgmr.msra.gmra.mrb[28].mxu1 %vm754_vm1, %v5053_v43 }
0x1277   : > { %12109 = vmatpush3.xpose.msk.msra.mxu1 %vm754_vm1, %v14100_v7 }
0x1278   : > { %12118 = vmatprep.subr.mxu1 %v13616_v0 }
0x1279   : > { %v5129_v45 = vpop.f32.mrb[52].mxu1 }
0x127a   : > { %v12084_v46 = vpop.f32.mrb[53].mxu1  ;;  %12095 = vmatprep.mubr.msk.f32.mxu1 %vm754_vm1, %v5129_v45 }
0x127d   : > { %v5205_v47 = vpop.f32.mrb[52].mxu0 }
0x127e   : > { %v12089_v48 = vpop.f32.mrb[53].mxu0  ;;  %12096 = vmatmul.mubr.msk.f32.gmra.mrb[30].mxu1 %vm754_vm1, %v5205_v47 }
0x127f   : > { %12110 = vmatprep.mubr.msk.f32.mxu1 %vm13617_vm0, %v13616_v0 }
0x1281   : > { %v5382_v50 = vpop.f32.mrb[54].mxu0 }
0x1282   : > { %v12102_v51 = vpop.f32.mrb[55].mxu0  ;;  %12111 = vmatmul.mubr.msk.f32.vlgmr.msra.gmra.mrb[54].mxu1 %vm754_vm1, %v5463_v49  ;;  %v5614_v52 = vsel %vm754_vm1, %v5382_v50, -inf }
0x1283   : > { %5615 = vmax.xlane.f32.xlu0 %v5614_v52  ;;  %12120 = vmatprep.mubr.msk.f32.mxu1 %vm13617_vm0, %v13616_v0 }
0x1285   : > { %v5458_v56 = vpop.f32.mrb[56].mxu0 }
0x1286   : > { %v12107_v57 = vpop.f32.mrb[57].mxu0  ;;  %v5617_v58 = vsel %vm754_vm1, %v5458_v56, -inf }
0x1287   : > { %5618 = vmax.xlane.f32.xlu1 %v5617_v58 }
0x1289   : > { %v5610_v61 = vpop.f32.mrb[58].mxu0 }
0x128a   : > { %v12117_v62 = vpop.f32.mrb[59].mxu0  ;;  %v5623_v17 = vsel %vm754_vm1, %v5610_v61, -inf }
0x1310   : > { %v5616_v63 = vpop.xlane.xlu0 %5615 }
0x1311   : > { %v5626_v2 = vsub.f32 %v5382_v50, %v5616_v63 }
0x1313   : > { %v5630_v4 = vmul.f32 1.442695, %v5626_v2 }
0x1314   : > { %v5619_v10 = vpop.xlane.xlu1 %5618 }
0x1315   : > { %13209 = vpow2.f32 %v5630_v4  ;;  %v5627_v12 = vsub.f32 %v5458_v56, %v5619_v10 }
0x1317   : > { %v5632_v13 = vmul.f32 1.442695, %v5627_v12 }
0x1319   : > { %13211 = vpow2.f32 %v5632_v13 }
0x131f   : > { %v13210_v6 = vpop.eup %13209 }
0x1320   : > { %v5638_v8 = vsel %vm754_vm1, %v13210_v6, 0.0 }
0x1321   : > { %5639 = vadd.xlane.f32.xlu1 %v5638_v8 }
0x1323   : > { %v13212_v18 = vpop.eup %13211 }
0x1324   : > { %v5641_v19 = vsel %vm754_vm1, %v13212_v18, 0.0 }
0x1332   : > { %5658 = vrot.lane.b32.xlu1 %v14138_v28, %s13618_s5 }
0x1336   : > { %5810 = vrot.lane.b32.xlu1 %v14100_v7, %s13618_s5 }
0x1355   : > { %v5534_v14 = vpop.f32.mrb[54].mxu1 }
0x1356   : > { %v12112_v15 = vpop.f32.mrb[55].mxu1  ;;  %v5620_v16 = vsel %vm754_vm1, %v5534_v14, -inf }
0x1357   : > { %5621 = vmax.xlane.f32.xlu0 %v5620_v16 }
0x135b   : > { %5624 = vmax.xlane.f32.xlu0 %v5623_v17 }
0x135f   : > { %5642 = vadd.xlane.f32.xlu0 %v5641_v19 }
0x13ae   : > { %v5640_v20 = vpop.xlane.xlu1 %5639 }
0x13af   : > { %13213 = vrcp.f32 %v5640_v20 }
0x13b2   : > { %v5659_v22 = vpop.permute.xlu1 %5658 }
0x13b3   : > { %12119 = vmatpush3.msra.mxu1 %v5659_v22 }
0x13b4   : > { %12128 = vmatprep.subr.mxu1 %v13616_v0 }
0x13b6   : > { %v5811_v29 = vpop.permute.xlu1 %5810 }
0x13b9   : > { %v13214_v24 = vpop.eup %13213 }
0x13ba   : > { %v5651_v26 = vmul.f32 %v13214_v24, %v13210_v6 }
0x13bc   : > { %12121 = vmatmul.mubr.msk.f32.vlgmr.msra.gmra.mrb[56].mxu1 %vm754_vm1, %v5651_v26 }
0x13bd   : > { %12129 = vmatpush3.msra.mxu1 %v5811_v29  ;;  %12130 = vmatprep.mubr.msk.f32.mxu1 %vm13617_vm0, %v13616_v0 }
0x13be   : > { %12138 = vmatprep.subr.mxu1 %v747_v38 }
0x13e4   : > { %v5622_v31 = vpop.xlane.xlu0 %5621 }
0x13e5   : > { %v5628_v32 = vsub.f32 %v5534_v14, %v5622_v31 }
0x13e7   : > { %v5634_v34 = vmul.f32 1.442695, %v5628_v32 }
0x13e8   : > { %v5625_v35 = vpop.xlane.xlu0 %5624 }
0x13e9   : > { %13215 = vpow2.f32 %v5634_v34  ;;  %v5629_v36 = vsub.f32 %v5610_v61, %v5625_v35 }
0x13eb   : > { %v5636_v33 = vmul.f32 1.442695, %v5629_v36 }
0x13ec   : > { %v5643_v39 = vpop.xlane.xlu0 %5642 }
0x13ed   : > { %13217 = vpow2.f32 %v5636_v33 }
0x13ee   : > { %13219 = vrcp.f32 %v5643_v39 }
0x13f3   : > { %v13216_v30 = vpop.eup %13215 }
0x13f4   : > { %v5644_v21 = vsel %vm754_vm1, %v13216_v30, 0.0 }
0x13f5   : > { %5645 = vadd.xlane.f32.xlu1 %v5644_v21 }
0x13f7   : > { %v13218_v37 = vpop.eup %13217 }
0x13f8   : > { %v5647_v23 = vsel %vm754_vm1, %v13218_v37, 0.0  ;;  %v13220_v40 = vpop.eup %13219 }
0x13f9   : > { %5648 = vadd.xlane.f32.xlu0 %v5647_v23  ;;  %v5653_v42 = vmul.f32 %v13220_v40, %v13212_v18 }
0x1406   : > { %5886 = vrot.lane.b32.xlu1 %v14106_v11, %s13618_s5 }
0x140a   : > { %6063 = vrot.lane.b32.xlu1 %v14087_v60, %s13628_s27 }
0x140e   : > { %6141 = vrot.lane.b32.xlu1 %v14092_v1, %s13628_s27 }
0x140f   : > { %5734 = vrot.lane.b32.xlu0 %v14094_v3, %s13618_s5  ;;  %s11052_s5 = sshll.u32 %s591_s15, 5 }
0x1412   : > { %6299 = vrot.lane.b32.xlu1 %v14106_v11, %s13620_s28 }
0x1413   : > { %6065 = vrot.lane.b32.xlu0 %v14138_v28, %s13620_s28 }
0x1416   : > { %6297 = vrot.lane.b32.xlu1 %v14104_v9, %s13628_s27 }
0x1417   : > { %6143 = vrot.lane.b32.xlu0 %v14094_v3, %s13620_s28 }
0x141b   : > { %6221 = vrot.lane.b32.xlu0 %v14100_v7, %s13620_s28  ;;  %s15456_s28 = scalar_lea.vmem [#allocation16], %s11052_s5 }
0x141f   : > { %6219 = vrot.lane.b32.xlu0 %v14098_v5, %s13628_s27 }
0x1482   : > { %v5646_v25 = vpop.xlane.xlu1 %5645 }
0x1483   : > { %13221 = vrcp.f32 %v5646_v25 }
0x1486   : > { %v5649_v27 = vpop.xlane.xlu0 %5648  ;;  %v5887_v41 = vpop.permute.xlu1 %5886 }
0x1487   : > { %13223 = vrcp.f32 %v5649_v27 }
0x148a   : > { %v5735_v43 = vpop.permute.xlu0 %5734  ;;  %v6064_v45 = vpop.permute.xlu1 %6063 }
0x148b   : > { %12124 = vmatpush3.msra.mxu0 %v5735_v43 }
0x148c   : > { %12126 = vmatmul.mubr.msk.f32.vlgmr.msra.gmra.mrb[60].mxu0 %vm754_vm1, %v5653_v42  ;;  %12133 = vmatprep.subr.mxu0 %v13616_v0 }
0x148d   : > { %v13222_v44 = vpop.eup %13221  ;;  %12134 = vmatpush3.msra.mxu0 %v5887_v41  ;;  %12135 = vmatprep.mubr.msk.f32.mxu0 %vm13617_vm0, %v13616_v0 }
0x148e   : > { %v5655_v46 = vmul.f32 %v13222_v44, %v13216_v30  ;;  %12146 = vmatprep.subr.mxu0 %v13616_v0  ;;  %v6066_v51 = vpop.permute.xlu0 %6065  ;;  %v6142_v52 = vpop.permute.xlu1 %6141 }
0x148f   : > { %v5730_v47 = vpop.f32.mrb[56].mxu1 }
0x1490   : > { %v12122_v48 = vpop.f32.mrb[57].mxu1  ;;  %12131 = vmatmul.mubr.msk.f32.vlgmr.msra.gmra.mrb[58].mxu1 %vm754_vm1, %v5655_v46 }
0x1491   : > { %v13224_v49 = vpop.eup %13223  ;;  %12140 = vmatprep.mubr.msk.f32.mxu1 %vm754_vm1, %v5730_v47  ;;  %12139 = vmatpush3.msra.mxu1 %v747_v38 }
0x1492   : > { %v5657_v50 = vmul.f32 %v13224_v49, %v13218_v37  ;;  %12156 = vmatprep.subr.mxu1 %v13616_v0  ;;  %v6144_v56 = vpop.permute.xlu0 %6143  ;;  %v6300_v57 = vpop.permute.xlu1 %6299 }
0x1494   : > { %12136 = vmatmul.mubr.msk.f32.vlgmr.msra.gmra.mrb[62].mxu0 %vm754_vm1, %v5657_v50  ;;  %v748_v50 = vld [vmem:[%s15519_s3 + $0x38] sm:$0xff] }
0x1495   : > { %12147 = vmatpush3.xpose.msk.msra.mxu0 %vm754_vm1, %v6066_v51  ;;  %12148 = vmatprep.mubr.msk.f32.mxu0 %vm13617_vm0, %v13616_v0 }
0x1496   : > { %12151 = vmatprep.subr.mxu0 %v13616_v0  ;;  %v6298_v58 = vpop.permute.xlu1 %6297  ;;  %v6222_v62 = vpop.permute.xlu0 %6221 }
0x1498   : > { %12149 = vmatmul.mubr.msk.f32.vlgmr.msra.gmra.mrb[64].mxu0 %vm754_vm1, %v6064_v45 }
0x1499   : > { %12152 = vmatpush3.xpose.msk.msra.mxu0 %vm754_vm1, %v6144_v56  ;;  %12153 = vmatprep.mubr.msk.f32.mxu0 %vm13617_vm0, %v13616_v0 }
0x149a   : > { %12161 = vmatprep.subr.mxu0 %v13616_v0  ;;  %v6220_v10 = vpop.permute.xlu0 %6219 }
0x149c   : > { %12154 = vmatmul.mubr.msk.f32.vlgmr.msra.gmra.mrb[66].mxu0 %vm754_vm1, %v6142_v52 }
0x149d   : > { %12162 = vmatpush3.xpose.msk.msra.mxu0 %vm754_vm1, %v6300_v57  ;;  %12163 = vmatprep.mubr.msk.f32.mxu0 %vm13617_vm0, %v13616_v0 }
0x149e   : > { %12171 = vmatprep.subr.mxu0 %v13616_v0 }
0x14a0   : > { %12164 = vmatmul.mubr.msk.f32.vlgmr.msra.gmra.mrb[68].mxu0 %vm754_vm1, %v6298_v58 }
0x14a1   : > { %12173 = vmatprep.mubr.msk.f32.mxu0 %vm13617_vm0, %v13616_v0 }
0x155f   : > { %v5806_v61 = vpop.f32.mrb[60].mxu0 }
0x1560   : > { %v12127_v63 = vpop.f32.mrb[61].mxu0  ;;  %12141 = vmatmul.mubr.msk.f32.vlgmr.msra.gmra.mrb[28].mxu1 %vm754_vm1, %v5806_v61 }
0x1561   : > { %12157 = vmatpush3.xpose.msk.msra.mxu1 %vm754_vm1, %v6222_v62 }
0x1562   : > { %12166 = vmatprep.subr.mxu1 %v13616_v0 }
0x1563   : > { %v5882_v2 = vpop.f32.mrb[58].mxu1 }
0x1564   : > { %v12132_v4 = vpop.f32.mrb[59].mxu1  ;;  %12143 = vmatprep.mubr.msk.f32.mxu1 %vm754_vm1, %v5882_v2 }
0x1567   : > { %v5958_v6 = vpop.f32.mrb[62].mxu0 }
0x1568   : > { %v12137_v8 = vpop.f32.mrb[63].mxu0  ;;  %12144 = vmatmul.mubr.msk.f32.gmra.mrb[30].mxu1 %vm754_vm1, %v5958_v6 }
0x1569   : > { %12158 = vmatprep.mubr.msk.f32.mxu1 %vm13617_vm0, %v13616_v0 }
0x156b   : > { %v6137_v12 = vpop.f32.mrb[64].mxu0 }
0x156c   : > { %v12150_v13 = vpop.f32.mrb[65].mxu0  ;;  %12159 = vmatmul.mubr.msk.f32.vlgmr.msra.gmra.mrb[60].mxu1 %vm754_vm1, %v6220_v10  ;;  %v6375_v14 = vsel %vm754_vm1, %v6137_v12, -inf }
0x156d   : > { %6376 = vmax.xlane.f32.xlu0 %v6375_v14  ;;  %12168 = vmatprep.mubr.msk.f32.mxu1 %vm13617_vm0, %v13616_v0 }
0x156f   : > { %v6215_v15 = vpop.f32.mrb[66].mxu0 }
0x1570   : > { %v12155_v16 = vpop.f32.mrb[67].mxu0  ;;  %v6378_v17 = vsel %vm754_vm1, %v6215_v15, -inf }
0x1571   : > { %6379 = vmax.xlane.f32.xlu1 %v6378_v17 }
0x1573   : > { %v6371_v18 = vpop.f32.mrb[68].mxu0 }
0x1574   : > { %v12165_v19 = vpop.f32.mrb[69].mxu0  ;;  %v6384_v30 = vsel %vm754_vm1, %v6371_v18, -inf }
0x15fa   : > { %v6377_v20 = vpop.xlane.xlu0 %6376 }
0x15fb   : > { %v6387_v22 = vsub.f32 %v6137_v12, %v6377_v20 }
0x15fd   : > { %v6391_v24 = vmul.f32 1.442695, %v6387_v22 }
0x15fe   : > { %v6380_v31 = vpop.xlane.xlu1 %6379 }
0x15ff   : > { %13225 = vpow2.f32 %v6391_v24  ;;  %v6388_v32 = vsub.f32 %v6215_v15, %v6380_v31 }
0x1601   : > { %v6393_v34 = vmul.f32 1.442695, %v6388_v32 }
0x1603   : > { %13227 = vpow2.f32 %v6393_v34 }
0x1609   : > { %v13226_v26 = vpop.eup %13225 }
0x160a   : > { %v6399_v29 = vsel %vm754_vm1, %v13226_v26, 0.0 }
0x160b   : > { %6400 = vadd.xlane.f32.xlu1 %v6399_v29 }
0x160d   : > { %v13228_v21 = vpop.eup %13227 }
0x160e   : > { %v6402_v37 = vsel %vm754_vm1, %v13228_v21, 0.0 }
0x161c   : > { %6419 = vrot.lane.b32.xlu1 %v14138_v28, %s13621_s30 }
0x1620   : > { %6571 = vrot.lane.b32.xlu1 %v14100_v7, %s13621_s30 }
0x163f   : > { %v6293_v35 = vpop.f32.mrb[60].mxu1 }
0x1640   : > { %v12160_v36 = vpop.f32.mrb[61].mxu1  ;;  %v6381_v33 = vsel %vm754_vm1, %v6293_v35, -inf }
0x1641   : > { %6382 = vmax.xlane.f32.xlu0 %v6381_v33 }
0x1645   : > { %6385 = vmax.xlane.f32.xlu0 %v6384_v30 }
0x1649   : > { %6403 = vadd.xlane.f32.xlu0 %v6402_v37 }
0x1698   : > { %v6401_v23 = vpop.xlane.xlu1 %6400 }
0x1699   : > { %13229 = vrcp.f32 %v6401_v23 }
0x169c   : > { %v6420_v38 = vpop.permute.xlu1 %6419 }
0x169d   : > { %12167 = vmatpush3.msra.mxu1 %v6420_v38 }
0x169e   : > { %12176 = vmatprep.subr.mxu1 %v13616_v0 }
0x16a0   : > { %v6572_v27 = vpop.permute.xlu1 %6571 }
0x16a3   : > { %v13230_v39 = vpop.eup %13229 }
0x16a4   : > { %v6412_v25 = vmul.f32 %v13230_v39, %v13226_v26 }
0x16a6   : > { %12169 = vmatmul.mubr.msk.f32.vlgmr.msra.gmra.mrb[62].mxu1 %vm754_vm1, %v6412_v25 }
0x16a7   : > { %12177 = vmatpush3.msra.mxu1 %v6572_v27  ;;  %12178 = vmatprep.mubr.msk.f32.mxu1 %vm13617_vm0, %v13616_v0 }
0x16a8   : > { %12186 = vmatprep.subr.mxu1 %v748_v50 }
0x16ce   : > { %v6383_v40 = vpop.xlane.xlu0 %6382 }
0x16cf   : > { %v6389_v41 = vsub.f32 %v6293_v35, %v6383_v40 }
0x16d1   : > { %v6395_v42 = vmul.f32 1.442695, %v6389_v41 }
0x16d2   : > { %v6386_v43 = vpop.xlane.xlu0 %6385 }
0x16d3   : > { %13231 = vpow2.f32 %v6395_v42  ;;  %v6390_v44 = vsub.f32 %v6371_v18, %v6386_v43 }
0x16d5   : > { %v6397_v45 = vmul.f32 1.442695, %v6390_v44 }
0x16d6   : > { %v6404_v51 = vpop.xlane.xlu0 %6403 }
0x16d7   : > { %13233 = vpow2.f32 %v6397_v45 }
0x16d8   : > { %13235 = vrcp.f32 %v6404_v51 }
0x16dd   : > { %v13232_v46 = vpop.eup %13231 }
0x16de   : > { %v6405_v47 = vsel %vm754_vm1, %v13232_v46, 0.0 }
0x16df   : > { %6406 = vadd.xlane.f32.xlu1 %v6405_v47 }
0x16e1   : > { %v13234_v48 = vpop.eup %13233 }
0x16e2   : > { %v6408_v49 = vsel %vm754_vm1, %v13234_v48, 0.0  ;;  %v13236_v57 = vpop.eup %13235 }
0x16e3   : > { %6409 = vadd.xlane.f32.xlu0 %v6408_v49  ;;  %v6414_v61 = vmul.f32 %v13236_v57, %v13228_v21 }
0x16f0   : > { %6647 = vrot.lane.b32.xlu1 %v14106_v11, %s13621_s30 }
0x16f4   : > { %6824 = vrot.lane.b32.xlu1 %v14087_v60, %s13630_s29 }
0x16f8   : > { %6902 = vrot.lane.b32.xlu1 %v14092_v1, %s13630_s29 }
0x16f9   : > { %6495 = vrot.lane.b32.xlu0 %v14094_v3, %s13621_s30  ;;  %s15578_s30 = sld [smem:[#allocation28_spill]] }
0x16fc   : > { %7060 = vrot.lane.b32.xlu1 %v14106_v11, %s13624_s17 }
0x16fd   : > { %6826 = vrot.lane.b32.xlu0 %v14138_v28, %s13624_s17 }
0x16ff   : > { %p15581_p11 = scmp.ne.s32.totalorder %s15578_s30, 0 }
0x1700   : > { %7058 = vrot.lane.b32.xlu1 %v14104_v9, %s13630_s29 }
0x1701   : > { %6904 = vrot.lane.b32.xlu0 %v14094_v3, %s13624_s17 }
0x1705   : > { %6982 = vrot.lane.b32.xlu0 %v14100_v7, %s13624_s17  ;;  %s11227_s17 = sshll.u32 %s13736_s22, 9  ;;  %s15474_s22 = scalar_lea.sflag [#allocation4], %s591_s15 }
0x1709   : > { %6980 = vrot.lane.b32.xlu0 %v14098_v5, %s13630_s29 }
0x176c   : > { %v6407_v52 = vpop.xlane.xlu1 %6406 }
0x176d   : > { %13237 = vrcp.f32 %v6407_v52 }
0x1770   : > { %v6410_v56 = vpop.xlane.xlu0 %6409  ;;  %v6648_v58 = vpop.permute.xlu1 %6647 }
0x1771   : > { %13239 = vrcp.f32 %v6410_v56 }
0x1774   : > { %v6496_v62 = vpop.permute.xlu0 %6495  ;;  %v6825_v2 = vpop.permute.xlu1 %6824 }
0x1775   : > { %12172 = vmatpush3.msra.mxu0 %v6496_v62 }
0x1776   : > { %12174 = vmatmul.mubr.msk.f32.vlgmr.msra.gmra.mrb[70].mxu0 %vm754_vm1, %v6414_v61  ;;  %12181 = vmatprep.subr.mxu0 %v13616_v0 }
0x1777   : > { %v13238_v63 = vpop.eup %13237  ;;  %12182 = vmatpush3.msra.mxu0 %v6648_v58  ;;  %12183 = vmatprep.mubr.msk.f32.mxu0 %vm13617_vm0, %v13616_v0 }
0x1778   : > { %v6416_v4 = vmul.f32 %v13238_v63, %v13232_v46  ;;  %12194 = vmatprep.subr.mxu0 %v13616_v0  ;;  %v6827_v13 = vpop.permute.xlu0 %6826  ;;  %v6903_v14 = vpop.permute.xlu1 %6902 }
0x1779   : > { %v6491_v6 = vpop.f32.mrb[62].mxu1 }
0x177a   : > { %v12170_v8 = vpop.f32.mrb[63].mxu1  ;;  %12179 = vmatmul.mubr.msk.f32.vlgmr.msra.gmra.mrb[64].mxu1 %vm754_vm1, %v6416_v4 }
0x177b   : > { %v13240_v10 = vpop.eup %13239  ;;  %12188 = vmatprep.mubr.msk.f32.mxu1 %vm754_vm1, %v6491_v6  ;;  %12187 = vmatpush3.msra.mxu1 %v748_v50 }
0x177c   : > { %v6418_v12 = vmul.f32 %v13240_v10, %v13234_v48  ;;  %12204 = vmatprep.subr.mxu1 %v13616_v0  ;;  %v6905_v15 = vpop.permute.xlu0 %6904  ;;  %v7061_v16 = vpop.permute.xlu1 %7060 }
0x177e   : > { %12184 = vmatmul.mubr.msk.f32.vlgmr.msra.gmra.mrb[72].mxu0 %vm754_vm1, %v6418_v12 }
0x177f   : > { %12195 = vmatpush3.xpose.msk.msra.mxu0 %vm754_vm1, %v6827_v13  ;;  %12196 = vmatprep.mubr.msk.f32.mxu0 %vm13617_vm0, %v13616_v0 }
0x1780   : > { %12199 = vmatprep.subr.mxu0 %v13616_v0  ;;  %v7059_v17 = vpop.permute.xlu1 %7058  ;;  %v6983_v19 = vpop.permute.xlu0 %6982 }
0x1782   : > { %12197 = vmatmul.mubr.msk.f32.vlgmr.msra.gmra.mrb[74].mxu0 %vm754_vm1, %v6825_v2 }
0x1783   : > { %12200 = vmatpush3.xpose.msk.msra.mxu0 %vm754_vm1, %v6905_v15  ;;  %12201 = vmatprep.mubr.msk.f32.mxu0 %vm13617_vm0, %v13616_v0 }
0x1784   : > { %12209 = vmatprep.subr.mxu0 %v13616_v0  ;;  %v6981_v31 = vpop.permute.xlu0 %6980 }
0x1786   : > { %12202 = vmatmul.mubr.msk.f32.vlgmr.msra.gmra.mrb[76].mxu0 %vm754_vm1, %v6903_v14 }
0x1787   : > { %12210 = vmatpush3.xpose.msk.msra.mxu0 %vm754_vm1, %v7061_v16  ;;  %12211 = vmatprep.mubr.msk.f32.mxu0 %vm13617_vm0, %v13616_v0 }
0x1788   : > { %12219 = vmatprep.subr.mxu0 %v13616_v0 }
0x178a   : > { %12212 = vmatmul.mubr.msk.f32.vlgmr.msra.gmra.mrb[78].mxu0 %vm754_vm1, %v7059_v17 }
0x178b   : > { %12221 = vmatprep.mubr.msk.f32.mxu0 %vm13617_vm0, %v13616_v0 }
0x1849   : > { %v6567_v18 = vpop.f32.mrb[70].mxu0 }
0x184a   : > { %v12175_v20 = vpop.f32.mrb[71].mxu0  ;;  %12189 = vmatmul.mubr.msk.f32.vlgmr.msra.gmra.mrb[28].mxu1 %vm754_vm1, %v6567_v18 }
0x184b   : > { %12205 = vmatpush3.xpose.msk.msra.mxu1 %vm754_vm1, %v6983_v19 }
0x184c   : > { %12214 = vmatprep.subr.mxu1 %v13616_v0 }
0x184d   : > { %v6643_v22 = vpop.f32.mrb[64].mxu1 }
0x184e   : > { %v12180_v24 = vpop.f32.mrb[65].mxu1  ;;  %12191 = vmatprep.mubr.msk.f32.mxu1 %vm754_vm1, %v6643_v22 }
0x1851   : > { %v6719_v26 = vpop.f32.mrb[72].mxu0 }
0x1852   : > { %v12185_v29 = vpop.f32.mrb[73].mxu0  ;;  %12192 = vmatmul.mubr.msk.f32.gmra.mrb[30].mxu1 %vm754_vm1, %v6719_v26 }
0x1853   : > { %12206 = vmatprep.mubr.msk.f32.mxu1 %vm13617_vm0, %v13616_v0 }
0x1855   : > { %v6898_v32 = vpop.f32.mrb[74].mxu0 }
0x1856   : > { %v12198_v34 = vpop.f32.mrb[75].mxu0  ;;  %12207 = vmatmul.mubr.msk.f32.vlgmr.msra.gmra.mrb[66].mxu1 %vm754_vm1, %v6981_v31  ;;  %v7136_v35 = vsel %vm754_vm1, %v6898_v32, -inf }
0x1857   : > { %7137 = vmax.xlane.f32.xlu0 %v7136_v35  ;;  %12216 = vmatprep.mubr.msk.f32.mxu1 %vm13617_vm0, %v13616_v0 }
0x1859   : > { %v6976_v36 = vpop.f32.mrb[76].mxu0 }
0x185a   : > { %v12203_v33 = vpop.f32.mrb[77].mxu0  ;;  %v7139_v30 = vsel %vm754_vm1, %v6976_v36, -inf }
0x185b   : > { %7140 = vmax.xlane.f32.xlu1 %v7139_v30 }
0x185d   : > { %v7132_v21 = vpop.f32.mrb[78].mxu0 }
0x185e   : > { %v12213_v37 = vpop.f32.mrb[79].mxu0  ;;  %v7145_v46 = vsel %vm754_vm1, %v7132_v21, -inf }
0x18e4   : > { %v7138_v23 = vpop.xlane.xlu0 %7137 }
0x18e5   : > { %v7148_v38 = vsub.f32 %v6898_v32, %v7138_v23 }
0x18e7   : > { %v7152_v39 = vmul.f32 1.442695, %v7148_v38 }
0x18e8   : > { %v7141_v40 = vpop.xlane.xlu1 %7140 }
0x18e9   : > { %13241 = vpow2.f32 %v7152_v39  ;;  %v7149_v41 = vsub.f32 %v6976_v36, %v7141_v40 }
0x18eb   : > { %v7154_v42 = vmul.f32 1.442695, %v7149_v41 }
0x18ed   : > { %13243 = vpow2.f32 %v7154_v42 }
0x18f3   : > { %v13242_v25 = vpop.eup %13241 }
0x18f4   : > { %v7160_v27 = vsel %vm754_vm1, %v13242_v25, 0.0 }
0x18f5   : > { %7161 = vadd.xlane.f32.xlu1 %v7160_v27 }
0x18f7   : > { %v13244_v47 = vpop.eup %13243 }
0x18f8   : > { %v7163_v48 = vsel %vm754_vm1, %v13244_v47, 0.0 }
0x1906   : > { %7180 = vrot.lane.b32.xlu1 %v14138_v28, %s13623_s23 }
0x190a   : > { %7332 = vrot.lane.b32.xlu1 %v14100_v7, %s13623_s23 }
0x1929   : > { %v7054_v43 = vpop.f32.mrb[66].mxu1 }
0x192a   : > { %v12208_v44 = vpop.f32.mrb[67].mxu1  ;;  %v7142_v45 = vsel %vm754_vm1, %v7054_v43, -inf }
0x192b   : > { %7143 = vmax.xlane.f32.xlu0 %v7142_v45 }
0x192f   : > { %7146 = vmax.xlane.f32.xlu0 %v7145_v46 }
0x1933   : > { %7164 = vadd.xlane.f32.xlu0 %v7163_v48 }
0x1982   : > { %v7162_v49 = vpop.xlane.xlu1 %7161 }
0x1983   : > { %13245 = vrcp.f32 %v7162_v49 }
0x1986   : > { %v7181_v50 = vpop.permute.xlu1 %7180 }
0x1987   : > { %12215 = vmatpush3.msra.mxu1 %v7181_v50 }
0x1988   : > { %12224 = vmatprep.subr.mxu1 %v13616_v0 }
0x198a   : > { %v7333_v56 = vpop.permute.xlu1 %7332 }
0x198d   : > { %v13246_v51 = vpop.eup %13245 }
0x198e   : > { %v7173_v52 = vmul.f32 %v13246_v51, %v13242_v25 }
0x1990   : > { %12217 = vmatmul.mubr.msk.f32.vlgmr.msra.gmra.mrb[68].mxu1 %vm754_vm1, %v7173_v52 }
0x1991   : > { %12225 = vmatpush3.msra.mxu1 %v7333_v56  ;;  %12226 = vmatprep.mubr.msk.f32.mxu1 %vm13617_vm0, %v13616_v0 }
0x19b8   : > { %v7144_v57 = vpop.xlane.xlu0 %7143 }
0x19b9   : > { %v7150_v58 = vsub.f32 %v7054_v43, %v7144_v57 }
0x19bb   : > { %v7156_v61 = vmul.f32 1.442695, %v7150_v58 }
0x19bc   : > { %v7147_v62 = vpop.xlane.xlu0 %7146 }
0x19bd   : > { %13247 = vpow2.f32 %v7156_v61  ;;  %v7151_v63 = vsub.f32 %v7132_v21, %v7147_v62 }
0x19bf   : > { %v7158_v2 = vmul.f32 1.442695, %v7151_v63 }
0x19c1   : > { %13249 = vpow2.f32 %v7158_v2 }
0x19c7   : > { %v13248_v4 = vpop.eup %13247 }
0x19c8   : > { %v7166_v6 = vsel %vm754_vm1, %v13248_v4, 0.0 }
0x19c9   : > { %7167 = vadd.xlane.f32.xlu1 %v7166_v6 }
0x19cb   : > { %v13250_v8 = vpop.eup %13249 }
0x19cc   : > { %v7169_v10 = vsel %vm754_vm1, %v13250_v8, 0.0 }
0x19cd   : > { %7170 = vadd.xlane.f32.xlu0 %v7169_v10 }
0x19da   : > { %7408 = vrot.lane.b32.xlu1 %v14106_v11, %s13623_s23 }
0x19de   : > { %7585 = vrot.lane.b32.xlu1 %v14087_v60, %s13632_s26  ;;  %v749_v60 = vld [vmem:[%s15519_s3 + $0x40] sm:$0xff] }
0x19df   : > { %12234 = vmatprep.subr.mxu1 %v749_v60 }
0x19e2   : > { %7663 = vrot.lane.b32.xlu1 %v14092_v1, %s13632_s26  ;;  %v7165_v1 = vpop.xlane.xlu0 %7164 }
0x19e3   : > { %7256 = vrot.lane.b32.xlu0 %v14094_v3, %s13623_s23  ;;  %13251 = vrcp.f32 %v7165_v1  ;;  %s10891_s23 = sshll.u32 %s15456_s28, 4  ;;  %s15469_s23 = int_to_ptr.vmem [resolvable:$true] %s10891_s23 }
0x19e4   : > { %s13521_s25 = scalar_lea.vmem %s15469_s23, 512 }
0x19e5   : > { %p13522_p8 = scmp.ne.s32.totalorder %s15469_s23, %s13521_s25 }
0x19e6   : > { %7821 = vrot.lane.b32.xlu1 %v14106_v11, %s13626_s18 }
0x19e7   : > { %7587 = vrot.lane.b32.xlu0 %v14138_v28, %s13626_s18  ;;  %p13523_p13 = pnand %p13522_p8, %p15581_p11 }
0x19e9   : > { %p13524_p1 = pneg %p13523_p13 }
0x19ea   : > { %7819 = vrot.lane.b32.xlu1 %v14104_v9, %s13632_s26 }
0x19eb   : > { %7665 = vrot.lane.b32.xlu0 %v14094_v3, %s13626_s18 }
0x19ed   : > { %v13252_v9 = vpop.eup %13251 }
0x19ee   : > { %v7175_v15 = vmul.f32 %v13252_v9, %v13244_v47 }
0x19ef   : > { %7743 = vrot.lane.b32.xlu0 %v14100_v7, %s13626_s18 }
0x19f3   : > { %7741 = vrot.lane.b32.xlu0 %v14098_v5, %s13632_s26  ;;  %s13525_s26 = sshll.u32 %s13633_s14, 4  ;;  %s13526_s26 = int_to_ptr.vmem [resolvable:$false] %s13525_s26 }
0x19f4   : > { %p13528_p0 = scmp.lt.s32.totalorder %s15469_s23, %s13526_s26 }
0x1a56   : > { %v7168_v12 = vpop.xlane.xlu1 %7167 }
0x1a57   : > { %13253 = vrcp.f32 %v7168_v12 }
0x1a5a   : > { %v7171_v13 = vpop.xlane.xlu0 %7170  ;;  %v7409_v14 = vpop.permute.xlu1 %7408 }
0x1a5b   : > { %13255 = vrcp.f32 %v7171_v13 }
0x1a5e   : > { %v7257_v16 = vpop.permute.xlu0 %7256  ;;  %v7586_v17 = vpop.permute.xlu1 %7585 }
0x1a5f   : > { %12220 = vmatpush3.msra.mxu0 %v7257_v16 }
0x1a60   : > { %12222 = vmatmul.mubr.msk.f32.vlgmr.msra.gmra.mrb[80].mxu0 %vm754_vm1, %v7175_v15  ;;  %12229 = vmatprep.subr.mxu0 %v13616_v0 }
0x1a61   : > { %v13254_v5 = vpop.eup %13253  ;;  %12230 = vmatpush3.msra.mxu0 %v7409_v14  ;;  %12231 = vmatprep.mubr.msk.f32.mxu0 %vm13617_vm0, %v13616_v0 }
0x1a62   : > { %v7177_v18 = vmul.f32 %v13254_v5, %v13248_v4  ;;  %12242 = vmatprep.subr.mxu0 %v13616_v0  ;;  %v7588_v26 = vpop.permute.xlu0 %7587  ;;  %v7664_v29 = vpop.permute.xlu1 %7663  ;;  %v750_v5 = vld [vmem:[%s15519_s3 + $0x48] sm:$0xff] }
0x1a63   : > { %v7252_v19 = vpop.f32.mrb[68].mxu1 }
0x1a64   : > { %v12218_v20 = vpop.f32.mrb[69].mxu1  ;;  %12227 = vmatmul.mubr.msk.f32.vlgmr.msra.gmra.mrb[70].mxu1 %vm754_vm1, %v7177_v18 }
0x1a65   : > { %v13256_v22 = vpop.eup %13255  ;;  %12236 = vmatprep.mubr.msk.f32.mxu1 %vm754_vm1, %v7252_v19  ;;  %12235 = vmatpush3.msra.mxu1 %v749_v60 }
0x1a66   : > { %v7179_v24 = vmul.f32 %v13256_v22, %v13250_v8  ;;  %12252 = vmatprep.subr.mxu1 %v13616_v0  ;;  %v7666_v31 = vpop.permute.xlu0 %7665  ;;  %v7822_v32 = vpop.permute.xlu1 %7821 }
0x1a68   : > { %12232 = vmatmul.mubr.msk.f32.vlgmr.msra.gmra.mrb[82].mxu0 %vm754_vm1, %v7179_v24 }
0x1a69   : > { %12243 = vmatpush3.xpose.msk.msra.mxu0 %vm754_vm1, %v7588_v26  ;;  %12244 = vmatprep.mubr.msk.f32.mxu0 %vm13617_vm0, %v13616_v0 }
0x1a6a   : > { %12247 = vmatprep.subr.mxu0 %v13616_v0  ;;  %v7820_v34 = vpop.permute.xlu1 %7819  ;;  %v7744_v36 = vpop.permute.xlu0 %7743 }
0x1a6c   : > { %12245 = vmatmul.mubr.msk.f32.vlgmr.msra.gmra.mrb[84].mxu0 %vm754_vm1, %v7586_v17 }
0x1a6d   : > { %12248 = vmatpush3.xpose.msk.msra.mxu0 %vm754_vm1, %v7666_v31  ;;  %12249 = vmatprep.mubr.msk.f32.mxu0 %vm13617_vm0, %v13616_v0 }
0x1a6e   : > { %12257 = vmatprep.subr.mxu0 %v13616_v0  ;;  %v7742_v38 = vpop.permute.xlu0 %7741 }
0x1a70   : > { %12250 = vmatmul.mubr.msk.f32.vlgmr.msra.gmra.mrb[86].mxu0 %vm754_vm1, %v7664_v29 }
0x1a71   : > { %12258 = vmatpush3.xpose.msk.msra.mxu0 %vm754_vm1, %v7822_v32  ;;  %12259 = vmatprep.mubr.msk.f32.mxu0 %vm13617_vm0, %v13616_v0 }
0x1a72   : > { %12267 = vmatprep.subr.mxu0 %v13616_v0 }
0x1a74   : > { %12260 = vmatmul.mubr.msk.f32.vlgmr.msra.gmra.mrb[88].mxu0 %vm754_vm1, %v7820_v34 }
0x1a75   : > { %12269 = vmatprep.mubr.msk.f32.mxu0 %vm13617_vm0, %v13616_v0 }
0x1b33   : > { %v7328_v35 = vpop.f32.mrb[80].mxu0 }
0x1b34   : > { %v12223_v33 = vpop.f32.mrb[81].mxu0  ;;  %12237 = vmatmul.mubr.msk.f32.vlgmr.msra.gmra.mrb[28].mxu1 %vm754_vm1, %v7328_v35 }
0x1b35   : > { %12253 = vmatpush3.xpose.msk.msra.mxu1 %vm754_vm1, %v7744_v36 }
0x1b36   : > { %12262 = vmatprep.subr.mxu1 %v13616_v0 }
0x1b37   : > { %v7404_v30 = vpop.f32.mrb[70].mxu1 }
0x1b38   : > { %v12228_v21 = vpop.f32.mrb[71].mxu1  ;;  %12239 = vmatprep.mubr.msk.f32.mxu1 %vm754_vm1, %v7404_v30 }
0x1b3b   : > { %v7480_v37 = vpop.f32.mrb[82].mxu0 }
0x1b3c   : > { %v12233_v23 = vpop.f32.mrb[83].mxu0  ;;  %12240 = vmatmul.mubr.msk.f32.gmra.mrb[30].mxu1 %vm754_vm1, %v7480_v37 }
0x1b3d   : > { %12254 = vmatprep.mubr.msk.f32.mxu1 %vm13617_vm0, %v13616_v0  ;;  %v11215_v23 = vld [vmem:[%s15520_s4] ss:$0 sm:$0xff] }
0x1b3f   : > { %v7659_v39 = vpop.f32.mrb[84].mxu0 }
0x1b40   : > { %v12246_v25 = vpop.f32.mrb[85].mxu0  ;;  %12255 = vmatmul.mubr.msk.f32.vlgmr.msra.gmra.mrb[72].mxu1 %vm754_vm1, %v7742_v38  ;;  %v7897_v27 = vsel %vm754_vm1, %v7659_v39, -inf }
0x1b41   : > { %7898 = vmax.xlane.f32.xlu0 %v7897_v27  ;;  %12264 = vmatprep.mubr.msk.f32.mxu1 %vm13617_vm0, %v13616_v0 }
0x1b43   : > { %v7737_v40 = vpop.f32.mrb[86].mxu0 }
0x1b44   : > { %v12251_v41 = vpop.f32.mrb[87].mxu0  ;;  %v7900_v42 = vsel %vm754_vm1, %v7737_v40, -inf }
0x1b45   : > { %7901 = vmax.xlane.f32.xlu1 %v7900_v42  ;;  %v13290_v42 = vld [vmem:[%s14063_s24] sm:$0xff] }
0x1b47   : > { %v7893_v43 = vpop.f32.mrb[88].mxu0 }
0x1b48   : > { %v12261_v44 = vpop.f32.mrb[89].mxu0  ;;  %v7906_v61 = vsel %vm754_vm1, %v7893_v43, -inf }
0x1bce   : > { %v7899_v45 = vpop.xlane.xlu0 %7898 }
0x1bcf   : > { %v7909_v46 = vsub.f32 %v7659_v39, %v7899_v45 }
0x1bd1   : > { %v7913_v47 = vmul.f32 1.442695, %v7909_v46 }
0x1bd2   : > { %v7902_v50 = vpop.xlane.xlu1 %7901 }
0x1bd3   : > { %13257 = vpow2.f32 %v7913_v47  ;;  %v7910_v51 = vsub.f32 %v7737_v40, %v7902_v50  ;;  %v13289_v40 = vld [vmem:[%s14063_s24 + $0x8] sm:$0xff]  ;;  %v13292_v50 = vld [vmem:[%s14063_s24 + $0x18] sm:$0xff] }
0x1bd5   : > { %v7915_v52 = vmul.f32 1.442695, %v7910_v51 }
0x1bd7   : > { %13259 = vpow2.f32 %v7915_v52  ;;  %v8434_v52 = vld [vmem:[#allocation8 + $0x8] sm:$0xff] }
0x1bdd   : > { %v13258_v48 = vpop.eup %13257 }
0x1bde   : > { %v7921_v49 = vsel %vm754_vm1, %v13258_v48, 0.0 }
0x1bdf   : > { %7922 = vadd.xlane.f32.xlu1 %v7921_v49 }
0x1be1   : > { %v13260_v62 = vpop.eup %13259 }
0x1be2   : > { %v7924_v63 = vsel %vm754_vm1, %v13260_v62, 0.0 }
0x1bf0   : > { %7941 = vrot.lane.b32.xlu1 %v14138_v28, %s13627_s21 }
0x1bf4   : > { %8093 = vrot.lane.b32.xlu1 %v14100_v7, %s13627_s21 }
0x1c13   : > { %v7815_v56 = vpop.f32.mrb[72].mxu1 }
0x1c14   : > { %v12256_v57 = vpop.f32.mrb[73].mxu1  ;;  %v7903_v58 = vsel %vm754_vm1, %v7815_v56, -inf }
0x1c15   : > { %7904 = vmax.xlane.f32.xlu0 %v7903_v58  ;;  %v8436_v57 = vld [vmem:[#allocation8 + $0x18] sm:$0xff] }
0x1c19   : > { %7907 = vmax.xlane.f32.xlu0 %v7906_v61  ;;  %v8452_v61 = vld [vmem:[#allocation8 + $0x98] sm:$0xff] }
0x1c1d   : > { %7925 = vadd.xlane.f32.xlu0 %v7924_v63  ;;  %v8449_v63 = vld [vmem:[#allocation8 + $0x80] sm:$0xff] }
0x1c6c   : > { %v7923_v28 = vpop.xlane.xlu1 %7922 }
0x1c6d   : > { %13261 = vrcp.f32 %v7923_v28  ;;  %v12392_v28 = vpack.c.bf16 %v8452_v61, %v8436_v57  ;;  %v8548_v57 = vld [vmem:[#allocation8 + $0x398] sm:$0xff]  ;;  %v8545_v61 = vld [vmem:[#allocation8 + $0x380] sm:$0xff] }
0x1c70   : > { %v7942_v2 = vpop.permute.xlu1 %7941 }
0x1c71   : > { %12263 = vmatpush3.msra.mxu1 %v7942_v2 }
0x1c72   : > { %12272 = vmatprep.subr.mxu1 %v13616_v0 }
0x1c74   : > { %v8094_v6 = vpop.permute.xlu1 %8093 }
0x1c77   : > { %v13262_v7 = vpop.eup %13261 }
0x1c78   : > { %v7934_v4 = vmul.f32 %v13262_v7, %v13258_v48  ;;  %v13291_v48 = vld [vmem:[%s14063_s24 + $0x10] sm:$0xff] }
0x1c79   : > { %v8435_v7 = vld [vmem:[#allocation8 + $0x10] sm:$0xff] }
0x1c7a   : > { %12265 = vmatmul.mubr.msk.f32.vlgmr.msra.gmra.mrb[74].mxu1 %vm754_vm1, %v7934_v4  ;;  %v8451_v4 = vld [vmem:[#allocation8 + $0x90] sm:$0xff] }
0x1c7b   : > { %12273 = vmatpush3.msra.mxu1 %v8094_v6  ;;  %12274 = vmatprep.mubr.msk.f32.mxu1 %vm13617_vm0, %v13616_v0  ;;  %v8466_v6 = vld [vmem:[#allocation8 + $0x108] sm:$0xff] }
0x1c7c   : > { %12282 = vmatprep.subr.mxu1 %v750_v5 }
0x1ca2   : > { %v7905_v8 = vpop.xlane.xlu0 %7904 }
0x1ca3   : > { %v7911_v10 = vsub.f32 %v7815_v56, %v7905_v8  ;;  %v8450_v56 = vld [vmem:[#allocation8 + $0x88] sm:$0xff]  ;;  %v12394_v8 = vpack.c.bf16 %v8451_v4, %v8435_v7 }
0x1ca4   : > { %v12360_v58 = vpack.c.bf16 %v8450_v56, %v8434_v52  ;;  %v8532_v52 = vld [vmem:[#allocation8 + $0x318] sm:$0xff]  ;;  %v8562_v7 = vld [vmem:[#allocation8 + $0x408] sm:$0xff] }
0x1ca5   : > { %v7917_v60 = vmul.f32 1.442695, %v7911_v10  ;;  %v8482_v10 = vld [vmem:[#allocation8 + $0x188] sm:$0xff] }
0x1ca6   : > { %v7908_v1 = vpop.xlane.xlu0 %7907  ;;  %v8578_v4 = vld [vmem:[#allocation8 + $0x488] sm:$0xff] }
0x1ca7   : > { %13263 = vpow2.f32 %v7917_v60  ;;  %v7912_v12 = vsub.f32 %v7893_v43, %v7908_v1  ;;  %v8468_v60 = vld [vmem:[#allocation8 + $0x118] sm:$0xff] }
0x1ca8   : > { %v8484_v1 = vld [vmem:[#allocation8 + $0x198] sm:$0xff] }
0x1ca9   : > { %v7919_v13 = vmul.f32 1.442695, %v7912_v12  ;;  %v12364_v12 = vpack.c.bf16 %v8482_v10, %v8466_v6  ;;  %v8564_v6 = vld [vmem:[#allocation8 + $0x418] sm:$0xff] }
0x1caa   : > { %v7926_v17 = vpop.xlane.xlu0 %7925  ;;  %v8580_v10 = vld [vmem:[#allocation8 + $0x498] sm:$0xff] }
0x1cab   : > { %13265 = vpow2.f32 %v7919_v13  ;;  %v12396_v13 = vpack.c.bf16 %v8484_v1, %v8468_v60  ;;  %v8561_v60 = vld [vmem:[#allocation8 + $0x400] sm:$0xff] }
0x1cac   : > { %13267 = vrcp.f32 %v7926_v17  ;;  %v8498_v17 = vld [vmem:[#allocation8 + $0x208] sm:$0xff]  ;;  %v8577_v1 = vld [vmem:[#allocation8 + $0x480] sm:$0xff] }
0x1cb1   : > { %v13264_v9 = vpop.eup %13263 }
0x1cb2   : > { %v7927_v14 = vsel %vm754_vm1, %v13264_v9, 0.0 }
0x1cb3   : > { %7928 = vadd.xlane.f32.xlu1 %v7927_v14  ;;  %v8481_v14 = vld [vmem:[#allocation8 + $0x180] sm:$0xff] }
0x1cb5   : > { %v13266_v15 = vpop.eup %13265 }
0x1cb6   : > { %v7930_v16 = vsel %vm754_vm1, %v13266_v15, 0.0  ;;  %v13268_v20 = vpop.eup %13267 }
0x1cb7   : > { %7931 = vadd.xlane.f32.xlu0 %v7930_v16  ;;  %v7936_v22 = vmul.f32 %v13268_v20, %v13260_v62  ;;  %v8433_v62 = vld [vmem:[#allocation8] sm:$0xff] }
0x1cb8   : > { %v12362_v2 = vpack.c.bf16 %v8449_v63, %v8433_v62  ;;  %v8531_v63 = vld [vmem:[#allocation8 + $0x310] sm:$0xff] }
0x1cc4   : > { %8169 = vrot.lane.b32.xlu1 %v14106_v11, %s13627_s21 }
0x1ccd   : > { %8017 = vrot.lane.b32.xlu0 %v14094_v3, %s13627_s21  ;;  %s15579_s21 = sld [smem:[#allocation34_spill]] }
0x1cd3   : > { %s15580_s6 = smov %s15579_s21  ;;  %s15467_s29 = scalar_lea.hbm %s15579_s21, %s11227_s17 }
0x1d40   : > { %v7929_v18 = vpop.xlane.xlu1 %7928 }
0x1d41   : > { %13269 = vrcp.f32 %v7929_v18  ;;  %v8514_v18 = vld [vmem:[#allocation8 + $0x288] sm:$0xff] }
0x1d42   : > { %v12368_v20 = vpack.c.bf16 %v8514_v18, %v8498_v17  ;;  %v8596_v17 = vld [vmem:[#allocation8 + $0x518] sm:$0xff] }
0x1d44   : > { %v7932_v19 = vpop.xlane.xlu0 %7931  ;;  %v8170_v26 = vpop.permute.xlu1 %8169 }
0x1d45   : > { %13271 = vrcp.f32 %v7932_v19 }
0x1d48   : > { %v8018_v24 = vpop.permute.xlu0 %8017 }
0x1d49   : > { %12268 = vmatpush3.msra.mxu0 %v8018_v24  ;;  %v8516_v24 = vld [vmem:[#allocation8 + $0x298] sm:$0xff] }
0x1d4a   : > { %12270 = vmatmul.mubr.msk.f32.vlgmr.msra.gmra.mrb[90].mxu0 %vm754_vm1, %v7936_v22  ;;  %12277 = vmatprep.subr.mxu0 %v13616_v0  ;;  %v8500_v22 = vld [vmem:[#allocation8 + $0x218] sm:$0xff] }
0x1d4b   : > { %v13270_v3 = vpop.eup %13269  ;;  %12278 = vmatpush3.msra.mxu0 %v8170_v26  ;;  %12279 = vmatprep.mubr.msk.f32.mxu0 %vm13617_vm0, %v13616_v0  ;;  %v8497_v26 = vld [vmem:[#allocation8 + $0x200] sm:$0xff] }
0x1d4c   : > { %v7938_v11 = vmul.f32 %v13270_v3, %v13264_v9  ;;  %12361 = vmatprep.subr.bf16.mxu0 %v12360_v58  ;;  %v8465_v9 = vld [vmem:[#allocation8 + $0x100] sm:$0xff]  ;;  %v12400_v3 = vpack.c.bf16 %v8516_v24, %v8500_v22 }
0x1d4d   : > { %v8013_v29 = vpop.f32.mrb[74].mxu1  ;;  %v12366_v16 = vpack.c.bf16 %v8481_v14, %v8465_v9  ;;  %v8529_v58 = vld [vmem:[#allocation8 + $0x300] sm:$0xff]  ;;  %v8563_v9 = vld [vmem:[#allocation8 + $0x410] sm:$0xff] }
0x1d4e   : > { %v12266_v31 = vpop.f32.mrb[75].mxu1  ;;  %12275 = vmatmul.mubr.msk.f32.vlgmr.msra.gmra.mrb[76].mxu1 %vm754_vm1, %v7938_v11  ;;  %v8513_v11 = vld [vmem:[#allocation8 + $0x280] sm:$0xff]  ;;  %v12374_v62 = vpack.c.bf16 %v8545_v61, %v8529_v58  ;;  %v8579_v14 = vld [vmem:[#allocation8 + $0x490] sm:$0xff]  ;;  %v8438_v58 = vld [vmem:[#allocation8 + $0x28] sm:$0xff] }
0x1d4f   : > { %v13272_v32 = vpop.eup %13271  ;;  %12284 = vmatprep.mubr.msk.f32.mxu1 %vm754_vm1, %v8013_v29  ;;  %12283 = vmatpush3.msra.mxu1 %v750_v5  ;;  %v8483_v5 = vld [vmem:[#allocation8 + $0x190] sm:$0xff]  ;;  %v8609_v22 = vld [vmem:[#allocation8 + $0x580] sm:$0xff]  ;;  %v8454_v61 = vld [vmem:[#allocation8 + $0xa8] sm:$0xff] }
0x1d50   : > { %v7940_v34 = vmul.f32 %v13272_v32, %v13266_v15  ;;  %12393 = vmatprep.subr.bf16.mxu1 %v12392_v28  ;;  %v8467_v15 = vld [vmem:[#allocation8 + $0x110] sm:$0xff]  ;;  %v12370_v32 = vpack.c.bf16 %v8513_v11, %v8497_v26 }
0x1d51   : > { %v12398_v19 = vpack.c.bf16 %v8483_v5, %v8467_v15  ;;  %v8499_v29 = vld [vmem:[#allocation8 + $0x210] sm:$0xff]  ;;  %v12410_v15 = vpack.c.bf16 %v8579_v14, %v8563_v9  ;;  %v8610_v5 = vld [vmem:[#allocation8 + $0x588] sm:$0xff] }
0x1d52   : > { %12280 = vmatmul.mubr.msk.f32.vlgmr.msra.gmra.mrb[92].mxu0 %vm754_vm1, %v7940_v34  ;;  %v8515_v31 = vld [vmem:[#allocation8 + $0x290] sm:$0xff] }
0x1d53   : > { %8837 = vmatprep.mubr.f32.mxu0 %v13616_v0  ;;  %12363 = vmatpush1.bf16.msra.mxu0 %v12362_v2  ;;  %v12402_v34 = vpack.c.bf16 %v8515_v31, %v8499_v29  ;;  %v8547_v28 = vld [vmem:[#allocation8 + $0x390] sm:$0xff]  ;;  %v8626_v31 = vld [vmem:[#allocation8 + $0x608] sm:$0xff] }
0x1d54   : > { %12365 = vmatprep.subr.bf16.mxu0 %v12364_v12  ;;  %v12406_v2 = vpack.c.bf16 %v8547_v28, %v8531_v63  ;;  %v12408_v12 = vpack.c.bf16 %v8580_v10, %v8564_v6  ;;  %v8611_v11 = vld [vmem:[#allocation8 + $0x590] sm:$0xff]  ;;  %v8456_v63 = vld [vmem:[#allocation8 + $0xb8] sm:$0xff] }
0x1d57   : > { %12367 = vmatpush1.bf16.msra.mxu0 %v12366_v16  ;;  %v8594_v16 = vld [vmem:[#allocation8 + $0x508] sm:$0xff] }
0x1d58   : > { %12369 = vmatprep.subr.bf16.mxu0 %v12368_v20  ;;  %v12380_v18 = vpack.c.bf16 %v8610_v5, %v8594_v16  ;;  %v8593_v20 = vld [vmem:[#allocation8 + $0x500] sm:$0xff]  ;;  %v14923_v16 = vld [vmem:[#allocation5] ss:$0 sm:$0xff] }
0x1d59   : > { %v12382_v26 = vpack.c.bf16 %v8609_v22, %v8593_v20  ;;  %v8453_v20 = vld [vmem:[#allocation8 + $0xa0] sm:$0xff]  ;;  %v8439_v22 = vld [vmem:[#allocation8 + $0x30] sm:$0xff] }
0x1d5b   : > { %12371 = vmatpush1.bf16.msra.mxu0 %v12370_v32  ;;  %v8642_v32 = vld [vmem:[#allocation8 + $0x688] sm:$0xff] }
0x1e1d   : > { %v8089_v35 = vpop.f32.mrb[90].mxu0 }
0x1e1e   : > { %v12271_v36 = vpop.f32.mrb[91].mxu0  ;;  %12285 = vmatmul.mubr.msk.f32.vlgmr.msra.gmra.mrb[28].mxu1 %vm754_vm1, %v8089_v35 }
0x1e1f   : > { %12395 = vmatpush1.bf16.msra.mxu1 %v12394_v8  ;;  %v14892_v36 = vand.u32 127, %v605_v53  ;;  %v12376_v8 = vpack.c.bf16 %v8578_v4, %v8562_v7 }
0x1e20   : > { %12397 = vmatprep.subr.bf16.mxu1 %v12396_v13  ;;  %v12378_v13 = vpack.c.bf16 %v8577_v1, %v8561_v60 }
0x1e21   : > { %v8165_v33 = vpop.f32.mrb[76].mxu1  ;;  %vm607_vm2 = vcmp.lt.s32.totalorder %v14892_v36, 40 }
0x1e22   : > { %v12276_v30 = vpop.f32.mrb[77].mxu1  ;;  %12287 = vmatprep.mubr.msk.f32.mxu1 %vm754_vm1, %v8165_v33 }
0x1e23   : > { %12399 = vmatpush1.bf16.msra.mxu1 %v12398_v19  ;;  %v8612_v19 = vld [vmem:[#allocation8 + $0x598] sm:$0xff] }
0x1e24   : > { %12401 = vmatprep.subr.bf16.mxu1 %v12400_v3  ;;  %v12412_v24 = vpack.c.bf16 %v8612_v19, %v8596_v17  ;;  %v8595_v3 = vld [vmem:[#allocation8 + $0x510] sm:$0xff]  ;;  %v8437_v17 = vld [vmem:[#allocation8 + $0x20] sm:$0xff] }
0x1e25   : > { %v8241_v21 = vpop.f32.mrb[92].mxu0  ;;  %v12414_v29 = vpack.c.bf16 %v8611_v11, %v8595_v3  ;;  %v8470_v3 = vld [vmem:[#allocation8 + $0x128] sm:$0xff] }
0x1e26   : > { %v12281_v37 = vpop.f32.mrb[93].mxu0  ;;  %12288 = vmatmul.mubr.msk.f32.gmra.mrb[30].mxu1 %vm754_vm1, %v8241_v21 }
0x1e27   : > { %8926 = vmatprep.mubr.f32.mxu1 %v13616_v0  ;;  %12403 = vmatpush1.bf16.msra.mxu1 %v12402_v34  ;;  %v8628_v34 = vld [vmem:[#allocation8 + $0x618] sm:$0xff] }
0x1ef1   : > { %v12286_v38 = vpop.f32.mrb[28].mxu1 }
0x1ef2   : > { %v8354_v39 = vadd.f32 %v12286_v38, %v11215_v23  ;;  %v8323_v25 = vpop.f32.mrb[29].mxu1 }
0x1ef3   : > { %v8353_v27 = vadd.f32 %v11215_v23, %v8323_v25 }
0x1ef4   : > { %v14876_v41 = vadd.f32 %v13289_v40, %v8354_v39 }
0x1ef5   : > { %v14879_v43 = vadd.f32 %v13290_v42, %v8353_v27 }
0x1ef6   : > { %8365 = vadd.xlane.f32.xlu1 %v14876_v41 }
0x1ef7   : > { %8363 = vadd.xlane.f32.xlu0 %v14879_v43 }
0x1ef9   : > { %v12289_v44 = vpop.f32.mrb[30].mxu1 }
0x1efa   : > { %v8333_v45 = vpop.f32.mrb[31].mxu1  ;;  %v8356_v47 = vadd.f32 %v12289_v44, %v11215_v23 }
0x1efb   : > { %v8355_v46 = vadd.f32 %v11215_v23, %v8333_v45 }
0x1efc   : > { %v14888_v51 = vadd.f32 %v13292_v50, %v8356_v47  ;;  %v8546_v50 = vld [vmem:[#allocation8 + $0x388] sm:$0xff] }
0x1efd   : > { %v14884_v49 = vadd.f32 %v13291_v48, %v8355_v46 }
0x1eff   : > { %8367 = vadd.xlane.f32.xlu0 %v14884_v49 }
0x1f03   : > { %8369 = vadd.xlane.f32.xlu0 %v14888_v51 }
0x1f83   : > { %v8366_v35 = vpop.xlane.xlu1 %8365 }
0x1f84   : > { %v8372_v33 = vmul.f32 0.025, %v8366_v35  ;;  %v8364_v30 = vpop.xlane.xlu0 %8363  ;;  %v12384_v35 = vpack.c.bf16 %v8642_v32, %v8626_v31  ;;  %v8472_v31 = vld [vmem:[#allocation8 + $0x138] sm:$0xff] }
0x1f85   : > { %v8371_v21 = vmul.f32 0.025, %v8364_v30  ;;  %v8625_v30 = vld [vmem:[#allocation8 + $0x600] sm:$0xff]  ;;  %v8488_v32 = vld [vmem:[#allocation8 + $0x1b8] sm:$0xff] }
0x1f86   : > { %v14895_v37 = vsub.f32 %v14876_v41, %v8372_v33  ;;  %v8644_v33 = vld [vmem:[#allocation8 + $0x698] sm:$0xff] }
0x1f87   : > { %v14898_v23 = vsub.f32 %v14879_v43, %v8371_v21  ;;  %v8641_v21 = vld [vmem:[#allocation8 + $0x680] sm:$0xff] }
0x1f88   : > { %v8380_v38 = vmul.f32 %v14895_v37, %v14895_v37 }
0x1f89   : > { %v8379_v39 = vmul.f32 %v14898_v23, %v14898_v23 }
0x1f8a   : > { %v8386_v53 = vsel %vm607_vm2, %v8380_v38, 0.0  ;;  %v12416_v38 = vpack.c.bf16 %v8644_v33, %v8628_v34  ;;  %v12426_v34 = vpack.c.bf16 %v8453_v20, %v8437_v17  ;;  %v8469_v33 = vld [vmem:[#allocation8 + $0x120] sm:$0xff] }
0x1f8b   : > { %8391 = vadd.xlane.f32.xlu0 %v8386_v53  ;;  %v8385_v25 = vsel %vm607_vm2, %v8379_v39, 0.0  ;;  %v12386_v39 = vpack.c.bf16 %v8641_v21, %v8625_v30  ;;  %v8627_v53 = vld [vmem:[#allocation8 + $0x610] sm:$0xff]  ;;  %v8581_v20 = vld [vmem:[#allocation8 + $0x4a0] sm:$0xff] }
0x1f8c   : > { %8389 = vadd.xlane.f32.xlu1 %v8385_v25  ;;  %v8368_v27 = vpop.xlane.xlu0 %8367  ;;  %v8643_v25 = vld [vmem:[#allocation8 + $0x690] sm:$0xff] }
0x1f8d   : > { %v8373_v40 = vmul.f32 0.025, %v8368_v27  ;;  %v12418_v27 = vpack.c.bf16 %v8643_v25, %v8627_v53  ;;  %v8471_v21 = vld [vmem:[#allocation8 + $0x130] sm:$0xff]  ;;  %v12460_v53 = vpack.c.bf16 %v8488_v32, %v8472_v31  ;;  %v8502_v25 = vld [vmem:[#allocation8 + $0x228] sm:$0xff]  ;;  %v8600_v32 = vld [vmem:[#allocation8 + $0x538] sm:$0xff] }
0x1f8e   : > { %v8614_v31 = vld [vmem:[#allocation8 + $0x5a8] sm:$0xff] }
0x1f8f   : > { %v14910_v41 = vsub.f32 %v14884_v49, %v8373_v40  ;;  %v8530_v49 = vld [vmem:[#allocation8 + $0x308] sm:$0xff] }
0x1f90   : > { %v8370_v42 = vpop.xlane.xlu0 %8369  ;;  %v12372_v56 = vpack.c.bf16 %v8546_v50, %v8530_v49  ;;  %v8658_v40 = vld [vmem:[#allocation8 + $0x708] sm:$0xff] }
0x1f91   : > { %v8374_v43 = vmul.f32 0.025, %v8370_v42  ;;  %v8381_v44 = vmul.f32 %v14910_v41, %v14910_v41  ;;  %v8674_v42 = vld [vmem:[#allocation8 + $0x788] sm:$0xff] }
0x1f92   : > { %12373 = vmatprep.subr.bf16.mxu0 %v12372_v56  ;;  %v8675_v56 = vld [vmem:[#allocation8 + $0x790] sm:$0xff] }
0x1f93   : > { %v14915_v45 = vsub.f32 %v14888_v51, %v8374_v43  ;;  %v8387_v46 = vsel %vm607_vm2, %v8381_v44, 0.0  ;;  %v12404_v51 = vpack.c.bf16 %v8548_v57, %v8532_v52  ;;  %12375 = vmatpush1.bf16.msra.mxu0 %v12374_v62  ;;  %v8660_v43 = vld [vmem:[#allocation8 + $0x718] sm:$0xff]  ;;  %v12388_v44 = vpack.c.bf16 %v8674_v42, %v8658_v40  ;;  %v8659_v52 = vld [vmem:[#allocation8 + $0x710] sm:$0xff] }
0x1f94   : > { %8393 = vadd.xlane.f32.xlu1 %v8387_v46  ;;  %12377 = vmatprep.subr.bf16.mxu0 %v12376_v8  ;;  %v8676_v46 = vld [vmem:[#allocation8 + $0x798] sm:$0xff]  ;;  %v12422_v57 = vpack.c.bf16 %v8675_v56, %v8659_v52  ;;  %v12424_v62 = vpack.c.bf16 %v8454_v61, %v8438_v58  ;;  %v8503_v52 = vld [vmem:[#allocation8 + $0x230] sm:$0xff]  ;;  %v8534_v61 = vld [vmem:[#allocation8 + $0x328] sm:$0xff] }
0x1f95   : > { %v8382_v47 = vmul.f32 %v14915_v45, %v14915_v45  ;;  %12405 = vmatprep.subr.bf16.mxu1 %v12404_v51  ;;  %v12420_v49 = vpack.c.bf16 %v8676_v46, %v8660_v43  ;;  %v8440_v51 = vld [vmem:[#allocation8 + $0x38] sm:$0xff]  ;;  %v8519_v56 = vld [vmem:[#allocation8 + $0x2b0] sm:$0xff] }
0x1f96   : > { %12407 = vmatpush1.bf16.msra.mxu1 %v12406_v2  ;;  %v12456_v28 = vpack.c.bf16 %v8456_v63, %v8440_v51  ;;  %v8504_v40 = vld [vmem:[#allocation8 + $0x238] sm:$0xff] }
0x1f97   : > { %v8388_v48 = vsel %vm607_vm2, %v8382_v47, 0.0  ;;  %12409 = vmatprep.subr.bf16.mxu1 %v12408_v12  ;;  %12379 = vmatpush1.bf16.msra.mxu0 %v12378_v13  ;;  %v8657_v47 = vld [vmem:[#allocation8 + $0x700] sm:$0xff]  ;;  %v8520_v42 = vld [vmem:[#allocation8 + $0x2b8] sm:$0xff] }
0x1f98   : > { %8395 = vadd.xlane.f32.xlu0 %v8388_v48  ;;  %12381 = vmatprep.subr.bf16.mxu0 %v12380_v18  ;;  %v8673_v48 = vld [vmem:[#allocation8 + $0x780] sm:$0xff]  ;;  %v12464_v58 = vpack.c.bf16 %v8520_v42, %v8504_v40  ;;  %v8552_v63 = vld [vmem:[#allocation8 + $0x3b8] sm:$0xff] }
0x1f99   : > { %v12390_v50 = vpack.c.bf16 %v8673_v48, %v8657_v47  ;;  %v8501_v47 = vld [vmem:[#allocation8 + $0x220] sm:$0xff]  ;;  %v8648_v40 = vld [vmem:[#allocation8 + $0x6b8] sm:$0xff] }
0x1f9a   : > { %12411 = vmatpush1.bf16.msra.mxu1 %v12410_v15 }
0x1f9b   : > { %12413 = vmatprep.subr.bf16.mxu1 %v12412_v24  ;;  %12383 = vmatpush1.bf16.msra.mxu0 %v12382_v26  ;;  %v8455_v24 = vld [vmem:[#allocation8 + $0xb0] sm:$0xff]  ;;  %v14927_v26 = vld [vmem:[#allocation7] ss:$0 sm:$0xff] }
0x1f9c   : > { %12385 = vmatprep.subr.bf16.mxu0 %v12384_v35  ;;  %v12458_v35 = vpack.c.bf16 %v8455_v24, %v8439_v22 }
0x1f9e   : > { %12415 = vmatpush1.bf16.msra.mxu1 %v12414_v29  ;;  %v8486_v29 = vld [vmem:[#allocation8 + $0x1a8] sm:$0xff] }
0x1f9f   : > { %12417 = vmatprep.subr.bf16.mxu1 %v12416_v38  ;;  %12387 = vmatpush1.bf16.msra.mxu0 %v12386_v39  ;;  %v8487_v38 = vld [vmem:[#allocation8 + $0x1b0] sm:$0xff]  ;;  %v12428_v39 = vpack.c.bf16 %v8486_v29, %v8470_v3  ;;  %v8598_v29 = vld [vmem:[#allocation8 + $0x528] sm:$0xff] }
0x1fa0   : > { %12389 = vmatprep.subr.bf16.mxu0 %v12388_v44  ;;  %v12462_v46 = vpack.c.bf16 %v8487_v38, %v8471_v21  ;;  %v8599_v38 = vld [vmem:[#allocation8 + $0x530] sm:$0xff] }
0x1fa2   : > { %12419 = vmatpush1.bf16.msra.mxu1 %v12418_v27  ;;  %v8518_v27 = vld [vmem:[#allocation8 + $0x2a8] sm:$0xff] }
0x1fa3   : > { %12421 = vmatprep.subr.bf16.mxu1 %v12420_v49  ;;  %12391 = vmatpush1.bf16.msra.mxu0 %v12390_v50  ;;  %v8517_v50 = vld [vmem:[#allocation8 + $0x2a0] sm:$0xff] }
0x1fa4   : > { %12425 = vmatprep.subr.bf16.mxu0 %v12424_v62  ;;  %v8550_v62 = vld [vmem:[#allocation8 + $0x3a8] sm:$0xff] }
0x1fa6   : > { %12423 = vmatpush1.bf16.msra.mxu1 %v12422_v57  ;;  %v12432_v57 = vpack.c.bf16 %v8518_v27, %v8502_v25  ;;  %v8646_v25 = vld [vmem:[#allocation8 + $0x6a8] sm:$0xff]  ;;  %v8632_v27 = vld [vmem:[#allocation8 + $0x638] sm:$0xff] }
0x1fa7   : > { %12457 = vmatprep.subr.bf16.mxu1 %v12456_v28 }
0x2018   : > { %v8392_v2 = vpop.xlane.xlu0 %8391 }
0x2019   : > { %v8398_v7 = vmul.f32 0.025, %v8392_v2  ;;  %v8390_v4 = vpop.xlane.xlu1 %8389  ;;  %v12434_v2 = vpack.c.bf16 %v8517_v50, %v8501_v47  ;;  %v8631_v50 = vld [vmem:[#allocation8 + $0x630] sm:$0xff] }
0x201a   : > { %v8397_v6 = vmul.f32 0.025, %v8390_v4  ;;  %v8533_v4 = vld [vmem:[#allocation8 + $0x320] sm:$0xff] }
0x201b   : > { %v8402_v8 = vadd.f32 1e-05, %v8398_v7  ;;  %v12466_v7 = vpack.c.bf16 %v8519_v56, %v8503_v52  ;;  %v8647_v52 = vld [vmem:[#allocation8 + $0x6b0] sm:$0xff]  ;;  %v8662_v56 = vld [vmem:[#allocation8 + $0x728] sm:$0xff] }
0x201c   : > { %v8401_v10 = vadd.f32 1e-05, %v8397_v6  ;;  %v8549_v6 = vld [vmem:[#allocation8 + $0x3a0] sm:$0xff] }
0x201d   : > { %13273 = vrsqrt.f32 %v8402_v8 }
0x201e   : > { %13275 = vrsqrt.f32 %v8401_v10 }
0x2021   : > { %v8394_v60 = vpop.xlane.xlu1 %8393 }
0x2022   : > { %v8399_v1 = vmul.f32 0.025, %v8394_v60  ;;  %v8535_v60 = vld [vmem:[#allocation8 + $0x330] sm:$0xff] }
0x2024   : > { %v8403_v12 = vadd.f32 1e-05, %v8399_v1  ;;  %v8551_v1 = vld [vmem:[#allocation8 + $0x3b0] sm:$0xff] }
0x2025   : > { %v8396_v13 = vpop.xlane.xlu0 %8395 }
0x2026   : > { %13277 = vrsqrt.f32 %v8403_v12  ;;  %v8400_v9 = vmul.f32 0.025, %v8396_v13  ;;  %v8566_v12 = vld [vmem:[#allocation8 + $0x428] sm:$0xff]  ;;  %v12436_v13 = vpack.c.bf16 %v8550_v62, %v8534_v61  ;;  %v8680_v61 = vld [vmem:[#allocation8 + $0x7b8] sm:$0xff]  ;;  %v12482_v62 = vpack.c.bf16 %v8647_v52, %v8631_v50  ;;  %v8537_v52 = vld [vmem:[#allocation8 + $0x340] sm:$0xff] }
0x2027   : > { %v13274_v14 = vpop.eup %13273 }
0x2028   : > { %v13276_v15 = vpop.eup %13275  ;;  %v8404_v5 = vadd.f32 1e-05, %v8400_v9  ;;  %v8410_v18 = vmul.f32 %v13274_v14, %v14895_v37  ;;  %v8582_v14 = vld [vmem:[#allocation8 + $0x4a8] sm:$0xff] }
0x2029   : > { %v8409_v19 = vmul.f32 %v13276_v15, %v14898_v23  ;;  %v8485_v23 = vld [vmem:[#allocation8 + $0x1a0] sm:$0xff]  ;;  %v8568_v15 = vld [vmem:[#allocation8 + $0x438] sm:$0xff]  ;;  %v12440_v24 = vpack.c.bf16 %v8582_v14, %v8566_v12 }
0x202a   : > { %13279 = vrsqrt.f32 %v8404_v5  ;;  %v8420_v30 = vmul.f32 %v14923_v16, %v8410_v18  ;;  %v12430_v44 = vpack.c.bf16 %v8485_v23, %v8469_v33  ;;  %v8584_v5 = vld [vmem:[#allocation8 + $0x4b8] sm:$0xff]  ;;  %v12470_v18 = vpack.c.bf16 %v8551_v1, %v8535_v60  ;;  %v8597_v33 = vld [vmem:[#allocation8 + $0x520] sm:$0xff] }
0x202b   : > { %v8419_v11 = vmul.f32 %v14923_v16, %v8409_v19  ;;  %v8565_v19 = vld [vmem:[#allocation8 + $0x420] sm:$0xff]  ;;  %v12472_v3 = vpack.c.bf16 %v8584_v5, %v8568_v15  ;;  %v12444_v23 = vpack.c.bf16 %v8614_v31, %v8598_v29  ;;  %v8444_v60 = vld [vmem:[#allocation8 + $0x58] sm:$0xff]  ;;  %v8475_v31 = vld [vmem:[#allocation8 + $0x150] sm:$0xff] }
0x202c   : > { %v14937_v48 = vadd.f32 %v14927_v26, %v8420_v30  ;;  %v8613_v30 = vld [vmem:[#allocation8 + $0x5a0] sm:$0xff]  ;;  %v8460_v1 = vld [vmem:[#allocation8 + $0xd8] sm:$0xff] }
0x202d   : > { %v14932_v37 = vadd.f32 %v14927_v26, %v8419_v11  ;;  %v8583_v11 = vld [vmem:[#allocation8 + $0x4b0] sm:$0xff]  ;;  %v12446_v42 = vpack.c.bf16 %v8613_v30, %v8597_v33  ;;  %v12520_v15 = vpack.c.bf16 %v8460_v1, %v8444_v60  ;;  %v8457_v5 = vld [vmem:[#allocation8 + $0xc0] sm:$0xff]  ;;  %v8522_v33 = vld [vmem:[#allocation8 + $0x2c8] sm:$0xff] }
0x202e   : > { %v8489_v29 = vld [vmem:[#allocation8 + $0x1c0] sm:$0xff]  ;;  %v8508_v30 = vld [vmem:[#allocation8 + $0x258] sm:$0xff]  ;;  %v8571_v1 = vld [vmem:[#allocation8 + $0x450] sm:$0xff] }
0x202f   : > { %8838 = vmatmul.mubr.f32.vlgmr.msra.gmra.mrb[94].mxu0 %v14932_v37  ;;  %8927 = vmatmul.mubr.f32.vlgmr.msra.gmra.mrb[78].mxu1 %v14932_v37 }
0x2030   : > { %v13278_v43 = vpop.eup %13277  ;;  %12427 = vmatpush1.bf16.msra.mxu0 %v12426_v34  ;;  %12459 = vmatpush1.bf16.msra.mxu1 %v12458_v35  ;;  %v8616_v34 = vld [vmem:[#allocation8 + $0x5b8] sm:$0xff] }
0x2031   : > { %v8411_v49 = vmul.f32 %v13278_v43, %v14910_v41  ;;  %8843 = vmatprep.mubr.f32.mxu0 %v13616_v0  ;;  %8932 = vmatprep.mubr.f32.mxu1 %v13616_v0  ;;  %v8536_v41 = vld [vmem:[#allocation8 + $0x338] sm:$0xff]  ;;  %v12476_v21 = vpack.c.bf16 %v8616_v34, %v8600_v32  ;;  %v8491_v32 = vld [vmem:[#allocation8 + $0x1d0] sm:$0xff] }
0x2032   : > { %12429 = vmatprep.subr.bf16.mxu0 %v12428_v39  ;;  %12461 = vmatprep.subr.bf16.mxu1 %v12460_v53  ;;  %v12468_v9 = vpack.c.bf16 %v8552_v63, %v8536_v41  ;;  %v8615_v39 = vld [vmem:[#allocation8 + $0x5b0] sm:$0xff]  ;;  %v8630_v53 = vld [vmem:[#allocation8 + $0x628] sm:$0xff]  ;;  %v8661_v41 = vld [vmem:[#allocation8 + $0x720] sm:$0xff] }
0x2033   : > { %v8421_v51 = vmul.f32 %v14923_v16, %v8411_v49  ;;  %8844 = vmatmul.mubr.f32.gmra.mrb[96].mxu0 %v14937_v48  ;;  %8933 = vmatmul.mubr.f32.gmra.mrb[80].mxu1 %v14937_v48  ;;  %v12478_v43 = vpack.c.bf16 %v8615_v39, %v8599_v38  ;;  %v12448_v47 = vpack.c.bf16 %v8646_v25, %v8630_v53  ;;  %v8677_v63 = vld [vmem:[#allocation8 + $0x7a0] sm:$0xff]  ;;  %v8507_v25 = vld [vmem:[#allocation8 + $0x250] sm:$0xff] }
0x2034   : > { %v13280_v28 = vpop.eup %13279  ;;  %12431 = vmatpush1.bf16.msra.mxu0 %v12430_v44  ;;  %12463 = vmatpush1.bf16.msra.mxu1 %v12462_v46  ;;  %v8629_v44 = vld [vmem:[#allocation8 + $0x620] sm:$0xff]  ;;  %v12480_v49 = vpack.c.bf16 %v8648_v40, %v8632_v27  ;;  %v12454_v12 = vpack.c.bf16 %v8677_v63, %v8661_v41  ;;  %v12526_v38 = vpack.c.bf16 %v8491_v32, %v8475_v31  ;;  %v8523_v27 = vld [vmem:[#allocation8 + $0x2d0] sm:$0xff]  ;;  %v8586_v41 = vld [vmem:[#allocation8 + $0x4c8] sm:$0xff] }
0x2035   : > { %v14946_v8 = vadd.f32 %v14927_v26, %v8421_v51  ;;  %v8412_v10 = vmul.f32 %v13280_v28, %v14915_v45  ;;  %8849 = vmatprep.mubr.f32.mxu0 %v13616_v0  ;;  %8938 = vmatprep.mubr.f32.mxu1 %v13616_v0  ;;  %v12438_v45 = vpack.c.bf16 %v8549_v6, %v8533_v4  ;;  %v8645_v46 = vld [vmem:[#allocation8 + $0x6a0] sm:$0xff]  ;;  %v8679_v4 = vld [vmem:[#allocation8 + $0x7b0] sm:$0xff]  ;;  %v8442_v6 = vld [vmem:[#allocation8 + $0x48] sm:$0xff] }
0x2036   : > { %12433 = vmatprep.subr.bf16.mxu0 %v12432_v57  ;;  %12465 = vmatprep.subr.bf16.mxu1 %v12464_v58  ;;  %v8678_v57 = vld [vmem:[#allocation8 + $0x7a8] sm:$0xff]  ;;  %v8664_v58 = vld [vmem:[#allocation8 + $0x738] sm:$0xff]  ;;  %v12450_v51 = vpack.c.bf16 %v8645_v46, %v8629_v44  ;;  %v8505_v39 = vld [vmem:[#allocation8 + $0x240] sm:$0xff]  ;;  %v12530_v50 = vpack.c.bf16 %v8523_v27, %v8507_v25 }
0x2037   : > { %v8422_v17 = vmul.f32 %v14923_v16, %v8412_v10  ;;  %8850 = vmatmul.mubr.f32.gmra.mrb[98].mxu0 %v14946_v8  ;;  %8939 = vmatmul.mubr.f32.gmra.mrb[82].mxu1 %v14946_v8  ;;  %v8567_v16 = vld [vmem:[#allocation8 + $0x430] sm:$0xff]  ;;  %v12452_v28 = vpack.c.bf16 %v8678_v57, %v8662_v56  ;;  %v8458_v10 = vld [vmem:[#allocation8 + $0xc8] sm:$0xff]  ;;  %v8521_v53 = vld [vmem:[#allocation8 + $0x2c0] sm:$0xff] }
0x2038   : > { %12435 = vmatpush1.bf16.msra.mxu0 %v12434_v2  ;;  %12467 = vmatpush1.bf16.msra.mxu1 %v12466_v7  ;;  %v12474_v35 = vpack.c.bf16 %v8583_v11, %v8567_v16  ;;  %v12484_v2 = vpack.c.bf16 %v8680_v61, %v8664_v58  ;;  %v8663_v7 = vld [vmem:[#allocation8 + $0x730] sm:$0xff]  ;;  %v12488_v14 = vpack.c.bf16 %v8458_v10, %v8442_v6  ;;  %v8473_v11 = vld [vmem:[#allocation8 + $0x140] sm:$0xff]  ;;  %v8554_v44 = vld [vmem:[#allocation8 + $0x3c8] sm:$0xff] }
0x2039   : > { %v14955_v22 = vadd.f32 %v14927_v26, %v8422_v17  ;;  %8855 = vmatprep.mubr.f32.mxu0 %v13616_v0  ;;  %8944 = vmatprep.mubr.f32.mxu1 %v13616_v0  ;;  %v12442_v26 = vpack.c.bf16 %v8581_v20, %v8565_v19  ;;  %v8443_v17 = vld [vmem:[#allocation8 + $0x50] sm:$0xff]  ;;  %v8490_v19 = vld [vmem:[#allocation8 + $0x1c8] sm:$0xff]  ;;  %v8476_v20 = vld [vmem:[#allocation8 + $0x158] sm:$0xff] }
0x203a   : > { %12437 = vmatprep.subr.bf16.mxu0 %v12436_v13  ;;  %12469 = vmatprep.subr.bf16.mxu1 %v12468_v9  ;;  %v12486_v13 = vpack.c.bf16 %v8679_v4, %v8663_v7  ;;  %v8441_v9 = vld [vmem:[#allocation8 + $0x40] sm:$0xff]  ;;  %v8540_v46 = vld [vmem:[#allocation8 + $0x358] sm:$0xff]  ;;  %v8539_v57 = vld [vmem:[#allocation8 + $0x350] sm:$0xff] }
0x203b   : > { %8856 = vmatmul.mubr.f32.gmra.mrb[100].mxu0 %v14955_v22  ;;  %8945 = vmatmul.mubr.f32.gmra.mrb[84].mxu1 %v14955_v22  ;;  %v8553_v56 = vld [vmem:[#allocation8 + $0x3c0] sm:$0xff]  ;;  %v8555_v58 = vld [vmem:[#allocation8 + $0x3d0] sm:$0xff]  ;;  %v8570_v61 = vld [vmem:[#allocation8 + $0x448] sm:$0xff] }
0x203c   : > { %12439 = vmatpush1.bf16.msra.mxu0 %v12438_v45  ;;  %12471 = vmatpush1.bf16.msra.mxu1 %v12470_v18  ;;  %v8459_v45 = vld [vmem:[#allocation8 + $0xd0] sm:$0xff]  ;;  %v8474_v18 = vld [vmem:[#allocation8 + $0x148] sm:$0xff]  ;;  %v8572_v63 = vld [vmem:[#allocation8 + $0x458] sm:$0xff]  ;;  %v12534_v7 = vpack.c.bf16 %v8555_v58, %v8539_v57  ;;  %v12504_v10 = vpack.c.bf16 %v8586_v41, %v8570_v61 }
0x203d   : > { %12441 = vmatprep.subr.bf16.mxu0 %v12440_v24  ;;  %12473 = vmatprep.subr.bf16.mxu1 %v12472_v3  ;;  %v8492_v24 = vld [vmem:[#allocation8 + $0x1d8] sm:$0xff]  ;;  %v12490_v3 = vpack.c.bf16 %v8457_v5, %v8441_v9  ;;  %v12522_v16 = vpack.c.bf16 %v8459_v45, %v8443_v17  ;;  %v12492_v34 = vpack.c.bf16 %v8490_v19, %v8474_v18  ;;  %v8569_v4 = vld [vmem:[#allocation8 + $0x440] sm:$0xff]  ;;  %v8618_v9 = vld [vmem:[#allocation8 + $0x5c8] sm:$0xff] }
0x203e   : > { %9015 = vmatprep.mubr.f32.mxu0 %v13616_v0  ;;  %9104 = vmatprep.mubr.f32.mxu1 %v13616_v0  ;;  %v8585_v6 = vld [vmem:[#allocation8 + $0x4c0] sm:$0xff]  ;;  %v8652_v31 = vld [vmem:[#allocation8 + $0x6d8] sm:$0xff] }
0x203f   : > { %v12506_v5 = vpack.c.bf16 %v8585_v6, %v8569_v4  ;;  %v8601_v45 = vld [vmem:[#allocation8 + $0x540] sm:$0xff]  ;;  %v8684_v25 = vld [vmem:[#allocation8 + $0x7d8] sm:$0xff]  ;;  %v8494_v4 = vld [vmem:[#allocation8 + $0x1e8] sm:$0xff] }
0x2040   : > { %12443 = vmatpush1.bf16.msra.mxu0 %v12442_v26  ;;  %12475 = vmatpush1.bf16.msra.mxu1 %v12474_v35  ;;  %v12524_v26 = vpack.c.bf16 %v8492_v24, %v8476_v20  ;;  %v8506_v35 = vld [vmem:[#allocation8 + $0x248] sm:$0xff]  ;;  %v8617_v18 = vld [vmem:[#allocation8 + $0x5c0] sm:$0xff]  ;;  %v8603_v24 = vld [vmem:[#allocation8 + $0x550] sm:$0xff] }
0x2041   : > { %12445 = vmatprep.subr.bf16.mxu0 %v12444_v23  ;;  %12477 = vmatprep.subr.bf16.mxu1 %v12476_v21  ;;  %v8524_v23 = vld [vmem:[#allocation8 + $0x2d8] sm:$0xff]  ;;  %v12494_v21 = vpack.c.bf16 %v8489_v29, %v8473_v11  ;;  %v12496_v40 = vpack.c.bf16 %v8522_v33, %v8506_v35  ;;  %v8650_v11 = vld [vmem:[#allocation8 + $0x6c8] sm:$0xff]  ;;  %v12510_v32 = vpack.c.bf16 %v8617_v18, %v8601_v45  ;;  %v8649_v35 = vld [vmem:[#allocation8 + $0x6c0] sm:$0xff] }
0x2042   : > { %v8636_v29 = vld [vmem:[#allocation8 + $0x658] sm:$0xff]  ;;  %v8526_v45 = vld [vmem:[#allocation8 + $0x2e8] sm:$0xff] }
0x2043   : > { %v8464_v57 = vld [vmem:[#allocation8 + $0xf8] sm:$0xff] }
0x2044   : > { %12447 = vmatpush1.bf16.msra.mxu0 %v12446_v42  ;;  %12479 = vmatpush1.bf16.msra.mxu1 %v12478_v43  ;;  %v12528_v42 = vpack.c.bf16 %v8524_v23, %v8508_v30  ;;  %v8538_v43 = vld [vmem:[#allocation8 + $0x348] sm:$0xff]  ;;  %v12544_v30 = vpack.c.bf16 %v8652_v31, %v8636_v29  ;;  %v8635_v23 = vld [vmem:[#allocation8 + $0x650] sm:$0xff]  ;;  %v8480_v6 = vld [vmem:[#allocation8 + $0x178] sm:$0xff] }
0x2045   : > { %12449 = vmatprep.subr.bf16.mxu0 %v12448_v47  ;;  %12481 = vmatprep.subr.bf16.mxu1 %v12480_v49  ;;  %v8556_v47 = vld [vmem:[#allocation8 + $0x3d8] sm:$0xff]  ;;  %v12498_v49 = vpack.c.bf16 %v8521_v53, %v8505_v39  ;;  %v8682_v39 = vld [vmem:[#allocation8 + $0x7c8] sm:$0xff]  ;;  %v8527_v29 = vld [vmem:[#allocation8 + $0x2f0] sm:$0xff] }
0x2046   : > { %v8668_v53 = vld [vmem:[#allocation8 + $0x758] sm:$0xff] }
0x2047   : > { %v8512_v18 = vld [vmem:[#allocation8 + $0x278] sm:$0xff] }
0x2048   : > { %12451 = vmatpush1.bf16.msra.mxu0 %v12450_v51  ;;  %12483 = vmatpush1.bf16.msra.mxu1 %v12482_v62  ;;  %v12500_v51 = vpack.c.bf16 %v8554_v44, %v8538_v43  ;;  %v12532_v62 = vpack.c.bf16 %v8556_v47, %v8540_v46  ;;  %v8681_v43 = vld [vmem:[#allocation8 + $0x7c0] sm:$0xff]  ;;  %v12548_v46 = vpack.c.bf16 %v8684_v25, %v8668_v53  ;;  %v8667_v47 = vld [vmem:[#allocation8 + $0x750] sm:$0xff]  ;;  %v8574_v25 = vld [vmem:[#allocation8 + $0x468] sm:$0xff] }
0x2049   : > { %12453 = vmatprep.subr.bf16.mxu0 %v12452_v28  ;;  %12485 = vmatprep.subr.bf16.mxu1 %v12484_v2  ;;  %v8588_v28 = vld [vmem:[#allocation8 + $0x4d8] sm:$0xff]  ;;  %v12502_v2 = vpack.c.bf16 %v8553_v56, %v8537_v52  ;;  %v8462_v52 = vld [vmem:[#allocation8 + $0xe8] sm:$0xff]  ;;  %v8559_v53 = vld [vmem:[#allocation8 + $0x3f0] sm:$0xff] }
0x204a   : > { %v12536_v60 = vpack.c.bf16 %v8588_v28, %v8572_v63  ;;  %v8448_v56 = vld [vmem:[#allocation8 + $0x78] sm:$0xff]  ;;  %v8461_v63 = vld [vmem:[#allocation8 + $0xe0] sm:$0xff]  ;;  %v8447_v28 = vld [vmem:[#allocation8 + $0x70] sm:$0xff] }
0x204b   : > { %v12584_v41 = vpack.c.bf16 %v8464_v57, %v8448_v56  ;;  %v8575_v57 = vld [vmem:[#allocation8 + $0x470] sm:$0xff] }
0x204c   : > { %12455 = vmatpush1.bf16.msra.mxu0 %v12454_v12  ;;  %12487 = vmatpush1.bf16.msra.mxu1 %v12486_v13  ;;  %v8587_v12 = vld [vmem:[#allocation8 + $0x4d0] sm:$0xff]  ;;  %v8602_v13 = vld [vmem:[#allocation8 + $0x548] sm:$0xff] }
0x204d   : > { %12489 = vmatprep.subr.bf16.mxu0 %v12488_v14  ;;  %12521 = vmatprep.subr.bf16.mxu1 %v12520_v15  ;;  %v8604_v14 = vld [vmem:[#allocation8 + $0x558] sm:$0xff]  ;;  %v12538_v17 = vpack.c.bf16 %v8587_v12, %v8571_v1  ;;  %v12508_v19 = vpack.c.bf16 %v8618_v9, %v8602_v13  ;;  %v8477_v12 = vld [vmem:[#allocation8 + $0x160] sm:$0xff]  ;;  %v8479_v9 = vld [vmem:[#allocation8 + $0x170] sm:$0xff] }
0x204e   : > { %v8620_v15 = vld [vmem:[#allocation8 + $0x5d8] sm:$0xff]  ;;  %v8493_v13 = vld [vmem:[#allocation8 + $0x1e0] sm:$0xff] }
0x204f   : > { %9016 = vmatmul.mubr.f32.vlgmr.msra.gmra.mrb[102].mxu0 %v14932_v37  ;;  %9105 = vmatmul.mubr.f32.vlgmr.msra.gmra.mrb[86].mxu1 %v14932_v37  ;;  %v12540_v20 = vpack.c.bf16 %v8620_v15, %v8604_v14  ;;  %v8495_v14 = vld [vmem:[#allocation8 + $0x1f0] sm:$0xff] }
0x2050   : > { %12491 = vmatpush1.bf16.msra.mxu0 %v12490_v3  ;;  %12523 = vmatpush1.bf16.msra.mxu1 %v12522_v16  ;;  %v8619_v3 = vld [vmem:[#allocation8 + $0x5d0] sm:$0xff]  ;;  %v8634_v16 = vld [vmem:[#allocation8 + $0x648] sm:$0xff] }
0x2051   : > { %9021 = vmatprep.mubr.f32.mxu0 %v13616_v0  ;;  %9110 = vmatprep.mubr.f32.mxu1 %v13616_v0  ;;  %v12512_v33 = vpack.c.bf16 %v8650_v11, %v8634_v16  ;;  %v8525_v16 = vld [vmem:[#allocation8 + $0x2e0] sm:$0xff]  ;;  %v8511_v11 = vld [vmem:[#allocation8 + $0x270] sm:$0xff] }
0x2052   : > { %12493 = vmatprep.subr.bf16.mxu0 %v12492_v34  ;;  %12525 = vmatprep.subr.bf16.mxu1 %v12524_v26  ;;  %v12542_v34 = vpack.c.bf16 %v8619_v3, %v8603_v24  ;;  %v8633_v26 = vld [vmem:[#allocation8 + $0x640] sm:$0xff]  ;;  %v12590_v24 = vpack.c.bf16 %v8495_v14, %v8479_v9  ;;  %v8656_v9 = vld [vmem:[#allocation8 + $0x6f8] sm:$0xff] }
0x2053   : > { %9022 = vmatmul.mubr.f32.gmra.mrb[104].mxu0 %v14937_v48  ;;  %9111 = vmatmul.mubr.f32.gmra.mrb[88].mxu1 %v14937_v48  ;;  %v12514_v27 = vpack.c.bf16 %v8649_v35, %v8633_v26  ;;  %v8509_v3 = vld [vmem:[#allocation8 + $0x260] sm:$0xff]  ;;  %v8558_v26 = vld [vmem:[#allocation8 + $0x3e8] sm:$0xff]  ;;  %v8544_v35 = vld [vmem:[#allocation8 + $0x378] sm:$0xff] }
0x2054   : > { %12495 = vmatpush1.bf16.msra.mxu0 %v12494_v21  ;;  %12527 = vmatpush1.bf16.msra.mxu1 %v12526_v38  ;;  %v8651_v21 = vld [vmem:[#allocation8 + $0x6d0] sm:$0xff]  ;;  %v8666_v38 = vld [vmem:[#allocation8 + $0x748] sm:$0xff] }
0x2055   : > { %9027 = vmatprep.mubr.f32.mxu0 %v13616_v0  ;;  %9116 = vmatprep.mubr.f32.mxu1 %v13616_v0  ;;  %v12516_v44 = vpack.c.bf16 %v8682_v39, %v8666_v38  ;;  %v8557_v38 = vld [vmem:[#allocation8 + $0x3e0] sm:$0xff]  ;;  %v8543_v39 = vld [vmem:[#allocation8 + $0x370] sm:$0xff] }
0x2056   : > { %12497 = vmatprep.subr.bf16.mxu0 %v12496_v40  ;;  %12529 = vmatprep.subr.bf16.mxu1 %v12528_v42  ;;  %v12546_v40 = vpack.c.bf16 %v8651_v21, %v8635_v23  ;;  %v8665_v42 = vld [vmem:[#allocation8 + $0x740] sm:$0xff]  ;;  %v12594_v23 = vpack.c.bf16 %v8527_v29, %v8511_v11  ;;  %v8688_v11 = vld [vmem:[#allocation8 + $0x7f8] sm:$0xff] }
0x2057   : > { %9028 = vmatmul.mubr.f32.gmra.mrb[106].mxu0 %v14946_v8  ;;  %9117 = vmatmul.mubr.f32.gmra.mrb[90].mxu1 %v14946_v8  ;;  %v12518_v58 = vpack.c.bf16 %v8681_v43, %v8665_v42  ;;  %v8541_v21 = vld [vmem:[#allocation8 + $0x360] sm:$0xff]  ;;  %v8590_v42 = vld [vmem:[#allocation8 + $0x4e8] sm:$0xff]  ;;  %v8576_v43 = vld [vmem:[#allocation8 + $0x478] sm:$0xff] }
0x2058   : > { %12499 = vmatpush1.bf16.msra.mxu0 %v12498_v49  ;;  %12531 = vmatpush1.bf16.msra.mxu1 %v12530_v50  ;;  %v8683_v49 = vld [vmem:[#allocation8 + $0x7d0] sm:$0xff]  ;;  %v8446_v50 = vld [vmem:[#allocation8 + $0x68] sm:$0xff] }
0x2059   : > { %9033 = vmatprep.mubr.f32.mxu0 %v13616_v0  ;;  %9122 = vmatprep.mubr.f32.mxu1 %v13616_v0  ;;  %v12550_v61 = vpack.c.bf16 %v8683_v49, %v8667_v47  ;;  %v12598_v47 = vpack.c.bf16 %v8559_v53, %v8543_v39  ;;  %v8573_v49 = vld [vmem:[#allocation8 + $0x460] sm:$0xff]  ;;  %v9598_v39 = vld [vmem:[#allocation10 + $0x188] sm:$0xff] }
0x205a   : > { %12501 = vmatprep.subr.bf16.mxu0 %v12500_v51  ;;  %12533 = vmatprep.subr.bf16.mxu1 %v12532_v62  ;;  %v8445_v51 = vld [vmem:[#allocation8 + $0x60] sm:$0xff]  ;;  %v12552_v62 = vpack.c.bf16 %v8462_v52, %v8446_v50  ;;  %v12568_v52 = vpack.c.bf16 %v8590_v42, %v8574_v25 }
0x205b   : > { %9034 = vmatmul.mubr.f32.gmra.mrb[108].mxu0 %v14955_v22  ;;  %9123 = vmatmul.mubr.f32.gmra.mrb[92].mxu1 %v14955_v22  ;;  %v8589_v50 = vld [vmem:[#allocation8 + $0x4e0] sm:$0xff] }
0x205c   : > { %12503 = vmatpush1.bf16.msra.mxu0 %v12502_v2  ;;  %12535 = vmatpush1.bf16.msra.mxu1 %v12534_v7  ;;  %v8463_v2 = vld [vmem:[#allocation8 + $0xf0] sm:$0xff]  ;;  %v8478_v7 = vld [vmem:[#allocation8 + $0x168] sm:$0xff]  ;;  %v9549_v42 = vld [vmem:[#allocation10] sm:$0xff] }
0x205d   : > { %12505 = vmatprep.subr.bf16.mxu0 %v12504_v10  ;;  %12537 = vmatprep.subr.bf16.mxu1 %v12536_v60  ;;  %v8496_v10 = vld [vmem:[#allocation8 + $0x1f8] sm:$0xff]  ;;  %v12554_v60 = vpack.c.bf16 %v8461_v63, %v8445_v51  ;;  %v12586_v1 = vpack.c.bf16 %v8463_v2, %v8447_v28  ;;  %v12556_v15 = vpack.c.bf16 %v8494_v4, %v8478_v7  ;;  %v8622_v51 = vld [vmem:[#allocation8 + $0x5e8] sm:$0xff]  ;;  %v8605_v2 = vld [vmem:[#allocation8 + $0x560] sm:$0xff] }
0x205e   : > { %9193 = vmatprep.mubr.f32.mxu0 %v13616_v0  ;;  %9282 = vmatprep.mubr.f32.mxu1 %v13616_v0  ;;  %v12570_v63 = vpack.c.bf16 %v8589_v50, %v8573_v49  ;;  %v8621_v7 = vld [vmem:[#allocation8 + $0x5e0] sm:$0xff]  ;;  %v9568_v49 = vld [vmem:[#allocation10 + $0x98] sm:$0xff]  ;;  %v9599_v50 = vld [vmem:[#allocation10 + $0x190] sm:$0xff] }
0x205f   : > { %v12574_v14 = vpack.c.bf16 %v8621_v7, %v8605_v2  ;;  %v9570_v2 = vld [vmem:[#allocation10 + $0xa8] sm:$0xff]  ;;  %v9601_v7 = vld [vmem:[#allocation10 + $0x1a0] sm:$0xff] }
0x2060   : > { %12507 = vmatpush1.bf16.msra.mxu0 %v12506_v5  ;;  %12539 = vmatpush1.bf16.msra.mxu1 %v12538_v17  ;;  %v12588_v5 = vpack.c.bf16 %v8496_v10, %v8480_v6  ;;  %v8510_v17 = vld [vmem:[#allocation8 + $0x268] sm:$0xff]  ;;  %v8607_v10 = vld [vmem:[#allocation8 + $0x570] sm:$0xff] }
0x2061   : > { %12509 = vmatprep.subr.bf16.mxu0 %v12508_v19  ;;  %12541 = vmatprep.subr.bf16.mxu1 %v12540_v20  ;;  %v8528_v19 = vld [vmem:[#allocation8 + $0x2f8] sm:$0xff]  ;;  %v12558_v20 = vpack.c.bf16 %v8493_v13, %v8477_v12  ;;  %v12560_v31 = vpack.c.bf16 %v8526_v45, %v8510_v17  ;;  %v8654_v12 = vld [vmem:[#allocation8 + $0x6e8] sm:$0xff]  ;;  %v8653_v17 = vld [vmem:[#allocation8 + $0x6e0] sm:$0xff] }
0x2062   : > { %v8640_v13 = vld [vmem:[#allocation8 + $0x678] sm:$0xff] }
0x2064   : > { %12511 = vmatpush1.bf16.msra.mxu0 %v12510_v32  ;;  %12543 = vmatpush1.bf16.msra.mxu1 %v12542_v34  ;;  %v12592_v32 = vpack.c.bf16 %v8528_v19, %v8512_v18  ;;  %v8542_v34 = vld [vmem:[#allocation8 + $0x368] sm:$0xff]  ;;  %v12608_v18 = vpack.c.bf16 %v8656_v9, %v8640_v13  ;;  %v8639_v19 = vld [vmem:[#allocation8 + $0x670] sm:$0xff]  ;;  %v9585_v9 = vld [vmem:[#allocation10 + $0x120] sm:$0xff] }
0x2065   : > { %12513 = vmatprep.subr.bf16.mxu0 %v12512_v33  ;;  %12545 = vmatprep.subr.bf16.mxu1 %v12544_v30  ;;  %v8560_v33 = vld [vmem:[#allocation8 + $0x3f8] sm:$0xff]  ;;  %v12562_v30 = vpack.c.bf16 %v8525_v16, %v8509_v3  ;;  %v8686_v3 = vld [vmem:[#allocation8 + $0x7e8] sm:$0xff] }
0x2066   : > { %v8672_v16 = vld [vmem:[#allocation8 + $0x778] sm:$0xff] }
0x2068   : > { %12515 = vmatpush1.bf16.msra.mxu0 %v12514_v27  ;;  %12547 = vmatpush1.bf16.msra.mxu1 %v12546_v40  ;;  %v12564_v27 = vpack.c.bf16 %v8558_v26, %v8542_v34  ;;  %v12596_v40 = vpack.c.bf16 %v8560_v33, %v8544_v35  ;;  %v8685_v34 = vld [vmem:[#allocation8 + $0x7e0] sm:$0xff]  ;;  %v12612_v35 = vpack.c.bf16 %v8688_v11, %v8672_v16  ;;  %v8671_v33 = vld [vmem:[#allocation8 + $0x770] sm:$0xff] }
0x2069   : > { %12517 = vmatprep.subr.bf16.mxu0 %v12516_v44  ;;  %12549 = vmatprep.subr.bf16.mxu1 %v12548_v46  ;;  %v8592_v44 = vld [vmem:[#allocation8 + $0x4f8] sm:$0xff]  ;;  %v12566_v46 = vpack.c.bf16 %v8557_v38, %v8541_v21  ;;  %v9566_v21 = vld [vmem:[#allocation10 + $0x88] sm:$0xff]  ;;  %v9597_v38 = vld [vmem:[#allocation10 + $0x180] sm:$0xff] }
0x206a   : > { %v12600_v56 = vpack.c.bf16 %v8592_v44, %v8576_v43  ;;  %v9550_v43 = vld [vmem:[#allocation10 + $0x8] sm:$0xff]  ;;  %v9581_v44 = vld [vmem:[#allocation10 + $0x100] sm:$0xff]  ;;  %v9587_v11 = vld [vmem:[#allocation10 + $0x130] sm:$0xff] }
0x206c   : > { %12519 = vmatpush1.bf16.msra.mxu0 %v12518_v58  ;;  %12551 = vmatpush1.bf16.msra.mxu1 %v12550_v61  ;;  %v8591_v58 = vld [vmem:[#allocation8 + $0x4f0] sm:$0xff]  ;;  %v8606_v61 = vld [vmem:[#allocation8 + $0x568] sm:$0xff] }
0x206d   : > { %12553 = vmatprep.subr.bf16.mxu0 %v12552_v62  ;;  %12585 = vmatprep.subr.bf16.mxu1 %v12584_v41  ;;  %v8608_v62 = vld [vmem:[#allocation8 + $0x578] sm:$0xff]  ;;  %v12602_v28 = vpack.c.bf16 %v8591_v58, %v8575_v57  ;;  %v12572_v4 = vpack.c.bf16 %v8622_v51, %v8606_v61  ;;  %v9551_v58 = vld [vmem:[#allocation10 + $0x10] sm:$0xff] }
0x206e   : > { %v8624_v41 = vld [vmem:[#allocation8 + $0x5f8] sm:$0xff] }
0x206f   : > { %9194 = vmatmul.mubr.f32.vlgmr.msra.gmra.mrb[110].mxu0 %v14932_v37  ;;  %9283 = vmatmul.mubr.f32.vlgmr.msra.gmra.mrb[94].mxu1 %v14932_v37  ;;  %v12604_v6 = vpack.c.bf16 %v8624_v41, %v8608_v62  ;;  %v9552_v61 = vld [vmem:[#allocation10 + $0x18] sm:$0xff]  ;;  %v9583_v41 = vld [vmem:[#allocation10 + $0x110] sm:$0xff] }
0x2070   : > { %12555 = vmatpush1.bf16.msra.mxu0 %v12554_v60  ;;  %12587 = vmatpush1.bf16.msra.mxu1 %v12586_v1  ;;  %v8623_v60 = vld [vmem:[#allocation8 + $0x5f0] sm:$0xff]  ;;  %v8638_v1 = vld [vmem:[#allocation8 + $0x668] sm:$0xff] }
0x2071   : > { %9199 = vmatprep.mubr.f32.mxu0 %v13616_v0  ;;  %9288 = vmatprep.mubr.f32.mxu1 %v13616_v0  ;;  %v12576_v45 = vpack.c.bf16 %v8654_v12, %v8638_v1  ;;  %v9554_v1 = vld [vmem:[#allocation10 + $0x28] sm:$0xff] }
0x2072   : > { %12557 = vmatprep.subr.bf16.mxu0 %v12556_v15  ;;  %12589 = vmatprep.subr.bf16.mxu1 %v12588_v5  ;;  %v12606_v15 = vpack.c.bf16 %v8623_v60, %v8607_v10  ;;  %v8637_v5 = vld [vmem:[#allocation8 + $0x660] sm:$0xff] }
0x2073   : > { %9200 = vmatmul.mubr.f32.gmra.mrb[112].mxu0 %v14937_v48  ;;  %9289 = vmatmul.mubr.f32.gmra.mrb[96].mxu1 %v14937_v48  ;;  %v12578_v29 = vpack.c.bf16 %v8653_v17, %v8637_v5  ;;  %v9553_v60 = vld [vmem:[#allocation10 + $0x20] sm:$0xff]  ;;  %v9572_v5 = vld [vmem:[#allocation10 + $0xb8] sm:$0xff]  ;;  %v9603_v17 = vld [vmem:[#allocation10 + $0x1b0] sm:$0xff] }
0x2074   : > { %12559 = vmatpush1.bf16.msra.mxu0 %v12558_v20  ;;  %12591 = vmatpush1.bf16.msra.mxu1 %v12590_v24  ;;  %v8655_v20 = vld [vmem:[#allocation8 + $0x6f0] sm:$0xff]  ;;  %v8670_v24 = vld [vmem:[#allocation8 + $0x768] sm:$0xff] }
0x2075   : > { %9205 = vmatprep.mubr.f32.mxu0 %v13616_v0  ;;  %9294 = vmatprep.mubr.f32.mxu1 %v13616_v0  ;;  %v12580_v26 = vpack.c.bf16 %v8686_v3, %v8670_v24  ;;  %v9556_v24 = vld [vmem:[#allocation10 + $0x38] sm:$0xff] }
0x2076   : > { %12561 = vmatprep.subr.bf16.mxu0 %v12560_v31  ;;  %12593 = vmatprep.subr.bf16.mxu1 %v12592_v32  ;;  %v12610_v31 = vpack.c.bf16 %v8655_v20, %v8639_v19  ;;  %v8669_v32 = vld [vmem:[#allocation8 + $0x760] sm:$0xff]  ;;  %v9555_v20 = vld [vmem:[#allocation10 + $0x30] sm:$0xff] }
0x2077   : > { %9206 = vmatmul.mubr.f32.gmra.mrb[114].mxu0 %v14946_v8  ;;  %9295 = vmatmul.mubr.f32.gmra.mrb[98].mxu1 %v14946_v8  ;;  %v12582_v53 = vpack.c.bf16 %v8685_v34, %v8669_v32  ;;  %v9574_v32 = vld [vmem:[#allocation10 + $0xc8] sm:$0xff]  ;;  %v9605_v34 = vld [vmem:[#allocation10 + $0x1c0] sm:$0xff] }
0x2078   : > { %12563 = vmatpush1.bf16.msra.mxu0 %v12562_v30  ;;  %12595 = vmatpush1.bf16.msra.mxu1 %v12594_v23  ;;  %v8687_v30 = vld [vmem:[#allocation8 + $0x7f0] sm:$0xff]  ;;  %v9565_v23 = vld [vmem:[#allocation10 + $0x80] sm:$0xff] }
0x2079   : > { %9211 = vmatprep.mubr.f32.mxu0 %v13616_v0  ;;  %9300 = vmatprep.mubr.f32.mxu1 %v13616_v0  ;;  %v12614_v25 = vpack.c.bf16 %v8687_v30, %v8671_v33  ;;  %v9557_v30 = vld [vmem:[#allocation10 + $0x40] sm:$0xff] }
0x207a   : > { %12565 = vmatprep.subr.bf16.mxu0 %v12564_v27  ;;  %12597 = vmatprep.subr.bf16.mxu1 %v12596_v40  ;;  %v12616_v27 = vpack.c.bf16 %v9566_v21, %v9565_v23  ;;  %v12648_v40 = vpack.c.bf16 %v9598_v39, %v9597_v38  ;;  %v9558_v23 = vld [vmem:[#allocation10 + $0x48] sm:$0xff]  ;;  %v9589_v39 = vld [vmem:[#allocation10 + $0x140] sm:$0xff] }
0x207b   : > { %9212 = vmatmul.mubr.f32.gmra.mrb[116].mxu0 %v14955_v22  ;;  %9301 = vmatmul.mubr.f32.gmra.mrb[100].mxu1 %v14955_v22 }
0x207c   : > { %12567 = vmatpush1.bf16.msra.mxu0 %v12566_v46  ;;  %12599 = vmatpush1.bf16.msra.mxu1 %v12598_v47  ;;  %v9582_v46 = vld [vmem:[#allocation10 + $0x108] sm:$0xff]  ;;  %v9567_v47 = vld [vmem:[#allocation10 + $0x90] sm:$0xff] }
0x207d   : > { %12569 = vmatprep.subr.bf16.mxu0 %v12568_v52  ;;  %12601 = vmatprep.subr.bf16.mxu1 %v12600_v56  ;;  %v9600_v52 = vld [vmem:[#allocation10 + $0x198] sm:$0xff]  ;;  %v12618_v56 = vpack.c.bf16 %v9550_v43, %v9549_v42  ;;  %v12650_v57 = vpack.c.bf16 %v9582_v46, %v9581_v44  ;;  %v12620_v51 = vpack.c.bf16 %v9568_v49, %v9567_v47  ;;  %v9559_v46 = vld [vmem:[#allocation10 + $0x50] sm:$0xff] }
0x207e   : > { %9371 = vmatprep.mubr.f32.mxu0 %v13616_v0  ;;  %9460 = vmatprep.mubr.f32.mxu1 %v13616_v0  ;;  %v12652_v62 = vpack.c.bf16 %v9600_v52, %v9599_v50  ;;  %v9608_v42 = vld [vmem:[#allocation10 + $0x1d8] sm:$0xff]  ;;  %v12634_v43 = vpack.c.bf16 %v9558_v23, %v9557_v30  ;;  %v9591_v52 = vld [vmem:[#allocation10 + $0x150] sm:$0xff] }
0x207f   : > { %v9560_v47 = vld [vmem:[#allocation10 + $0x58] sm:$0xff] }
0x2080   : > { %12571 = vmatpush1.bf16.msra.mxu0 %v12570_v63  ;;  %12603 = vmatpush1.bf16.msra.mxu1 %v12602_v28  ;;  %v9584_v63 = vld [vmem:[#allocation10 + $0x118] sm:$0xff]  ;;  %v9569_v28 = vld [vmem:[#allocation10 + $0xa0] sm:$0xff] }
0x2081   : > { %12573 = vmatprep.subr.bf16.mxu0 %v12572_v4  ;;  %12605 = vmatprep.subr.bf16.mxu1 %v12604_v6  ;;  %v9602_v4 = vld [vmem:[#allocation10 + $0x1a8] sm:$0xff]  ;;  %v12622_v6 = vpack.c.bf16 %v9552_v61, %v9551_v58  ;;  %v12654_v10 = vpack.c.bf16 %v9584_v63, %v9583_v41  ;;  %v12624_v12 = vpack.c.bf16 %v9570_v2, %v9569_v28  ;;  %v9609_v61 = vld [vmem:[#allocation10 + $0x1e0] sm:$0xff] }
0x2082   : > { %v12656_v13 = vpack.c.bf16 %v9602_v4, %v9601_v7  ;;  %v9578_v58 = vld [vmem:[#allocation10 + $0xe8] sm:$0xff]  ;;  %v9561_v63 = vld [vmem:[#allocation10 + $0x60] sm:$0xff] }
0x2083   : > { %v9562_v28 = vld [vmem:[#allocation10 + $0x68] sm:$0xff]  ;;  %v9593_v4 = vld [vmem:[#allocation10 + $0x160] sm:$0xff] }
0x2084   : > { %12575 = vmatpush1.bf16.msra.mxu0 %v12574_v14  ;;  %12607 = vmatpush1.bf16.msra.mxu1 %v12606_v15  ;;  %v9586_v14 = vld [vmem:[#allocation10 + $0x128] sm:$0xff]  ;;  %v9571_v15 = vld [vmem:[#allocation10 + $0xb0] sm:$0xff] }
0x2085   : > { %12577 = vmatprep.subr.bf16.mxu0 %v12576_v45  ;;  %12609 = vmatprep.subr.bf16.mxu1 %v12608_v18  ;;  %v9604_v45 = vld [vmem:[#allocation10 + $0x1b8] sm:$0xff]  ;;  %v12626_v18 = vpack.c.bf16 %v9554_v1, %v9553_v60  ;;  %v12658_v19 = vpack.c.bf16 %v9586_v14, %v9585_v9  ;;  %v12628_v3 = vpack.c.bf16 %v9572_v5, %v9571_v15  ;;  %v9611_v1 = vld [vmem:[#allocation10 + $0x1f0] sm:$0xff] }
0x2086   : > { %v12660_v16 = vpack.c.bf16 %v9604_v45, %v9603_v17  ;;  %v9580_v60 = vld [vmem:[#allocation10 + $0xf8] sm:$0xff]  ;;  %v9563_v14 = vld [vmem:[#allocation10 + $0x70] sm:$0xff] }
0x2087   : > { %v9564_v15 = vld [vmem:[#allocation10 + $0x78] sm:$0xff]  ;;  %v9595_v45 = vld [vmem:[#allocation10 + $0x170] sm:$0xff] }
0x2088   : > { %12579 = vmatpush1.bf16.msra.mxu0 %v12578_v29  ;;  %12611 = vmatpush1.bf16.msra.mxu1 %v12610_v31  ;;  %v9588_v29 = vld [vmem:[#allocation10 + $0x138] sm:$0xff]  ;;  %v9573_v31 = vld [vmem:[#allocation10 + $0xc0] sm:$0xff] }
0x2089   : > { %12581 = vmatprep.subr.bf16.mxu0 %v12580_v26  ;;  %12613 = vmatprep.subr.bf16.mxu1 %v12612_v35  ;;  %v9606_v26 = vld [vmem:[#allocation10 + $0x1c8] sm:$0xff]  ;;  %v12630_v35 = vpack.c.bf16 %v9556_v24, %v9555_v20  ;;  %v12662_v33 = vpack.c.bf16 %v9588_v29, %v9587_v11  ;;  %v12632_v21 = vpack.c.bf16 %v9574_v32, %v9573_v31  ;;  %v9661_v24 = vld [vmem:[#allocation10 + $0x380] sm:$0xff]  ;;  %v8703_v32 = vsub.s32 2, %v14074_v54 }
0x208a   : > { %v12664_v38 = vpack.c.bf16 %v9606_v26, %v9605_v34  ;;  %v9630_v20 = vld [vmem:[#allocation10 + $0x288] sm:$0xff]  ;;  %v15013_v34 = vld [vmem:[%s15524_s8] sm:$0xff]  ;;  %v8707_v26 = vsub.s32 3, %v14074_v54 }
0x208b   : > { %v15027_v30 = vrot.slane %v15013_v34, %v14085_v59 }
0x208c   : > { %12583 = vmatpush1.bf16.msra.mxu0 %v12582_v53  ;;  %12615 = vmatpush1.bf16.msra.mxu1 %v12614_v25  ;;  %v9590_v53 = vld [vmem:[#allocation10 + $0x148] sm:$0xff]  ;;  %v9575_v25 = vld [vmem:[#allocation10 + $0xd0] sm:$0xff]  ;;  %v15032_v23 = vrot.slane %v15013_v34, %v8707_v26 }
0x208d   : > { %12617 = vmatprep.subr.bf16.mxu0 %v12616_v27  ;;  %12649 = vmatprep.subr.bf16.mxu1 %v12648_v40  ;;  %v9576_v27 = vld [vmem:[#allocation10 + $0xd8] sm:$0xff]  ;;  %v9607_v40 = vld [vmem:[#allocation10 + $0x1d0] sm:$0xff]  ;;  %v12666_v44 = vpack.c.bf16 %v9590_v53, %v9589_v39 }
0x208e   : > { %v12636_v49 = vpack.c.bf16 %v9576_v27, %v9575_v25  ;;  %v12668_v50 = vpack.c.bf16 %v9608_v42, %v9607_v40  ;;  %v9645_v25 = vld [vmem:[#allocation10 + $0x300] sm:$0xff]  ;;  %v9646_v27 = vld [vmem:[#allocation10 + $0x308] sm:$0xff]  ;;  %v9631_v40 = vld [vmem:[#allocation10 + $0x290] sm:$0xff] }
0x208f   : > { %9372 = vmatmul.mubr.f32.vlgmr.msra.gmra.mrb[118].mxu0 %v14932_v37  ;;  %9461 = vmatmul.mubr.f32.vlgmr.msra.gmra.mrb[102].mxu1 %v14932_v37 }
0x2090   : > { %9377 = vmatprep.mubr.f32.mxu0 %v13616_v0  ;;  %9466 = vmatprep.mubr.f32.mxu1 %v13616_v0 }
0x2091   : > { %12619 = vmatpush3.bf16.msra.mxu0 %v12618_v56  ;;  %12651 = vmatpush3.bf16.msra.mxu1 %v12650_v57  ;;  %v9592_v56 = vld [vmem:[#allocation10 + $0x158] sm:$0xff]  ;;  %v9577_v57 = vld [vmem:[#allocation10 + $0xe0] sm:$0xff] }
0x2092   : > { %12621 = vmatprep.subr.bf16.mxu0 %v12620_v51  ;;  %12653 = vmatprep.subr.bf16.mxu1 %v12652_v62  ;;  %v9610_v51 = vld [vmem:[#allocation10 + $0x1e8] sm:$0xff]  ;;  %v12638_v62 = vpack.c.bf16 %v9560_v47, %v9559_v46  ;;  %v12670_v41 = vpack.c.bf16 %v9592_v56, %v9591_v52  ;;  %v12640_v2 = vpack.c.bf16 %v9578_v58, %v9577_v57  ;;  %v9632_v47 = vld [vmem:[#allocation10 + $0x298] sm:$0xff]  ;;  %v15038_v57 = vld [vmem:[#allocation10 + $0x210] sm:$0xff] }
0x2093   : > { %9378 = vmatmul.mubr.f32.gmra.mrb[120].mxu0 %v14937_v48  ;;  %9467 = vmatmul.mubr.f32.gmra.mrb[104].mxu1 %v14937_v48  ;;  %v12672_v7 = vpack.c.bf16 %v9610_v51, %v9609_v61  ;;  %v12714_v61 = vpack.c.bf16 %v9646_v27, %v9645_v25  ;;  %v9616_v51 = vld [vmem:[#allocation10 + $0x218] sm:$0xff]  ;;  %v9635_v25 = vld [vmem:[#allocation10 + $0x2b0] sm:$0xff] }
0x2094   : > { %9383 = vmatprep.mubr.f32.mxu0 %v13616_v0  ;;  %9472 = vmatprep.mubr.f32.mxu1 %v13616_v0  ;;  %v9636_v27 = vld [vmem:[#allocation10 + $0x2b8] sm:$0xff] }
0x2095   : > { %12623 = vmatpush3.bf16.msra.mxu0 %v12622_v6  ;;  %12655 = vmatpush3.bf16.msra.mxu1 %v12654_v10  ;;  %v9594_v6 = vld [vmem:[#allocation10 + $0x168] sm:$0xff]  ;;  %v9579_v10 = vld [vmem:[#allocation10 + $0xf0] sm:$0xff] }
0x2096   : > { %12625 = vmatprep.subr.bf16.mxu0 %v12624_v12  ;;  %12657 = vmatprep.subr.bf16.mxu1 %v12656_v13  ;;  %v9612_v12 = vld [vmem:[#allocation10 + $0x1f8] sm:$0xff]  ;;  %v12642_v13 = vpack.c.bf16 %v9562_v28, %v9561_v63  ;;  %v12674_v9 = vpack.c.bf16 %v9594_v6, %v9593_v4  ;;  %v12644_v5 = vpack.c.bf16 %v9580_v60, %v9579_v10  ;;  %v15040_v10 = vld [vmem:[#allocation10 + $0x2a0] sm:$0xff]  ;;  %v15042_v60 = vld [vmem:[#allocation10 + $0x2a8] sm:$0xff] }
0x2097   : > { %9384 = vmatmul.mubr.f32.gmra.mrb[122].mxu0 %v14946_v8  ;;  %9473 = vmatmul.mubr.f32.gmra.mrb[106].mxu1 %v14946_v8  ;;  %v12676_v17 = vpack.c.bf16 %v9612_v12, %v9611_v1  ;;  %v12684_v4 = vpack.c.bf16 %v9632_v47, %v9631_v40 }
0x2098   : > { %9389 = vmatprep.mubr.f32.mxu0 %v13616_v0  ;;  %9478 = vmatprep.mubr.f32.mxu1 %v13616_v0 }
0x2099   : > { %12627 = vmatpush3.bf16.msra.mxu0 %v12626_v18  ;;  %12659 = vmatpush3.bf16.msra.mxu1 %v12658_v19  ;;  %v9596_v18 = vld [vmem:[#allocation10 + $0x178] sm:$0xff]  ;;  %v9629_v19 = vld [vmem:[#allocation10 + $0x280] sm:$0xff] }
0x209a   : > { %12629 = vmatprep.subr.bf16.mxu0 %v12628_v3  ;;  %12661 = vmatprep.subr.bf16.mxu1 %v12660_v16  ;;  %v9662_v3 = vld [vmem:[#allocation10 + $0x388] sm:$0xff]  ;;  %v12646_v16 = vpack.c.bf16 %v9564_v15, %v9563_v14  ;;  %v12678_v11 = vpack.c.bf16 %v9596_v18, %v9595_v45  ;;  %v12680_v29 = vpack.c.bf16 %v9630_v20, %v9629_v19  ;;  %v15048_v19 = vld [vmem:[#allocation10 + $0x220] sm:$0xff] }
0x209b   : > { %9390 = vmatmul.mubr.f32.gmra.mrb[124].mxu0 %v14955_v22  ;;  %9479 = vmatmul.mubr.f32.gmra.mrb[108].mxu1 %v14955_v22  ;;  %v12712_v31 = vpack.c.bf16 %v9662_v3, %v9661_v24  ;;  %v12686_v20 = vpack.c.bf16 %v9616_v51, %v15038_v57  ;;  %v15051_v3 = vld [vmem:[#allocation10 + $0x228] sm:$0xff] }
0x209c   : > { %v12690_v57 = vpack.c.bf16 %v15051_v3, %v15048_v19  ;;  %v9622_v3 = vld [vmem:[#allocation10 + $0x248] sm:$0xff] }
0x209d   : > { %12631 = vmatpush3.bf16.msra.mxu0 %v12630_v35  ;;  %12663 = vmatpush3.bf16.msra.mxu1 %v12662_v33  ;;  %v15018_v35 = vrot.slane %v15013_v34, %v14081_v55  ;;  %v15023_v33 = vrot.slane %v15013_v34, %v8703_v32 }
0x209e   : > { %12633 = vmatprep.subr.bf16.mxu0 %v12632_v21  ;;  %12665 = vmatprep.subr.bf16.mxu1 %v12664_v38  ;;  %v9613_v21 = vld [vmem:[#allocation10 + $0x200] sm:$0xff]  ;;  %v9614_v38 = vld [vmem:[#allocation10 + $0x208] sm:$0xff] }
0x209f   : > { %v12682_v58 = vpack.c.bf16 %v9614_v38, %v9613_v21 }
0x20a1   : > { %12635 = vmatpush3.bf16.msra.mxu0 %v12634_v43  ;;  %12667 = vmatpush3.bf16.msra.mxu1 %v12666_v44 }
0x20a2   : > { %12637 = vmatprep.subr.bf16.mxu0 %v12636_v49  ;;  %12669 = vmatprep.subr.bf16.mxu1 %v12668_v50  ;;  %v9663_v49 = vld [vmem:[#allocation10 + $0x390] sm:$0xff]  ;;  %v9664_v50 = vld [vmem:[#allocation10 + $0x398] sm:$0xff] }
0x20a3   : > { %v12716_v6 = vpack.c.bf16 %v9664_v50, %v9663_v49  ;;  %v9667_v49 = vld [vmem:[#allocation10 + $0x3b0] sm:$0xff]  ;;  %v9668_v50 = vld [vmem:[#allocation10 + $0x3b8] sm:$0xff] }
0x20a5   : > { %12639 = vmatpush3.bf16.msra.mxu0 %v12638_v62  ;;  %12671 = vmatpush3.bf16.msra.mxu1 %v12670_v41  ;;  %v9647_v62 = vld [vmem:[#allocation10 + $0x310] sm:$0xff]  ;;  %v9648_v41 = vld [vmem:[#allocation10 + $0x318] sm:$0xff] }
0x20a6   : > { %12641 = vmatprep.subr.bf16.mxu0 %v12640_v2  ;;  %12673 = vmatprep.subr.bf16.mxu1 %v12672_v7  ;;  %v12718_v24 = vpack.c.bf16 %v9648_v41, %v9647_v62 }
0x20a9   : > { %12643 = vmatpush3.bf16.msra.mxu0 %v12642_v13  ;;  %12675 = vmatpush3.bf16.msra.mxu1 %v12674_v9 }
0x20aa   : > { %12645 = vmatprep.subr.bf16.mxu0 %v12644_v5  ;;  %12677 = vmatprep.subr.bf16.mxu1 %v12676_v17  ;;  %v9665_v5 = vld [vmem:[#allocation10 + $0x3a0] sm:$0xff]  ;;  %v9666_v17 = vld [vmem:[#allocation10 + $0x3a8] sm:$0xff] }
0x20ad   : > { %12647 = vmatpush3.bf16.msra.mxu0 %v12646_v16  ;;  %12679 = vmatpush3.bf16.msra.mxu1 %v12678_v11  ;;  %v15053_v16 = vld [vmem:[#allocation10 + $0x320] sm:$0xff]  ;;  %v9650_v11 = vld [vmem:[#allocation10 + $0x328] sm:$0xff] }
0x20ae   : > { %12681 = vmatprep.subr.bf16.mxu0 %v12680_v29  ;;  %12713 = vmatprep.subr.bf16.mxu1 %v12712_v31 }
0x2102   : > { %v8839_v39 = vpop.f32.mrb[94].mxu0  ;;  %v8928_v53 = vpop.f32.mrb[78].mxu1 }
0x2103   : > { %v8840_v42 = vadd.f32 %v8839_v39, %v15018_v35  ;;  %v8929_v43 = vadd.f32 %v8928_v53, %v15023_v33  ;;  %v8841_v44 = vpop.f32.mrb[95].mxu0  ;;  %v8930_v46 = vpop.f32.mrb[79].mxu1  ;;  %v12688_v39 = vpack.c.bf16 %v15042_v60, %v15040_v10  ;;  %v12720_v53 = vpack.c.bf16 %v9666_v17, %v9665_v5  ;;  %v9638_v17 = vld [vmem:[#allocation10 + $0x2c8] sm:$0xff] }
0x2104   : > { %v8842_v52 = vadd.f32 %v8841_v44, %v15027_v30  ;;  %v8931_v56 = vadd.f32 %v8930_v46, %v15032_v23 }
0x2105   : > { %v9485_v1 = vmax.f32 %v8840_v42, 0.0  ;;  %v9487_v12 = vmax.f32 %v8929_v43, 0.0 }
0x2106   : > { %v9486_v63 = vmax.f32 %v8842_v52, 0.0  ;;  %v9488_v28 = vmax.f32 %v8931_v56, 0.0  ;;  %v8845_v2 = vpop.f32.mrb[96].mxu0  ;;  %v8934_v7 = vpop.f32.mrb[80].mxu1 }
0x2107   : > { %v8846_v13 = vadd.f32 %v8845_v2, %v15018_v35  ;;  %v8935_v9 = vadd.f32 %v8934_v7, %v15023_v33  ;;  %v8847_v14 = vpop.f32.mrb[97].mxu0  ;;  %v8936_v15 = vpop.f32.mrb[81].mxu1  ;;  %v12724_v2 = vpack.c.bf16 %v9668_v50, %v9667_v49  ;;  %v9620_v7 = vld [vmem:[#allocation10 + $0x238] sm:$0xff]  ;;  %v9641_v49 = vld [vmem:[#allocation10 + $0x2e0] sm:$0xff]  ;;  %v9642_v50 = vld [vmem:[#allocation10 + $0x2e8] sm:$0xff] }
0x2108   : > { %v8848_v45 = vadd.f32 %v8847_v14, %v15027_v30  ;;  %v8937_v18 = vadd.f32 %v8936_v15, %v15032_v23  ;;  %9876 = vmatprep.mubr.f32.mxu0 %v9486_v63  ;;  %9961 = vmatprep.mubr.f32.mxu1 %v9488_v28  ;;  %v12692_v28 = vpack.c.bf16 %v9636_v27, %v9635_v25  ;;  %v9637_v14 = vld [vmem:[#allocation10 + $0x2c0] sm:$0xff] }
0x2109   : > { %9877 = vmatmul.mubr.f32.vlgmr.msra.gmra.mrb[126].mxu0 %v9485_v1  ;;  %9962 = vmatmul.mubr.f32.vlgmr.msra.gmra.mrb[110].mxu1 %v9487_v12  ;;  %v9501_v40 = vmax.f32 %v8846_v13, 0.0  ;;  %v9503_v42 = vmax.f32 %v8935_v9, 0.0  ;;  %v9652_v9 = vld [vmem:[#allocation10 + $0x338] sm:$0xff] }
0x210a   : > { %v9502_v29 = vmax.f32 %v8848_v45, 0.0  ;;  %v9504_v31 = vmax.f32 %v8937_v18, 0.0  ;;  %12683 = vmatpush3.bf16.msra.mxu0 %v12682_v58  ;;  %12715 = vmatpush3.bf16.msra.mxu1 %v12714_v61  ;;  %v8851_v21 = vpop.f32.mrb[98].mxu0  ;;  %v8940_v38 = vpop.f32.mrb[82].mxu1  ;;  %v12722_v58 = vpack.c.bf16 %v9650_v11, %v15053_v16  ;;  %v9619_v61 = vld [vmem:[#allocation10 + $0x230] sm:$0xff]  ;;  %v9669_v45 = vld [vmem:[#allocation10 + $0x3c0] sm:$0xff] }
0x210b   : > { %v8852_v43 = vadd.f32 %v8851_v21, %v15018_v35  ;;  %v8941_v44 = vadd.f32 %v8940_v38, %v15023_v33  ;;  %v8853_v46 = vpop.f32.mrb[99].mxu0  ;;  %v8942_v47 = vpop.f32.mrb[83].mxu1  ;;  %12685 = vmatprep.subr.bf16.mxu0 %v12684_v4  ;;  %12717 = vmatprep.subr.bf16.mxu1 %v12716_v6  ;;  %v9651_v4 = vld [vmem:[#allocation10 + $0x330] sm:$0xff]  ;;  %v9670_v18 = vld [vmem:[#allocation10 + $0x3c8] sm:$0xff]  ;;  %v9640_v38 = vld [vmem:[#allocation10 + $0x2d8] sm:$0xff] }
0x210c   : > { %v8854_v52 = vadd.f32 %v8853_v46, %v15027_v30  ;;  %v8943_v56 = vadd.f32 %v8942_v47, %v15032_v23  ;;  %9881 = vmatprep.mubr.f32.mxu0 %v9502_v29  ;;  %9966 = vmatprep.mubr.f32.mxu1 %v9504_v31  ;;  %v9653_v29 = vld [vmem:[#allocation10 + $0x340] sm:$0xff]  ;;  %v9654_v31 = vld [vmem:[#allocation10 + $0x348] sm:$0xff]  ;;  %v9639_v21 = vld [vmem:[#allocation10 + $0x2d0] sm:$0xff] }
0x210d   : > { %9882 = vmatmul.mubr.f32.gmra.mrb[128].mxu0 %v9501_v40  ;;  %9967 = vmatmul.mubr.f32.gmra.mrb[112].mxu1 %v9503_v42  ;;  %v9517_v6 = vmax.f32 %v8852_v43, 0.0  ;;  %v9519_v10 = vmax.f32 %v8941_v44, 0.0  ;;  %v12730_v27 = vpack.c.bf16 %v9654_v31, %v9653_v29  ;;  %v9623_v40 = vld [vmem:[#allocation10 + $0x250] sm:$0xff]  ;;  %v9624_v42 = vld [vmem:[#allocation10 + $0x258] sm:$0xff]  ;;  %v12700_v43 = vpack.c.bf16 %v9640_v38, %v9639_v21 }
0x210e   : > { %v9518_v51 = vmax.f32 %v8854_v52, 0.0  ;;  %v9520_v62 = vmax.f32 %v8943_v56, 0.0  ;;  %12687 = vmatpush3.bf16.msra.mxu0 %v12686_v20  ;;  %12719 = vmatpush3.bf16.msra.mxu1 %v12718_v24  ;;  %v8857_v41 = vpop.f32.mrb[100].mxu0  ;;  %v8946_v63 = vpop.f32.mrb[84].mxu1  ;;  %v12726_v20 = vpack.c.bf16 %v9652_v9, %v9651_v4  ;;  %v9621_v24 = vld [vmem:[#allocation10 + $0x240] sm:$0xff]  ;;  %v9655_v46 = vld [vmem:[#allocation10 + $0x350] sm:$0xff] }
0x210f   : > { %v8858_v60 = vadd.f32 %v8857_v41, %v15018_v35  ;;  %v8947_v1 = vadd.f32 %v8946_v63, %v15023_v33  ;;  %v8859_v12 = vpop.f32.mrb[101].mxu0  ;;  %v8948_v13 = vpop.f32.mrb[85].mxu1  ;;  %12689 = vmatprep.subr.bf16.mxu0 %v12688_v39  ;;  %12721 = vmatprep.subr.bf16.mxu1 %v12720_v53  ;;  %v12694_v33 = vpack.c.bf16 %v9620_v7, %v9619_v61  ;;  %v9671_v39 = vld [vmem:[#allocation10 + $0x3d0] sm:$0xff]  ;;  %v9672_v53 = vld [vmem:[#allocation10 + $0x3d8] sm:$0xff]  ;;  %v9673_v52 = vld [vmem:[#allocation10 + $0x3e0] sm:$0xff]  ;;  %v8711_v61 = vsub.s32 4, %v14074_v54 }
0x2110   : > { %v8860_v15 = vadd.f32 %v8859_v12, %v15027_v30  ;;  %v8949_v5 = vadd.f32 %v8948_v13, %v15032_v23  ;;  %9886 = vmatprep.mubr.f32.mxu0 %v9518_v51  ;;  %9971 = vmatprep.mubr.f32.mxu1 %v9520_v62  ;;  %v12696_v30 = vpack.c.bf16 %v9638_v17, %v9637_v14  ;;  %v9656_v47 = vld [vmem:[#allocation10 + $0x358] sm:$0xff]  ;;  %v9674_v56 = vld [vmem:[#allocation10 + $0x3e8] sm:$0xff]  ;;  %v9625_v51 = vld [vmem:[#allocation10 + $0x260] sm:$0xff] }
0x2111   : > { %9887 = vmatmul.mubr.f32.gmra.mrb[130].mxu0 %v9517_v6  ;;  %9972 = vmatmul.mubr.f32.gmra.mrb[114].mxu1 %v9519_v10  ;;  %v9533_v16 = vmax.f32 %v8858_v60, 0.0  ;;  %v9535_v11 = vmax.f32 %v8947_v1, 0.0  ;;  %v12728_v23 = vpack.c.bf16 %v9670_v18, %v9669_v45  ;;  %v12698_v25 = vpack.c.bf16 %v9622_v3, %v9621_v24  ;;  %v9626_v62 = vld [vmem:[#allocation10 + $0x268] sm:$0xff]  ;;  %v9643_v4 = vld [vmem:[#allocation10 + $0x2f0] sm:$0xff]  ;;  %v9644_v60 = vld [vmem:[#allocation10 + $0x2f8] sm:$0xff] }
0x2112   : > { %v9534_v35 = vmax.f32 %v8860_v15, 0.0  ;;  %v9536_v19 = vmax.f32 %v8949_v5, 0.0  ;;  %12691 = vmatpush3.bf16.msra.mxu0 %v12690_v57  ;;  %12723 = vmatpush3.bf16.msra.mxu1 %v12722_v58  ;;  %v12732_v44 = vpack.c.bf16 %v9672_v53, %v9671_v39  ;;  %v12702_v57 = vpack.c.bf16 %v9624_v42, %v9623_v40  ;;  %v9658_v7 = vld [vmem:[#allocation10 + $0x368] sm:$0xff]  ;;  %v9675_v1 = vld [vmem:[#allocation10 + $0x3f0] sm:$0xff]  ;;  %v9676_v12 = vld [vmem:[#allocation10 + $0x3f8] sm:$0xff] }
0x2113   : > { %12693 = vmatprep.subr.bf16.mxu0 %v12692_v28  ;;  %12725 = vmatprep.subr.bf16.mxu1 %v12724_v2  ;;  %v12734_v58 = vpack.c.bf16 %v9656_v47, %v9655_v46  ;;  %v12704_v41 = vpack.c.bf16 %v9642_v50, %v9641_v49  ;;  %v12736_v63 = vpack.c.bf16 %v9674_v56, %v9673_v52  ;;  %v8719_v28 = vsub.s32 6, %v14074_v54  ;;  %v9657_v2 = vld [vmem:[#allocation10 + $0x360] sm:$0xff]  ;;  %v9627_v15 = vld [vmem:[#allocation10 + $0x270] sm:$0xff]  ;;  %v9628_v5 = vld [vmem:[#allocation10 + $0x278] sm:$0xff] }
0x2114   : > { %9891 = vmatprep.mubr.f32.mxu0 %v9534_v35  ;;  %9976 = vmatprep.mubr.f32.mxu1 %v9536_v19  ;;  %v8715_v6 = vsub.s32 5, %v14074_v54  ;;  %v8723_v10 = vsub.s32 7, %v14074_v54  ;;  %v15075_v13 = vrot.slane %v15013_v34, %v8711_v61  ;;  %v12706_v9 = vpack.c.bf16 %v9626_v62, %v9625_v51  ;;  %v9659_v17 = vld [vmem:[#allocation10 + $0x370] sm:$0xff]  ;;  %v9660_v19 = vld [vmem:[#allocation10 + $0x378] sm:$0xff]  ;;  %v9709_v53 = vld [vmem:[#allocation10 + $0x500] sm:$0xff] }
0x2115   : > { %9892 = vmatmul.mubr.f32.gmra.mrb[132].mxu0 %v9533_v16  ;;  %9977 = vmatmul.mubr.f32.gmra.mrb[116].mxu1 %v9535_v11  ;;  %v12738_v14 = vpack.c.bf16 %v9658_v7, %v9657_v2  ;;  %v15080_v45 = vrot.slane %v15013_v34, %v8719_v28  ;;  %v12708_v18 = vpack.c.bf16 %v9644_v60, %v9643_v4  ;;  %v9725_v16 = vld [vmem:[#allocation10 + $0x580] sm:$0xff]  ;;  %v9726_v11 = vld [vmem:[#allocation10 + $0x588] sm:$0xff]  ;;  %v9696_v46 = vld [vmem:[#allocation10 + $0x498] sm:$0xff] }
0x2116   : > { %12695 = vmatpush3.bf16.msra.mxu0 %v12694_v33  ;;  %12727 = vmatpush3.bf16.msra.mxu1 %v12726_v20  ;;  %v12740_v35 = vpack.c.bf16 %v9676_v12, %v9675_v1  ;;  %v9693_v33 = vld [vmem:[#allocation10 + $0x480] sm:$0xff]  ;;  %v9694_v20 = vld [vmem:[#allocation10 + $0x488] sm:$0xff]  ;;  %v15085_v24 = vrot.slane %v15013_v34, %v8715_v6  ;;  %v15090_v3 = vrot.slane %v15013_v34, %v8723_v10  ;;  %v9727_v47 = vld [vmem:[#allocation10 + $0x590] sm:$0xff] }
0x2117   : > { %12697 = vmatprep.subr.bf16.mxu0 %v12696_v30  ;;  %12729 = vmatprep.subr.bf16.mxu1 %v12728_v23  ;;  %v15092_v30 = vld [vmem:[#allocation10 + $0x400] sm:$0xff]  ;;  %v15094_v23 = vld [vmem:[#allocation10 + $0x408] sm:$0xff]  ;;  %v12710_v21 = vpack.c.bf16 %v9628_v5, %v9627_v15  ;;  %v12742_v38 = vpack.c.bf16 %v9660_v19, %v9659_v17  ;;  %v12744_v39 = vpack.c.bf16 %v9694_v20, %v9693_v33  ;;  %v9728_v49 = vld [vmem:[#allocation10 + $0x598] sm:$0xff] }
0x2118   : > { %v15102_v56 = vld [vmem:[#allocation10 + $0x410] sm:$0xff]  ;;  %v15106_v51 = vld [vmem:[#allocation10 + $0x418] sm:$0xff]  ;;  %v12780_v1 = vpack.c.bf16 %v9728_v49, %v9727_v47  ;;  %v15113_v12 = vld [vmem:[#allocation10 + $0x4a0] sm:$0xff] }
0x2119   : > { %v15108_v62 = vld [vmem:[#allocation10 + $0x510] sm:$0xff]  ;;  %v9729_v19 = vld [vmem:[#allocation10 + $0x5a0] sm:$0xff]  ;;  %v9730_v33 = vld [vmem:[#allocation10 + $0x5a8] sm:$0xff] }
0x211a   : > { %12699 = vmatpush3.bf16.msra.mxu0 %v12698_v25  ;;  %12731 = vmatpush3.bf16.msra.mxu1 %v12730_v27  ;;  %v9710_v25 = vld [vmem:[#allocation10 + $0x508] sm:$0xff]  ;;  %v15096_v27 = vld [vmem:[#allocation10 + $0x490] sm:$0xff] }
0x211b   : > { %12701 = vmatprep.subr.bf16.mxu0 %v12700_v43  ;;  %12733 = vmatprep.subr.bf16.mxu1 %v12732_v44  ;;  %v12776_v44 = vpack.c.bf16 %v9726_v11, %v9725_v16  ;;  %v12748_v60 = vpack.c.bf16 %v9696_v46, %v15096_v27  ;;  %v15121_v11 = vld [vmem:[#allocation10 + $0x420] sm:$0xff] }
0x211e   : > { %12703 = vmatpush3.bf16.msra.mxu0 %v12702_v57  ;;  %12735 = vmatpush3.bf16.msra.mxu1 %v12734_v58  ;;  %v12746_v57 = vpack.c.bf16 %v15094_v23, %v15092_v30  ;;  %v12778_v58 = vpack.c.bf16 %v9710_v25, %v9709_v53  ;;  %v12750_v30 = vpack.c.bf16 %v15106_v51, %v15102_v56  ;;  %v9732_v56 = vld [vmem:[#allocation10 + $0x5b8] sm:$0xff] }
0x211f   : > { %12705 = vmatprep.subr.bf16.mxu0 %v12704_v41  ;;  %12737 = vmatprep.subr.bf16.mxu1 %v12736_v63  ;;  %v15110_v41 = vld [vmem:[#allocation10 + $0x518] sm:$0xff] }
0x2120   : > { %v12782_v23 = vpack.c.bf16 %v15110_v41, %v15108_v62  ;;  %v9683_v41 = vld [vmem:[#allocation10 + $0x430] sm:$0xff] }
0x2122   : > { %v9017_v29 = vpop.f32.mrb[102].mxu0  ;;  %v9106_v31 = vpop.f32.mrb[86].mxu1  ;;  %12707 = vmatpush3.bf16.msra.mxu0 %v12706_v9  ;;  %12739 = vmatpush3.bf16.msra.mxu1 %v12738_v14  ;;  %v15115_v9 = vld [vmem:[#allocation10 + $0x4a8] sm:$0xff] }
0x2123   : > { %v9018_v34 = vadd.f32 %v9017_v29, %v15075_v13  ;;  %v9107_v40 = vadd.f32 %v9106_v31, %v15080_v45  ;;  %v9019_v42 = vpop.f32.mrb[103].mxu0  ;;  %v9108_v43 = vpop.f32.mrb[87].mxu1  ;;  %12709 = vmatprep.subr.bf16.mxu0 %v12708_v18  ;;  %12741 = vmatprep.subr.bf16.mxu1 %v12740_v35  ;;  %v15127_v29 = vld [vmem:[#allocation10 + $0x428] sm:$0xff]  ;;  %v15129_v31 = vld [vmem:[#allocation10 + $0x520] sm:$0xff]  ;;  %v12752_v27 = vpack.c.bf16 %v15115_v9, %v15113_v12  ;;  %v9684_v12 = vld [vmem:[#allocation10 + $0x438] sm:$0xff] }
0x2124   : > { %v9020_v50 = vadd.f32 %v9019_v42, %v15085_v24  ;;  %v9109_v52 = vadd.f32 %v9108_v43, %v15090_v3  ;;  %v9700_v42 = vld [vmem:[#allocation10 + $0x4b8] sm:$0xff]  ;;  %v12754_v51 = vpack.c.bf16 %v15127_v29, %v15121_v11  ;;  %v9715_v9 = vld [vmem:[#allocation10 + $0x530] sm:$0xff]  ;;  %v9702_v11 = vld [vmem:[#allocation10 + $0x4c8] sm:$0xff] }
0x2125   : > { %v9489_v14 = vmax.f32 %v9018_v34, 0.0  ;;  %v9491_v15 = vmax.f32 %v9107_v40, 0.0  ;;  %v12784_v34 = vpack.c.bf16 %v9730_v33, %v9729_v19  ;;  %v9699_v40 = vld [vmem:[#allocation10 + $0x4b0] sm:$0xff]  ;;  %v9716_v19 = vld [vmem:[#allocation10 + $0x538] sm:$0xff]  ;;  %v9701_v33 = vld [vmem:[#allocation10 + $0x4c0] sm:$0xff] }
0x2126   : > { %v9490_v63 = vmax.f32 %v9020_v50, 0.0  ;;  %v9492_v2 = vmax.f32 %v9109_v52, 0.0  ;;  %v9023_v7 = vpop.f32.mrb[104].mxu0  ;;  %v9112_v4 = vpop.f32.mrb[88].mxu1  ;;  %12711 = vmatpush3.bf16.msra.mxu0 %v12710_v21  ;;  %12743 = vmatpush3.bf16.msra.mxu1 %v12742_v38  ;;  %v9714_v21 = vld [vmem:[#allocation10 + $0x528] sm:$0xff]  ;;  %v9731_v52 = vld [vmem:[#allocation10 + $0x5b0] sm:$0xff] }
0x2127   : > { %v9024_v5 = vadd.f32 %v9023_v7, %v15075_v13  ;;  %v9113_v17 = vadd.f32 %v9112_v4, %v15080_v45  ;;  %v9025_v18 = vpop.f32.mrb[105].mxu0  ;;  %v9114_v35 = vpop.f32.mrb[89].mxu1  ;;  %12745 = vmatprep.subr.bf16.mxu0 %v12744_v39  ;;  %12777 = vmatprep.subr.bf16.mxu1 %v12776_v44  ;;  %v12786_v62 = vpack.c.bf16 %v9714_v21, %v15129_v31  ;;  %v9685_v21 = vld [vmem:[#allocation10 + $0x440] sm:$0xff] }
0x2128   : > { %v9026_v20 = vadd.f32 %v9025_v18, %v15085_v24  ;;  %v9115_v16 = vadd.f32 %v9114_v35, %v15090_v3  ;;  %10046 = vmatprep.mubr.f32.mxu0 %v9490_v63  ;;  %10131 = vmatprep.mubr.f32.mxu1 %v9492_v2  ;;  %v12790_v31 = vpack.c.bf16 %v9716_v19, %v9715_v9  ;;  %v9721_v9 = vld [vmem:[#allocation10 + $0x560] sm:$0xff] }
0x2129   : > { %10047 = vmatmul.mubr.f32.vlgmr.msra.gmra.mrb[134].mxu0 %v9489_v14  ;;  %10132 = vmatmul.mubr.f32.vlgmr.msra.gmra.mrb[118].mxu1 %v9491_v15  ;;  %v9505_v43 = vmax.f32 %v9024_v5, 0.0  ;;  %v9507_v44 = vmax.f32 %v9113_v17, 0.0 }
0x212a   : > { %v9506_v38 = vmax.f32 %v9026_v20, 0.0  ;;  %v9508_v39 = vmax.f32 %v9115_v16, 0.0  ;;  %v9029_v53 = vpop.f32.mrb[106].mxu0  ;;  %v9118_v25 = vpop.f32.mrb[90].mxu1  ;;  %12747 = vmatpush3.bf16.msra.mxu0 %v12746_v57  ;;  %12779 = vmatpush3.bf16.msra.mxu1 %v12778_v58 }
0x212b   : > { %v9030_v46 = vadd.f32 %v9029_v53, %v15075_v13  ;;  %v9119_v47 = vadd.f32 %v9118_v25, %v15080_v45  ;;  %v9031_v49 = vpop.f32.mrb[107].mxu0  ;;  %v9120_v50 = vpop.f32.mrb[91].mxu1  ;;  %12749 = vmatprep.subr.bf16.mxu0 %v12748_v60  ;;  %12781 = vmatprep.subr.bf16.mxu1 %v12780_v1  ;;  %v12756_v60 = vpack.c.bf16 %v9700_v42, %v9699_v40  ;;  %v9717_v25 = vld [vmem:[#allocation10 + $0x540] sm:$0xff]  ;;  %v9704_v40 = vld [vmem:[#allocation10 + $0x4d8] sm:$0xff]  ;;  %v9735_v42 = vld [vmem:[#allocation10 + $0x5d0] sm:$0xff] }
0x212c   : > { %v9032_v57 = vadd.f32 %v9031_v49, %v15085_v24  ;;  %v9121_v58 = vadd.f32 %v9120_v50, %v15090_v3  ;;  %10051 = vmatprep.mubr.f32.mxu0 %v9506_v38  ;;  %10136 = vmatprep.mubr.f32.mxu1 %v9508_v39  ;;  %v12788_v1 = vpack.c.bf16 %v9732_v56, %v9731_v52  ;;  %v9686_v38 = vld [vmem:[#allocation10 + $0x448] sm:$0xff]  ;;  %v9688_v49 = vld [vmem:[#allocation10 + $0x458] sm:$0xff]  ;;  %v9719_v56 = vld [vmem:[#allocation10 + $0x550] sm:$0xff] }
0x212d   : > { %10052 = vmatmul.mubr.f32.gmra.mrb[136].mxu0 %v9505_v43  ;;  %10137 = vmatmul.mubr.f32.gmra.mrb[120].mxu1 %v9507_v44  ;;  %v9521_v14 = vmax.f32 %v9030_v46, 0.0  ;;  %v9523_v15 = vmax.f32 %v9119_v47, 0.0  ;;  %v9736_v43 = vld [vmem:[#allocation10 + $0x5d8] sm:$0xff]  ;;  %v12762_v44 = vpack.c.bf16 %v9686_v38, %v9685_v21  ;;  %v9687_v47 = vld [vmem:[#allocation10 + $0x450] sm:$0xff]  ;;  %v9789_v38 = vld [vmem:[#allocation10 + $0x780] sm:$0xff] }
0x212e   : > { %v9522_v63 = vmax.f32 %v9032_v57, 0.0  ;;  %v9524_v2 = vmax.f32 %v9121_v58, 0.0  ;;  %v9035_v7 = vpop.f32.mrb[108].mxu0  ;;  %v9124_v4 = vpop.f32.mrb[92].mxu1  ;;  %12751 = vmatpush3.bf16.msra.mxu0 %v12750_v30  ;;  %12783 = vmatpush3.bf16.msra.mxu1 %v12782_v23  ;;  %v9733_v30 = vld [vmem:[#allocation10 + $0x5c0] sm:$0xff]  ;;  %v9734_v23 = vld [vmem:[#allocation10 + $0x5c8] sm:$0xff]  ;;  %v12796_v52 = vpack.c.bf16 %v9736_v43, %v9735_v42 }
0x212f   : > { %v9036_v5 = vadd.f32 %v9035_v7, %v15075_v13  ;;  %v9125_v17 = vadd.f32 %v9124_v4, %v15080_v45  ;;  %v9037_v18 = vpop.f32.mrb[109].mxu0  ;;  %v9126_v35 = vpop.f32.mrb[93].mxu1  ;;  %12753 = vmatprep.subr.bf16.mxu0 %v12752_v27  ;;  %12785 = vmatprep.subr.bf16.mxu1 %v12784_v34  ;;  %v12758_v45 = vpack.c.bf16 %v9684_v12, %v9683_v41  ;;  %v9718_v27 = vld [vmem:[#allocation10 + $0x548] sm:$0xff]  ;;  %v9703_v34 = vld [vmem:[#allocation10 + $0x4d0] sm:$0xff]  ;;  %v9720_v57 = vld [vmem:[#allocation10 + $0x558] sm:$0xff] }
0x2130   : > { %v9038_v20 = vadd.f32 %v9037_v18, %v15085_v24  ;;  %v9127_v16 = vadd.f32 %v9126_v35, %v15090_v3  ;;  %10056 = vmatprep.mubr.f32.mxu0 %v9522_v63  ;;  %10141 = vmatprep.mubr.f32.mxu1 %v9524_v2  ;;  %v12760_v24 = vpack.c.bf16 %v9702_v11, %v9701_v33  ;;  %v9705_v58 = vld [vmem:[#allocation10 + $0x4e0] sm:$0xff]  ;;  %v9738_v41 = vld [vmem:[#allocation10 + $0x5e8] sm:$0xff]  ;;  %v9740_v18 = vld [vmem:[#allocation10 + $0x5f8] sm:$0xff] }
0x2131   : > { %10057 = vmatmul.mubr.f32.gmra.mrb[138].mxu0 %v9521_v14  ;;  %10142 = vmatmul.mubr.f32.gmra.mrb[122].mxu1 %v9523_v15  ;;  %v9537_v39 = vmax.f32 %v9036_v5, 0.0  ;;  %v9539_v53 = vmax.f32 %v9125_v17, 0.0  ;;  %v12792_v3 = vpack.c.bf16 %v9734_v23, %v9733_v30  ;;  %v12794_v46 = vpack.c.bf16 %v9718_v27, %v9717_v25  ;;  %v15147_v7 = vld [vmem:[%s15524_s8 + $0x8] sm:$0xff]  ;;  %v9707_v15 = vld [vmem:[#allocation10 + $0x4f0] sm:$0xff]  ;;  %v9708_v5 = vld [vmem:[#allocation10 + $0x4f8] sm:$0xff] }
0x2132   : > { %v9538_v13 = vmax.f32 %v9038_v20, 0.0  ;;  %v9540_v29 = vmax.f32 %v9127_v16, 0.0  ;;  %12755 = vmatpush3.bf16.msra.mxu0 %v12754_v51  ;;  %12787 = vmatpush3.bf16.msra.mxu1 %v12786_v62  ;;  %v12764_v50 = vpack.c.bf16 %v9704_v40, %v9703_v34  ;;  %v9706_v51 = vld [vmem:[#allocation10 + $0x4e8] sm:$0xff]  ;;  %v9737_v62 = vld [vmem:[#allocation10 + $0x5e0] sm:$0xff]  ;;  %v12766_v63 = vpack.c.bf16 %v9688_v49, %v9687_v47  ;;  %v9739_v17 = vld [vmem:[#allocation10 + $0x5f0] sm:$0xff] }
0x2133   : > { %12757 = vmatprep.subr.bf16.mxu0 %v12756_v60  ;;  %12789 = vmatprep.subr.bf16.mxu1 %v12788_v1  ;;  %v12798_v2 = vpack.c.bf16 %v9720_v57, %v9719_v56  ;;  %v9689_v4 = vld [vmem:[#allocation10 + $0x460] sm:$0xff]  ;;  %v9690_v60 = vld [vmem:[#allocation10 + $0x468] sm:$0xff]  ;;  %v12768_v1 = vpack.c.bf16 %v9706_v51, %v9705_v58  ;;  %v12800_v12 = vpack.c.bf16 %v9738_v41, %v9737_v62  ;;  %v9691_v20 = vld [vmem:[#allocation10 + $0x470] sm:$0xff] }
0x2134   : > { %10061 = vmatprep.mubr.f32.mxu0 %v9538_v13  ;;  %10146 = vmatprep.mubr.f32.mxu1 %v9540_v29  ;;  %v9722_v14 = vld [vmem:[#allocation10 + $0x568] sm:$0xff]  ;;  %v15151_v35 = vrot.slane %v15147_v7, %v14081_v55  ;;  %v12770_v19 = vpack.c.bf16 %v9690_v60, %v9689_v4  ;;  %v9692_v16 = vld [vmem:[#allocation10 + $0x478] sm:$0xff]  ;;  %v9723_v11 = vld [vmem:[#allocation10 + $0x570] sm:$0xff]  ;;  %v15156_v30 = vrot.slane %v15147_v7, %v8703_v32 }
0x2135   : > { %10062 = vmatmul.mubr.f32.gmra.mrb[140].mxu0 %v9537_v39  ;;  %10147 = vmatmul.mubr.f32.gmra.mrb[124].mxu1 %v9539_v53  ;;  %v12802_v33 = vpack.c.bf16 %v9722_v14, %v9721_v9  ;;  %v12772_v23 = vpack.c.bf16 %v9708_v5, %v9707_v15  ;;  %v12804_v13 = vpack.c.bf16 %v9740_v18, %v9739_v17  ;;  %v9724_v29 = vld [vmem:[#allocation10 + $0x578] sm:$0xff]  ;;  %v9790_v39 = vld [vmem:[#allocation10 + $0x788] sm:$0xff]  ;;  %v15167_v53 = vld [vmem:[#allocation10 + $0x600] sm:$0xff] }
0x2136   : > { %12759 = vmatpush3.bf16.msra.mxu0 %v12758_v45  ;;  %12791 = vmatpush3.bf16.msra.mxu1 %v12790_v31  ;;  %v9757_v45 = vld [vmem:[#allocation10 + $0x680] sm:$0xff]  ;;  %v9758_v31 = vld [vmem:[#allocation10 + $0x688] sm:$0xff]  ;;  %v15160_v55 = vrot.slane %v15147_v7, %v14085_v59  ;;  %v15165_v21 = vrot.slane %v15147_v7, %v8707_v26  ;;  %v12774_v25 = vpack.c.bf16 %v9692_v16, %v9691_v20  ;;  %v15171_v42 = vld [vmem:[#allocation10 + $0x690] sm:$0xff] }
0x2137   : > { %12761 = vmatprep.subr.bf16.mxu0 %v12760_v24  ;;  %12793 = vmatprep.subr.bf16.mxu1 %v12792_v3  ;;  %v15169_v32 = vld [vmem:[#allocation10 + $0x608] sm:$0xff]  ;;  %v12806_v27 = vpack.c.bf16 %v9724_v29, %v9723_v11  ;;  %v12808_v34 = vpack.c.bf16 %v9758_v31, %v9757_v45  ;;  %v9773_v59 = vld [vmem:[#allocation10 + $0x700] sm:$0xff]  ;;  %v12840_v47 = vpack.c.bf16 %v9790_v39, %v9789_v38  ;;  %v9760_v49 = vld [vmem:[#allocation10 + $0x698] sm:$0xff] }
0x2138   : > { %v9774_v40 = vld [vmem:[#allocation10 + $0x708] sm:$0xff]  ;;  %v15177_v58 = vld [vmem:[#allocation10 + $0x610] sm:$0xff]  ;;  %v12810_v51 = vpack.c.bf16 %v15169_v32, %v15167_v53  ;;  %v15181_v41 = vld [vmem:[#allocation10 + $0x618] sm:$0xff]  ;;  %v12812_v9 = vpack.c.bf16 %v9760_v49, %v15171_v42 }
0x2139   : > { %v12842_v62 = vpack.c.bf16 %v9774_v40, %v9773_v59  ;;  %v15188_v15 = vld [vmem:[#allocation10 + $0x6a0] sm:$0xff]  ;;  %v15190_v5 = vld [vmem:[#allocation10 + $0x6a8] sm:$0xff]  ;;  %v12814_v31 = vpack.c.bf16 %v15181_v41, %v15177_v58  ;;  %v9763_v40 = vld [vmem:[#allocation10 + $0x6b0] sm:$0xff] }
0x213a   : > { %12763 = vmatpush3.bf16.msra.mxu0 %v12762_v44  ;;  %12795 = vmatpush3.bf16.msra.mxu1 %v12794_v46  ;;  %v9793_v11 = vld [vmem:[#allocation10 + $0x7a0] sm:$0xff]  ;;  %v15202_v39 = vld [vmem:[#allocation10 + $0x628] sm:$0xff]  ;;  %v9764_v42 = vld [vmem:[#allocation10 + $0x6b8] sm:$0xff] }
0x213b   : > { %12765 = vmatprep.subr.bf16.mxu0 %v12764_v50  ;;  %12797 = vmatprep.subr.bf16.mxu1 %v12796_v52  ;;  %v9791_v50 = vld [vmem:[#allocation10 + $0x790] sm:$0xff]  ;;  %v9792_v52 = vld [vmem:[#allocation10 + $0x798] sm:$0xff]  ;;  %v15196_v45 = vld [vmem:[#allocation10 + $0x620] sm:$0xff] }
0x213c   : > { %v12844_v14 = vpack.c.bf16 %v9792_v52, %v9791_v50  ;;  %v15204_v53 = vld [vmem:[#allocation10 + $0x720] sm:$0xff]  ;;  %v9778_v32 = vld [vmem:[#allocation10 + $0x728] sm:$0xff]  ;;  %v9795_v50 = vld [vmem:[#allocation10 + $0x7b0] sm:$0xff]  ;;  %v12818_v58 = vpack.c.bf16 %v15202_v39, %v15196_v45 }
0x213d   : > { %v9796_v52 = vld [vmem:[#allocation10 + $0x7b8] sm:$0xff]  ;;  %v9750_v39 = vld [vmem:[#allocation10 + $0x648] sm:$0xff] }
0x213e   : > { %12767 = vmatpush3.bf16.msra.mxu0 %v12766_v63  ;;  %12799 = vmatpush3.bf16.msra.mxu1 %v12798_v2  ;;  %v15183_v63 = vld [vmem:[#allocation10 + $0x710] sm:$0xff]  ;;  %v15185_v2 = vld [vmem:[#allocation10 + $0x718] sm:$0xff] }
0x213f   : > { %12769 = vmatprep.subr.bf16.mxu0 %v12768_v1  ;;  %12801 = vmatprep.subr.bf16.mxu1 %v12800_v12  ;;  %v12846_v38 = vpack.c.bf16 %v15185_v2, %v15183_v63 }
0x2142   : > { %v9195_v24 = vpop.f32.mrb[110].mxu0  ;;  %v9284_v3 = vpop.f32.mrb[94].mxu1  ;;  %12771 = vmatpush3.bf16.msra.mxu0 %v12770_v19  ;;  %12803 = vmatpush3.bf16.msra.mxu1 %v12802_v33 }
0x2143   : > { %v9196_v26 = vadd.f32 %v9195_v24, %v15151_v35  ;;  %v9285_v43 = vadd.f32 %v9284_v3, %v15156_v30  ;;  %v9197_v44 = vpop.f32.mrb[111].mxu0  ;;  %v9286_v46 = vpop.f32.mrb[95].mxu1  ;;  %12773 = vmatprep.subr.bf16.mxu0 %v12772_v23  ;;  %12805 = vmatprep.subr.bf16.mxu1 %v12804_v13  ;;  %v9794_v23 = vld [vmem:[#allocation10 + $0x7a8] sm:$0xff] }
0x2144   : > { %v9198_v56 = vadd.f32 %v9197_v44, %v15160_v55  ;;  %v9287_v57 = vadd.f32 %v9286_v46, %v15165_v21  ;;  %v12848_v59 = vpack.c.bf16 %v9794_v23, %v9793_v11  ;;  %v9766_v23 = vld [vmem:[#allocation10 + $0x6c8] sm:$0xff] }
0x2145   : > { %v9493_v17 = vmax.f32 %v9196_v26, 0.0  ;;  %v9495_v18 = vmax.f32 %v9285_v43, 0.0 }
0x2146   : > { %v9494_v4 = vmax.f32 %v9198_v56, 0.0  ;;  %v9496_v60 = vmax.f32 %v9287_v57, 0.0  ;;  %v9201_v1 = vpop.f32.mrb[112].mxu0  ;;  %v9290_v12 = vpop.f32.mrb[96].mxu1  ;;  %12775 = vmatpush3.bf16.msra.mxu0 %v12774_v25  ;;  %12807 = vmatpush3.bf16.msra.mxu1 %v12806_v27 }
0x2147   : > { %v9202_v19 = vadd.f32 %v9201_v1, %v15151_v35  ;;  %v9291_v33 = vadd.f32 %v9290_v12, %v15156_v30  ;;  %v9203_v20 = vpop.f32.mrb[113].mxu0  ;;  %v9292_v16 = vpop.f32.mrb[97].mxu1  ;;  %12809 = vmatprep.subr.bf16.mxu0 %v12808_v34  ;;  %12841 = vmatprep.subr.bf16.mxu1 %v12840_v47  ;;  %v12816_v34 = vpack.c.bf16 %v15190_v5, %v15188_v15  ;;  %v9748_v12 = vld [vmem:[#allocation10 + $0x638] sm:$0xff] }
0x2148   : > { %v9204_v13 = vadd.f32 %v9203_v20, %v15160_v55  ;;  %v9293_v29 = vadd.f32 %v9292_v16, %v15165_v21  ;;  %10216 = vmatprep.mubr.f32.mxu0 %v9494_v4  ;;  %10301 = vmatprep.mubr.f32.mxu1 %v9496_v60  ;;  %v12820_v60 = vpack.c.bf16 %v9764_v42, %v9763_v40  ;;  %v9765_v20 = vld [vmem:[#allocation10 + $0x6c0] sm:$0xff] }
0x2149   : > { %10217 = vmatmul.mubr.f32.vlgmr.msra.gmra.mrb[142].mxu0 %v9493_v17  ;;  %10302 = vmatmul.mubr.f32.vlgmr.msra.gmra.mrb[126].mxu1 %v9495_v18  ;;  %v9509_v26 = vmax.f32 %v9202_v19, 0.0  ;;  %v9511_v43 = vmax.f32 %v9291_v33, 0.0  ;;  %v12852_v1 = vpack.c.bf16 %v9796_v52, %v9795_v50  ;;  %v9780_v33 = vld [vmem:[#allocation10 + $0x738] sm:$0xff]  ;;  %v9769_v50 = vld [vmem:[#allocation10 + $0x6e0] sm:$0xff]  ;;  %v9770_v52 = vld [vmem:[#allocation10 + $0x6e8] sm:$0xff] }
0x214a   : > { %v9510_v24 = vmax.f32 %v9204_v13, 0.0  ;;  %v9512_v3 = vmax.f32 %v9293_v29, 0.0  ;;  %v9207_v25 = vpop.f32.mrb[114].mxu0  ;;  %v9296_v27 = vpop.f32.mrb[98].mxu1  ;;  %12811 = vmatpush3.bf16.msra.mxu0 %v12810_v51  ;;  %12843 = vmatpush3.bf16.msra.mxu1 %v12842_v62  ;;  %v12850_v51 = vpack.c.bf16 %v9778_v32, %v15204_v53  ;;  %v9747_v62 = vld [vmem:[#allocation10 + $0x630] sm:$0xff]  ;;  %v9797_v13 = vld [vmem:[#allocation10 + $0x7c0] sm:$0xff] }
0x214b   : > { %v9208_v44 = vadd.f32 %v9207_v25, %v15151_v35  ;;  %v9297_v46 = vadd.f32 %v9296_v27, %v15156_v30  ;;  %v9209_v47 = vpop.f32.mrb[115].mxu0  ;;  %v9298_v49 = vpop.f32.mrb[99].mxu1  ;;  %12813 = vmatprep.subr.bf16.mxu0 %v12812_v9  ;;  %12845 = vmatprep.subr.bf16.mxu1 %v12844_v14  ;;  %v9779_v9 = vld [vmem:[#allocation10 + $0x730] sm:$0xff]  ;;  %v9798_v29 = vld [vmem:[#allocation10 + $0x7c8] sm:$0xff]  ;;  %v9768_v27 = vld [vmem:[#allocation10 + $0x6d8] sm:$0xff] }
0x214c   : > { %v9210_v56 = vadd.f32 %v9209_v47, %v15160_v55  ;;  %v9299_v57 = vadd.f32 %v9298_v49, %v15165_v21  ;;  %10221 = vmatprep.mubr.f32.mxu0 %v9510_v24  ;;  %10306 = vmatprep.mubr.f32.mxu1 %v9512_v3  ;;  %v9781_v24 = vld [vmem:[#allocation10 + $0x740] sm:$0xff]  ;;  %v9782_v3 = vld [vmem:[#allocation10 + $0x748] sm:$0xff]  ;;  %v9767_v25 = vld [vmem:[#allocation10 + $0x6d0] sm:$0xff] }
0x214d   : > { %10222 = vmatmul.mubr.f32.gmra.mrb[144].mxu0 %v9509_v26  ;;  %10307 = vmatmul.mubr.f32.gmra.mrb[128].mxu1 %v9511_v43  ;;  %v9525_v14 = vmax.f32 %v9208_v44, 0.0  ;;  %v9527_v15 = vmax.f32 %v9297_v46, 0.0  ;;  %v12858_v42 = vpack.c.bf16 %v9782_v3, %v9781_v24  ;;  %v9751_v26 = vld [vmem:[#allocation10 + $0x650] sm:$0xff]  ;;  %v9752_v43 = vld [vmem:[#allocation10 + $0x658] sm:$0xff]  ;;  %v12828_v44 = vpack.c.bf16 %v9768_v27, %v9767_v25 }
0x214e   : > { %v9526_v41 = vmax.f32 %v9210_v56, 0.0  ;;  %v9528_v63 = vmax.f32 %v9299_v57, 0.0  ;;  %v9213_v2 = vpop.f32.mrb[116].mxu0  ;;  %v9302_v4 = vpop.f32.mrb[100].mxu1  ;;  %12815 = vmatpush3.bf16.msra.mxu0 %v12814_v31  ;;  %12847 = vmatpush3.bf16.msra.mxu1 %v12846_v38  ;;  %v12854_v31 = vpack.c.bf16 %v9780_v33, %v9779_v9  ;;  %v9749_v38 = vld [vmem:[#allocation10 + $0x640] sm:$0xff]  ;;  %v9783_v47 = vld [vmem:[#allocation10 + $0x750] sm:$0xff] }
0x214f   : > { %v9214_v5 = vadd.f32 %v9213_v2, %v15151_v35  ;;  %v9303_v17 = vadd.f32 %v9302_v4, %v15156_v30  ;;  %v9215_v18 = vpop.f32.mrb[117].mxu0  ;;  %v9304_v19 = vpop.f32.mrb[101].mxu1  ;;  %12817 = vmatprep.subr.bf16.mxu0 %v12816_v34  ;;  %12849 = vmatprep.subr.bf16.mxu1 %v12848_v59  ;;  %v12822_v30 = vpack.c.bf16 %v9748_v12, %v9747_v62  ;;  %v9799_v34 = vld [vmem:[#allocation10 + $0x7d0] sm:$0xff]  ;;  %v9800_v59 = vld [vmem:[#allocation10 + $0x7d8] sm:$0xff]  ;;  %v9801_v56 = vld [vmem:[#allocation10 + $0x7e0] sm:$0xff] }
0x2150   : > { %v9216_v16 = vadd.f32 %v9215_v18, %v15160_v55  ;;  %v9305_v11 = vadd.f32 %v9304_v19, %v15165_v21  ;;  %10226 = vmatprep.mubr.f32.mxu0 %v9526_v41  ;;  %10311 = vmatprep.mubr.f32.mxu1 %v9528_v63  ;;  %v12824_v55 = vpack.c.bf16 %v9766_v23, %v9765_v20  ;;  %v9784_v49 = vld [vmem:[#allocation10 + $0x758] sm:$0xff]  ;;  %v9802_v57 = vld [vmem:[#allocation10 + $0x7e8] sm:$0xff]  ;;  %v9753_v62 = vld [vmem:[#allocation10 + $0x660] sm:$0xff] }
0x2151   : > { %10227 = vmatmul.mubr.f32.gmra.mrb[146].mxu0 %v9525_v14  ;;  %10312 = vmatmul.mubr.f32.gmra.mrb[130].mxu1 %v9527_v15  ;;  %v9541_v53 = vmax.f32 %v9214_v5, 0.0  ;;  %v9543_v32 = vmax.f32 %v9303_v17, 0.0  ;;  %v12856_v21 = vpack.c.bf16 %v9798_v29, %v9797_v13  ;;  %v12826_v40 = vpack.c.bf16 %v9750_v39, %v9749_v38  ;;  %v9754_v41 = vld [vmem:[#allocation10 + $0x668] sm:$0xff]  ;;  %v9785_v4 = vld [vmem:[#allocation10 + $0x760] sm:$0xff]  ;;  %v9772_v12 = vld [vmem:[#allocation10 + $0x6f8] sm:$0xff] }
0x2152   : > { %v9542_v35 = vmax.f32 %v9216_v16, 0.0  ;;  %v9544_v45 = vmax.f32 %v9305_v11, 0.0  ;;  %12819 = vmatpush3.bf16.msra.mxu0 %v12818_v58  ;;  %12851 = vmatpush3.bf16.msra.mxu1 %v12850_v51  ;;  %v12860_v46 = vpack.c.bf16 %v9800_v59, %v9799_v34  ;;  %v12830_v58 = vpack.c.bf16 %v9752_v43, %v9751_v26  ;;  %v9803_v9 = vld [vmem:[#allocation10 + $0x7f0] sm:$0xff]  ;;  %v9804_v14 = vld [vmem:[#allocation10 + $0x7f8] sm:$0xff] }
0x2153   : > { %12821 = vmatprep.subr.bf16.mxu0 %v12820_v60  ;;  %12853 = vmatprep.subr.bf16.mxu1 %v12852_v1  ;;  %v12862_v51 = vpack.c.bf16 %v9784_v49, %v9783_v47  ;;  %v12832_v63 = vpack.c.bf16 %v9770_v52, %v9769_v50  ;;  %v12864_v2 = vpack.c.bf16 %v9802_v57, %v9801_v56  ;;  %v9786_v60 = vld [vmem:[#allocation10 + $0x768] sm:$0xff]  ;;  %v9771_v1 = vld [vmem:[#allocation10 + $0x6f0] sm:$0xff]  ;;  %v9756_v16 = vld [vmem:[#allocation10 + $0x678] sm:$0xff] }
0x2154   : > { %10231 = vmatprep.mubr.f32.mxu0 %v9542_v35  ;;  %10316 = vmatprep.mubr.f32.mxu1 %v9544_v45  ;;  %v15222_v15 = vrot.slane %v15147_v7, %v8711_v61  ;;  %v12834_v5 = vpack.c.bf16 %v9754_v41, %v9753_v62  ;;  %v12866_v17 = vpack.c.bf16 %v9786_v60, %v9785_v4  ;;  %v9755_v18 = vld [vmem:[#allocation10 + $0x670] sm:$0xff]  ;;  %v9788_v23 = vld [vmem:[#allocation10 + $0x778] sm:$0xff] }
0x2155   : > { %10232 = vmatmul.mubr.f32.gmra.mrb[148].mxu0 %v9541_v53  ;;  %10317 = vmatmul.mubr.f32.gmra.mrb[132].mxu1 %v9543_v32  ;;  %v15227_v19 = vrot.slane %v15147_v7, %v8719_v28  ;;  %v12836_v33 = vpack.c.bf16 %v9772_v12, %v9771_v1  ;;  %v12868_v20 = vpack.c.bf16 %v9804_v14, %v9803_v9  ;;  %v9787_v11 = vld [vmem:[#allocation10 + $0x770] sm:$0xff] }
0x2156   : > { %12823 = vmatpush3.bf16.msra.mxu0 %v12822_v30  ;;  %12855 = vmatpush3.bf16.msra.mxu1 %v12854_v31  ;;  %v8748_v61 = vrot.slane %v15147_v7, %v8715_v6  ;;  %v8756_v13 = vrot.slane %v15147_v7, %v8723_v10  ;;  %v12838_v45 = vpack.c.bf16 %v9756_v16, %v9755_v18  ;;  %v10578_v16 = vld [vmem:[%s15529_s13] sm:$0xff] }
0x2157   : > { %12825 = vmatprep.subr.bf16.mxu0 %v12824_v55  ;;  %12857 = vmatprep.subr.bf16.mxu1 %v12856_v21  ;;  %v12870_v28 = vpack.c.bf16 %v9788_v23, %v9787_v11  ;;  %v10581_v23 = vld [vmem:[%s15529_s13 + $0x18] sm:$0xff] }
0x215a   : > { %12827 = vmatpush3.bf16.msra.mxu0 %v12826_v40  ;;  %12859 = vmatpush3.bf16.msra.mxu1 %v12858_v42 }
0x215b   : > { %12829 = vmatprep.subr.bf16.mxu0 %v12828_v44  ;;  %12861 = vmatprep.subr.bf16.mxu1 %v12860_v46 }
0x215e   : > { %12831 = vmatpush3.bf16.msra.mxu0 %v12830_v58  ;;  %12863 = vmatpush3.bf16.msra.mxu1 %v12862_v51 }
0x215f   : > { %12833 = vmatprep.subr.bf16.mxu0 %v12832_v63  ;;  %12865 = vmatprep.subr.bf16.mxu1 %v12864_v2 }
0x2162   : > { %v9373_v29 = vpop.f32.mrb[118].mxu0  ;;  %v9462_v35 = vpop.f32.mrb[102].mxu1  ;;  %12835 = vmatpush3.bf16.msra.mxu0 %v12834_v5  ;;  %12867 = vmatpush3.bf16.msra.mxu1 %v12866_v17 }
0x2163   : > { %v9374_v30 = vadd.f32 %v9373_v29, %v15222_v15  ;;  %v9463_v31 = vadd.f32 %v9462_v35, %v15227_v19  ;;  %v9375_v38 = vpop.f32.mrb[119].mxu0  ;;  %v9464_v39 = vpop.f32.mrb[103].mxu1  ;;  %12837 = vmatprep.subr.bf16.mxu0 %v12836_v33  ;;  %12869 = vmatprep.subr.bf16.mxu1 %v12868_v20  ;;  %v10582_v20 = vld [vmem:[%s15529_s13 + $0x20] sm:$0xff]  ;;  %v12874_v29 = vpack.c.bf16 %v10581_v23, %v10578_v16  ;;  %v10613_v16 = vld [vmem:[%s15529_s13 + $0x118] sm:$0xff] }
0x2164   : > { %v9376_v53 = vadd.f32 %v9375_v38, %v8748_v61  ;;  %v9465_v6 = vadd.f32 %v9464_v39, %v8756_v13  ;;  %v10587_v38 = vld [vmem:[%s15529_s13 + $0x48] sm:$0xff]  ;;  %v10586_v39 = vld [vmem:[%s15529_s13 + $0x40] sm:$0xff] }
0x2165   : > { %v9497_v7 = vmax.f32 %v9374_v30, 0.0  ;;  %v9499_v21 = vmax.f32 %v9463_v31, 0.0  ;;  %v10584_v30 = vld [vmem:[%s15529_s13 + $0x30] sm:$0xff] }
0x2166   : > { %v9498_v32 = vmax.f32 %v9376_v53, 0.0  ;;  %v9500_v54 = vmax.f32 %v9465_v6, 0.0  ;;  %v9379_v55 = vpop.f32.mrb[120].mxu0  ;;  %v9468_v10 = vpop.f32.mrb[104].mxu1  ;;  %12839 = vmatpush3.bf16.msra.mxu0 %v12838_v45  ;;  %12871 = vmatpush3.bf16.msra.mxu1 %v12870_v28  ;;  %v10585_v45 = vld [vmem:[%s15529_s13 + $0x38] sm:$0xff]  ;;  %v10588_v28 = vld [vmem:[%s15529_s13 + $0x50] sm:$0xff]  ;;  %v12878_v6 = vpack.c.bf16 %v10587_v38, %v10584_v30 }
0x2167   : > { %v9380_v24 = vadd.f32 %v9379_v55, %v15222_v15  ;;  %v9469_v3 = vadd.f32 %v9468_v10, %v15227_v19  ;;  %v9381_v25 = vpop.f32.mrb[121].mxu0  ;;  %v9470_v27 = vpop.f32.mrb[105].mxu1  ;;  %v12876_v31 = vpack.c.bf16 %v10588_v28, %v10585_v45  ;;  %v10589_v53 = vld [vmem:[%s15529_s13 + $0x58] sm:$0xff]  ;;  %v10594_v55 = vld [vmem:[%s15529_s13 + $0x80] sm:$0xff]  ;;  %v10611_v45 = vld [vmem:[%s15529_s13 + $0x108] sm:$0xff] }
0x2168   : > { %v9382_v34 = vadd.f32 %v9381_v25, %v8748_v61  ;;  %v9471_v59 = vadd.f32 %v9470_v27, %v8756_v13  ;;  %10386 = vmatprep.mubr.f32.mxu0 %v9498_v32  ;;  %10471 = vmatprep.mubr.f32.mxu1 %v9500_v54  ;;  %v12908_v32 = vpack.c.bf16 %v10589_v53, %v10586_v39  ;;  %v10591_v54 = vld [vmem:[%s15529_s13 + $0x68] sm:$0xff]  ;;  %v10590_v10 = vld [vmem:[%s15529_s13 + $0x60] sm:$0xff]  ;;  %v10597_v27 = vld [vmem:[%s15529_s13 + $0x98] sm:$0xff] }
0x2169   : > { %10387 = vmatmul.mubr.f32.vlgmr.msra.gmra.mrb[150].mxu0 %v9497_v7  ;;  %10472 = vmatmul.mubr.f32.vlgmr.msra.gmra.mrb[134].mxu1 %v9499_v21  ;;  %v9513_v44 = vmax.f32 %v9380_v24, 0.0  ;;  %v9515_v46 = vmax.f32 %v9469_v3, 0.0  ;;  %v12880_v7 = vpack.c.bf16 %v10594_v55, %v10591_v54  ;;  %v10593_v21 = vld [vmem:[%s15529_s13 + $0x78] sm:$0xff]  ;;  %v10592_v24 = vld [vmem:[%s15529_s13 + $0x70] sm:$0xff]  ;;  %v10595_v3 = vld [vmem:[%s15529_s13 + $0x88] sm:$0xff] }
0x216a   : > { %v9514_v40 = vmax.f32 %v9382_v34, 0.0  ;;  %v9516_v42 = vmax.f32 %v9471_v59, 0.0  ;;  %v9385_v26 = vpop.f32.mrb[122].mxu0  ;;  %v9474_v43 = vpop.f32.mrb[106].mxu1  ;;  %v12912_v25 = vpack.c.bf16 %v10595_v3, %v10592_v24  ;;  %v10600_v34 = vld [vmem:[%s15529_s13 + $0xb0] sm:$0xff]  ;;  %v10598_v59 = vld [vmem:[%s15529_s13 + $0xa0] sm:$0xff] }
0x216b   : > { %v9386_v47 = vadd.f32 %v9385_v26, %v15222_v15  ;;  %v9475_v49 = vadd.f32 %v9474_v43, %v15227_v19  ;;  %v9387_v50 = vpop.f32.mrb[123].mxu0  ;;  %v9476_v52 = vpop.f32.mrb[107].mxu1  ;;  %v12884_v26 = vpack.c.bf16 %v10600_v34, %v10597_v27  ;;  %v10596_v43 = vld [vmem:[%s15529_s13 + $0x90] sm:$0xff]  ;;  %v10615_v39 = vld [vmem:[%s15529_s13 + $0x128] sm:$0xff]  ;;  %v10618_v53 = vld [vmem:[%s15529_s13 + $0x140] sm:$0xff] }
0x216c   : > { %v9388_v56 = vadd.f32 %v9387_v50, %v8748_v61  ;;  %v9477_v57 = vadd.f32 %v9476_v52, %v8756_v13  ;;  %10391 = vmatprep.mubr.f32.mxu0 %v9514_v40  ;;  %10476 = vmatprep.mubr.f32.mxu1 %v9516_v42  ;;  %v10601_v40 = vld [vmem:[%s15529_s13 + $0xb8] sm:$0xff]  ;;  %v12882_v42 = vpack.c.bf16 %v10593_v21, %v10590_v10  ;;  %v10603_v50 = vld [vmem:[%s15529_s13 + $0xc8] sm:$0xff]  ;;  %v10606_v52 = vld [vmem:[%s15529_s13 + $0xe0] sm:$0xff] }
0x216d   : > { %10392 = vmatmul.mubr.f32.gmra.mrb[152].mxu0 %v9513_v44  ;;  %10477 = vmatmul.mubr.f32.gmra.mrb[136].mxu1 %v9515_v46  ;;  %v9529_v63 = vmax.f32 %v9386_v47, 0.0  ;;  %v9531_v2 = vmax.f32 %v9475_v49, 0.0  ;;  %v10599_v44 = vld [vmem:[%s15529_s13 + $0xa8] sm:$0xff]  ;;  %v12916_v49 = vpack.c.bf16 %v10601_v40, %v10598_v59  ;;  %v10616_v54 = vld [vmem:[%s15529_s13 + $0x130] sm:$0xff]  ;;  %v12896_v3 = vpack.c.bf16 %v10618_v53, %v10615_v39  ;;  %v10617_v27 = vld [vmem:[%s15529_s13 + $0x138] sm:$0xff] }
0x216e   : > { %v9530_v58 = vmax.f32 %v9388_v56, 0.0  ;;  %v9532_v51 = vmax.f32 %v9477_v57, 0.0  ;;  %v9391_v62 = vpop.f32.mrb[124].mxu0  ;;  %v9480_v41 = vpop.f32.mrb[108].mxu1  ;;  %v15326_v56 = vld [vmem:[#allocation11] ss:$0 sm:$0xff] }
0x216f   : > { %v9392_v4 = vadd.f32 %v9391_v62, %v15222_v15  ;;  %v9481_v60 = vadd.f32 %v9480_v41, %v15227_v19  ;;  %v9393_v1 = vpop.f32.mrb[125].mxu0  ;;  %v9482_v12 = vpop.f32.mrb[109].mxu1  ;;  %v15245_v15 = vld [vmem:[%s14063_s24] sm:$0xff]  ;;  %v10579_v19 = vld [vmem:[%s15529_s13 + $0x8] sm:$0xff] }
0x2170   : > { %v9394_v9 = vadd.f32 %v9393_v1, %v8748_v61  ;;  %v9483_v14 = vadd.f32 %v9482_v12, %v8756_v13  ;;  %10396 = vmatprep.mubr.f32.mxu0 %v9530_v58  ;;  %10481 = vmatprep.mubr.f32.mxu1 %v9532_v51  ;;  %v12872_v11 = vpack.c.bf16 %v10582_v20, %v10579_v19  ;;  %v10580_v61 = vld [vmem:[%s15529_s13 + $0x10] sm:$0xff]  ;;  %v10583_v13 = vld [vmem:[%s15529_s13 + $0x28] sm:$0xff]  ;;  %v10605_v1 = vld [vmem:[%s15529_s13 + $0xd8] sm:$0xff] }
0x2171   : > { %10397 = vmatmul.mubr.f32.gmra.mrb[154].mxu0 %v9529_v63  ;;  %10482 = vmatmul.mubr.f32.gmra.mrb[138].mxu1 %v9531_v2  ;;  %v9545_v18 = vmax.f32 %v9392_v4, 0.0  ;;  %v9547_v33 = vmax.f32 %v9481_v60, 0.0  ;;  %v12904_v35 = vpack.c.bf16 %v10583_v13, %v10580_v61  ;;  %v10604_v51 = vld [vmem:[%s15529_s13 + $0xd0] sm:$0xff]  ;;  %v10607_v62 = vld [vmem:[%s15529_s13 + $0xe8] sm:$0xff]  ;;  %v12886_v2 = vpack.c.bf16 %v10599_v44, %v10596_v43  ;;  %v10602_v60 = vld [vmem:[%s15529_s13 + $0xc0] sm:$0xff] }
0x2172   : > { %v9546_v5 = vmax.f32 %v9394_v9, 0.0  ;;  %v9548_v17 = vmax.f32 %v9483_v14, 0.0  ;;  %12873 = vmatprep.subr.bf16.mxu0 %v12872_v11  ;;  %v12888_v4 = vpack.c.bf16 %v10606_v52, %v10603_v50  ;;  %v10610_v20 = vld [vmem:[%s15529_s13 + $0x100] sm:$0xff]  ;;  %v12890_v13 = vpack.c.bf16 %v10605_v1, %v10602_v60  ;;  %v10619_v55 = vld [vmem:[%s15529_s13 + $0x148] sm:$0xff]  ;;  %v10624_v43 = vld [vmem:[%s15529_s13 + $0x170] sm:$0xff] }
0x2173   : > { %12875 = vmatpush1.bf16.msra.mxu0 %v12874_v29  ;;  %12905 = vmatprep.subr.bf16.mxu1 %v12904_v35  ;;  %v12924_v38 = vpack.c.bf16 %v10613_v16, %v10610_v20  ;;  %v13294_v1 = vld [vmem:[%s14063_s24 + $0x8] sm:$0xff] }
0x2174   : > { %10401 = vmatprep.mubr.f32.mxu0 %v9546_v5  ;;  %10486 = vmatprep.mubr.f32.mxu1 %v9548_v17  ;;  %v12920_v5 = vpack.c.bf16 %v10607_v62, %v10604_v51  ;;  %v10609_v17 = vld [vmem:[%s15529_s13 + $0xf8] sm:$0xff]  ;;  %v10620_v62 = vld [vmem:[%s15529_s13 + $0x150] sm:$0xff] }
0x2175   : > { %10402 = vmatmul.mubr.f32.gmra.mrb[156].mxu0 %v9545_v18  ;;  %10487 = vmatmul.mubr.f32.gmra.mrb[140].mxu1 %v9547_v33  ;;  %v10612_v18 = vld [vmem:[%s15529_s13 + $0x110] sm:$0xff] }
0x2176   : > { %10690 = vmatprep.mubr.f32.mxu0 %v13616_v0  ;;  %12322 = vmatprep.mubr.f32.mxu1 %v15245_v15  ;;  %v12892_v29 = vpack.c.bf16 %v10612_v18, %v10609_v17 }
0x2177   : > { %12907 = vmatpush3.bf16.msra.mxu1 %v12904_v35  ;;  %12877 = vmatprep.subr.bf16.mxu0 %v12876_v31  ;;  %v10608_v35 = vld [vmem:[%s15529_s13 + $0xf0] sm:$0xff] }
0x2178   : > { %12909 = vmatprep.subr.bf16.mxu1 %v12908_v32  ;;  %12879 = vmatpush1.bf16.msra.mxu0 %v12878_v6  ;;  %v12894_v24 = vpack.c.bf16 %v10611_v45, %v10608_v35 }
0x2179   : > { %12881 = vmatprep.subr.bf16.mxu0 %v12880_v7 }
0x217b   : > { %12911 = vmatpush3.bf16.msra.mxu1 %v12908_v32 }
0x217c   : > { %12913 = vmatprep.subr.bf16.mxu1 %v12912_v25  ;;  %12883 = vmatpush1.bf16.msra.mxu0 %v12882_v42  ;;  %v12928_v42 = vpack.c.bf16 %v10619_v55, %v10616_v54 }
0x217d   : > { %12885 = vmatprep.subr.bf16.mxu0 %v12884_v26  ;;  %v10621_v26 = vld [vmem:[%s15529_s13 + $0x158] sm:$0xff] }
0x217e   : > { %v12900_v51 = vpack.c.bf16 %v10624_v43, %v10621_v26 }
0x217f   : > { %12915 = vmatpush3.bf16.msra.mxu1 %v12912_v25  ;;  %v10614_v25 = vld [vmem:[%s15529_s13 + $0x120] sm:$0xff] }
0x2180   : > { %12917 = vmatprep.subr.bf16.mxu1 %v12916_v49  ;;  %12887 = vmatpush1.bf16.msra.mxu0 %v12886_v2 }
0x2181   : > { %12889 = vmatprep.subr.bf16.mxu0 %v12888_v4 }
0x2183   : > { %12919 = vmatpush3.bf16.msra.mxu1 %v12916_v49  ;;  %v10625_v49 = vld [vmem:[%s15529_s13 + $0x178] sm:$0xff] }
0x2184   : > { %12921 = vmatprep.subr.bf16.mxu1 %v12920_v5  ;;  %12891 = vmatpush1.bf16.msra.mxu0 %v12890_v13 }
0x2185   : > { %12893 = vmatprep.subr.bf16.mxu0 %v12892_v29 }
0x2187   : > { %12923 = vmatpush3.bf16.msra.mxu1 %v12920_v5 }
0x2188   : > { %12925 = vmatprep.subr.bf16.mxu1 %v12924_v38  ;;  %12895 = vmatpush1.bf16.msra.mxu0 %v12894_v24 }
0x2189   : > { %12897 = vmatprep.subr.bf16.mxu0 %v12896_v3 }
0x218b   : > { %12927 = vmatpush3.bf16.msra.mxu1 %v12924_v38 }
0x218c   : > { %12929 = vmatprep.subr.bf16.mxu1 %v12928_v42 }
0x218f   : > { %12931 = vmatpush3.bf16.msra.mxu1 %v12928_v42 }
0x21dc   : > { %v11470_v46 = vpop.f32.mrb[126].mxu0  ;;  %v11514_v47 = vpop.f32.mrb[110].mxu1 }
0x21dd   : > { %v11471_v57 = vpop.f32.mrb[127].mxu0  ;;  %v11515_v58 = vpop.f32.mrb[111].mxu1 }
0x21de   : > { %v11472_v41 = vadd.f32 %v11471_v57, %v11470_v46  ;;  %v11516_v63 = vadd.f32 %v11515_v58, %v11514_v47  ;;  %v10622_v47 = vld [vmem:[%s15529_s13 + $0x160] sm:$0xff]  ;;  %v12898_v58 = vpack.c.bf16 %v10617_v27, %v10614_v25 }
0x21df   : > { %v12932_v2 = vpack.c.bf16 %v10625_v49, %v10622_v47 }
0x21e0   : > { %v9879_v12 = vadd.f32 %v11472_v41, %v15326_v56  ;;  %v11473_v9 = vpop.f32.mrb[128].mxu0  ;;  %v11517_v14 = vpop.f32.mrb[112].mxu1  ;;  %v10623_v41 = vld [vmem:[%s15529_s13 + $0x168] sm:$0xff]  ;;  %12899 = vmatpush1.bf16.msra.mxu0 %v12898_v58 }
0x21e1   : > { %v11474_v33 = vpop.f32.mrb[129].mxu0  ;;  %v11518_v19 = vpop.f32.mrb[113].mxu1  ;;  %v12902_v60 = vpack.c.bf16 %v10623_v41, %v10620_v62  ;;  %12901 = vmatprep.subr.bf16.mxu0 %v12900_v51  ;;  %12933 = vmatprep.subr.bf16.mxu1 %v12932_v2 }
0x21e2   : > { %v15353_v11 = vadd.f32 %v11516_v63, %v9879_v12  ;;  %v11475_v23 = vadd.f32 %v11474_v33, %v11473_v9  ;;  %v11519_v61 = vadd.f32 %v11518_v19, %v11517_v14  ;;  %12935 = vmatpush3.bf16.msra.mxu1 %v12932_v2  ;;  %v13295_v12 = vld [vmem:[%s14063_s24 + $0x10] sm:$0xff] }
0x21e4   : > { %v9884_v28 = vadd.f32 %v11475_v23, %v15326_v56  ;;  %v11476_v30 = vpop.f32.mrb[130].mxu0  ;;  %v11520_v31 = vpop.f32.mrb[114].mxu1  ;;  %12903 = vmatpush1.bf16.msra.mxu0 %v12902_v60 }
0x21e5   : > { %v11477_v6 = vpop.f32.mrb[131].mxu0  ;;  %v11521_v32 = vpop.f32.mrb[115].mxu1  ;;  %12323 = vmatmul.mubr.f32.vlgmr.msra.gmra.mrb[142].mxu1 %v13294_v1 }
0x21e6   : > { %v15374_v10 = vadd.f32 %v11519_v61, %v9884_v28  ;;  %v11478_v7 = vadd.f32 %v11477_v6, %v11476_v30  ;;  %v11522_v21 = vadd.f32 %v11521_v32, %v11520_v31  ;;  %12325 = vmatprep.mubr.f32.mxu1 %v13295_v12 }
0x21e7   : > { %10691 = vmatmul.mubr.f32.vlgmr.msra.gmra.mrb[158].mxu0 %v15245_v15 }
0x21e8   : > { %v9889_v34 = vadd.f32 %v11478_v7, %v15326_v56  ;;  %v11479_v59 = vpop.f32.mrb[132].mxu0  ;;  %v11523_v40 = vpop.f32.mrb[116].mxu1  ;;  %10696 = vmatprep.mubr.f32.mxu0 %v13616_v0 }
0x21e9   : > { %v11480_v44 = vpop.f32.mrb[133].mxu0  ;;  %v11524_v46 = vpop.f32.mrb[117].mxu1 }
0x21ea   : > { %v9974_v50 = vadd.f32 %v11522_v21, %v9889_v34  ;;  %v11481_v52 = vadd.f32 %v11480_v44, %v11479_v59  ;;  %v11525_v57 = vadd.f32 %v11524_v46, %v11523_v40 }
0x21eb   : > { %10697 = vmatmul.mubr.f32.gmra.mrb[160].mxu0 %v13294_v1 }
0x21ec   : > { %v9894_v63 = vadd.f32 %v11481_v52, %v15326_v56  ;;  %10702 = vmatprep.mubr.f32.mxu0 %v13616_v0  ;;  %v13296_v56 = vld [vmem:[%s14063_s24 + $0x18] sm:$0xff]  ;;  %s13527_s24 = scalar_lea.vmem %s13526_s26, 1024 }
0x21ed   : > { %12326 = vmatmul.mubr.f32.gmra.mrb[144].mxu1 %v13296_v56  ;;  %p13529_p6 = scmp.lt.s32.totalorder %s13527_s24, %s13521_s25 }
0x21ee   : > { %v9979_v4 = vadd.f32 %v11525_v57, %v9894_v63 }
0x21ef   : > { %10703 = vmatmul.mubr.f32.gmra.mrb[162].mxu0 %v13295_v12  ;;  %p13530_p5 = por %p13529_p6, %p13528_p0 }
0x21f0   : > { %10708 = vmatprep.mubr.f32.mxu0 %v13616_v0 }
0x21f1   : > { %p13531_p9 = pnand %p13530_p5, %p13524_p1 }
0x21f3   : > { %10709 = vmatmul.mubr.f32.gmra.mrb[164].mxu0 %v13296_v56 }
0x21fc   : > { %v11558_v9 = vpop.f32.mrb[134].mxu0  ;;  %v11602_v14 = vpop.f32.mrb[118].mxu1 }
0x21fd   : > { %v11559_v5 = vpop.f32.mrb[135].mxu0  ;;  %v11603_v17 = vpop.f32.mrb[119].mxu1 }
0x21fe   : > { %v11560_v18 = vadd.f32 %v11559_v5, %v11558_v9  ;;  %v11604_v33 = vadd.f32 %v11603_v17, %v11602_v14 }
0x2200   : > { %v10049_v15 = vadd.f32 %v11560_v18, %v15353_v11  ;;  %v11561_v19 = vpop.f32.mrb[136].mxu0  ;;  %v11605_v20 = vpop.f32.mrb[120].mxu1 }
0x2201   : > { %v11562_v16 = vpop.f32.mrb[137].mxu0  ;;  %v11606_v23 = vpop.f32.mrb[121].mxu1 }
0x2202   : > { %v10134_v61 = vadd.f32 %v11604_v33, %v10049_v15  ;;  %v11563_v13 = vadd.f32 %v11562_v16, %v11561_v19  ;;  %v11607_v29 = vadd.f32 %v11606_v23, %v11605_v20 }
0x2204   : > { %v10054_v35 = vadd.f32 %v11563_v13, %v15374_v10  ;;  %v11564_v45 = vpop.f32.mrb[138].mxu0  ;;  %v11608_v28 = vpop.f32.mrb[122].mxu1 }
0x2205   : > { %v11565_v30 = vpop.f32.mrb[139].mxu0  ;;  %v11609_v31 = vpop.f32.mrb[123].mxu1 }
0x2206   : > { %v10139_v38 = vadd.f32 %v11607_v29, %v10054_v35  ;;  %v11566_v39 = vadd.f32 %v11565_v30, %v11564_v45  ;;  %v11610_v53 = vadd.f32 %v11609_v31, %v11608_v28 }
0x2208   : > { %v10059_v0 = vadd.f32 %v11566_v39, %v9974_v50  ;;  %v11567_v6 = vpop.f32.mrb[140].mxu0  ;;  %v11611_v11 = vpop.f32.mrb[124].mxu1 }
0x2209   : > { %v11568_v32 = vpop.f32.mrb[141].mxu0  ;;  %v11612_v54 = vpop.f32.mrb[125].mxu1 }
0x220a   : > { %v10144_v55 = vadd.f32 %v11610_v53, %v10059_v0  ;;  %v11569_v7 = vadd.f32 %v11568_v32, %v11567_v6  ;;  %v11613_v21 = vadd.f32 %v11612_v54, %v11611_v11 }
0x220c   : > { %v10064_v24 = vadd.f32 %v11569_v7, %v9979_v4 }
0x220e   : > { %v10149_v3 = vadd.f32 %v11613_v21, %v10064_v24 }
0x221c   : > { %v11646_v25 = vpop.f32.mrb[142].mxu0  ;;  %v11690_v27 = vpop.f32.mrb[126].mxu1 }
0x221d   : > { %v11647_v10 = vpop.f32.mrb[143].mxu0  ;;  %v11691_v34 = vpop.f32.mrb[127].mxu1 }
0x221e   : > { %v11648_v59 = vadd.f32 %v11647_v10, %v11646_v25  ;;  %v11692_v40 = vadd.f32 %v11691_v34, %v11690_v27 }
0x2220   : > { %v10219_v42 = vadd.f32 %v11648_v59, %v10134_v61  ;;  %v11649_v26 = vpop.f32.mrb[144].mxu0  ;;  %v11693_v43 = vpop.f32.mrb[128].mxu1 }
0x2221   : > { %v11650_v44 = vpop.f32.mrb[145].mxu0  ;;  %v11694_v46 = vpop.f32.mrb[129].mxu1 }
0x2222   : > { %v10304_v47 = vadd.f32 %v11692_v40, %v10219_v42  ;;  %v11651_v49 = vadd.f32 %v11650_v44, %v11649_v26  ;;  %v11695_v50 = vadd.f32 %v11694_v46, %v11693_v43 }
0x2224   : > { %v10224_v52 = vadd.f32 %v11651_v49, %v10139_v38  ;;  %v11652_v57 = vpop.f32.mrb[146].mxu0  ;;  %v11696_v58 = vpop.f32.mrb[130].mxu1 }
0x2225   : > { %v11653_v51 = vpop.f32.mrb[147].mxu0  ;;  %v11697_v62 = vpop.f32.mrb[131].mxu1 }
0x2226   : > { %v10309_v41 = vadd.f32 %v11695_v50, %v10224_v52  ;;  %v11654_v63 = vadd.f32 %v11653_v51, %v11652_v57  ;;  %v11698_v2 = vadd.f32 %v11697_v62, %v11696_v58 }
0x2228   : > { %v10229_v4 = vadd.f32 %v11654_v63, %v10144_v55  ;;  %v11655_v60 = vpop.f32.mrb[148].mxu0  ;;  %v11699_v1 = vpop.f32.mrb[132].mxu1 }
0x2229   : > { %v11656_v12 = vpop.f32.mrb[149].mxu0  ;;  %v11700_v56 = vpop.f32.mrb[133].mxu1 }
0x222a   : > { %v10314_v9 = vadd.f32 %v11698_v2, %v10229_v4  ;;  %v11657_v14 = vadd.f32 %v11656_v12, %v11655_v60  ;;  %v11701_v5 = vadd.f32 %v11700_v56, %v11699_v1 }
0x222c   : > { %v10234_v17 = vadd.f32 %v11657_v14, %v10149_v3 }
0x222e   : > { %v10319_v18 = vadd.f32 %v11701_v5, %v10234_v17 }
0x223c   : > { %v11734_v33 = vpop.f32.mrb[150].mxu0  ;;  %v11778_v15 = vpop.f32.mrb[134].mxu1 }
0x223d   : > { %v11735_v19 = vpop.f32.mrb[151].mxu0  ;;  %v11779_v20 = vpop.f32.mrb[135].mxu1 }
0x223e   : > { %v11736_v16 = vadd.f32 %v11735_v19, %v11734_v33  ;;  %v11780_v23 = vadd.f32 %v11779_v20, %v11778_v15 }
0x2240   : > { %v10389_v61 = vadd.f32 %v11736_v16, %v10304_v47  ;;  %v11737_v13 = vpop.f32.mrb[152].mxu0  ;;  %v11781_v29 = vpop.f32.mrb[136].mxu1 }
0x2241   : > { %v11738_v35 = vpop.f32.mrb[153].mxu0  ;;  %v11782_v45 = vpop.f32.mrb[137].mxu1 }
0x2242   : > { %v10474_v28 = vadd.f32 %v11780_v23, %v10389_v61  ;;  %v11739_v30 = vadd.f32 %v11738_v35, %v11737_v13  ;;  %v11783_v31 = vadd.f32 %v11782_v45, %v11781_v29 }
0x2244   : > { %v10394_v38 = vadd.f32 %v11739_v30, %v10309_v41  ;;  %v11740_v39 = vpop.f32.mrb[154].mxu0  ;;  %v11784_v53 = vpop.f32.mrb[138].mxu1  ;;  %v10492_v0 = vadd.f32 %v10474_v28, %v14932_v37 }
0x2245   : > { %v11741_v6 = vpop.f32.mrb[155].mxu0  ;;  %v11785_v11 = vpop.f32.mrb[139].mxu1 }
0x2246   : > { %v10479_v32 = vadd.f32 %v11783_v31, %v10394_v38  ;;  %v11742_v54 = vadd.f32 %v11741_v6, %v11740_v39  ;;  %v11786_v55 = vadd.f32 %v11785_v11, %v11784_v53  ;;  %10498 = vadd.xlane.f32.xlu1 %v10492_v0 }
0x2248   : > { %v10399_v7 = vadd.f32 %v11742_v54, %v10314_v9  ;;  %v11743_v21 = vpop.f32.mrb[156].mxu0  ;;  %v11787_v24 = vpop.f32.mrb[140].mxu1  ;;  %v10493_v3 = vadd.f32 %v10479_v32, %v14937_v48 }
0x2249   : > { %v11744_v25 = vpop.f32.mrb[157].mxu0  ;;  %v11788_v27 = vpop.f32.mrb[141].mxu1 }
0x224a   : > { %v10484_v10 = vadd.f32 %v11786_v55, %v10399_v7  ;;  %v11745_v34 = vadd.f32 %v11744_v25, %v11743_v21  ;;  %v11789_v59 = vadd.f32 %v11788_v27, %v11787_v24  ;;  %10500 = vadd.xlane.f32.xlu0 %v10493_v3 }
0x224c   : > { %v10404_v40 = vadd.f32 %v11745_v34, %v10319_v18  ;;  %v10494_v37 = vadd.f32 %v10484_v10, %v14946_v8 }
0x224e   : > { %v10489_v42 = vadd.f32 %v11789_v59, %v10404_v40  ;;  %10502 = vadd.xlane.f32.xlu1 %v10494_v37 }
0x2250   : > { %v10495_v26 = vadd.f32 %v10489_v42, %v14955_v22 }
0x2252   : > { %10504 = vadd.xlane.f32.xlu0 %v10495_v26 }
0x22b8   : > { %v12324_v9 = vpop.f32.mrb[142].mxu1 }
0x22b9   : > { %v10781_v14 = vpop.f32.mrb[143].mxu1  ;;  %v10830_v23 = vrot.slane %v12324_v9, 1 }
0x22ba   : > { %v10692_v12 = vpop.f32.mrb[158].mxu0  ;;  %v10829_v5 = vrot.slane %v10781_v14, 1 }
0x22bb   : > { %v10804_v56 = vrot.slane %v10692_v12, 7  ;;  %v10694_v17 = vpop.f32.mrb[159].mxu0  ;;  %v10839_v35 = vsel %vm10837_vm4, %v10830_v23, 0.0 }
0x22bc   : > { %v10838_v19 = vsel %vm10837_vm4, %v10829_v5, 0.0 }
0x22bd   : > { %v10813_v18 = vsel %vm10812_vm3, 0.0, %v10804_v56 }
0x22be   : > { %v10821_v33 = vadd.f32 %v10813_v18, %v10694_v17  ;;  %v10698_v15 = vpop.f32.mrb[160].mxu0 }
0x22bf   : > { %v10805_v20 = vrot.slane %v10698_v15, 7  ;;  %v10700_v36 = vpop.f32.mrb[161].mxu0 }
0x22c0   : > { %v10842_v16 = vadd.f32 %v10838_v19, %v10821_v33  ;;  %v12327_v28 = vpop.f32.mrb[144].mxu1 }
0x22c1   : > { %v10814_v61 = vsel %vm10812_vm3, 0.0, %v10805_v20  ;;  %v10791_v31 = vpop.f32.mrb[145].mxu1  ;;  %v10832_v55 = vrot.slane %v12327_v28, 1 }
0x22c2   : > { %v10822_v13 = vadd.f32 %v10814_v61, %v10700_v36  ;;  %v10704_v29 = vpop.f32.mrb[162].mxu0  ;;  %v10831_v38 = vrot.slane %v10791_v31, 1 }
0x22c3   : > { %v10806_v45 = vrot.slane %v10704_v29, 7  ;;  %v10706_v39 = vpop.f32.mrb[163].mxu0 }
0x22c4   : > { %v10843_v30 = vadd.f32 %v10839_v35, %v10822_v13  ;;  %v10840_v11 = vsel %vm10837_vm4, %v10831_v38, 0.0 }
0x22c5   : > { %v10815_v53 = vsel %vm10812_vm3, 0.0, %v10806_v45 }
0x22c6   : > { %v10710_v6 = vpop.f32.mrb[164].mxu0 }
0x22c7   : > { %v10807_v32 = vrot.slane %v10710_v6, 7  ;;  %v10712_v7 = vpop.f32.mrb[165].mxu0 }
0x22c9   : > { %v10816_v21 = vsel %vm10812_vm3, 0.0, %v10807_v32 }
0x22ca   : > { %v10824_v24 = vadd.f32 %v10816_v21, %v10712_v7 }
0x22d3   : > { %v10499_v43 = vpop.xlane.xlu1 %10498 }
0x22d4   : > { %v10506_v44 = vmul.f32 0.025, %v10499_v43 }
0x22d6   : > { %v15415_v46 = vsub.f32 %v10492_v0, %v10506_v44  ;;  %v10823_v0 = vadd.f32 %v10815_v53, %v10706_v39 }
0x22d7   : > { %v10501_v47 = vpop.xlane.xlu0 %10500 }
0x22d8   : > { %v10507_v48 = vmul.f32 0.025, %v10501_v47  ;;  %v10514_v49 = vmul.f32 %v15415_v46, %v15415_v46  ;;  %v10844_v54 = vadd.f32 %v10840_v11, %v10823_v0  ;;  %v11221_v47 = vld [vmem:[%s15577_s20] ss:$0 sm:$0xff] }
0x22da   : > { %v15419_v50 = vsub.f32 %v10493_v3, %v10507_v48  ;;  %v10518_v52 = vsel %vm607_vm2, %v10514_v49, 0.0  ;;  %v10841_v3 = vsel %vm10837_vm4, %v10832_v55, 0.0 }
0x22db   : > { %10522 = vadd.xlane.f32.xlu1 %v10518_v52  ;;  %v10503_v8 = vpop.xlane.xlu1 %10502  ;;  %v10845_v25 = vadd.f32 %v10841_v3, %v10824_v24  ;;  %v11219_v52 = vld [vmem:[#allocation13] ss:$0 sm:$0xff] }
0x22dc   : > { %v10508_v57 = vmul.f32 0.025, %v10503_v8  ;;  %v10515_v22 = vmul.f32 %v15419_v50, %v15419_v50 }
0x22dd   : > { %v10856_v13 = vadd.f32 %v11221_v47, %v10845_v25 }
0x22de   : > { %v15425_v58 = vsub.f32 %v10494_v37, %v10508_v57  ;;  %v10519_v51 = vsel %vm607_vm2, %v10515_v22, 0.0  ;;  %v10853_v57 = vadd.f32 %v11221_v47, %v10842_v16 }
0x22df   : > { %10524 = vadd.xlane.f32.xlu0 %v10519_v51  ;;  %v10505_v62 = vpop.xlane.xlu0 %10504  ;;  %v11220_v51 = vld [vmem:[#allocation14] ss:$0 sm:$0xff]  ;;  %v10864_v38 = vmul.f32 0.1, %v10856_v13  ;;  %vm10860_vm11 = vcmp.gt.f32.partialorder %v10856_v13, 0.0 }
0x22e0   : > { %v10509_v41 = vmul.f32 0.025, %v10505_v62  ;;  %v10516_v63 = vmul.f32 %v15425_v58, %v15425_v58  ;;  %vm10857_vm5 = vcmp.gt.f32.partialorder %v10853_v57, 0.0 }
0x22e1   : > { %v10868_v0 = vsel %vm10860_vm11, %v10856_v13, %v10864_v38 }
0x22e2   : > { %v15431_v2 = vsub.f32 %v10495_v26, %v10509_v41  ;;  %v10520_v4 = vsel %vm607_vm2, %v10516_v63, 0.0  ;;  %v10861_v63 = vmul.f32 0.1, %v10853_v57 }
0x22e3   : > { %10526 = vadd.xlane.f32.xlu1 %v10520_v4  ;;  %v10854_v4 = vadd.f32 %v11221_v47, %v10843_v30 }
0x22e4   : > { %v10517_v60 = vmul.f32 %v15431_v2, %v15431_v2  ;;  %v10865_v14 = vsel %vm10857_vm5, %v10853_v57, %v10861_v63 }
0x22e5   : > { %v10862_v5 = vmul.f32 0.1, %v10854_v4  ;;  %vm10858_vm7 = vcmp.gt.f32.partialorder %v10854_v4, 0.0 }
0x22e6   : > { %v10521_v1 = vsel %vm607_vm2, %v10517_v60, 0.0 }
0x22e7   : > { %10528 = vadd.xlane.f32.xlu0 %v10521_v1  ;;  %v10866_v16 = vsel %vm10858_vm7, %v10854_v4, %v10862_v5 }
0x2368   : > { %v10523_v27 = vpop.xlane.xlu1 %10522 }
0x2369   : > { %v10530_v10 = vmul.f32 0.025, %v10523_v27 }
0x236b   : > { %v10534_v34 = vadd.f32 1e-05, %v10530_v10 }
0x236c   : > { %v10525_v59 = vpop.xlane.xlu0 %10524 }
0x236d   : > { %13281 = vrsqrt.f32 %v10534_v34  ;;  %v10531_v40 = vmul.f32 0.025, %v10525_v59 }
0x236f   : > { %v10535_v37 = vadd.f32 1e-05, %v10531_v40 }
0x2370   : > { %v10527_v42 = vpop.xlane.xlu1 %10526 }
0x2371   : > { %13283 = vrsqrt.f32 %v10535_v37  ;;  %v10532_v26 = vmul.f32 0.025, %v10527_v42 }
0x2373   : > { %v10536_v43 = vadd.f32 1e-05, %v10532_v26 }
0x2374   : > { %v10529_v44 = vpop.xlane.xlu0 %10528 }
0x2375   : > { %13285 = vrsqrt.f32 %v10536_v43  ;;  %v10533_v48 = vmul.f32 0.025, %v10529_v44 }
0x2377   : > { %v13282_v49 = vpop.eup %13281  ;;  %v10537_v8 = vadd.f32 1e-05, %v10533_v48 }
0x2378   : > { %v10542_v22 = vmul.f32 %v13282_v49, %v15415_v46  ;;  %v10855_v46 = vadd.f32 %v11221_v47, %v10844_v54 }
0x2379   : > { %13287 = vrsqrt.f32 %v10537_v8 }
0x237a   : > { %v10552_v62 = vmul.f32 %v11219_v52, %v10542_v22  ;;  %v10863_v23 = vmul.f32 0.1, %v10855_v46  ;;  %vm10859_vm9 = vcmp.gt.f32.partialorder %v10855_v46, 0.0 }
0x237b   : > { %v13284_v41 = vpop.eup %13283 }
0x237c   : > { %v10543_v60 = vmul.f32 %v13284_v41, %v15419_v50  ;;  %v10562_v1 = vadd.f32 %v11220_v51, %v10552_v62  ;;  %v10867_v30 = vsel %vm10859_vm9, %v10855_v46, %v10863_v23 }
0x237e   : > { %v10553_v12 = vmul.f32 %v11219_v52, %v10543_v60  ;;  %vm10566_vm6 = vcmp.gt.f32.partialorder %v10562_v1, 0.0  ;;  %v10570_v56 = vmul.f32 0.1, %v10562_v1 }
0x237f   : > { %v13286_v9 = vpop.eup %13285 }
0x2380   : > { %v10544_v17 = vmul.f32 %v13286_v9, %v15425_v58  ;;  %v10574_v18 = vsel %vm10566_vm6, %v10562_v1, %v10570_v56  ;;  %v10563_v33 = vadd.f32 %v11220_v51, %v10553_v12 }
0x2381   : > { %v10869_v15 = vmul.f32 %v10865_v14, %v10574_v18 }
0x2382   : > { %v10554_v19 = vmul.f32 %v11219_v52, %v10544_v17  ;;  %vm10567_vm8 = vcmp.gt.f32.partialorder %v10563_v33, 0.0  ;;  %v10571_v50 = vmul.f32 0.1, %v10563_v33 }
0x2383   : > { %v13288_v20 = vpop.eup %13287  ;;  %10873 = vst [vmem:[%s15456_s28] sm:$0xff] %v10869_v15 }
0x2384   : > { %v10545_v36 = vmul.f32 %v13288_v20, %v15431_v2  ;;  %v10575_v61 = vsel %vm10567_vm8, %v10563_v33, %v10571_v50  ;;  %v10564_v58 = vadd.f32 %v11220_v51, %v10554_v19 }
0x2385   : > { %v10870_v29 = vmul.f32 %v10866_v16, %v10575_v61 }
0x2386   : > { %v10555_v35 = vmul.f32 %v11219_v52, %v10545_v36  ;;  %vm10568_vm10 = vcmp.gt.f32.partialorder %v10564_v58, 0.0  ;;  %v10572_v45 = vmul.f32 0.1, %v10564_v58 }
0x2387   : > { %10874 = vst [vmem:[%s15456_s28 + $0x8] sm:$0xff] %v10870_v29 }
0x2388   : > { %v10576_v28 = vsel %vm10568_vm10, %v10564_v58, %v10572_v45  ;;  %v10565_v31 = vadd.f32 %v11220_v51, %v10555_v35 }
0x2389   : > { %v10871_v39 = vmul.f32 %v10867_v30, %v10576_v28 }
0x238a   : > { %vm10569_vm12 = vcmp.gt.f32.partialorder %v10565_v31, 0.0  ;;  %v10573_v2 = vmul.f32 0.1, %v10565_v31 }
0x238b   : > { %10875 = vst [vmem:[%s15456_s28 + $0x10] sm:$0xff] %v10871_v39 }
0x238c   : > { %v10577_v53 = vsel %vm10569_vm12, %v10565_v31, %v10573_v2 }
0x238d   : > { %v10872_v6 = vmul.f32 %v10868_v0, %v10577_v53 }
0x238f   : > { %10876 = vst [vmem:[%s15456_s28 + $0x18] sm:$0xff] %v10872_v6 }
0x2390   : > { %13534 = shalt.err (!%p13531_p9)
}
0x2391   : > { %s13535_s2 = scalar_lea.hbm %s15467_s29, 512  ;;  %s13539_s5 = scalar_lea.hbm %s15580_s6, 1024 }
0x2392   : > { %p13536_p12 = scmp.ne.s32.totalorder %s15467_s29, %s13535_s2  ;;  %p13540_p3 = scmp.lt.u32.totalorder %s15467_s29, %s15580_s6 }
0x2393   : > { %p13541_p4 = scmp.lt.u32.totalorder %s13539_s5, %s13535_s2  ;;  %p13543_p8 = scmp.lt.u32.totalorder %s13535_s2, %s15467_s29 }
0x2394   : > { %p13537_p10 = pnand %p13536_p12, %p15581_p11 }
0x2395   : > { %p13542_p7 = por %p13541_p4, %p13540_p3 }
0x2396   : > { %p13538_p2 = pneg %p13537_p10 }
0x2397   : > { %p13544_p13 = por %p13543_p8, %p13542_p7 }
0x2399   : > { %p13545_p1 = pnand %p13544_p13, %p13538_p2 }
0x239b   : > { %13548 = shalt.err (!%p13545_p1)
}
0x239c   : > { %s13634_s18 = smov 128  }
0x239d   : > { %13004 = dma.vmem_to_hbm [thread:$0]  (%p15581_p11), %s15469_s23, 512, %s15467_s29, %s15474_s22, %s13634_s18, %s13634_s18, %s13631_s16  }
0x239e PF: > { %s15582_s27 = sld [smem:[#allocation25_spill]]  ;;  %s15583_s21 = sld [smem:[#allocation23_spill]] }
0x239f   : > { %s15584_s25 = sld [smem:[#allocation29_spill]] }
0x23a4   : > { %p13051_p0 = scmp.ge.s32.totalorder %s15582_s27, 2  ;;  %s10906_s14 = sand.u32 1, %s15583_s21  }
0x23a5   : > { %p15585_p6 = scmp.ne.s32.totalorder %s15584_s25, 0  ;;  %s10907_s26 = scalar_lea.sflag [#allocation4], %s10906_s14 }
0x23a7   : > { %p13032_p5 = pnand %p13051_p0, %p15585_p6 }
0x23a9   : > { %13586 = dma.done.wait (!%p13032_p5), %s10907_s26, 512  }
0x23aa   : > { %13588 = vsyncadd (!%p13032_p5), %s10907_s26, 4294966784  ;;  %s15586_s21 = sld [smem:[#allocation26_spill]]  ;;  %s15587_s24 = sld [smem:[#allocation24_spill]] }
0x23ab   : > { %s15588_s20 = sld [smem:[#allocation27_spill]]  ;;  %s15589_s18 = smov %s13595_s19 }
0x23b0   : > { %p30_p9 = scmp.ge.s32.totalorder %s15586_s21, 4   ;;  %s15590_s19 = smov %s15587_s24 }
0x23b2   :  { %32 = sbr.rel (!%p30_p9) target bundleno = 14 (0xe), region = 148 }
0x23b9   :  { %10912 = vsyncpa [#allocation3], 1 }
0x23ba   :  { %10914 = vsyncpa [#allocation3 + $0x1], 1 }
0x23bb   :  { %10915 = vsyncpa [#allocation6], 1 }
0x23bc   :  { %10916 = vsyncpa [#allocation9], 1 }
0x23bd   :  { %10917 = vsyncpa [#allocation12], 1 }
0x23be   :  { %10918 = vsyncpa [#allocation15], 1 }
0x23bf   :  { %10919 = vsyncpa [#allocation4], 1 }
0x23c0   :  { %10921 = vsyncpa [#allocation4 + $0x1], 1 }

</bundles_post_ra>
